<compile_context>
chip_gen: v7x
topology: tpu7x:2x2x1
jax: 0.10.0
libtpu: 0.0.40
codegen_flags: <defaults>
</compile_context>

<pallas_src>
import numpy as np
import jax
import jax.numpy as jnp
from jax import lax
from jax.experimental import pallas as pl
from jax.experimental.pallas import tpu as pltpu


def _tf_same_pads(H, W, K, s):
    """TF-'SAME' padding amounts (extra pixel goes to bottom/right)."""
    Ho = -(-H // s)
    Wo = -(-W // s)
    pad_h = (Ho - 1) * s + K - H
    pad_w = (Wo - 1) * s + K - W
    assert pad_h >= 0 and pad_w >= 0, "negative TF-same padding not supported"
    pt = pad_h // 2
    pl_ = pad_w // 2
    # TODO(synk): ConvTF builds the F.pad list in (H, W) order but F.pad consumes
    # it as (W, H); for the square/symmetric shapes exercised here (and in
    # BlazePalm) the two coincide, so standard TF-SAME padding is used.
    return Ho, Wo, pt, pad_h - pt, pl_, pad_w - pl_


def _round_up(v, m):
    return (v + m - 1) // m * m


def _vmem_bytes(shape, itemsize=4):
    """Approx VMEM footprint of one buffer after (8, 128) tiling of minor dims."""
    shape = list(shape)
    shape[-1] = _round_up(shape[-1], 128)
    if len(shape) >= 2:
        shape[-2] = _round_up(shape[-2], 8)
    n = itemsize
    for d in shape:
        n *= d
    return n


def _pick_tb(B, per_batch_bytes, budget_bytes, cap=8):
    """Largest divisor of B that (a) keeps double-buffered blocks inside the
    VMEM budget and (b) keeps the grid length >= 2 when B >= 2 so both v7x
    TensorCores receive work under dimension_semantics=('parallel',)."""
    tb = 1
    for cand in range(1, min(B, cap) + 1):
        if B % cand:
            continue
        if 2 * cand * per_batch_bytes > budget_bytes:
            continue
        if B > 1 and B // cand < 2:
            continue
        tb = cand
    return tb


def dual_blaze_block(x, dw1_w, dw1_b, pw1_w, pw1_b, dw2_w, dw2_b, pw2_w, pw2_b,
                     *, kernel_size=3, stride=1):
    """DualBlazeBlock forward (NCHW, matches the PyTorch module).

    x:     (B, Cin, H, W) float32
    dw1_w: (Cin, K, K)    stage-1 depthwise weights (PyTorch (Cin,1,K,K))
    dw1_b: (Cin,)
    pw1_w: (Cmid, Cin)    stage-1 1x1 weights (PyTorch (Cmid,Cin,1,1))
    pw1_b: (Cmid,)
    dw2_w: (Cmid, K, K)   stage-2 depthwise weights
    dw2_b: (Cmid,)
    pw2_w: (Cout, Cmid)   stage-2 1x1 weights
    pw2_b: (Cout,)
    returns (B, Cout, ceil(H/stride), ceil(W/stride))
    """
    B, Cin, H, W = x.shape
    Cmid = pw1_w.shape[0]
    Cout = pw2_w.shape[0]
    K, s = kernel_size, stride
    channel_pad = Cout - Cin
    assert channel_pad >= 0
    if s > 1:
        assert H % s == 0 and W % s == 0, "residual max-pool shape mismatch"

    Ho, Wo, pt1, _, pl1, _ = _tf_same_pads(H, W, K, s)
    _, _, pt2, pb2, pl2, pr2 = _tf_same_pads(Ho, Wo, K, 1)
    Hp2, Wp2 = Ho + pt2 + pb2, Wo + pl2 + pr2

    # Stage 1 is evaluated on the expanded (Hp2, Wp2) output grid; the border
    # rows/cols become the exact TF-'SAME' zeros of the stage-2 input via an
    # in-kernel mask, so no padded scratch is needed.  The wrapper therefore
    # pads the input by an extra (pt2*s, pl2*s) on top/left.
    PT, PL = pt1 + pt2 * s, pl1 + pl2 * s
    Ph = max(max(kh // s for kh in range(K)) + Hp2,
             max((PT + d) // s for d in range(s)) + Ho)
    Pw = max(max(kw // s for kw in range(K)) + Wp2,
             max((PL + d) // s for d in range(s)) + Wo)
    n_phase = s * s

    pad_b = s * Ph - H - PT
    pad_r = s * Pw - W - PL
    assert pad_b >= 0 and pad_r >= 0
    xp = jnp.pad(x, ((0, 0), (0, 0), (PT, pad_b), (PL, pad_r)))
    if s > 1:
        # Stride phases stacked along the channel axis so every strided tap of
        # the depthwise conv / max-pool is a unit-stride static slice in-kernel.
        # TODO(synk): verify in HLO that this pad+gather fuses into one pass
        # over x; stride==1 skips it entirely.
        phx = jnp.concatenate(
            [xp[:, :, a::s, d::s] for a in range(s) for d in range(s)], axis=1)
    else:
        phx = xp                                              # (B, Cin, Ph, Pw)

    # Host-side parameter massaging, all flattened to 1-D so the SMEM copies
    # avoid the [ceil(R/8)*8, ceil(C/128)*128] 2-D SMEM padding:
    #   dw*_flat[(kh*K+kw)*C + c] = dw*_w[c, kh, kw]
    #   pw1_flat[c*Cmid + m]      = pw1_w[m, c]   (pw2 analogous)
    #   depthwise biases folded into the following 1x1 biases (exact).
    dw1_flat = jnp.transpose(dw1_w.reshape(Cin, K * K), (1, 0)).reshape(-1)
    dw2_flat = jnp.transpose(dw2_w.reshape(Cmid, K * K), (1, 0)).reshape(-1)
    pw1_flat = jnp.transpose(pw1_w, (1, 0)).reshape(-1)
    pw2_flat = jnp.transpose(pw2_w, (1, 0)).reshape(-1)
    b1 = (pw1_w @ dw1_b + pw1_b).astype(jnp.float32)          # (Cmid,)
    b2 = (pw2_w @ dw2_b + pw2_b).astype(jnp.float32)          # (Cout,)

    # Batch blocking: amortize the ~0.35us/step grid overhead while keeping
    # the grid length >= 2 (v7x has two TensorCores) and a v7x-safe VMEM use.
    per_batch = (_vmem_bytes((n_phase * Cin, Ph, Pw))
                 + _vmem_bytes((Cout, Ho, Wo)))
    TB = _pick_tb(B, per_batch, budget_bytes=16 * 2**20)
    grid = (B // TB,)

    def kernel(phx_ref, dw1_ref, pw1_ref, b1_ref, dw2_ref, pw2_ref, b2_ref,
               out_ref):
        # Interior mask for the TF-'SAME' zero border of the stage-2 input.
        ri = lax.broadcasted_iota(jnp.int32, (Hp2, Wp2), 0)
        ci = lax.broadcasted_iota(jnp.int32, (Hp2, Wp2), 1)
        interior = ((ri >= pt2) & (ri < pt2 + Ho)
                    & (ci >= pl2) & (ci < pl2 + Wo))

        def make_win(b, c):
            # Column-window cache: each distinct (phase, lane-offset, width)
            # load happens once per channel (K lane shifts per stage instead
            # of K*K); per-tap row windows are cheap sublane slices of it.
            cache = {}

            def win(r_abs, c_abs, h, w):
                p = (r_abs % s) * s + (c_abs % s)
                r0, c0 = r_abs // s, c_abs // s
                key = (p, c0, w)
                if key not in cache:
                    cache[key] = phx_ref[b, p * Cin + c, :, c0:c0 + w]
                return cache[key][r0:r0 + h, :]

            return win

        for b in range(TB):
            # ---- stage 1: depthwise KxK (stride s) fused with the 1x1 conv,
            # one input channel at a time.  Weights come from SMEM as scalars
            # (sreg splat), computed on the expanded (Hp2, Wp2) grid.
            mid = [None] * Cmid
            for c in range(Cin):
                win = make_win(b, c)
                acc = None
                for kh in range(K):
                    for kw in range(K):
                        wgt = dw1_ref[(kh * K + kw) * Cin + c]
                        t = wgt * win(kh, kw, Hp2, Wp2)
                        acc = t if acc is None else acc + t
                for m in range(Cmid):
                    t = pw1_ref[c * Cmid + m] * acc
                    mid[m] = t if mid[m] is None else mid[m] + t

            # folded bias + ReLU; border masked to the exact TF-'SAME' zeros.
            for m in range(Cmid):
                mid[m] = jnp.where(interior,
                                   jnp.maximum(mid[m] + b1_ref[m], 0.0), 0.0)

            # ---- stage 2: depthwise KxK (stride 1) fused with the 1x1 conv,
            # one mid channel at a time; windows are static slices of the
            # already-padded register planes (no scratch round trip).
            y = [None] * Cout
            for m in range(Cmid):
                colw = [mid[m][:, kw:kw + Wo] for kw in range(K)]  # hoisted lane shifts
                acc = None
                for kh in range(K):
                    for kw in range(K):
                        wgt = dw2_ref[(kh * K + kw) * Cmid + m]
                        t = wgt * colw[kw][kh:kh + Ho, :]
                        acc = t if acc is None else acc + t
                for o in range(Cout):
                    t = pw2_ref[m * Cout + o] * acc
                    y[o] = t if y[o] is None else y[o] + t

            # ---- residual branch (max-pool for stride>1, identity otherwise)
            # + folded bias; channel padding folded into the store.
            # TODO(synk): at production BlazePalm resolutions (Wo >= 128) this
            # store is already lane-dense; for tiny Wo a (Ho,Wo)->(Ho*Wo)
            # sublane->lane relayout would widen it at the cost of one
            # in-kernel relayout per channel.
            for o in range(Cout):
                val = y[o] + b2_ref[o]
                if o < Cin:
                    rwin = make_win(b, o)
                    h = None
                    for di in range(s):
                        for dj in range(s):
                            v = rwin(PT + di, PL + dj, Ho, Wo)
                            h = v if h is None else jnp.maximum(h, v)
                    val = val + h
                out_ref[b, o] = val.astype(out_ref.dtype)

    # Explicit, generation-aware VMEM budget (v7x has 64 MiB physical VMEM;
    # v5e/v6e have 128 MiB).
    est = 2 * (_vmem_bytes((TB, n_phase * Cin, Ph, Pw))
               + _vmem_bytes((TB, Cout, Ho, Wo)))
    try:
        phys = int(pltpu.get_tpu_info().vmem_capacity_bytes)
    except Exception:
        phys = 64 * 2**20
    vmem_limit = int(min(max(4 * est, 16 * 2**20), (3 * phys) // 4))

    def smem():
        return pl.BlockSpec(memory_space=pltpu.MemorySpace.SMEM)

    return pl.pallas_call(
        kernel,
        out_shape=jax.ShapeDtypeStruct((B, Cout, Ho, Wo), x.dtype),
        grid=grid,
        in_specs=[
            pl.BlockSpec((TB, n_phase * Cin, Ph, Pw), lambda i: (i, 0, 0, 0)),
            smem(), smem(), smem(), smem(), smem(), smem(),
        ],
        out_specs=pl.BlockSpec((TB, Cout, Ho, Wo), lambda i: (i, 0, 0, 0)),
        compiler_params=pltpu.CompilerParams(
            dimension_semantics=("parallel",),
            vmem_limit_bytes=vmem_limit),
    )(phx, dw1_flat, pw1_flat, b1, dw2_flat, pw2_flat, b2)


def dual_blaze_block_reference(x, dw1_w, dw1_b, pw1_w, pw1_b,
                               dw2_w, dw2_b, pw2_w, pw2_b,
                               *, kernel_size=3, stride=1):
    """Pure-JAX reference (lax convolutions, NCHW) for correctness checking."""
    B, Cin, H, W = x.shape
    Cmid = pw1_w.shape[0]
    Cout = pw2_w.shape[0]
    K, s = kernel_size, stride
    Ho, Wo, pt1, pb1, pl1, pr1 = _tf_same_pads(H, W, K, s)
    _, _, pt2, pb2, pl2, pr2 = _tf_same_pads(Ho, Wo, K, 1)
    dn = ("NCHW", "OIHW", "NCHW")

    y = lax.conv_general_dilated(
        x, dw1_w.reshape(Cin, 1, K, K), (s, s), ((pt1, pb1), (pl1, pr1)),
        dimension_numbers=dn, feature_group_count=Cin,
        precision=lax.Precision.HIGHEST)
    y = y + dw1_b[None, :, None, None]
    y = lax.conv_general_dilated(
        y, pw1_w.reshape(Cmid, Cin, 1, 1), (1, 1), "VALID",
        dimension_numbers=dn, precision=lax.Precision.HIGHEST)
    y = y + pw1_b[None, :, None, None]
    y = jnp.maximum(y, 0.0)
    y = lax.conv_general_dilated(
        y, dw2_w.reshape(Cmid, 1, K, K), (1, 1), ((pt2, pb2), (pl2, pr2)),
        dimension_numbers=dn, feature_group_count=Cmid,
        precision=lax.Precision.HIGHEST)
    y = y + dw2_b[None, :, None, None]
    y = lax.conv_general_dilated(
        y, pw2_w.reshape(Cout, Cmid, 1, 1), (1, 1), "VALID",
        dimension_numbers=dn, precision=lax.Precision.HIGHEST)
    y = y + pw2_b[None, :, None, None]

    if s > 1:
        h = lax.reduce_window(x, -jnp.inf, lax.max,
                              (1, 1, s, s), (1, 1, s, s), "VALID")
    else:
        h = x
    if Cout > Cin:
        h = jnp.pad(h, ((0, 0), (0, Cout - Cin), (0, 0), (0, 0)))
    return y + h


if __name__ == "__main__":
    key = jax.random.PRNGKey(0)

    configs = [
        dict(B=2, Cin=4, Cmid=16, Cout=8, H=16, W=16, K=3, stride=2),  # pool + pad
        dict(B=2, Cin=8, Cmid=16, Cout=8, H=8, W=8, K=3, stride=1),    # identity res
    ]
    for cfg in configs:
        B, Cin, Cmid, Cout, H, W, K, s = (cfg[k] for k in
                                          ("B", "Cin", "Cmid", "Cout",
                                           "H", "W", "K", "stride"))
        keys = jax.random.split(key, 10)
        key = keys[-1]
        x = jax.random.normal(keys[0], (B, Cin, H, W), jnp.float32)   # NCHW
        dw1_w = 0.2 * jax.random.normal(keys[1], (Cin, K, K), jnp.float32)
        dw1_b = 0.2 * jax.random.normal(keys[2], (Cin,), jnp.float32)
        pw1_w = 0.2 * jax.random.normal(keys[3], (Cmid, Cin), jnp.float32)
        pw1_b = 0.2 * jax.random.normal(keys[4], (Cmid,), jnp.float32)
        dw2_w = 0.2 * jax.random.normal(keys[5], (Cmid, K, K), jnp.float32)
        dw2_b = 0.2 * jax.random.normal(keys[6], (Cmid,), jnp.float32)
        pw2_w = 0.2 * jax.random.normal(keys[7], (Cout, Cmid), jnp.float32)
        pw2_b = 0.2 * jax.random.normal(keys[8], (Cout,), jnp.float32)

        out = dual_blaze_block(x, dw1_w, dw1_b, pw1_w, pw1_b,
                               dw2_w, dw2_b, pw2_w, pw2_b,
                               kernel_size=K, stride=s)
        out = jax.block_until_ready(out)
        ref = dual_blaze_block_reference(x, dw1_w, dw1_b, pw1_w, pw1_b,
                                         dw2_w, dw2_b, pw2_w, pw2_b,
                                         kernel_size=K, stride=s)
        np.testing.assert_allclose(np.asarray(out), np.asarray(ref),
                                   atol=2e-4, rtol=2e-4)

    print("KERNEL_OK")
</pallas_src>

<mosaic_0001>
module attributes {stable_mosaic.version = 11 : i64} {
  func.func @kernel(%arg0: i32, %arg1: memref<1x16x11x11xf32, #tpu.memory_space<vmem>>, %arg2: memref<36xf32, #tpu.memory_space<smem>>, %arg3: memref<64xf32, #tpu.memory_space<smem>>, %arg4: memref<16xf32, #tpu.memory_space<smem>>, %arg5: memref<144xf32, #tpu.memory_space<smem>>, %arg6: memref<128xf32, #tpu.memory_space<smem>>, %arg7: memref<8xf32, #tpu.memory_space<smem>>, %arg8: memref<1x8x8x8xf32, #tpu.memory_space<vmem>>) attributes {dimension_semantics = [#tpu.dimension_semantics<parallel>], iteration_bounds = array<i64: 2>, scalar_prefetch = 0 : i64, scratch_operands = 0 : i64, tpu.core_type = #tpu.core_type<tc>, window_params = [{transform_indices = @transform_0, window_bounds = array<i64: 1, 16, 11, 11>}, {transform_indices = @transform_1, window_bounds = array<i64: 36>}, {transform_indices = @transform_2, window_bounds = array<i64: 64>}, {transform_indices = @transform_3, window_bounds = array<i64: 16>}, {transform_indices = @transform_4, window_bounds = array<i64: 144>}, {transform_indices = @transform_5, window_bounds = array<i64: 128>}, {transform_indices = @transform_6, window_bounds = array<i64: 8>}, {transform_indices = @transform_7, window_bounds = array<i64: 1, 8, 8, 8>}]} {
    %0 = tpu.iota {dimensions = array<i32: 0>} : vector<10x10xi32>
    %1 = tpu.iota {dimensions = array<i32: 1>} : vector<10x10xi32>
    %c1_i32 = arith.constant 1 : i32
    %2 = vector.broadcast %c1_i32 : i32 to vector<10x10xi32>
    %3 = arith.cmpi sge, %0, %2 : vector<10x10xi32>
    %c9_i32 = arith.constant 9 : i32
    %4 = vector.broadcast %c9_i32 : i32 to vector<10x10xi32>
    %5 = arith.cmpi slt, %0, %4 : vector<10x10xi32>
    %6 = arith.andi %3, %5 : vector<10x10xi1>
    %c1_i32_0 = arith.constant 1 : i32
    %7 = vector.broadcast %c1_i32_0 : i32 to vector<10x10xi32>
    %8 = arith.cmpi sge, %1, %7 : vector<10x10xi32>
    %9 = arith.andi %6, %8 : vector<10x10xi1>
    %c9_i32_1 = arith.constant 9 : i32
    %10 = vector.broadcast %c9_i32_1 : i32 to vector<10x10xi32>
    %11 = arith.cmpi slt, %1, %10 : vector<10x10xi32>
    %12 = arith.andi %9, %11 : vector<10x10xi1>
    %c0 = arith.constant 0 : index
    %13 = memref.load %arg2[%c0] : memref<36xf32, #tpu.memory_space<smem>>
    %c0_2 = arith.constant 0 : index
    %c0_3 = arith.constant 0 : index
    %c0_4 = arith.constant 0 : index
    %c0_5 = arith.constant 0 : index
    %14 = vector.load %arg1[%c0_2, %c0_3, %c0_4, %c0_5] : memref<1x16x11x11xf32, #tpu.memory_space<vmem>>, vector<1x1x11x10xf32>
    %15 = vector.shape_cast %14 : vector<1x1x11x10xf32> to vector<11x10xf32>
    %16 = vector.extract_strided_slice %15 {offsets = [0, 0], sizes = [10, 10], strides = [1, 1]} : vector<11x10xf32> to vector<10x10xf32>
    %17 = vector.broadcast %13 : f32 to vector<10x10xf32>
    %18 = arith.mulf %17, %16 : vector<10x10xf32>
    %c4 = arith.constant 4 : index
    %19 = memref.load %arg2[%c4] : memref<36xf32, #tpu.memory_space<smem>>
    %c0_6 = arith.constant 0 : index
    %c4_7 = arith.constant 4 : index
    %c0_8 = arith.constant 0 : index
    %c0_9 = arith.constant 0 : index
    %20 = vector.load %arg1[%c0_6, %c4_7, %c0_8, %c0_9] : memref<1x16x11x11xf32, #tpu.memory_space<vmem>>, vector<1x1x11x10xf32>
    %21 = vector.shape_cast %20 : vector<1x1x11x10xf32> to vector<11x10xf32>
    %22 = vector.extract_strided_slice %21 {offsets = [0, 0], sizes = [10, 10], strides = [1, 1]} : vector<11x10xf32> to vector<10x10xf32>
    %23 = vector.broadcast %19 : f32 to vector<10x10xf32>
    %24 = arith.mulf %23, %22 : vector<10x10xf32>
    %25 = arith.addf %18, %24 : vector<10x10xf32>
    %c8 = arith.constant 8 : index
    %26 = memref.load %arg2[%c8] : memref<36xf32, #tpu.memory_space<smem>>
    %c0_10 = arith.constant 0 : index
    %c0_11 = arith.constant 0 : index
    %c0_12 = arith.constant 0 : index
    %c1 = arith.constant 1 : index
    %27 = vector.load %arg1[%c0_10, %c0_11, %c0_12, %c1] : memref<1x16x11x11xf32, #tpu.memory_space<vmem>>, vector<1x1x11x10xf32>
    %28 = vector.shape_cast %27 : vector<1x1x11x10xf32> to vector<11x10xf32>
    %29 = vector.extract_strided_slice %28 {offsets = [0, 0], sizes = [10, 10], strides = [1, 1]} : vector<11x10xf32> to vector<10x10xf32>
    %30 = vector.broadcast %26 : f32 to vector<10x10xf32>
    %31 = arith.mulf %30, %29 : vector<10x10xf32>
    %32 = arith.addf %25, %31 : vector<10x10xf32>
    %c12 = arith.constant 12 : index
    %33 = memref.load %arg2[%c12] : memref<36xf32, #tpu.memory_space<smem>>
    %c0_13 = arith.constant 0 : index
    %c8_14 = arith.constant 8 : index
    %c0_15 = arith.constant 0 : index
    %c0_16 = arith.constant 0 : index
    %34 = vector.load %arg1[%c0_13, %c8_14, %c0_15, %c0_16] : memref<1x16x11x11xf32, #tpu.memory_space<vmem>>, vector<1x1x11x10xf32>
    %35 = vector.shape_cast %34 : vector<1x1x11x10xf32> to vector<11x10xf32>
    %36 = vector.extract_strided_slice %35 {offsets = [0, 0], sizes = [10, 10], strides = [1, 1]} : vector<11x10xf32> to vector<10x10xf32>
    %37 = vector.broadcast %33 : f32 to vector<10x10xf32>
    %38 = arith.mulf %37, %36 : vector<10x10xf32>
    %39 = arith.addf %32, %38 : vector<10x10xf32>
    %c16 = arith.constant 16 : index
    %40 = memref.load %arg2[%c16] : memref<36xf32, #tpu.memory_space<smem>>
    %c0_17 = arith.constant 0 : index
    %c12_18 = arith.constant 12 : index
    %c0_19 = arith.constant 0 : index
    %c0_20 = arith.constant 0 : index
    %41 = vector.load %arg1[%c0_17, %c12_18, %c0_19, %c0_20] : memref<1x16x11x11xf32, #tpu.memory_space<vmem>>, vector<1x1x11x10xf32>
    %42 = vector.shape_cast %41 : vector<1x1x11x10xf32> to vector<11x10xf32>
    %43 = vector.extract_strided_slice %42 {offsets = [0, 0], sizes = [10, 10], strides = [1, 1]} : vector<11x10xf32> to vector<10x10xf32>
    %44 = vector.broadcast %40 : f32 to vector<10x10xf32>
    %45 = arith.mulf %44, %43 : vector<10x10xf32>
    %46 = arith.addf %39, %45 : vector<10x10xf32>
    %c20 = arith.constant 20 : index
    %47 = memref.load %arg2[%c20] : memref<36xf32, #tpu.memory_space<smem>>
    %c0_21 = arith.constant 0 : index
    %c8_22 = arith.constant 8 : index
    %c0_23 = arith.constant 0 : index
    %c1_24 = arith.constant 1 : index
    %48 = vector.load %arg1[%c0_21, %c8_22, %c0_23, %c1_24] : memref<1x16x11x11xf32, #tpu.memory_space<vmem>>, vector<1x1x11x10xf32>
    %49 = vector.shape_cast %48 : vector<1x1x11x10xf32> to vector<11x10xf32>
    %50 = vector.extract_strided_slice %49 {offsets = [0, 0], sizes = [10, 10], strides = [1, 1]} : vector<11x10xf32> to vector<10x10xf32>
    %51 = vector.broadcast %47 : f32 to vector<10x10xf32>
    %52 = arith.mulf %51, %50 : vector<10x10xf32>
    %53 = arith.addf %46, %52 : vector<10x10xf32>
    %c24 = arith.constant 24 : index
    %54 = memref.load %arg2[%c24] : memref<36xf32, #tpu.memory_space<smem>>
    %55 = vector.extract_strided_slice %15 {offsets = [1, 0], sizes = [10, 10], strides = [1, 1]} : vector<11x10xf32> to vector<10x10xf32>
    %56 = vector.broadcast %54 : f32 to vector<10x10xf32>
    %57 = arith.mulf %56, %55 : vector<10x10xf32>
    %58 = arith.addf %53, %57 : vector<10x10xf32>
    %c28 = arith.constant 28 : index
    %59 = memref.load %arg2[%c28] : memref<36xf32, #tpu.memory_space<smem>>
    %60 = vector.extract_strided_slice %21 {offsets = [1, 0], sizes = [10, 10], strides = [1, 1]} : vector<11x10xf32> to vector<10x10xf32>
    %61 = vector.broadcast %59 : f32 to vector<10x10xf32>
    %62 = arith.mulf %61, %60 : vector<10x10xf32>
    %63 = arith.addf %58, %62 : vector<10x10xf32>
    %c32 = arith.constant 32 : index
    %64 = memref.load %arg2[%c32] : memref<36xf32, #tpu.memory_space<smem>>
    %65 = vector.extract_strided_slice %28 {offsets = [1, 0], sizes = [10, 10], strides = [1, 1]} : vector<11x10xf32> to vector<10x10xf32>
    %66 = vector.broadcast %64 : f32 to vector<10x10xf32>
    %67 = arith.mulf %66, %65 : vector<10x10xf32>
    %68 = arith.addf %63, %67 : vector<10x10xf32>
    %c0_25 = arith.constant 0 : index
    %69 = memref.load %arg3[%c0_25] : memref<64xf32, #tpu.memory_space<smem>>
    %70 = vector.broadcast %69 : f32 to vector<10x10xf32>
    %71 = arith.mulf %70, %68 : vector<10x10xf32>
    %c1_26 = arith.constant 1 : index
    %72 = memref.load %arg3[%c1_26] : memref<64xf32, #tpu.memory_space<smem>>
    %73 = vector.broadcast %72 : f32 to vector<10x10xf32>
    %74 = arith.mulf %73, %68 : vector<10x10xf32>
    %c2 = arith.constant 2 : index
    %75 = memref.load %arg3[%c2] : memref<64xf32, #tpu.memory_space<smem>>
    %76 = vector.broadcast %75 : f32 to vector<10x10xf32>
    %77 = arith.mulf %76, %68 : vector<10x10xf32>
    %c3 = arith.constant 3 : index
    %78 = memref.load %arg3[%c3] : memref<64xf32, #tpu.memory_space<smem>>
    %79 = vector.broadcast %78 : f32 to vector<10x10xf32>
    %80 = arith.mulf %79, %68 : vector<10x10xf32>
    %c4_27 = arith.constant 4 : index
    %81 = memref.load %arg3[%c4_27] : memref<64xf32, #tpu.memory_space<smem>>
    %82 = vector.broadcast %81 : f32 to vector<10x10xf32>
    %83 = arith.mulf %82, %68 : vector<10x10xf32>
    %c5 = arith.constant 5 : index
    %84 = memref.load %arg3[%c5] : memref<64xf32, #tpu.memory_space<smem>>
    %85 = vector.broadcast %84 : f32 to vector<10x10xf32>
    %86 = arith.mulf %85, %68 : vector<10x10xf32>
    %c6 = arith.constant 6 : index
    %87 = memref.load %arg3[%c6] : memref<64xf32, #tpu.memory_space<smem>>
    %88 = vector.broadcast %87 : f32 to vector<10x10xf32>
    %89 = arith.mulf %88, %68 : vector<10x10xf32>
    %c7 = arith.constant 7 : index
    %90 = memref.load %arg3[%c7] : memref<64xf32, #tpu.memory_space<smem>>
    %91 = vector.broadcast %90 : f32 to vector<10x10xf32>
    %92 = arith.mulf %91, %68 : vector<10x10xf32>
    %c8_28 = arith.constant 8 : index
    %93 = memref.load %arg3[%c8_28] : memref<64xf32, #tpu.memory_space<smem>>
    %94 = vector.broadcast %93 : f32 to vector<10x10xf32>
    %95 = arith.mulf %94, %68 : vector<10x10xf32>
    %c9 = arith.constant 9 : index
    %96 = memref.load %arg3[%c9] : memref<64xf32, #tpu.memory_space<smem>>
    %97 = vector.broadcast %96 : f32 to vector<10x10xf32>
    %98 = arith.mulf %97, %68 : vector<10x10xf32>
    %c10 = arith.constant 10 : index
    %99 = memref.load %arg3[%c10] : memref<64xf32, #tpu.memory_space<smem>>
    %100 = vector.broadcast %99 : f32 to vector<10x10xf32>
    %101 = arith.mulf %100, %68 : vector<10x10xf32>
    %c11 = arith.constant 11 : index
    %102 = memref.load %arg3[%c11] : memref<64xf32, #tpu.memory_space<smem>>
    %103 = vector.broadcast %102 : f32 to vector<10x10xf32>
    %104 = arith.mulf %103, %68 : vector<10x10xf32>
    %c12_29 = arith.constant 12 : index
    %105 = memref.load %arg3[%c12_29] : memref<64xf32, #tpu.memory_space<smem>>
    %106 = vector.broadcast %105 : f32 to vector<10x10xf32>
    %107 = arith.mulf %106, %68 : vector<10x10xf32>
    %c13 = arith.constant 13 : index
    %108 = memref.load %arg3[%c13] : memref<64xf32, #tpu.memory_space<smem>>
    %109 = vector.broadcast %108 : f32 to vector<10x10xf32>
    %110 = arith.mulf %109, %68 : vector<10x10xf32>
    %c14 = arith.constant 14 : index
    %111 = memref.load %arg3[%c14] : memref<64xf32, #tpu.memory_space<smem>>
    %112 = vector.broadcast %111 : f32 to vector<10x10xf32>
    %113 = arith.mulf %112, %68 : vector<10x10xf32>
    %c15 = arith.constant 15 : index
    %114 = memref.load %arg3[%c15] : memref<64xf32, #tpu.memory_space<smem>>
    %115 = vector.broadcast %114 : f32 to vector<10x10xf32>
    %116 = arith.mulf %115, %68 : vector<10x10xf32>
    %c1_30 = arith.constant 1 : index
    %117 = memref.load %arg2[%c1_30] : memref<36xf32, #tpu.memory_space<smem>>
    %c0_31 = arith.constant 0 : index
    %c1_32 = arith.constant 1 : index
    %c0_33 = arith.constant 0 : index
    %c0_34 = arith.constant 0 : index
    %118 = vector.load %arg1[%c0_31, %c1_32, %c0_33, %c0_34] : memref<1x16x11x11xf32, #tpu.memory_space<vmem>>, vector<1x1x11x10xf32>
    %119 = vector.shape_cast %118 : vector<1x1x11x10xf32> to vector<11x10xf32>
    %120 = vector.extract_strided_slice %119 {offsets = [0, 0], sizes = [10, 10], strides = [1, 1]} : vector<11x10xf32> to vector<10x10xf32>
    %121 = vector.broadcast %117 : f32 to vector<10x10xf32>
    %122 = arith.mulf %121, %120 : vector<10x10xf32>
    %c5_35 = arith.constant 5 : index
    %123 = memref.load %arg2[%c5_35] : memref<36xf32, #tpu.memory_space<smem>>
    %c0_36 = arith.constant 0 : index
    %c5_37 = arith.constant 5 : index
    %c0_38 = arith.constant 0 : index
    %c0_39 = arith.constant 0 : index
    %124 = vector.load %arg1[%c0_36, %c5_37, %c0_38, %c0_39] : memref<1x16x11x11xf32, #tpu.memory_space<vmem>>, vector<1x1x11x10xf32>
    %125 = vector.shape_cast %124 : vector<1x1x11x10xf32> to vector<11x10xf32>
    %126 = vector.extract_strided_slice %125 {offsets = [0, 0], sizes = [10, 10], strides = [1, 1]} : vector<11x10xf32> to vector<10x10xf32>
    %127 = vector.broadcast %123 : f32 to vector<10x10xf32>
    %128 = arith.mulf %127, %126 : vector<10x10xf32>
    %129 = arith.addf %122, %128 : vector<10x10xf32>
    %c9_40 = arith.constant 9 : index
    %130 = memref.load %arg2[%c9_40] : memref<36xf32, #tpu.memory_space<smem>>
    %c0_41 = arith.constant 0 : index
    %c1_42 = arith.constant 1 : index
    %c0_43 = arith.constant 0 : index
    %c1_44 = arith.constant 1 : index
    %131 = vector.load %arg1[%c0_41, %c1_42, %c0_43, %c1_44] : memref<1x16x11x11xf32, #tpu.memory_space<vmem>>, vector<1x1x11x10xf32>
    %132 = vector.shape_cast %131 : vector<1x1x11x10xf32> to vector<11x10xf32>
    %133 = vector.extract_strided_slice %132 {offsets = [0, 0], sizes = [10, 10], strides = [1, 1]} : vector<11x10xf32> to vector<10x10xf32>
    %134 = vector.broadcast %130 : f32 to vector<10x10xf32>
    %135 = arith.mulf %134, %133 : vector<10x10xf32>
    %136 = arith.addf %129, %135 : vector<10x10xf32>
    %c13_45 = arith.constant 13 : index
    %137 = memref.load %arg2[%c13_45] : memref<36xf32, #tpu.memory_space<smem>>
    %c0_46 = arith.constant 0 : index
    %c9_47 = arith.constant 9 : index
    %c0_48 = arith.constant 0 : index
    %c0_49 = arith.constant 0 : index
    %138 = vector.load %arg1[%c0_46, %c9_47, %c0_48, %c0_49] : memref<1x16x11x11xf32, #tpu.memory_space<vmem>>, vector<1x1x11x10xf32>
    %139 = vector.shape_cast %138 : vector<1x1x11x10xf32> to vector<11x10xf32>
    %140 = vector.extract_strided_slice %139 {offsets = [0, 0], sizes = [10, 10], strides = [1, 1]} : vector<11x10xf32> to vector<10x10xf32>
    %141 = vector.broadcast %137 : f32 to vector<10x10xf32>
    %142 = arith.mulf %141, %140 : vector<10x10xf32>
    %143 = arith.addf %136, %142 : vector<10x10xf32>
    %c17 = arith.constant 17 : index
    %144 = memref.load %arg2[%c17] : memref<36xf32, #tpu.memory_space<smem>>
    %c0_50 = arith.constant 0 : index
    %c13_51 = arith.constant 13 : index
    %c0_52 = arith.constant 0 : index
    %c0_53 = arith.constant 0 : index
    %145 = vector.load %arg1[%c0_50, %c13_51, %c0_52, %c0_53] : memref<1x16x11x11xf32, #tpu.memory_space<vmem>>, vector<1x1x11x10xf32>
    %146 = vector.shape_cast %145 : vector<1x1x11x10xf32> to vector<11x10xf32>
    %147 = vector.extract_strided_slice %146 {offsets = [0, 0], sizes = [10, 10], strides = [1, 1]} : vector<11x10xf32> to vector<10x10xf32>
    %148 = vector.broadcast %144 : f32 to vector<10x10xf32>
    %149 = arith.mulf %148, %147 : vector<10x10xf32>
    %150 = arith.addf %143, %149 : vector<10x10xf32>
    %c21 = arith.constant 21 : index
    %151 = memref.load %arg2[%c21] : memref<36xf32, #tpu.memory_space<smem>>
    %c0_54 = arith.constant 0 : index
    %c9_55 = arith.constant 9 : index
    %c0_56 = arith.constant 0 : index
    %c1_57 = arith.constant 1 : index
    %152 = vector.load %arg1[%c0_54, %c9_55, %c0_56, %c1_57] : memref<1x16x11x11xf32, #tpu.memory_space<vmem>>, vector<1x1x11x10xf32>
    %153 = vector.shape_cast %152 : vector<1x1x11x10xf32> to vector<11x10xf32>
    %154 = vector.extract_strided_slice %153 {offsets = [0, 0], sizes = [10, 10], strides = [1, 1]} : vector<11x10xf32> to vector<10x10xf32>
    %155 = vector.broadcast %151 : f32 to vector<10x10xf32>
    %156 = arith.mulf %155, %154 : vector<10x10xf32>
    %157 = arith.addf %150, %156 : vector<10x10xf32>
    %c25 = arith.constant 25 : index
    %158 = memref.load %arg2[%c25] : memref<36xf32, #tpu.memory_space<smem>>
    %159 = vector.extract_strided_slice %119 {offsets = [1, 0], sizes = [10, 10], strides = [1, 1]} : vector<11x10xf32> to vector<10x10xf32>
    %160 = vector.broadcast %158 : f32 to vector<10x10xf32>
    %161 = arith.mulf %160, %159 : vector<10x10xf32>
    %162 = arith.addf %157, %161 : vector<10x10xf32>
    %c29 = arith.constant 29 : index
    %163 = memref.load %arg2[%c29] : memref<36xf32, #tpu.memory_space<smem>>
    %164 = vector.extract_strided_slice %125 {offsets = [1, 0], sizes = [10, 10], strides = [1, 1]} : vector<11x10xf32> to vector<10x10xf32>
    %165 = vector.broadcast %163 : f32 to vector<10x10xf32>
    %166 = arith.mulf %165, %164 : vector<10x10xf32>
    %167 = arith.addf %162, %166 : vector<10x10xf32>
    %c33 = arith.constant 33 : index
    %168 = memref.load %arg2[%c33] : memref<36xf32, #tpu.memory_space<smem>>
    %169 = vector.extract_strided_slice %132 {offsets = [1, 0], sizes = [10, 10], strides = [1, 1]} : vector<11x10xf32> to vector<10x10xf32>
    %170 = vector.broadcast %168 : f32 to vector<10x10xf32>
    %171 = arith.mulf %170, %169 : vector<10x10xf32>
    %172 = arith.addf %167, %171 : vector<10x10xf32>
    %c16_58 = arith.constant 16 : index
    %173 = memref.load %arg3[%c16_58] : memref<64xf32, #tpu.memory_space<smem>>
    %174 = vector.broadcast %173 : f32 to vector<10x10xf32>
    %175 = arith.mulf %174, %172 : vector<10x10xf32>
    %176 = arith.addf %71, %175 : vector<10x10xf32>
    %c17_59 = arith.constant 17 : index
    %177 = memref.load %arg3[%c17_59] : memref<64xf32, #tpu.memory_space<smem>>
    %178 = vector.broadcast %177 : f32 to vector<10x10xf32>
    %179 = arith.mulf %178, %172 : vector<10x10xf32>
    %180 = arith.addf %74, %179 : vector<10x10xf32>
    %c18 = arith.constant 18 : index
    %181 = memref.load %arg3[%c18] : memref<64xf32, #tpu.memory_space<smem>>
    %182 = vector.broadcast %181 : f32 to vector<10x10xf32>
    %183 = arith.mulf %182, %172 : vector<10x10xf32>
    %184 = arith.addf %77, %183 : vector<10x10xf32>
    %c19 = arith.constant 19 : index
    %185 = memref.load %arg3[%c19] : memref<64xf32, #tpu.memory_space<smem>>
    %186 = vector.broadcast %185 : f32 to vector<10x10xf32>
    %187 = arith.mulf %186, %172 : vector<10x10xf32>
    %188 = arith.addf %80, %187 : vector<10x10xf32>
    %c20_60 = arith.constant 20 : index
    %189 = memref.load %arg3[%c20_60] : memref<64xf32, #tpu.memory_space<smem>>
    %190 = vector.broadcast %189 : f32 to vector<10x10xf32>
    %191 = arith.mulf %190, %172 : vector<10x10xf32>
    %192 = arith.addf %83, %191 : vector<10x10xf32>
    %c21_61 = arith.constant 21 : index
    %193 = memref.load %arg3[%c21_61] : memref<64xf32, #tpu.memory_space<smem>>
    %194 = vector.broadcast %193 : f32 to vector<10x10xf32>
    %195 = arith.mulf %194, %172 : vector<10x10xf32>
    %196 = arith.addf %86, %195 : vector<10x10xf32>
    %c22 = arith.constant 22 : index
    %197 = memref.load %arg3[%c22] : memref<64xf32, #tpu.memory_space<smem>>
    %198 = vector.broadcast %197 : f32 to vector<10x10xf32>
    %199 = arith.mulf %198, %172 : vector<10x10xf32>
    %200 = arith.addf %89, %199 : vector<10x10xf32>
    %c23 = arith.constant 23 : index
    %201 = memref.load %arg3[%c23] : memref<64xf32, #tpu.memory_space<smem>>
    %202 = vector.broadcast %201 : f32 to vector<10x10xf32>
    %203 = arith.mulf %202, %172 : vector<10x10xf32>
    %204 = arith.addf %92, %203 : vector<10x10xf32>
    %c24_62 = arith.constant 24 : index
    %205 = memref.load %arg3[%c24_62] : memref<64xf32, #tpu.memory_space<smem>>
    %206 = vector.broadcast %205 : f32 to vector<10x10xf32>
    %207 = arith.mulf %206, %172 : vector<10x10xf32>
    %208 = arith.addf %95, %207 : vector<10x10xf32>
    %c25_63 = arith.constant 25 : index
    %209 = memref.load %arg3[%c25_63] : memref<64xf32, #tpu.memory_space<smem>>
    %210 = vector.broadcast %209 : f32 to vector<10x10xf32>
    %211 = arith.mulf %210, %172 : vector<10x10xf32>
    %212 = arith.addf %98, %211 : vector<10x10xf32>
    %c26 = arith.constant 26 : index
    %213 = memref.load %arg3[%c26] : memref<64xf32, #tpu.memory_space<smem>>
    %214 = vector.broadcast %213 : f32 to vector<10x10xf32>
    %215 = arith.mulf %214, %172 : vector<10x10xf32>
    %216 = arith.addf %101, %215 : vector<10x10xf32>
    %c27 = arith.constant 27 : index
    %217 = memref.load %arg3[%c27] : memref<64xf32, #tpu.memory_space<smem>>
    %218 = vector.broadcast %217 : f32 to vector<10x10xf32>
    %219 = arith.mulf %218, %172 : vector<10x10xf32>
    %220 = arith.addf %104, %219 : vector<10x10xf32>
    %c28_64 = arith.constant 28 : index
    %221 = memref.load %arg3[%c28_64] : memref<64xf32, #tpu.memory_space<smem>>
    %222 = vector.broadcast %221 : f32 to vector<10x10xf32>
    %223 = arith.mulf %222, %172 : vector<10x10xf32>
    %224 = arith.addf %107, %223 : vector<10x10xf32>
    %c29_65 = arith.constant 29 : index
    %225 = memref.load %arg3[%c29_65] : memref<64xf32, #tpu.memory_space<smem>>
    %226 = vector.broadcast %225 : f32 to vector<10x10xf32>
    %227 = arith.mulf %226, %172 : vector<10x10xf32>
    %228 = arith.addf %110, %227 : vector<10x10xf32>
    %c30 = arith.constant 30 : index
    %229 = memref.load %arg3[%c30] : memref<64xf32, #tpu.memory_space<smem>>
    %230 = vector.broadcast %229 : f32 to vector<10x10xf32>
    %231 = arith.mulf %230, %172 : vector<10x10xf32>
    %232 = arith.addf %113, %231 : vector<10x10xf32>
    %c31 = arith.constant 31 : index
    %233 = memref.load %arg3[%c31] : memref<64xf32, #tpu.memory_space<smem>>
    %234 = vector.broadcast %233 : f32 to vector<10x10xf32>
    %235 = arith.mulf %234, %172 : vector<10x10xf32>
    %236 = arith.addf %116, %235 : vector<10x10xf32>
    %c2_66 = arith.constant 2 : index
    %237 = memref.load %arg2[%c2_66] : memref<36xf32, #tpu.memory_space<smem>>
    %c0_67 = arith.constant 0 : index
    %c2_68 = arith.constant 2 : index
    %c0_69 = arith.constant 0 : index
    %c0_70 = arith.constant 0 : index
    %238 = vector.load %arg1[%c0_67, %c2_68, %c0_69, %c0_70] : memref<1x16x11x11xf32, #tpu.memory_space<vmem>>, vector<1x1x11x10xf32>
    %239 = vector.shape_cast %238 : vector<1x1x11x10xf32> to vector<11x10xf32>
    %240 = vector.extract_strided_slice %239 {offsets = [0, 0], sizes = [10, 10], strides = [1, 1]} : vector<11x10xf32> to vector<10x10xf32>
    %241 = vector.broadcast %237 : f32 to vector<10x10xf32>
    %242 = arith.mulf %241, %240 : vector<10x10xf32>
    %c6_71 = arith.constant 6 : index
    %243 = memref.load %arg2[%c6_71] : memref<36xf32, #tpu.memory_space<smem>>
    %c0_72 = arith.constant 0 : index
    %c6_73 = arith.constant 6 : index
    %c0_74 = arith.constant 0 : index
    %c0_75 = arith.constant 0 : index
    %244 = vector.load %arg1[%c0_72, %c6_73, %c0_74, %c0_75] : memref<1x16x11x11xf32, #tpu.memory_space<vmem>>, vector<1x1x11x10xf32>
    %245 = vector.shape_cast %244 : vector<1x1x11x10xf32> to vector<11x10xf32>
    %246 = vector.extract_strided_slice %245 {offsets = [0, 0], sizes = [10, 10], strides = [1, 1]} : vector<11x10xf32> to vector<10x10xf32>
    %247 = vector.broadcast %243 : f32 to vector<10x10xf32>
    %248 = arith.mulf %247, %246 : vector<10x10xf32>
    %249 = arith.addf %242, %248 : vector<10x10xf32>
    %c10_76 = arith.constant 10 : index
    %250 = memref.load %arg2[%c10_76] : memref<36xf32, #tpu.memory_space<smem>>
    %c0_77 = arith.constant 0 : index
    %c2_78 = arith.constant 2 : index
    %c0_79 = arith.constant 0 : index
    %c1_80 = arith.constant 1 : index
    %251 = vector.load %arg1[%c0_77, %c2_78, %c0_79, %c1_80] : memref<1x16x11x11xf32, #tpu.memory_space<vmem>>, vector<1x1x11x10xf32>
    %252 = vector.shape_cast %251 : vector<1x1x11x10xf32> to vector<11x10xf32>
    %253 = vector.extract_strided_slice %252 {offsets = [0, 0], sizes = [10, 10], strides = [1, 1]} : vector<11x10xf32> to vector<10x10xf32>
    %254 = vector.broadcast %250 : f32 to vector<10x10xf32>
    %255 = arith.mulf %254, %253 : vector<10x10xf32>
    %256 = arith.addf %249, %255 : vector<10x10xf32>
    %c14_81 = arith.constant 14 : index
    %257 = memref.load %arg2[%c14_81] : memref<36xf32, #tpu.memory_space<smem>>
    %c0_82 = arith.constant 0 : index
    %c10_83 = arith.constant 10 : index
    %c0_84 = arith.constant 0 : index
    %c0_85 = arith.constant 0 : index
    %258 = vector.load %arg1[%c0_82, %c10_83, %c0_84, %c0_85] : memref<1x16x11x11xf32, #tpu.memory_space<vmem>>, vector<1x1x11x10xf32>
    %259 = vector.shape_cast %258 : vector<1x1x11x10xf32> to vector<11x10xf32>
    %260 = vector.extract_strided_slice %259 {offsets = [0, 0], sizes = [10, 10], strides = [1, 1]} : vector<11x10xf32> to vector<10x10xf32>
    %261 = vector.broadcast %257 : f32 to vector<10x10xf32>
    %262 = arith.mulf %261, %260 : vector<10x10xf32>
    %263 = arith.addf %256, %262 : vector<10x10xf32>
    %c18_86 = arith.constant 18 : index
    %264 = memref.load %arg2[%c18_86] : memref<36xf32, #tpu.memory_space<smem>>
    %c0_87 = arith.constant 0 : index
    %c14_88 = arith.constant 14 : index
    %c0_89 = arith.constant 0 : index
    %c0_90 = arith.constant 0 : index
    %265 = vector.load %arg1[%c0_87, %c14_88, %c0_89, %c0_90] : memref<1x16x11x11xf32, #tpu.memory_space<vmem>>, vector<1x1x11x10xf32>
    %266 = vector.shape_cast %265 : vector<1x1x11x10xf32> to vector<11x10xf32>
    %267 = vector.extract_strided_slice %266 {offsets = [0, 0], sizes = [10, 10], strides = [1, 1]} : vector<11x10xf32> to vector<10x10xf32>
    %268 = vector.broadcast %264 : f32 to vector<10x10xf32>
    %269 = arith.mulf %268, %267 : vector<10x10xf32>
    %270 = arith.addf %263, %269 : vector<10x10xf32>
    %c22_91 = arith.constant 22 : index
    %271 = memref.load %arg2[%c22_91] : memref<36xf32, #tpu.memory_space<smem>>
    %c0_92 = arith.constant 0 : index
    %c10_93 = arith.constant 10 : index
    %c0_94 = arith.constant 0 : index
    %c1_95 = arith.constant 1 : index
    %272 = vector.load %arg1[%c0_92, %c10_93, %c0_94, %c1_95] : memref<1x16x11x11xf32, #tpu.memory_space<vmem>>, vector<1x1x11x10xf32>
    %273 = vector.shape_cast %272 : vector<1x1x11x10xf32> to vector<11x10xf32>
    %274 = vector.extract_strided_slice %273 {offsets = [0, 0], sizes = [10, 10], strides = [1, 1]} : vector<11x10xf32> to vector<10x10xf32>
    %275 = vector.broadcast %271 : f32 to vector<10x10xf32>
    %276 = arith.mulf %275, %274 : vector<10x10xf32>
    %277 = arith.addf %270, %276 : vector<10x10xf32>
    %c26_96 = arith.constant 26 : index
    %278 = memref.load %arg2[%c26_96] : memref<36xf32, #tpu.memory_space<smem>>
    %279 = vector.extract_strided_slice %239 {offsets = [1, 0], sizes = [10, 10], strides = [1, 1]} : vector<11x10xf32> to vector<10x10xf32>
    %280 = vector.broadcast %278 : f32 to vector<10x10xf32>
    %281 = arith.mulf %280, %279 : vector<10x10xf32>
    %282 = arith.addf %277, %281 : vector<10x10xf32>
    %c30_97 = arith.constant 30 : index
    %283 = memref.load %arg2[%c30_97] : memref<36xf32, #tpu.memory_space<smem>>
    %284 = vector.extract_strided_slice %245 {offsets = [1, 0], sizes = [10, 10], strides = [1, 1]} : vector<11x10xf32> to vector<10x10xf32>
    %285 = vector.broadcast %283 : f32 to vector<10x10xf32>
    %286 = arith.mulf %285, %284 : vector<10x10xf32>
    %287 = arith.addf %282, %286 : vector<10x10xf32>
    %c34 = arith.constant 34 : index
    %288 = memref.load %arg2[%c34] : memref<36xf32, #tpu.memory_space<smem>>
    %289 = vector.extract_strided_slice %252 {offsets = [1, 0], sizes = [10, 10], strides = [1, 1]} : vector<11x10xf32> to vector<10x10xf32>
    %290 = vector.broadcast %288 : f32 to vector<10x10xf32>
    %291 = arith.mulf %290, %289 : vector<10x10xf32>
    %292 = arith.addf %287, %291 : vector<10x10xf32>
    %c32_98 = arith.constant 32 : index
    %293 = memref.load %arg3[%c32_98] : memref<64xf32, #tpu.memory_space<smem>>
    %294 = vector.broadcast %293 : f32 to vector<10x10xf32>
    %295 = arith.mulf %294, %292 : vector<10x10xf32>
    %296 = arith.addf %176, %295 : vector<10x10xf32>
    %c33_99 = arith.constant 33 : index
    %297 = memref.load %arg3[%c33_99] : memref<64xf32, #tpu.memory_space<smem>>
    %298 = vector.broadcast %297 : f32 to vector<10x10xf32>
    %299 = arith.mulf %298, %292 : vector<10x10xf32>
    %300 = arith.addf %180, %299 : vector<10x10xf32>
    %c34_100 = arith.constant 34 : index
    %301 = memref.load %arg3[%c34_100] : memref<64xf32, #tpu.memory_space<smem>>
    %302 = vector.broadcast %301 : f32 to vector<10x10xf32>
    %303 = arith.mulf %302, %292 : vector<10x10xf32>
    %304 = arith.addf %184, %303 : vector<10x10xf32>
    %c35 = arith.constant 35 : index
    %305 = memref.load %arg3[%c35] : memref<64xf32, #tpu.memory_space<smem>>
    %306 = vector.broadcast %305 : f32 to vector<10x10xf32>
    %307 = arith.mulf %306, %292 : vector<10x10xf32>
    %308 = arith.addf %188, %307 : vector<10x10xf32>
    %c36 = arith.constant 36 : index
    %309 = memref.load %arg3[%c36] : memref<64xf32, #tpu.memory_space<smem>>
    %310 = vector.broadcast %309 : f32 to vector<10x10xf32>
    %311 = arith.mulf %310, %292 : vector<10x10xf32>
    %312 = arith.addf %192, %311 : vector<10x10xf32>
    %c37 = arith.constant 37 : index
    %313 = memref.load %arg3[%c37] : memref<64xf32, #tpu.memory_space<smem>>
    %314 = vector.broadcast %313 : f32 to vector<10x10xf32>
    %315 = arith.mulf %314, %292 : vector<10x10xf32>
    %316 = arith.addf %196, %315 : vector<10x10xf32>
    %c38 = arith.constant 38 : index
    %317 = memref.load %arg3[%c38] : memref<64xf32, #tpu.memory_space<smem>>
    %318 = vector.broadcast %317 : f32 to vector<10x10xf32>
    %319 = arith.mulf %318, %292 : vector<10x10xf32>
    %320 = arith.addf %200, %319 : vector<10x10xf32>
    %c39 = arith.constant 39 : index
    %321 = memref.load %arg3[%c39] : memref<64xf32, #tpu.memory_space<smem>>
    %322 = vector.broadcast %321 : f32 to vector<10x10xf32>
    %323 = arith.mulf %322, %292 : vector<10x10xf32>
    %324 = arith.addf %204, %323 : vector<10x10xf32>
    %c40 = arith.constant 40 : index
    %325 = memref.load %arg3[%c40] : memref<64xf32, #tpu.memory_space<smem>>
    %326 = vector.broadcast %325 : f32 to vector<10x10xf32>
    %327 = arith.mulf %326, %292 : vector<10x10xf32>
    %328 = arith.addf %208, %327 : vector<10x10xf32>
    %c41 = arith.constant 41 : index
    %329 = memref.load %arg3[%c41] : memref<64xf32, #tpu.memory_space<smem>>
    %330 = vector.broadcast %329 : f32 to vector<10x10xf32>
    %331 = arith.mulf %330, %292 : vector<10x10xf32>
    %332 = arith.addf %212, %331 : vector<10x10xf32>
    %c42 = arith.constant 42 : index
    %333 = memref.load %arg3[%c42] : memref<64xf32, #tpu.memory_space<smem>>
    %334 = vector.broadcast %333 : f32 to vector<10x10xf32>
    %335 = arith.mulf %334, %292 : vector<10x10xf32>
    %336 = arith.addf %216, %335 : vector<10x10xf32>
    %c43 = arith.constant 43 : index
    %337 = memref.load %arg3[%c43] : memref<64xf32, #tpu.memory_space<smem>>
    %338 = vector.broadcast %337 : f32 to vector<10x10xf32>
    %339 = arith.mulf %338, %292 : vector<10x10xf32>
    %340 = arith.addf %220, %339 : vector<10x10xf32>
    %c44 = arith.constant 44 : index
    %341 = memref.load %arg3[%c44] : memref<64xf32, #tpu.memory_space<smem>>
    %342 = vector.broadcast %341 : f32 to vector<10x10xf32>
    %343 = arith.mulf %342, %292 : vector<10x10xf32>
    %344 = arith.addf %224, %343 : vector<10x10xf32>
    %c45 = arith.constant 45 : index
    %345 = memref.load %arg3[%c45] : memref<64xf32, #tpu.memory_space<smem>>
    %346 = vector.broadcast %345 : f32 to vector<10x10xf32>
    %347 = arith.mulf %346, %292 : vector<10x10xf32>
    %348 = arith.addf %228, %347 : vector<10x10xf32>
    %c46 = arith.constant 46 : index
    %349 = memref.load %arg3[%c46] : memref<64xf32, #tpu.memory_space<smem>>
    %350 = vector.broadcast %349 : f32 to vector<10x10xf32>
    %351 = arith.mulf %350, %292 : vector<10x10xf32>
    %352 = arith.addf %232, %351 : vector<10x10xf32>
    %c47 = arith.constant 47 : index
    %353 = memref.load %arg3[%c47] : memref<64xf32, #tpu.memory_space<smem>>
    %354 = vector.broadcast %353 : f32 to vector<10x10xf32>
    %355 = arith.mulf %354, %292 : vector<10x10xf32>
    %356 = arith.addf %236, %355 : vector<10x10xf32>
    %c3_101 = arith.constant 3 : index
    %357 = memref.load %arg2[%c3_101] : memref<36xf32, #tpu.memory_space<smem>>
    %c0_102 = arith.constant 0 : index
    %c3_103 = arith.constant 3 : index
    %c0_104 = arith.constant 0 : index
    %c0_105 = arith.constant 0 : index
    %358 = vector.load %arg1[%c0_102, %c3_103, %c0_104, %c0_105] : memref<1x16x11x11xf32, #tpu.memory_space<vmem>>, vector<1x1x11x10xf32>
    %359 = vector.shape_cast %358 : vector<1x1x11x10xf32> to vector<11x10xf32>
    %360 = vector.extract_strided_slice %359 {offsets = [0, 0], sizes = [10, 10], strides = [1, 1]} : vector<11x10xf32> to vector<10x10xf32>
    %361 = vector.broadcast %357 : f32 to vector<10x10xf32>
    %362 = arith.mulf %361, %360 : vector<10x10xf32>
    %c7_106 = arith.constant 7 : index
    %363 = memref.load %arg2[%c7_106] : memref<36xf32, #tpu.memory_space<smem>>
    %c0_107 = arith.constant 0 : index
    %c7_108 = arith.constant 7 : index
    %c0_109 = arith.constant 0 : index
    %c0_110 = arith.constant 0 : index
    %364 = vector.load %arg1[%c0_107, %c7_108, %c0_109, %c0_110] : memref<1x16x11x11xf32, #tpu.memory_space<vmem>>, vector<1x1x11x10xf32>
    %365 = vector.shape_cast %364 : vector<1x1x11x10xf32> to vector<11x10xf32>
    %366 = vector.extract_strided_slice %365 {offsets = [0, 0], sizes = [10, 10], strides = [1, 1]} : vector<11x10xf32> to vector<10x10xf32>
    %367 = vector.broadcast %363 : f32 to vector<10x10xf32>
    %368 = arith.mulf %367, %366 : vector<10x10xf32>
    %369 = arith.addf %362, %368 : vector<10x10xf32>
    %c11_111 = arith.constant 11 : index
    %370 = memref.load %arg2[%c11_111] : memref<36xf32, #tpu.memory_space<smem>>
    %c0_112 = arith.constant 0 : index
    %c3_113 = arith.constant 3 : index
    %c0_114 = arith.constant 0 : index
    %c1_115 = arith.constant 1 : index
    %371 = vector.load %arg1[%c0_112, %c3_113, %c0_114, %c1_115] : memref<1x16x11x11xf32, #tpu.memory_space<vmem>>, vector<1x1x11x10xf32>
    %372 = vector.shape_cast %371 : vector<1x1x11x10xf32> to vector<11x10xf32>
    %373 = vector.extract_strided_slice %372 {offsets = [0, 0], sizes = [10, 10], strides = [1, 1]} : vector<11x10xf32> to vector<10x10xf32>
    %374 = vector.broadcast %370 : f32 to vector<10x10xf32>
    %375 = arith.mulf %374, %373 : vector<10x10xf32>
    %376 = arith.addf %369, %375 : vector<10x10xf32>
    %c15_116 = arith.constant 15 : index
    %377 = memref.load %arg2[%c15_116] : memref<36xf32, #tpu.memory_space<smem>>
    %c0_117 = arith.constant 0 : index
    %c11_118 = arith.constant 11 : index
    %c0_119 = arith.constant 0 : index
    %c0_120 = arith.constant 0 : index
    %378 = vector.load %arg1[%c0_117, %c11_118, %c0_119, %c0_120] : memref<1x16x11x11xf32, #tpu.memory_space<vmem>>, vector<1x1x11x10xf32>
    %379 = vector.shape_cast %378 : vector<1x1x11x10xf32> to vector<11x10xf32>
    %380 = vector.extract_strided_slice %379 {offsets = [0, 0], sizes = [10, 10], strides = [1, 1]} : vector<11x10xf32> to vector<10x10xf32>
    %381 = vector.broadcast %377 : f32 to vector<10x10xf32>
    %382 = arith.mulf %381, %380 : vector<10x10xf32>
    %383 = arith.addf %376, %382 : vector<10x10xf32>
    %c19_121 = arith.constant 19 : index
    %384 = memref.load %arg2[%c19_121] : memref<36xf32, #tpu.memory_space<smem>>
    %c0_122 = arith.constant 0 : index
    %c15_123 = arith.constant 15 : index
    %c0_124 = arith.constant 0 : index
    %c0_125 = arith.constant 0 : index
    %385 = vector.load %arg1[%c0_122, %c15_123, %c0_124, %c0_125] : memref<1x16x11x11xf32, #tpu.memory_space<vmem>>, vector<1x1x11x10xf32>
    %386 = vector.shape_cast %385 : vector<1x1x11x10xf32> to vector<11x10xf32>
    %387 = vector.extract_strided_slice %386 {offsets = [0, 0], sizes = [10, 10], strides = [1, 1]} : vector<11x10xf32> to vector<10x10xf32>
    %388 = vector.broadcast %384 : f32 to vector<10x10xf32>
    %389 = arith.mulf %388, %387 : vector<10x10xf32>
    %390 = arith.addf %383, %389 : vector<10x10xf32>
    %c23_126 = arith.constant 23 : index
    %391 = memref.load %arg2[%c23_126] : memref<36xf32, #tpu.memory_space<smem>>
    %c0_127 = arith.constant 0 : index
    %c11_128 = arith.constant 11 : index
    %c0_129 = arith.constant 0 : index
    %c1_130 = arith.constant 1 : index
    %392 = vector.load %arg1[%c0_127, %c11_128, %c0_129, %c1_130] : memref<1x16x11x11xf32, #tpu.memory_space<vmem>>, vector<1x1x11x10xf32>
    %393 = vector.shape_cast %392 : vector<1x1x11x10xf32> to vector<11x10xf32>
    %394 = vector.extract_strided_slice %393 {offsets = [0, 0], sizes = [10, 10], strides = [1, 1]} : vector<11x10xf32> to vector<10x10xf32>
    %395 = vector.broadcast %391 : f32 to vector<10x10xf32>
    %396 = arith.mulf %395, %394 : vector<10x10xf32>
    %397 = arith.addf %390, %396 : vector<10x10xf32>
    %c27_131 = arith.constant 27 : index
    %398 = memref.load %arg2[%c27_131] : memref<36xf32, #tpu.memory_space<smem>>
    %399 = vector.extract_strided_slice %359 {offsets = [1, 0], sizes = [10, 10], strides = [1, 1]} : vector<11x10xf32> to vector<10x10xf32>
    %400 = vector.broadcast %398 : f32 to vector<10x10xf32>
    %401 = arith.mulf %400, %399 : vector<10x10xf32>
    %402 = arith.addf %397, %401 : vector<10x10xf32>
    %c31_132 = arith.constant 31 : index
    %403 = memref.load %arg2[%c31_132] : memref<36xf32, #tpu.memory_space<smem>>
    %404 = vector.extract_strided_slice %365 {offsets = [1, 0], sizes = [10, 10], strides = [1, 1]} : vector<11x10xf32> to vector<10x10xf32>
    %405 = vector.broadcast %403 : f32 to vector<10x10xf32>
    %406 = arith.mulf %405, %404 : vector<10x10xf32>
    %407 = arith.addf %402, %406 : vector<10x10xf32>
    %c35_133 = arith.constant 35 : index
    %408 = memref.load %arg2[%c35_133] : memref<36xf32, #tpu.memory_space<smem>>
    %409 = vector.extract_strided_slice %372 {offsets = [1, 0], sizes = [10, 10], strides = [1, 1]} : vector<11x10xf32> to vector<10x10xf32>
    %410 = vector.broadcast %408 : f32 to vector<10x10xf32>
    %411 = arith.mulf %410, %409 : vector<10x10xf32>
    %412 = arith.addf %407, %411 : vector<10x10xf32>
    %c48 = arith.constant 48 : index
    %413 = memref.load %arg3[%c48] : memref<64xf32, #tpu.memory_space<smem>>
    %414 = vector.broadcast %413 : f32 to vector<10x10xf32>
    %415 = arith.mulf %414, %412 : vector<10x10xf32>
    %416 = arith.addf %296, %415 : vector<10x10xf32>
    %c49 = arith.constant 49 : index
    %417 = memref.load %arg3[%c49] : memref<64xf32, #tpu.memory_space<smem>>
    %418 = vector.broadcast %417 : f32 to vector<10x10xf32>
    %419 = arith.mulf %418, %412 : vector<10x10xf32>
    %420 = arith.addf %300, %419 : vector<10x10xf32>
    %c50 = arith.constant 50 : index
    %421 = memref.load %arg3[%c50] : memref<64xf32, #tpu.memory_space<smem>>
    %422 = vector.broadcast %421 : f32 to vector<10x10xf32>
    %423 = arith.mulf %422, %412 : vector<10x10xf32>
    %424 = arith.addf %304, %423 : vector<10x10xf32>
    %c51 = arith.constant 51 : index
    %425 = memref.load %arg3[%c51] : memref<64xf32, #tpu.memory_space<smem>>
    %426 = vector.broadcast %425 : f32 to vector<10x10xf32>
    %427 = arith.mulf %426, %412 : vector<10x10xf32>
    %428 = arith.addf %308, %427 : vector<10x10xf32>
    %c52 = arith.constant 52 : index
    %429 = memref.load %arg3[%c52] : memref<64xf32, #tpu.memory_space<smem>>
    %430 = vector.broadcast %429 : f32 to vector<10x10xf32>
    %431 = arith.mulf %430, %412 : vector<10x10xf32>
    %432 = arith.addf %312, %431 : vector<10x10xf32>
    %c53 = arith.constant 53 : index
    %433 = memref.load %arg3[%c53] : memref<64xf32, #tpu.memory_space<smem>>
    %434 = vector.broadcast %433 : f32 to vector<10x10xf32>
    %435 = arith.mulf %434, %412 : vector<10x10xf32>
    %436 = arith.addf %316, %435 : vector<10x10xf32>
    %c54 = arith.constant 54 : index
    %437 = memref.load %arg3[%c54] : memref<64xf32, #tpu.memory_space<smem>>
    %438 = vector.broadcast %437 : f32 to vector<10x10xf32>
    %439 = arith.mulf %438, %412 : vector<10x10xf32>
    %440 = arith.addf %320, %439 : vector<10x10xf32>
    %c55 = arith.constant 55 : index
    %441 = memref.load %arg3[%c55] : memref<64xf32, #tpu.memory_space<smem>>
    %442 = vector.broadcast %441 : f32 to vector<10x10xf32>
    %443 = arith.mulf %442, %412 : vector<10x10xf32>
    %444 = arith.addf %324, %443 : vector<10x10xf32>
    %c56 = arith.constant 56 : index
    %445 = memref.load %arg3[%c56] : memref<64xf32, #tpu.memory_space<smem>>
    %446 = vector.broadcast %445 : f32 to vector<10x10xf32>
    %447 = arith.mulf %446, %412 : vector<10x10xf32>
    %448 = arith.addf %328, %447 : vector<10x10xf32>
    %c57 = arith.constant 57 : index
    %449 = memref.load %arg3[%c57] : memref<64xf32, #tpu.memory_space<smem>>
    %450 = vector.broadcast %449 : f32 to vector<10x10xf32>
    %451 = arith.mulf %450, %412 : vector<10x10xf32>
    %452 = arith.addf %332, %451 : vector<10x10xf32>
    %c58 = arith.constant 58 : index
    %453 = memref.load %arg3[%c58] : memref<64xf32, #tpu.memory_space<smem>>
    %454 = vector.broadcast %453 : f32 to vector<10x10xf32>
    %455 = arith.mulf %454, %412 : vector<10x10xf32>
    %456 = arith.addf %336, %455 : vector<10x10xf32>
    %c59 = arith.constant 59 : index
    %457 = memref.load %arg3[%c59] : memref<64xf32, #tpu.memory_space<smem>>
    %458 = vector.broadcast %457 : f32 to vector<10x10xf32>
    %459 = arith.mulf %458, %412 : vector<10x10xf32>
    %460 = arith.addf %340, %459 : vector<10x10xf32>
    %c60 = arith.constant 60 : index
    %461 = memref.load %arg3[%c60] : memref<64xf32, #tpu.memory_space<smem>>
    %462 = vector.broadcast %461 : f32 to vector<10x10xf32>
    %463 = arith.mulf %462, %412 : vector<10x10xf32>
    %464 = arith.addf %344, %463 : vector<10x10xf32>
    %c61 = arith.constant 61 : index
    %465 = memref.load %arg3[%c61] : memref<64xf32, #tpu.memory_space<smem>>
    %466 = vector.broadcast %465 : f32 to vector<10x10xf32>
    %467 = arith.mulf %466, %412 : vector<10x10xf32>
    %468 = arith.addf %348, %467 : vector<10x10xf32>
    %c62 = arith.constant 62 : index
    %469 = memref.load %arg3[%c62] : memref<64xf32, #tpu.memory_space<smem>>
    %470 = vector.broadcast %469 : f32 to vector<10x10xf32>
    %471 = arith.mulf %470, %412 : vector<10x10xf32>
    %472 = arith.addf %352, %471 : vector<10x10xf32>
    %c63 = arith.constant 63 : index
    %473 = memref.load %arg3[%c63] : memref<64xf32, #tpu.memory_space<smem>>
    %474 = vector.broadcast %473 : f32 to vector<10x10xf32>
    %475 = arith.mulf %474, %412 : vector<10x10xf32>
    %476 = arith.addf %356, %475 : vector<10x10xf32>
    %c0_134 = arith.constant 0 : index
    %477 = memref.load %arg4[%c0_134] : memref<16xf32, #tpu.memory_space<smem>>
    %478 = vector.broadcast %477 : f32 to vector<10x10xf32>
    %479 = arith.addf %416, %478 : vector<10x10xf32>
    %cst = arith.constant 0.000000e+00 : f32
    %480 = vector.broadcast %cst : f32 to vector<10x10xf32>
    %481 = arith.maximumf %479, %480 : vector<10x10xf32>
    %cst_135 = arith.constant 0.000000e+00 : f32
    %482 = vector.broadcast %cst_135 : f32 to vector<10x10xf32>
    %483 = arith.select %12, %481, %482 : vector<10x10xi1>, vector<10x10xf32>
    %c1_136 = arith.constant 1 : index
    %484 = memref.load %arg4[%c1_136] : memref<16xf32, #tpu.memory_space<smem>>
    %485 = vector.broadcast %484 : f32 to vector<10x10xf32>
    %486 = arith.addf %420, %485 : vector<10x10xf32>
    %cst_137 = arith.constant 0.000000e+00 : f32
    %487 = vector.broadcast %cst_137 : f32 to vector<10x10xf32>
    %488 = arith.maximumf %486, %487 : vector<10x10xf32>
    %cst_138 = arith.constant 0.000000e+00 : f32
    %489 = vector.broadcast %cst_138 : f32 to vector<10x10xf32>
    %490 = arith.select %12, %488, %489 : vector<10x10xi1>, vector<10x10xf32>
    %c2_139 = arith.constant 2 : index
    %491 = memref.load %arg4[%c2_139] : memref<16xf32, #tpu.memory_space<smem>>
    %492 = vector.broadcast %491 : f32 to vector<10x10xf32>
    %493 = arith.addf %424, %492 : vector<10x10xf32>
    %cst_140 = arith.constant 0.000000e+00 : f32
    %494 = vector.broadcast %cst_140 : f32 to vector<10x10xf32>
    %495 = arith.maximumf %493, %494 : vector<10x10xf32>
    %cst_141 = arith.constant 0.000000e+00 : f32
    %496 = vector.broadcast %cst_141 : f32 to vector<10x10xf32>
    %497 = arith.select %12, %495, %496 : vector<10x10xi1>, vector<10x10xf32>
    %c3_142 = arith.constant 3 : index
    %498 = memref.load %arg4[%c3_142] : memref<16xf32, #tpu.memory_space<smem>>
    %499 = vector.broadcast %498 : f32 to vector<10x10xf32>
    %500 = arith.addf %428, %499 : vector<10x10xf32>
    %cst_143 = arith.constant 0.000000e+00 : f32
    %501 = vector.broadcast %cst_143 : f32 to vector<10x10xf32>
    %502 = arith.maximumf %500, %501 : vector<10x10xf32>
    %cst_144 = arith.constant 0.000000e+00 : f32
    %503 = vector.broadcast %cst_144 : f32 to vector<10x10xf32>
    %504 = arith.select %12, %502, %503 : vector<10x10xi1>, vector<10x10xf32>
    %c4_145 = arith.constant 4 : index
    %505 = memref.load %arg4[%c4_145] : memref<16xf32, #tpu.memory_space<smem>>
    %506 = vector.broadcast %505 : f32 to vector<10x10xf32>
    %507 = arith.addf %432, %506 : vector<10x10xf32>
    %cst_146 = arith.constant 0.000000e+00 : f32
    %508 = vector.broadcast %cst_146 : f32 to vector<10x10xf32>
    %509 = arith.maximumf %507, %508 : vector<10x10xf32>
    %cst_147 = arith.constant 0.000000e+00 : f32
    %510 = vector.broadcast %cst_147 : f32 to vector<10x10xf32>
    %511 = arith.select %12, %509, %510 : vector<10x10xi1>, vector<10x10xf32>
    %c5_148 = arith.constant 5 : index
    %512 = memref.load %arg4[%c5_148] : memref<16xf32, #tpu.memory_space<smem>>
    %513 = vector.broadcast %512 : f32 to vector<10x10xf32>
    %514 = arith.addf %436, %513 : vector<10x10xf32>
    %cst_149 = arith.constant 0.000000e+00 : f32
    %515 = vector.broadcast %cst_149 : f32 to vector<10x10xf32>
    %516 = arith.maximumf %514, %515 : vector<10x10xf32>
    %cst_150 = arith.constant 0.000000e+00 : f32
    %517 = vector.broadcast %cst_150 : f32 to vector<10x10xf32>
    %518 = arith.select %12, %516, %517 : vector<10x10xi1>, vector<10x10xf32>
    %c6_151 = arith.constant 6 : index
    %519 = memref.load %arg4[%c6_151] : memref<16xf32, #tpu.memory_space<smem>>
    %520 = vector.broadcast %519 : f32 to vector<10x10xf32>
    %521 = arith.addf %440, %520 : vector<10x10xf32>
    %cst_152 = arith.constant 0.000000e+00 : f32
    %522 = vector.broadcast %cst_152 : f32 to vector<10x10xf32>
    %523 = arith.maximumf %521, %522 : vector<10x10xf32>
    %cst_153 = arith.constant 0.000000e+00 : f32
    %524 = vector.broadcast %cst_153 : f32 to vector<10x10xf32>
    %525 = arith.select %12, %523, %524 : vector<10x10xi1>, vector<10x10xf32>
    %c7_154 = arith.constant 7 : index
    %526 = memref.load %arg4[%c7_154] : memref<16xf32, #tpu.memory_space<smem>>
    %527 = vector.broadcast %526 : f32 to vector<10x10xf32>
    %528 = arith.addf %444, %527 : vector<10x10xf32>
    %cst_155 = arith.constant 0.000000e+00 : f32
    %529 = vector.broadcast %cst_155 : f32 to vector<10x10xf32>
    %530 = arith.maximumf %528, %529 : vector<10x10xf32>
    %cst_156 = arith.constant 0.000000e+00 : f32
    %531 = vector.broadcast %cst_156 : f32 to vector<10x10xf32>
    %532 = arith.select %12, %530, %531 : vector<10x10xi1>, vector<10x10xf32>
    %c8_157 = arith.constant 8 : index
    %533 = memref.load %arg4[%c8_157] : memref<16xf32, #tpu.memory_space<smem>>
    %534 = vector.broadcast %533 : f32 to vector<10x10xf32>
    %535 = arith.addf %448, %534 : vector<10x10xf32>
    %cst_158 = arith.constant 0.000000e+00 : f32
    %536 = vector.broadcast %cst_158 : f32 to vector<10x10xf32>
    %537 = arith.maximumf %535, %536 : vector<10x10xf32>
    %cst_159 = arith.constant 0.000000e+00 : f32
    %538 = vector.broadcast %cst_159 : f32 to vector<10x10xf32>
    %539 = arith.select %12, %537, %538 : vector<10x10xi1>, vector<10x10xf32>
    %c9_160 = arith.constant 9 : index
    %540 = memref.load %arg4[%c9_160] : memref<16xf32, #tpu.memory_space<smem>>
    %541 = vector.broadcast %540 : f32 to vector<10x10xf32>
    %542 = arith.addf %452, %541 : vector<10x10xf32>
    %cst_161 = arith.constant 0.000000e+00 : f32
    %543 = vector.broadcast %cst_161 : f32 to vector<10x10xf32>
    %544 = arith.maximumf %542, %543 : vector<10x10xf32>
    %cst_162 = arith.constant 0.000000e+00 : f32
    %545 = vector.broadcast %cst_162 : f32 to vector<10x10xf32>
    %546 = arith.select %12, %544, %545 : vector<10x10xi1>, vector<10x10xf32>
    %c10_163 = arith.constant 10 : index
    %547 = memref.load %arg4[%c10_163] : memref<16xf32, #tpu.memory_space<smem>>
    %548 = vector.broadcast %547 : f32 to vector<10x10xf32>
    %549 = arith.addf %456, %548 : vector<10x10xf32>
    %cst_164 = arith.constant 0.000000e+00 : f32
    %550 = vector.broadcast %cst_164 : f32 to vector<10x10xf32>
    %551 = arith.maximumf %549, %550 : vector<10x10xf32>
    %cst_165 = arith.constant 0.000000e+00 : f32
    %552 = vector.broadcast %cst_165 : f32 to vector<10x10xf32>
    %553 = arith.select %12, %551, %552 : vector<10x10xi1>, vector<10x10xf32>
    %c11_166 = arith.constant 11 : index
    %554 = memref.load %arg4[%c11_166] : memref<16xf32, #tpu.memory_space<smem>>
    %555 = vector.broadcast %554 : f32 to vector<10x10xf32>
    %556 = arith.addf %460, %555 : vector<10x10xf32>
    %cst_167 = arith.constant 0.000000e+00 : f32
    %557 = vector.broadcast %cst_167 : f32 to vector<10x10xf32>
    %558 = arith.maximumf %556, %557 : vector<10x10xf32>
    %cst_168 = arith.constant 0.000000e+00 : f32
    %559 = vector.broadcast %cst_168 : f32 to vector<10x10xf32>
    %560 = arith.select %12, %558, %559 : vector<10x10xi1>, vector<10x10xf32>
    %c12_169 = arith.constant 12 : index
    %561 = memref.load %arg4[%c12_169] : memref<16xf32, #tpu.memory_space<smem>>
    %562 = vector.broadcast %561 : f32 to vector<10x10xf32>
    %563 = arith.addf %464, %562 : vector<10x10xf32>
    %cst_170 = arith.constant 0.000000e+00 : f32
    %564 = vector.broadcast %cst_170 : f32 to vector<10x10xf32>
    %565 = arith.maximumf %563, %564 : vector<10x10xf32>
    %cst_171 = arith.constant 0.000000e+00 : f32
    %566 = vector.broadcast %cst_171 : f32 to vector<10x10xf32>
    %567 = arith.select %12, %565, %566 : vector<10x10xi1>, vector<10x10xf32>
    %c13_172 = arith.constant 13 : index
    %568 = memref.load %arg4[%c13_172] : memref<16xf32, #tpu.memory_space<smem>>
    %569 = vector.broadcast %568 : f32 to vector<10x10xf32>
    %570 = arith.addf %468, %569 : vector<10x10xf32>
    %cst_173 = arith.constant 0.000000e+00 : f32
    %571 = vector.broadcast %cst_173 : f32 to vector<10x10xf32>
    %572 = arith.maximumf %570, %571 : vector<10x10xf32>
    %cst_174 = arith.constant 0.000000e+00 : f32
    %573 = vector.broadcast %cst_174 : f32 to vector<10x10xf32>
    %574 = arith.select %12, %572, %573 : vector<10x10xi1>, vector<10x10xf32>
    %c14_175 = arith.constant 14 : index
    %575 = memref.load %arg4[%c14_175] : memref<16xf32, #tpu.memory_space<smem>>
    %576 = vector.broadcast %575 : f32 to vector<10x10xf32>
    %577 = arith.addf %472, %576 : vector<10x10xf32>
    %cst_176 = arith.constant 0.000000e+00 : f32
    %578 = vector.broadcast %cst_176 : f32 to vector<10x10xf32>
    %579 = arith.maximumf %577, %578 : vector<10x10xf32>
    %cst_177 = arith.constant 0.000000e+00 : f32
    %580 = vector.broadcast %cst_177 : f32 to vector<10x10xf32>
    %581 = arith.select %12, %579, %580 : vector<10x10xi1>, vector<10x10xf32>
    %c15_178 = arith.constant 15 : index
    %582 = memref.load %arg4[%c15_178] : memref<16xf32, #tpu.memory_space<smem>>
    %583 = vector.broadcast %582 : f32 to vector<10x10xf32>
    %584 = arith.addf %476, %583 : vector<10x10xf32>
    %cst_179 = arith.constant 0.000000e+00 : f32
    %585 = vector.broadcast %cst_179 : f32 to vector<10x10xf32>
    %586 = arith.maximumf %584, %585 : vector<10x10xf32>
    %cst_180 = arith.constant 0.000000e+00 : f32
    %587 = vector.broadcast %cst_180 : f32 to vector<10x10xf32>
    %588 = arith.select %12, %586, %587 : vector<10x10xi1>, vector<10x10xf32>
    %589 = vector.extract_strided_slice %483 {offsets = [0, 0], sizes = [10, 8], strides = [1, 1]} : vector<10x10xf32> to vector<10x8xf32>
    %590 = vector.extract_strided_slice %483 {offsets = [0, 1], sizes = [10, 8], strides = [1, 1]} : vector<10x10xf32> to vector<10x8xf32>
    %591 = vector.extract_strided_slice %483 {offsets = [0, 2], sizes = [10, 8], strides = [1, 1]} : vector<10x10xf32> to vector<10x8xf32>
    %c0_181 = arith.constant 0 : index
    %592 = memref.load %arg5[%c0_181] : memref<144xf32, #tpu.memory_space<smem>>
    %593 = vector.extract_strided_slice %589 {offsets = [0, 0], sizes = [8, 8], strides = [1, 1]} : vector<10x8xf32> to vector<8x8xf32>
    %594 = vector.broadcast %592 : f32 to vector<8x8xf32>
    %595 = arith.mulf %594, %593 : vector<8x8xf32>
    %c16_182 = arith.constant 16 : index
    %596 = memref.load %arg5[%c16_182] : memref<144xf32, #tpu.memory_space<smem>>
    %597 = vector.extract_strided_slice %590 {offsets = [0, 0], sizes = [8, 8], strides = [1, 1]} : vector<10x8xf32> to vector<8x8xf32>
    %598 = vector.broadcast %596 : f32 to vector<8x8xf32>
    %599 = arith.mulf %598, %597 : vector<8x8xf32>
    %600 = arith.addf %595, %599 : vector<8x8xf32>
    %c32_183 = arith.constant 32 : index
    %601 = memref.load %arg5[%c32_183] : memref<144xf32, #tpu.memory_space<smem>>
    %602 = vector.extract_strided_slice %591 {offsets = [0, 0], sizes = [8, 8], strides = [1, 1]} : vector<10x8xf32> to vector<8x8xf32>
    %603 = vector.broadcast %601 : f32 to vector<8x8xf32>
    %604 = arith.mulf %603, %602 : vector<8x8xf32>
    %605 = arith.addf %600, %604 : vector<8x8xf32>
    %c48_184 = arith.constant 48 : index
    %606 = memref.load %arg5[%c48_184] : memref<144xf32, #tpu.memory_space<smem>>
    %607 = vector.extract_strided_slice %589 {offsets = [1, 0], sizes = [8, 8], strides = [1, 1]} : vector<10x8xf32> to vector<8x8xf32>
    %608 = vector.broadcast %606 : f32 to vector<8x8xf32>
    %609 = arith.mulf %608, %607 : vector<8x8xf32>
    %610 = arith.addf %605, %609 : vector<8x8xf32>
    %c64 = arith.constant 64 : index
    %611 = memref.load %arg5[%c64] : memref<144xf32, #tpu.memory_space<smem>>
    %612 = vector.extract_strided_slice %590 {offsets = [1, 0], sizes = [8, 8], strides = [1, 1]} : vector<10x8xf32> to vector<8x8xf32>
    %613 = vector.broadcast %611 : f32 to vector<8x8xf32>
    %614 = arith.mulf %613, %612 : vector<8x8xf32>
    %615 = arith.addf %610, %614 : vector<8x8xf32>
    %c80 = arith.constant 80 : index
    %616 = memref.load %arg5[%c80] : memref<144xf32, #tpu.memory_space<smem>>
    %617 = vector.extract_strided_slice %591 {offsets = [1, 0], sizes = [8, 8], strides = [1, 1]} : vector<10x8xf32> to vector<8x8xf32>
    %618 = vector.broadcast %616 : f32 to vector<8x8xf32>
    %619 = arith.mulf %618, %617 : vector<8x8xf32>
    %620 = arith.addf %615, %619 : vector<8x8xf32>
    %c96 = arith.constant 96 : index
    %621 = memref.load %arg5[%c96] : memref<144xf32, #tpu.memory_space<smem>>
    %622 = vector.extract_strided_slice %589 {offsets = [2, 0], sizes = [8, 8], strides = [1, 1]} : vector<10x8xf32> to vector<8x8xf32>
    %623 = vector.broadcast %621 : f32 to vector<8x8xf32>
    %624 = arith.mulf %623, %622 : vector<8x8xf32>
    %625 = arith.addf %620, %624 : vector<8x8xf32>
    %c112 = arith.constant 112 : index
    %626 = memref.load %arg5[%c112] : memref<144xf32, #tpu.memory_space<smem>>
    %627 = vector.extract_strided_slice %590 {offsets = [2, 0], sizes = [8, 8], strides = [1, 1]} : vector<10x8xf32> to vector<8x8xf32>
    %628 = vector.broadcast %626 : f32 to vector<8x8xf32>
    %629 = arith.mulf %628, %627 : vector<8x8xf32>
    %630 = arith.addf %625, %629 : vector<8x8xf32>
    %c128 = arith.constant 128 : index
    %631 = memref.load %arg5[%c128] : memref<144xf32, #tpu.memory_space<smem>>
    %632 = vector.extract_strided_slice %591 {offsets = [2, 0], sizes = [8, 8], strides = [1, 1]} : vector<10x8xf32> to vector<8x8xf32>
    %633 = vector.broadcast %631 : f32 to vector<8x8xf32>
    %634 = arith.mulf %633, %632 : vector<8x8xf32>
    %635 = arith.addf %630, %634 : vector<8x8xf32>
    %c0_185 = arith.constant 0 : index
    %636 = memref.load %arg6[%c0_185] : memref<128xf32, #tpu.memory_space<smem>>
    %637 = vector.broadcast %636 : f32 to vector<8x8xf32>
    %638 = arith.mulf %637, %635 : vector<8x8xf32>
    %c1_186 = arith.constant 1 : index
    %639 = memref.load %arg6[%c1_186] : memref<128xf32, #tpu.memory_space<smem>>
    %640 = vector.broadcast %639 : f32 to vector<8x8xf32>
    %641 = arith.mulf %640, %635 : vector<8x8xf32>
    %c2_187 = arith.constant 2 : index
    %642 = memref.load %arg6[%c2_187] : memref<128xf32, #tpu.memory_space<smem>>
    %643 = vector.broadcast %642 : f32 to vector<8x8xf32>
    %644 = arith.mulf %643, %635 : vector<8x8xf32>
    %c3_188 = arith.constant 3 : index
    %645 = memref.load %arg6[%c3_188] : memref<128xf32, #tpu.memory_space<smem>>
    %646 = vector.broadcast %645 : f32 to vector<8x8xf32>
    %647 = arith.mulf %646, %635 : vector<8x8xf32>
    %c4_189 = arith.constant 4 : index
    %648 = memref.load %arg6[%c4_189] : memref<128xf32, #tpu.memory_space<smem>>
    %649 = vector.broadcast %648 : f32 to vector<8x8xf32>
    %650 = arith.mulf %649, %635 : vector<8x8xf32>
    %c5_190 = arith.constant 5 : index
    %651 = memref.load %arg6[%c5_190] : memref<128xf32, #tpu.memory_space<smem>>
    %652 = vector.broadcast %651 : f32 to vector<8x8xf32>
    %653 = arith.mulf %652, %635 : vector<8x8xf32>
    %c6_191 = arith.constant 6 : index
    %654 = memref.load %arg6[%c6_191] : memref<128xf32, #tpu.memory_space<smem>>
    %655 = vector.broadcast %654 : f32 to vector<8x8xf32>
    %656 = arith.mulf %655, %635 : vector<8x8xf32>
    %c7_192 = arith.constant 7 : index
    %657 = memref.load %arg6[%c7_192] : memref<128xf32, #tpu.memory_space<smem>>
    %658 = vector.broadcast %657 : f32 to vector<8x8xf32>
    %659 = arith.mulf %658, %635 : vector<8x8xf32>
    %660 = vector.extract_strided_slice %490 {offsets = [0, 0], sizes = [10, 8], strides = [1, 1]} : vector<10x10xf32> to vector<10x8xf32>
    %661 = vector.extract_strided_slice %490 {offsets = [0, 1], sizes = [10, 8], strides = [1, 1]} : vector<10x10xf32> to vector<10x8xf32>
    %662 = vector.extract_strided_slice %490 {offsets = [0, 2], sizes = [10, 8], strides = [1, 1]} : vector<10x10xf32> to vector<10x8xf32>
    %c1_193 = arith.constant 1 : index
    %663 = memref.load %arg5[%c1_193] : memref<144xf32, #tpu.memory_space<smem>>
    %664 = vector.extract_strided_slice %660 {offsets = [0, 0], sizes = [8, 8], strides = [1, 1]} : vector<10x8xf32> to vector<8x8xf32>
    %665 = vector.broadcast %663 : f32 to vector<8x8xf32>
    %666 = arith.mulf %665, %664 : vector<8x8xf32>
    %c17_194 = arith.constant 17 : index
    %667 = memref.load %arg5[%c17_194] : memref<144xf32, #tpu.memory_space<smem>>
    %668 = vector.extract_strided_slice %661 {offsets = [0, 0], sizes = [8, 8], strides = [1, 1]} : vector<10x8xf32> to vector<8x8xf32>
    %669 = vector.broadcast %667 : f32 to vector<8x8xf32>
    %670 = arith.mulf %669, %668 : vector<8x8xf32>
    %671 = arith.addf %666, %670 : vector<8x8xf32>
    %c33_195 = arith.constant 33 : index
    %672 = memref.load %arg5[%c33_195] : memref<144xf32, #tpu.memory_space<smem>>
    %673 = vector.extract_strided_slice %662 {offsets = [0, 0], sizes = [8, 8], strides = [1, 1]} : vector<10x8xf32> to vector<8x8xf32>
    %674 = vector.broadcast %672 : f32 to vector<8x8xf32>
    %675 = arith.mulf %674, %673 : vector<8x8xf32>
    %676 = arith.addf %671, %675 : vector<8x8xf32>
    %c49_196 = arith.constant 49 : index
    %677 = memref.load %arg5[%c49_196] : memref<144xf32, #tpu.memory_space<smem>>
    %678 = vector.extract_strided_slice %660 {offsets = [1, 0], sizes = [8, 8], strides = [1, 1]} : vector<10x8xf32> to vector<8x8xf32>
    %679 = vector.broadcast %677 : f32 to vector<8x8xf32>
    %680 = arith.mulf %679, %678 : vector<8x8xf32>
    %681 = arith.addf %676, %680 : vector<8x8xf32>
    %c65 = arith.constant 65 : index
    %682 = memref.load %arg5[%c65] : memref<144xf32, #tpu.memory_space<smem>>
    %683 = vector.extract_strided_slice %661 {offsets = [1, 0], sizes = [8, 8], strides = [1, 1]} : vector<10x8xf32> to vector<8x8xf32>
    %684 = vector.broadcast %682 : f32 to vector<8x8xf32>
    %685 = arith.mulf %684, %683 : vector<8x8xf32>
    %686 = arith.addf %681, %685 : vector<8x8xf32>
    %c81 = arith.constant 81 : index
    %687 = memref.load %arg5[%c81] : memref<144xf32, #tpu.memory_space<smem>>
    %688 = vector.extract_strided_slice %662 {offsets = [1, 0], sizes = [8, 8], strides = [1, 1]} : vector<10x8xf32> to vector<8x8xf32>
    %689 = vector.broadcast %687 : f32 to vector<8x8xf32>
    %690 = arith.mulf %689, %688 : vector<8x8xf32>
    %691 = arith.addf %686, %690 : vector<8x8xf32>
    %c97 = arith.constant 97 : index
    %692 = memref.load %arg5[%c97] : memref<144xf32, #tpu.memory_space<smem>>
    %693 = vector.extract_strided_slice %660 {offsets = [2, 0], sizes = [8, 8], strides = [1, 1]} : vector<10x8xf32> to vector<8x8xf32>
    %694 = vector.broadcast %692 : f32 to vector<8x8xf32>
    %695 = arith.mulf %694, %693 : vector<8x8xf32>
    %696 = arith.addf %691, %695 : vector<8x8xf32>
    %c113 = arith.constant 113 : index
    %697 = memref.load %arg5[%c113] : memref<144xf32, #tpu.memory_space<smem>>
    %698 = vector.extract_strided_slice %661 {offsets = [2, 0], sizes = [8, 8], strides = [1, 1]} : vector<10x8xf32> to vector<8x8xf32>
    %699 = vector.broadcast %697 : f32 to vector<8x8xf32>
    %700 = arith.mulf %699, %698 : vector<8x8xf32>
    %701 = arith.addf %696, %700 : vector<8x8xf32>
    %c129 = arith.constant 129 : index
    %702 = memref.load %arg5[%c129] : memref<144xf32, #tpu.memory_space<smem>>
    %703 = vector.extract_strided_slice %662 {offsets = [2, 0], sizes = [8, 8], strides = [1, 1]} : vector<10x8xf32> to vector<8x8xf32>
    %704 = vector.broadcast %702 : f32 to vector<8x8xf32>
    %705 = arith.mulf %704, %703 : vector<8x8xf32>
    %706 = arith.addf %701, %705 : vector<8x8xf32>
    %c8_197 = arith.constant 8 : index
    %707 = memref.load %arg6[%c8_197] : memref<128xf32, #tpu.memory_space<smem>>
    %708 = vector.broadcast %707 : f32 to vector<8x8xf32>
    %709 = arith.mulf %708, %706 : vector<8x8xf32>
    %710 = arith.addf %638, %709 : vector<8x8xf32>
    %c9_198 = arith.constant 9 : index
    %711 = memref.load %arg6[%c9_198] : memref<128xf32, #tpu.memory_space<smem>>
    %712 = vector.broadcast %711 : f32 to vector<8x8xf32>
    %713 = arith.mulf %712, %706 : vector<8x8xf32>
    %714 = arith.addf %641, %713 : vector<8x8xf32>
    %c10_199 = arith.constant 10 : index
    %715 = memref.load %arg6[%c10_199] : memref<128xf32, #tpu.memory_space<smem>>
    %716 = vector.broadcast %715 : f32 to vector<8x8xf32>
    %717 = arith.mulf %716, %706 : vector<8x8xf32>
    %718 = arith.addf %644, %717 : vector<8x8xf32>
    %c11_200 = arith.constant 11 : index
    %719 = memref.load %arg6[%c11_200] : memref<128xf32, #tpu.memory_space<smem>>
    %720 = vector.broadcast %719 : f32 to vector<8x8xf32>
    %721 = arith.mulf %720, %706 : vector<8x8xf32>
    %722 = arith.addf %647, %721 : vector<8x8xf32>
    %c12_201 = arith.constant 12 : index
    %723 = memref.load %arg6[%c12_201] : memref<128xf32, #tpu.memory_space<smem>>
    %724 = vector.broadcast %723 : f32 to vector<8x8xf32>
    %725 = arith.mulf %724, %706 : vector<8x8xf32>
    %726 = arith.addf %650, %725 : vector<8x8xf32>
    %c13_202 = arith.constant 13 : index
    %727 = memref.load %arg6[%c13_202] : memref<128xf32, #tpu.memory_space<smem>>
    %728 = vector.broadcast %727 : f32 to vector<8x8xf32>
    %729 = arith.mulf %728, %706 : vector<8x8xf32>
    %730 = arith.addf %653, %729 : vector<8x8xf32>
    %c14_203 = arith.constant 14 : index
    %731 = memref.load %arg6[%c14_203] : memref<128xf32, #tpu.memory_space<smem>>
    %732 = vector.broadcast %731 : f32 to vector<8x8xf32>
    %733 = arith.mulf %732, %706 : vector<8x8xf32>
    %734 = arith.addf %656, %733 : vector<8x8xf32>
    %c15_204 = arith.constant 15 : index
    %735 = memref.load %arg6[%c15_204] : memref<128xf32, #tpu.memory_space<smem>>
    %736 = vector.broadcast %735 : f32 to vector<8x8xf32>
    %737 = arith.mulf %736, %706 : vector<8x8xf32>
    %738 = arith.addf %659, %737 : vector<8x8xf32>
    %739 = vector.extract_strided_slice %497 {offsets = [0, 0], sizes = [10, 8], strides = [1, 1]} : vector<10x10xf32> to vector<10x8xf32>
    %740 = vector.extract_strided_slice %497 {offsets = [0, 1], sizes = [10, 8], strides = [1, 1]} : vector<10x10xf32> to vector<10x8xf32>
    %741 = vector.extract_strided_slice %497 {offsets = [0, 2], sizes = [10, 8], strides = [1, 1]} : vector<10x10xf32> to vector<10x8xf32>
    %c2_205 = arith.constant 2 : index
    %742 = memref.load %arg5[%c2_205] : memref<144xf32, #tpu.memory_space<smem>>
    %743 = vector.extract_strided_slice %739 {offsets = [0, 0], sizes = [8, 8], strides = [1, 1]} : vector<10x8xf32> to vector<8x8xf32>
    %744 = vector.broadcast %742 : f32 to vector<8x8xf32>
    %745 = arith.mulf %744, %743 : vector<8x8xf32>
    %c18_206 = arith.constant 18 : index
    %746 = memref.load %arg5[%c18_206] : memref<144xf32, #tpu.memory_space<smem>>
    %747 = vector.extract_strided_slice %740 {offsets = [0, 0], sizes = [8, 8], strides = [1, 1]} : vector<10x8xf32> to vector<8x8xf32>
    %748 = vector.broadcast %746 : f32 to vector<8x8xf32>
    %749 = arith.mulf %748, %747 : vector<8x8xf32>
    %750 = arith.addf %745, %749 : vector<8x8xf32>
    %c34_207 = arith.constant 34 : index
    %751 = memref.load %arg5[%c34_207] : memref<144xf32, #tpu.memory_space<smem>>
    %752 = vector.extract_strided_slice %741 {offsets = [0, 0], sizes = [8, 8], strides = [1, 1]} : vector<10x8xf32> to vector<8x8xf32>
    %753 = vector.broadcast %751 : f32 to vector<8x8xf32>
    %754 = arith.mulf %753, %752 : vector<8x8xf32>
    %755 = arith.addf %750, %754 : vector<8x8xf32>
    %c50_208 = arith.constant 50 : index
    %756 = memref.load %arg5[%c50_208] : memref<144xf32, #tpu.memory_space<smem>>
    %757 = vector.extract_strided_slice %739 {offsets = [1, 0], sizes = [8, 8], strides = [1, 1]} : vector<10x8xf32> to vector<8x8xf32>
    %758 = vector.broadcast %756 : f32 to vector<8x8xf32>
    %759 = arith.mulf %758, %757 : vector<8x8xf32>
    %760 = arith.addf %755, %759 : vector<8x8xf32>
    %c66 = arith.constant 66 : index
    %761 = memref.load %arg5[%c66] : memref<144xf32, #tpu.memory_space<smem>>
    %762 = vector.extract_strided_slice %740 {offsets = [1, 0], sizes = [8, 8], strides = [1, 1]} : vector<10x8xf32> to vector<8x8xf32>
    %763 = vector.broadcast %761 : f32 to vector<8x8xf32>
    %764 = arith.mulf %763, %762 : vector<8x8xf32>
    %765 = arith.addf %760, %764 : vector<8x8xf32>
    %c82 = arith.constant 82 : index
    %766 = memref.load %arg5[%c82] : memref<144xf32, #tpu.memory_space<smem>>
    %767 = vector.extract_strided_slice %741 {offsets = [1, 0], sizes = [8, 8], strides = [1, 1]} : vector<10x8xf32> to vector<8x8xf32>
    %768 = vector.broadcast %766 : f32 to vector<8x8xf32>
    %769 = arith.mulf %768, %767 : vector<8x8xf32>
    %770 = arith.addf %765, %769 : vector<8x8xf32>
    %c98 = arith.constant 98 : index
    %771 = memref.load %arg5[%c98] : memref<144xf32, #tpu.memory_space<smem>>
    %772 = vector.extract_strided_slice %739 {offsets = [2, 0], sizes = [8, 8], strides = [1, 1]} : vector<10x8xf32> to vector<8x8xf32>
    %773 = vector.broadcast %771 : f32 to vector<8x8xf32>
    %774 = arith.mulf %773, %772 : vector<8x8xf32>
    %775 = arith.addf %770, %774 : vector<8x8xf32>
    %c114 = arith.constant 114 : index
    %776 = memref.load %arg5[%c114] : memref<144xf32, #tpu.memory_space<smem>>
    %777 = vector.extract_strided_slice %740 {offsets = [2, 0], sizes = [8, 8], strides = [1, 1]} : vector<10x8xf32> to vector<8x8xf32>
    %778 = vector.broadcast %776 : f32 to vector<8x8xf32>
    %779 = arith.mulf %778, %777 : vector<8x8xf32>
    %780 = arith.addf %775, %779 : vector<8x8xf32>
    %c130 = arith.constant 130 : index
    %781 = memref.load %arg5[%c130] : memref<144xf32, #tpu.memory_space<smem>>
    %782 = vector.extract_strided_slice %741 {offsets = [2, 0], sizes = [8, 8], strides = [1, 1]} : vector<10x8xf32> to vector<8x8xf32>
    %783 = vector.broadcast %781 : f32 to vector<8x8xf32>
    %784 = arith.mulf %783, %782 : vector<8x8xf32>
    %785 = arith.addf %780, %784 : vector<8x8xf32>
    %c16_209 = arith.constant 16 : index
    %786 = memref.load %arg6[%c16_209] : memref<128xf32, #tpu.memory_space<smem>>
    %787 = vector.broadcast %786 : f32 to vector<8x8xf32>
    %788 = arith.mulf %787, %785 : vector<8x8xf32>
    %789 = arith.addf %710, %788 : vector<8x8xf32>
    %c17_210 = arith.constant 17 : index
    %790 = memref.load %arg6[%c17_210] : memref<128xf32, #tpu.memory_space<smem>>
    %791 = vector.broadcast %790 : f32 to vector<8x8xf32>
    %792 = arith.mulf %791, %785 : vector<8x8xf32>
    %793 = arith.addf %714, %792 : vector<8x8xf32>
    %c18_211 = arith.constant 18 : index
    %794 = memref.load %arg6[%c18_211] : memref<128xf32, #tpu.memory_space<smem>>
    %795 = vector.broadcast %794 : f32 to vector<8x8xf32>
    %796 = arith.mulf %795, %785 : vector<8x8xf32>
    %797 = arith.addf %718, %796 : vector<8x8xf32>
    %c19_212 = arith.constant 19 : index
    %798 = memref.load %arg6[%c19_212] : memref<128xf32, #tpu.memory_space<smem>>
    %799 = vector.broadcast %798 : f32 to vector<8x8xf32>
    %800 = arith.mulf %799, %785 : vector<8x8xf32>
    %801 = arith.addf %722, %800 : vector<8x8xf32>
    %c20_213 = arith.constant 20 : index
    %802 = memref.load %arg6[%c20_213] : memref<128xf32, #tpu.memory_space<smem>>
    %803 = vector.broadcast %802 : f32 to vector<8x8xf32>
    %804 = arith.mulf %803, %785 : vector<8x8xf32>
    %805 = arith.addf %726, %804 : vector<8x8xf32>
    %c21_214 = arith.constant 21 : index
    %806 = memref.load %arg6[%c21_214] : memref<128xf32, #tpu.memory_space<smem>>
    %807 = vector.broadcast %806 : f32 to vector<8x8xf32>
    %808 = arith.mulf %807, %785 : vector<8x8xf32>
    %809 = arith.addf %730, %808 : vector<8x8xf32>
    %c22_215 = arith.constant 22 : index
    %810 = memref.load %arg6[%c22_215] : memref<128xf32, #tpu.memory_space<smem>>
    %811 = vector.broadcast %810 : f32 to vector<8x8xf32>
    %812 = arith.mulf %811, %785 : vector<8x8xf32>
    %813 = arith.addf %734, %812 : vector<8x8xf32>
    %c23_216 = arith.constant 23 : index
    %814 = memref.load %arg6[%c23_216] : memref<128xf32, #tpu.memory_space<smem>>
    %815 = vector.broadcast %814 : f32 to vector<8x8xf32>
    %816 = arith.mulf %815, %785 : vector<8x8xf32>
    %817 = arith.addf %738, %816 : vector<8x8xf32>
    %818 = vector.extract_strided_slice %504 {offsets = [0, 0], sizes = [10, 8], strides = [1, 1]} : vector<10x10xf32> to vector<10x8xf32>
    %819 = vector.extract_strided_slice %504 {offsets = [0, 1], sizes = [10, 8], strides = [1, 1]} : vector<10x10xf32> to vector<10x8xf32>
    %820 = vector.extract_strided_slice %504 {offsets = [0, 2], sizes = [10, 8], strides = [1, 1]} : vector<10x10xf32> to vector<10x8xf32>
    %c3_217 = arith.constant 3 : index
    %821 = memref.load %arg5[%c3_217] : memref<144xf32, #tpu.memory_space<smem>>
    %822 = vector.extract_strided_slice %818 {offsets = [0, 0], sizes = [8, 8], strides = [1, 1]} : vector<10x8xf32> to vector<8x8xf32>
    %823 = vector.broadcast %821 : f32 to vector<8x8xf32>
    %824 = arith.mulf %823, %822 : vector<8x8xf32>
    %c19_218 = arith.constant 19 : index
    %825 = memref.load %arg5[%c19_218] : memref<144xf32, #tpu.memory_space<smem>>
    %826 = vector.extract_strided_slice %819 {offsets = [0, 0], sizes = [8, 8], strides = [1, 1]} : vector<10x8xf32> to vector<8x8xf32>
    %827 = vector.broadcast %825 : f32 to vector<8x8xf32>
    %828 = arith.mulf %827, %826 : vector<8x8xf32>
    %829 = arith.addf %824, %828 : vector<8x8xf32>
    %c35_219 = arith.constant 35 : index
    %830 = memref.load %arg5[%c35_219] : memref<144xf32, #tpu.memory_space<smem>>
    %831 = vector.extract_strided_slice %820 {offsets = [0, 0], sizes = [8, 8], strides = [1, 1]} : vector<10x8xf32> to vector<8x8xf32>
    %832 = vector.broadcast %830 : f32 to vector<8x8xf32>
    %833 = arith.mulf %832, %831 : vector<8x8xf32>
    %834 = arith.addf %829, %833 : vector<8x8xf32>
    %c51_220 = arith.constant 51 : index
    %835 = memref.load %arg5[%c51_220] : memref<144xf32, #tpu.memory_space<smem>>
    %836 = vector.extract_strided_slice %818 {offsets = [1, 0], sizes = [8, 8], strides = [1, 1]} : vector<10x8xf32> to vector<8x8xf32>
    %837 = vector.broadcast %835 : f32 to vector<8x8xf32>
    %838 = arith.mulf %837, %836 : vector<8x8xf32>
    %839 = arith.addf %834, %838 : vector<8x8xf32>
    %c67 = arith.constant 67 : index
    %840 = memref.load %arg5[%c67] : memref<144xf32, #tpu.memory_space<smem>>
    %841 = vector.extract_strided_slice %819 {offsets = [1, 0], sizes = [8, 8], strides = [1, 1]} : vector<10x8xf32> to vector<8x8xf32>
    %842 = vector.broadcast %840 : f32 to vector<8x8xf32>
    %843 = arith.mulf %842, %841 : vector<8x8xf32>
    %844 = arith.addf %839, %843 : vector<8x8xf32>
    %c83 = arith.constant 83 : index
    %845 = memref.load %arg5[%c83] : memref<144xf32, #tpu.memory_space<smem>>
    %846 = vector.extract_strided_slice %820 {offsets = [1, 0], sizes = [8, 8], strides = [1, 1]} : vector<10x8xf32> to vector<8x8xf32>
    %847 = vector.broadcast %845 : f32 to vector<8x8xf32>
    %848 = arith.mulf %847, %846 : vector<8x8xf32>
    %849 = arith.addf %844, %848 : vector<8x8xf32>
    %c99 = arith.constant 99 : index
    %850 = memref.load %arg5[%c99] : memref<144xf32, #tpu.memory_space<smem>>
    %851 = vector.extract_strided_slice %818 {offsets = [2, 0], sizes = [8, 8], strides = [1, 1]} : vector<10x8xf32> to vector<8x8xf32>
    %852 = vector.broadcast %850 : f32 to vector<8x8xf32>
    %853 = arith.mulf %852, %851 : vector<8x8xf32>
    %854 = arith.addf %849, %853 : vector<8x8xf32>
    %c115 = arith.constant 115 : index
    %855 = memref.load %arg5[%c115] : memref<144xf32, #tpu.memory_space<smem>>
    %856 = vector.extract_strided_slice %819 {offsets = [2, 0], sizes = [8, 8], strides = [1, 1]} : vector<10x8xf32> to vector<8x8xf32>
    %857 = vector.broadcast %855 : f32 to vector<8x8xf32>
    %858 = arith.mulf %857, %856 : vector<8x8xf32>
    %859 = arith.addf %854, %858 : vector<8x8xf32>
    %c131 = arith.constant 131 : index
    %860 = memref.load %arg5[%c131] : memref<144xf32, #tpu.memory_space<smem>>
    %861 = vector.extract_strided_slice %820 {offsets = [2, 0], sizes = [8, 8], strides = [1, 1]} : vector<10x8xf32> to vector<8x8xf32>
    %862 = vector.broadcast %860 : f32 to vector<8x8xf32>
    %863 = arith.mulf %862, %861 : vector<8x8xf32>
    %864 = arith.addf %859, %863 : vector<8x8xf32>
    %c24_221 = arith.constant 24 : index
    %865 = memref.load %arg6[%c24_221] : memref<128xf32, #tpu.memory_space<smem>>
    %866 = vector.broadcast %865 : f32 to vector<8x8xf32>
    %867 = arith.mulf %866, %864 : vector<8x8xf32>
    %868 = arith.addf %789, %867 : vector<8x8xf32>
    %c25_222 = arith.constant 25 : index
    %869 = memref.load %arg6[%c25_222] : memref<128xf32, #tpu.memory_space<smem>>
    %870 = vector.broadcast %869 : f32 to vector<8x8xf32>
    %871 = arith.mulf %870, %864 : vector<8x8xf32>
    %872 = arith.addf %793, %871 : vector<8x8xf32>
    %c26_223 = arith.constant 26 : index
    %873 = memref.load %arg6[%c26_223] : memref<128xf32, #tpu.memory_space<smem>>
    %874 = vector.broadcast %873 : f32 to vector<8x8xf32>
    %875 = arith.mulf %874, %864 : vector<8x8xf32>
    %876 = arith.addf %797, %875 : vector<8x8xf32>
    %c27_224 = arith.constant 27 : index
    %877 = memref.load %arg6[%c27_224] : memref<128xf32, #tpu.memory_space<smem>>
    %878 = vector.broadcast %877 : f32 to vector<8x8xf32>
    %879 = arith.mulf %878, %864 : vector<8x8xf32>
    %880 = arith.addf %801, %879 : vector<8x8xf32>
    %c28_225 = arith.constant 28 : index
    %881 = memref.load %arg6[%c28_225] : memref<128xf32, #tpu.memory_space<smem>>
    %882 = vector.broadcast %881 : f32 to vector<8x8xf32>
    %883 = arith.mulf %882, %864 : vector<8x8xf32>
    %884 = arith.addf %805, %883 : vector<8x8xf32>
    %c29_226 = arith.constant 29 : index
    %885 = memref.load %arg6[%c29_226] : memref<128xf32, #tpu.memory_space<smem>>
    %886 = vector.broadcast %885 : f32 to vector<8x8xf32>
    %887 = arith.mulf %886, %864 : vector<8x8xf32>
    %888 = arith.addf %809, %887 : vector<8x8xf32>
    %c30_227 = arith.constant 30 : index
    %889 = memref.load %arg6[%c30_227] : memref<128xf32, #tpu.memory_space<smem>>
    %890 = vector.broadcast %889 : f32 to vector<8x8xf32>
    %891 = arith.mulf %890, %864 : vector<8x8xf32>
    %892 = arith.addf %813, %891 : vector<8x8xf32>
    %c31_228 = arith.constant 31 : index
    %893 = memref.load %arg6[%c31_228] : memref<128xf32, #tpu.memory_space<smem>>
    %894 = vector.broadcast %893 : f32 to vector<8x8xf32>
    %895 = arith.mulf %894, %864 : vector<8x8xf32>
    %896 = arith.addf %817, %895 : vector<8x8xf32>
    %897 = vector.extract_strided_slice %511 {offsets = [0, 0], sizes = [10, 8], strides = [1, 1]} : vector<10x10xf32> to vector<10x8xf32>
    %898 = vector.extract_strided_slice %511 {offsets = [0, 1], sizes = [10, 8], strides = [1, 1]} : vector<10x10xf32> to vector<10x8xf32>
    %899 = vector.extract_strided_slice %511 {offsets = [0, 2], sizes = [10, 8], strides = [1, 1]} : vector<10x10xf32> to vector<10x8xf32>
    %c4_229 = arith.constant 4 : index
    %900 = memref.load %arg5[%c4_229] : memref<144xf32, #tpu.memory_space<smem>>
    %901 = vector.extract_strided_slice %897 {offsets = [0, 0], sizes = [8, 8], strides = [1, 1]} : vector<10x8xf32> to vector<8x8xf32>
    %902 = vector.broadcast %900 : f32 to vector<8x8xf32>
    %903 = arith.mulf %902, %901 : vector<8x8xf32>
    %c20_230 = arith.constant 20 : index
    %904 = memref.load %arg5[%c20_230] : memref<144xf32, #tpu.memory_space<smem>>
    %905 = vector.extract_strided_slice %898 {offsets = [0, 0], sizes = [8, 8], strides = [1, 1]} : vector<10x8xf32> to vector<8x8xf32>
    %906 = vector.broadcast %904 : f32 to vector<8x8xf32>
    %907 = arith.mulf %906, %905 : vector<8x8xf32>
    %908 = arith.addf %903, %907 : vector<8x8xf32>
    %c36_231 = arith.constant 36 : index
    %909 = memref.load %arg5[%c36_231] : memref<144xf32, #tpu.memory_space<smem>>
    %910 = vector.extract_strided_slice %899 {offsets = [0, 0], sizes = [8, 8], strides = [1, 1]} : vector<10x8xf32> to vector<8x8xf32>
    %911 = vector.broadcast %909 : f32 to vector<8x8xf32>
    %912 = arith.mulf %911, %910 : vector<8x8xf32>
    %913 = arith.addf %908, %912 : vector<8x8xf32>
    %c52_232 = arith.constant 52 : index
    %914 = memref.load %arg5[%c52_232] : memref<144xf32, #tpu.memory_space<smem>>
    %915 = vector.extract_strided_slice %897 {offsets = [1, 0], sizes = [8, 8], strides = [1, 1]} : vector<10x8xf32> to vector<8x8xf32>
    %916 = vector.broadcast %914 : f32 to vector<8x8xf32>
    %917 = arith.mulf %916, %915 : vector<8x8xf32>
    %918 = arith.addf %913, %917 : vector<8x8xf32>
    %c68 = arith.constant 68 : index
    %919 = memref.load %arg5[%c68] : memref<144xf32, #tpu.memory_space<smem>>
    %920 = vector.extract_strided_slice %898 {offsets = [1, 0], sizes = [8, 8], strides = [1, 1]} : vector<10x8xf32> to vector<8x8xf32>
    %921 = vector.broadcast %919 : f32 to vector<8x8xf32>
    %922 = arith.mulf %921, %920 : vector<8x8xf32>
    %923 = arith.addf %918, %922 : vector<8x8xf32>
    %c84 = arith.constant 84 : index
    %924 = memref.load %arg5[%c84] : memref<144xf32, #tpu.memory_space<smem>>
    %925 = vector.extract_strided_slice %899 {offsets = [1, 0], sizes = [8, 8], strides = [1, 1]} : vector<10x8xf32> to vector<8x8xf32>
    %926 = vector.broadcast %924 : f32 to vector<8x8xf32>
    %927 = arith.mulf %926, %925 : vector<8x8xf32>
    %928 = arith.addf %923, %927 : vector<8x8xf32>
    %c100 = arith.constant 100 : index
    %929 = memref.load %arg5[%c100] : memref<144xf32, #tpu.memory_space<smem>>
    %930 = vector.extract_strided_slice %897 {offsets = [2, 0], sizes = [8, 8], strides = [1, 1]} : vector<10x8xf32> to vector<8x8xf32>
    %931 = vector.broadcast %929 : f32 to vector<8x8xf32>
    %932 = arith.mulf %931, %930 : vector<8x8xf32>
    %933 = arith.addf %928, %932 : vector<8x8xf32>
    %c116 = arith.constant 116 : index
    %934 = memref.load %arg5[%c116] : memref<144xf32, #tpu.memory_space<smem>>
    %935 = vector.extract_strided_slice %898 {offsets = [2, 0], sizes = [8, 8], strides = [1, 1]} : vector<10x8xf32> to vector<8x8xf32>
    %936 = vector.broadcast %934 : f32 to vector<8x8xf32>
    %937 = arith.mulf %936, %935 : vector<8x8xf32>
    %938 = arith.addf %933, %937 : vector<8x8xf32>
    %c132 = arith.constant 132 : index
    %939 = memref.load %arg5[%c132] : memref<144xf32, #tpu.memory_space<smem>>
    %940 = vector.extract_strided_slice %899 {offsets = [2, 0], sizes = [8, 8], strides = [1, 1]} : vector<10x8xf32> to vector<8x8xf32>
    %941 = vector.broadcast %939 : f32 to vector<8x8xf32>
    %942 = arith.mulf %941, %940 : vector<8x8xf32>
    %943 = arith.addf %938, %942 : vector<8x8xf32>
    %c32_233 = arith.constant 32 : index
    %944 = memref.load %arg6[%c32_233] : memref<128xf32, #tpu.memory_space<smem>>
    %945 = vector.broadcast %944 : f32 to vector<8x8xf32>
    %946 = arith.mulf %945, %943 : vector<8x8xf32>
    %947 = arith.addf %868, %946 : vector<8x8xf32>
    %c33_234 = arith.constant 33 : index
    %948 = memref.load %arg6[%c33_234] : memref<128xf32, #tpu.memory_space<smem>>
    %949 = vector.broadcast %948 : f32 to vector<8x8xf32>
    %950 = arith.mulf %949, %943 : vector<8x8xf32>
    %951 = arith.addf %872, %950 : vector<8x8xf32>
    %c34_235 = arith.constant 34 : index
    %952 = memref.load %arg6[%c34_235] : memref<128xf32, #tpu.memory_space<smem>>
    %953 = vector.broadcast %952 : f32 to vector<8x8xf32>
    %954 = arith.mulf %953, %943 : vector<8x8xf32>
    %955 = arith.addf %876, %954 : vector<8x8xf32>
    %c35_236 = arith.constant 35 : index
    %956 = memref.load %arg6[%c35_236] : memref<128xf32, #tpu.memory_space<smem>>
    %957 = vector.broadcast %956 : f32 to vector<8x8xf32>
    %958 = arith.mulf %957, %943 : vector<8x8xf32>
    %959 = arith.addf %880, %958 : vector<8x8xf32>
    %c36_237 = arith.constant 36 : index
    %960 = memref.load %arg6[%c36_237] : memref<128xf32, #tpu.memory_space<smem>>
    %961 = vector.broadcast %960 : f32 to vector<8x8xf32>
    %962 = arith.mulf %961, %943 : vector<8x8xf32>
    %963 = arith.addf %884, %962 : vector<8x8xf32>
    %c37_238 = arith.constant 37 : index
    %964 = memref.load %arg6[%c37_238] : memref<128xf32, #tpu.memory_space<smem>>
    %965 = vector.broadcast %964 : f32 to vector<8x8xf32>
    %966 = arith.mulf %965, %943 : vector<8x8xf32>
    %967 = arith.addf %888, %966 : vector<8x8xf32>
    %c38_239 = arith.constant 38 : index
    %968 = memref.load %arg6[%c38_239] : memref<128xf32, #tpu.memory_space<smem>>
    %969 = vector.broadcast %968 : f32 to vector<8x8xf32>
    %970 = arith.mulf %969, %943 : vector<8x8xf32>
    %971 = arith.addf %892, %970 : vector<8x8xf32>
    %c39_240 = arith.constant 39 : index
    %972 = memref.load %arg6[%c39_240] : memref<128xf32, #tpu.memory_space<smem>>
    %973 = vector.broadcast %972 : f32 to vector<8x8xf32>
    %974 = arith.mulf %973, %943 : vector<8x8xf32>
    %975 = arith.addf %896, %974 : vector<8x8xf32>
    %976 = vector.extract_strided_slice %518 {offsets = [0, 0], sizes = [10, 8], strides = [1, 1]} : vector<10x10xf32> to vector<10x8xf32>
    %977 = vector.extract_strided_slice %518 {offsets = [0, 1], sizes = [10, 8], strides = [1, 1]} : vector<10x10xf32> to vector<10x8xf32>
    %978 = vector.extract_strided_slice %518 {offsets = [0, 2], sizes = [10, 8], strides = [1, 1]} : vector<10x10xf32> to vector<10x8xf32>
    %c5_241 = arith.constant 5 : index
    %979 = memref.load %arg5[%c5_241] : memref<144xf32, #tpu.memory_space<smem>>
    %980 = vector.extract_strided_slice %976 {offsets = [0, 0], sizes = [8, 8], strides = [1, 1]} : vector<10x8xf32> to vector<8x8xf32>
    %981 = vector.broadcast %979 : f32 to vector<8x8xf32>
    %982 = arith.mulf %981, %980 : vector<8x8xf32>
    %c21_242 = arith.constant 21 : index
    %983 = memref.load %arg5[%c21_242] : memref<144xf32, #tpu.memory_space<smem>>
    %984 = vector.extract_strided_slice %977 {offsets = [0, 0], sizes = [8, 8], strides = [1, 1]} : vector<10x8xf32> to vector<8x8xf32>
    %985 = vector.broadcast %983 : f32 to vector<8x8xf32>
    %986 = arith.mulf %985, %984 : vector<8x8xf32>
    %987 = arith.addf %982, %986 : vector<8x8xf32>
    %c37_243 = arith.constant 37 : index
    %988 = memref.load %arg5[%c37_243] : memref<144xf32, #tpu.memory_space<smem>>
    %989 = vector.extract_strided_slice %978 {offsets = [0, 0], sizes = [8, 8], strides = [1, 1]} : vector<10x8xf32> to vector<8x8xf32>
    %990 = vector.broadcast %988 : f32 to vector<8x8xf32>
    %991 = arith.mulf %990, %989 : vector<8x8xf32>
    %992 = arith.addf %987, %991 : vector<8x8xf32>
    %c53_244 = arith.constant 53 : index
    %993 = memref.load %arg5[%c53_244] : memref<144xf32, #tpu.memory_space<smem>>
    %994 = vector.extract_strided_slice %976 {offsets = [1, 0], sizes = [8, 8], strides = [1, 1]} : vector<10x8xf32> to vector<8x8xf32>
    %995 = vector.broadcast %993 : f32 to vector<8x8xf32>
    %996 = arith.mulf %995, %994 : vector<8x8xf32>
    %997 = arith.addf %992, %996 : vector<8x8xf32>
    %c69 = arith.constant 69 : index
    %998 = memref.load %arg5[%c69] : memref<144xf32, #tpu.memory_space<smem>>
    %999 = vector.extract_strided_slice %977 {offsets = [1, 0], sizes = [8, 8], strides = [1, 1]} : vector<10x8xf32> to vector<8x8xf32>
    %1000 = vector.broadcast %998 : f32 to vector<8x8xf32>
    %1001 = arith.mulf %1000, %999 : vector<8x8xf32>
    %1002 = arith.addf %997, %1001 : vector<8x8xf32>
    %c85 = arith.constant 85 : index
    %1003 = memref.load %arg5[%c85] : memref<144xf32, #tpu.memory_space<smem>>
    %1004 = vector.extract_strided_slice %978 {offsets = [1, 0], sizes = [8, 8], strides = [1, 1]} : vector<10x8xf32> to vector<8x8xf32>
    %1005 = vector.broadcast %1003 : f32 to vector<8x8xf32>
    %1006 = arith.mulf %1005, %1004 : vector<8x8xf32>
    %1007 = arith.addf %1002, %1006 : vector<8x8xf32>
    %c101 = arith.constant 101 : index
    %1008 = memref.load %arg5[%c101] : memref<144xf32, #tpu.memory_space<smem>>
    %1009 = vector.extract_strided_slice %976 {offsets = [2, 0], sizes = [8, 8], strides = [1, 1]} : vector<10x8xf32> to vector<8x8xf32>
    %1010 = vector.broadcast %1008 : f32 to vector<8x8xf32>
    %1011 = arith.mulf %1010, %1009 : vector<8x8xf32>
    %1012 = arith.addf %1007, %1011 : vector<8x8xf32>
    %c117 = arith.constant 117 : index
    %1013 = memref.load %arg5[%c117] : memref<144xf32, #tpu.memory_space<smem>>
    %1014 = vector.extract_strided_slice %977 {offsets = [2, 0], sizes = [8, 8], strides = [1, 1]} : vector<10x8xf32> to vector<8x8xf32>
    %1015 = vector.broadcast %1013 : f32 to vector<8x8xf32>
    %1016 = arith.mulf %1015, %1014 : vector<8x8xf32>
    %1017 = arith.addf %1012, %1016 : vector<8x8xf32>
    %c133 = arith.constant 133 : index
    %1018 = memref.load %arg5[%c133] : memref<144xf32, #tpu.memory_space<smem>>
    %1019 = vector.extract_strided_slice %978 {offsets = [2, 0], sizes = [8, 8], strides = [1, 1]} : vector<10x8xf32> to vector<8x8xf32>
    %1020 = vector.broadcast %1018 : f32 to vector<8x8xf32>
    %1021 = arith.mulf %1020, %1019 : vector<8x8xf32>
    %1022 = arith.addf %1017, %1021 : vector<8x8xf32>
    %c40_245 = arith.constant 40 : index
    %1023 = memref.load %arg6[%c40_245] : memref<128xf32, #tpu.memory_space<smem>>
    %1024 = vector.broadcast %1023 : f32 to vector<8x8xf32>
    %1025 = arith.mulf %1024, %1022 : vector<8x8xf32>
    %1026 = arith.addf %947, %1025 : vector<8x8xf32>
    %c41_246 = arith.constant 41 : index
    %1027 = memref.load %arg6[%c41_246] : memref<128xf32, #tpu.memory_space<smem>>
    %1028 = vector.broadcast %1027 : f32 to vector<8x8xf32>
    %1029 = arith.mulf %1028, %1022 : vector<8x8xf32>
    %1030 = arith.addf %951, %1029 : vector<8x8xf32>
    %c42_247 = arith.constant 42 : index
    %1031 = memref.load %arg6[%c42_247] : memref<128xf32, #tpu.memory_space<smem>>
    %1032 = vector.broadcast %1031 : f32 to vector<8x8xf32>
    %1033 = arith.mulf %1032, %1022 : vector<8x8xf32>
    %1034 = arith.addf %955, %1033 : vector<8x8xf32>
    %c43_248 = arith.constant 43 : index
    %1035 = memref.load %arg6[%c43_248] : memref<128xf32, #tpu.memory_space<smem>>
    %1036 = vector.broadcast %1035 : f32 to vector<8x8xf32>
    %1037 = arith.mulf %1036, %1022 : vector<8x8xf32>
    %1038 = arith.addf %959, %1037 : vector<8x8xf32>
    %c44_249 = arith.constant 44 : index
    %1039 = memref.load %arg6[%c44_249] : memref<128xf32, #tpu.memory_space<smem>>
    %1040 = vector.broadcast %1039 : f32 to vector<8x8xf32>
    %1041 = arith.mulf %1040, %1022 : vector<8x8xf32>
    %1042 = arith.addf %963, %1041 : vector<8x8xf32>
    %c45_250 = arith.constant 45 : index
    %1043 = memref.load %arg6[%c45_250] : memref<128xf32, #tpu.memory_space<smem>>
    %1044 = vector.broadcast %1043 : f32 to vector<8x8xf32>
    %1045 = arith.mulf %1044, %1022 : vector<8x8xf32>
    %1046 = arith.addf %967, %1045 : vector<8x8xf32>
    %c46_251 = arith.constant 46 : index
    %1047 = memref.load %arg6[%c46_251] : memref<128xf32, #tpu.memory_space<smem>>
    %1048 = vector.broadcast %1047 : f32 to vector<8x8xf32>
    %1049 = arith.mulf %1048, %1022 : vector<8x8xf32>
    %1050 = arith.addf %971, %1049 : vector<8x8xf32>
    %c47_252 = arith.constant 47 : index
    %1051 = memref.load %arg6[%c47_252] : memref<128xf32, #tpu.memory_space<smem>>
    %1052 = vector.broadcast %1051 : f32 to vector<8x8xf32>
    %1053 = arith.mulf %1052, %1022 : vector<8x8xf32>
    %1054 = arith.addf %975, %1053 : vector<8x8xf32>
    %1055 = vector.extract_strided_slice %525 {offsets = [0, 0], sizes = [10, 8], strides = [1, 1]} : vector<10x10xf32> to vector<10x8xf32>
    %1056 = vector.extract_strided_slice %525 {offsets = [0, 1], sizes = [10, 8], strides = [1, 1]} : vector<10x10xf32> to vector<10x8xf32>
    %1057 = vector.extract_strided_slice %525 {offsets = [0, 2], sizes = [10, 8], strides = [1, 1]} : vector<10x10xf32> to vector<10x8xf32>
    %c6_253 = arith.constant 6 : index
    %1058 = memref.load %arg5[%c6_253] : memref<144xf32, #tpu.memory_space<smem>>
    %1059 = vector.extract_strided_slice %1055 {offsets = [0, 0], sizes = [8, 8], strides = [1, 1]} : vector<10x8xf32> to vector<8x8xf32>
    %1060 = vector.broadcast %1058 : f32 to vector<8x8xf32>
    %1061 = arith.mulf %1060, %1059 : vector<8x8xf32>
    %c22_254 = arith.constant 22 : index
    %1062 = memref.load %arg5[%c22_254] : memref<144xf32, #tpu.memory_space<smem>>
    %1063 = vector.extract_strided_slice %1056 {offsets = [0, 0], sizes = [8, 8], strides = [1, 1]} : vector<10x8xf32> to vector<8x8xf32>
    %1064 = vector.broadcast %1062 : f32 to vector<8x8xf32>
    %1065 = arith.mulf %1064, %1063 : vector<8x8xf32>
    %1066 = arith.addf %1061, %1065 : vector<8x8xf32>
    %c38_255 = arith.constant 38 : index
    %1067 = memref.load %arg5[%c38_255] : memref<144xf32, #tpu.memory_space<smem>>
    %1068 = vector.extract_strided_slice %1057 {offsets = [0, 0], sizes = [8, 8], strides = [1, 1]} : vector<10x8xf32> to vector<8x8xf32>
    %1069 = vector.broadcast %1067 : f32 to vector<8x8xf32>
    %1070 = arith.mulf %1069, %1068 : vector<8x8xf32>
    %1071 = arith.addf %1066, %1070 : vector<8x8xf32>
    %c54_256 = arith.constant 54 : index
    %1072 = memref.load %arg5[%c54_256] : memref<144xf32, #tpu.memory_space<smem>>
    %1073 = vector.extract_strided_slice %1055 {offsets = [1, 0], sizes = [8, 8], strides = [1, 1]} : vector<10x8xf32> to vector<8x8xf32>
    %1074 = vector.broadcast %1072 : f32 to vector<8x8xf32>
    %1075 = arith.mulf %1074, %1073 : vector<8x8xf32>
    %1076 = arith.addf %1071, %1075 : vector<8x8xf32>
    %c70 = arith.constant 70 : index
    %1077 = memref.load %arg5[%c70] : memref<144xf32, #tpu.memory_space<smem>>
    %1078 = vector.extract_strided_slice %1056 {offsets = [1, 0], sizes = [8, 8], strides = [1, 1]} : vector<10x8xf32> to vector<8x8xf32>
    %1079 = vector.broadcast %1077 : f32 to vector<8x8xf32>
    %1080 = arith.mulf %1079, %1078 : vector<8x8xf32>
    %1081 = arith.addf %1076, %1080 : vector<8x8xf32>
    %c86 = arith.constant 86 : index
    %1082 = memref.load %arg5[%c86] : memref<144xf32, #tpu.memory_space<smem>>
    %1083 = vector.extract_strided_slice %1057 {offsets = [1, 0], sizes = [8, 8], strides = [1, 1]} : vector<10x8xf32> to vector<8x8xf32>
    %1084 = vector.broadcast %1082 : f32 to vector<8x8xf32>
    %1085 = arith.mulf %1084, %1083 : vector<8x8xf32>
    %1086 = arith.addf %1081, %1085 : vector<8x8xf32>
    %c102 = arith.constant 102 : index
    %1087 = memref.load %arg5[%c102] : memref<144xf32, #tpu.memory_space<smem>>
    %1088 = vector.extract_strided_slice %1055 {offsets = [2, 0], sizes = [8, 8], strides = [1, 1]} : vector<10x8xf32> to vector<8x8xf32>
    %1089 = vector.broadcast %1087 : f32 to vector<8x8xf32>
    %1090 = arith.mulf %1089, %1088 : vector<8x8xf32>
    %1091 = arith.addf %1086, %1090 : vector<8x8xf32>
    %c118 = arith.constant 118 : index
    %1092 = memref.load %arg5[%c118] : memref<144xf32, #tpu.memory_space<smem>>
    %1093 = vector.extract_strided_slice %1056 {offsets = [2, 0], sizes = [8, 8], strides = [1, 1]} : vector<10x8xf32> to vector<8x8xf32>
    %1094 = vector.broadcast %1092 : f32 to vector<8x8xf32>
    %1095 = arith.mulf %1094, %1093 : vector<8x8xf32>
    %1096 = arith.addf %1091, %1095 : vector<8x8xf32>
    %c134 = arith.constant 134 : index
    %1097 = memref.load %arg5[%c134] : memref<144xf32, #tpu.memory_space<smem>>
    %1098 = vector.extract_strided_slice %1057 {offsets = [2, 0], sizes = [8, 8], strides = [1, 1]} : vector<10x8xf32> to vector<8x8xf32>
    %1099 = vector.broadcast %1097 : f32 to vector<8x8xf32>
    %1100 = arith.mulf %1099, %1098 : vector<8x8xf32>
    %1101 = arith.addf %1096, %1100 : vector<8x8xf32>
    %c48_257 = arith.constant 48 : index
    %1102 = memref.load %arg6[%c48_257] : memref<128xf32, #tpu.memory_space<smem>>
    %1103 = vector.broadcast %1102 : f32 to vector<8x8xf32>
    %1104 = arith.mulf %1103, %1101 : vector<8x8xf32>
    %1105 = arith.addf %1026, %1104 : vector<8x8xf32>
    %c49_258 = arith.constant 49 : index
    %1106 = memref.load %arg6[%c49_258] : memref<128xf32, #tpu.memory_space<smem>>
    %1107 = vector.broadcast %1106 : f32 to vector<8x8xf32>
    %1108 = arith.mulf %1107, %1101 : vector<8x8xf32>
    %1109 = arith.addf %1030, %1108 : vector<8x8xf32>
    %c50_259 = arith.constant 50 : index
    %1110 = memref.load %arg6[%c50_259] : memref<128xf32, #tpu.memory_space<smem>>
    %1111 = vector.broadcast %1110 : f32 to vector<8x8xf32>
    %1112 = arith.mulf %1111, %1101 : vector<8x8xf32>
    %1113 = arith.addf %1034, %1112 : vector<8x8xf32>
    %c51_260 = arith.constant 51 : index
    %1114 = memref.load %arg6[%c51_260] : memref<128xf32, #tpu.memory_space<smem>>
    %1115 = vector.broadcast %1114 : f32 to vector<8x8xf32>
    %1116 = arith.mulf %1115, %1101 : vector<8x8xf32>
    %1117 = arith.addf %1038, %1116 : vector<8x8xf32>
    %c52_261 = arith.constant 52 : index
    %1118 = memref.load %arg6[%c52_261] : memref<128xf32, #tpu.memory_space<smem>>
    %1119 = vector.broadcast %1118 : f32 to vector<8x8xf32>
    %1120 = arith.mulf %1119, %1101 : vector<8x8xf32>
    %1121 = arith.addf %1042, %1120 : vector<8x8xf32>
    %c53_262 = arith.constant 53 : index
    %1122 = memref.load %arg6[%c53_262] : memref<128xf32, #tpu.memory_space<smem>>
    %1123 = vector.broadcast %1122 : f32 to vector<8x8xf32>
    %1124 = arith.mulf %1123, %1101 : vector<8x8xf32>
    %1125 = arith.addf %1046, %1124 : vector<8x8xf32>
    %c54_263 = arith.constant 54 : index
    %1126 = memref.load %arg6[%c54_263] : memref<128xf32, #tpu.memory_space<smem>>
    %1127 = vector.broadcast %1126 : f32 to vector<8x8xf32>
    %1128 = arith.mulf %1127, %1101 : vector<8x8xf32>
    %1129 = arith.addf %1050, %1128 : vector<8x8xf32>
    %c55_264 = arith.constant 55 : index
    %1130 = memref.load %arg6[%c55_264] : memref<128xf32, #tpu.memory_space<smem>>
    %1131 = vector.broadcast %1130 : f32 to vector<8x8xf32>
    %1132 = arith.mulf %1131, %1101 : vector<8x8xf32>
    %1133 = arith.addf %1054, %1132 : vector<8x8xf32>
    %1134 = vector.extract_strided_slice %532 {offsets = [0, 0], sizes = [10, 8], strides = [1, 1]} : vector<10x10xf32> to vector<10x8xf32>
    %1135 = vector.extract_strided_slice %532 {offsets = [0, 1], sizes = [10, 8], strides = [1, 1]} : vector<10x10xf32> to vector<10x8xf32>
    %1136 = vector.extract_strided_slice %532 {offsets = [0, 2], sizes = [10, 8], strides = [1, 1]} : vector<10x10xf32> to vector<10x8xf32>
    %c7_265 = arith.constant 7 : index
    %1137 = memref.load %arg5[%c7_265] : memref<144xf32, #tpu.memory_space<smem>>
    %1138 = vector.extract_strided_slice %1134 {offsets = [0, 0], sizes = [8, 8], strides = [1, 1]} : vector<10x8xf32> to vector<8x8xf32>
    %1139 = vector.broadcast %1137 : f32 to vector<8x8xf32>
    %1140 = arith.mulf %1139, %1138 : vector<8x8xf32>
    %c23_266 = arith.constant 23 : index
    %1141 = memref.load %arg5[%c23_266] : memref<144xf32, #tpu.memory_space<smem>>
    %1142 = vector.extract_strided_slice %1135 {offsets = [0, 0], sizes = [8, 8], strides = [1, 1]} : vector<10x8xf32> to vector<8x8xf32>
    %1143 = vector.broadcast %1141 : f32 to vector<8x8xf32>
    %1144 = arith.mulf %1143, %1142 : vector<8x8xf32>
    %1145 = arith.addf %1140, %1144 : vector<8x8xf32>
    %c39_267 = arith.constant 39 : index
    %1146 = memref.load %arg5[%c39_267] : memref<144xf32, #tpu.memory_space<smem>>
    %1147 = vector.extract_strided_slice %1136 {offsets = [0, 0], sizes = [8, 8], strides = [1, 1]} : vector<10x8xf32> to vector<8x8xf32>
    %1148 = vector.broadcast %1146 : f32 to vector<8x8xf32>
    %1149 = arith.mulf %1148, %1147 : vector<8x8xf32>
    %1150 = arith.addf %1145, %1149 : vector<8x8xf32>
    %c55_268 = arith.constant 55 : index
    %1151 = memref.load %arg5[%c55_268] : memref<144xf32, #tpu.memory_space<smem>>
    %1152 = vector.extract_strided_slice %1134 {offsets = [1, 0], sizes = [8, 8], strides = [1, 1]} : vector<10x8xf32> to vector<8x8xf32>
    %1153 = vector.broadcast %1151 : f32 to vector<8x8xf32>
    %1154 = arith.mulf %1153, %1152 : vector<8x8xf32>
    %1155 = arith.addf %1150, %1154 : vector<8x8xf32>
    %c71 = arith.constant 71 : index
    %1156 = memref.load %arg5[%c71] : memref<144xf32, #tpu.memory_space<smem>>
    %1157 = vector.extract_strided_slice %1135 {offsets = [1, 0], sizes = [8, 8], strides = [1, 1]} : vector<10x8xf32> to vector<8x8xf32>
    %1158 = vector.broadcast %1156 : f32 to vector<8x8xf32>
    %1159 = arith.mulf %1158, %1157 : vector<8x8xf32>
    %1160 = arith.addf %1155, %1159 : vector<8x8xf32>
    %c87 = arith.constant 87 : index
    %1161 = memref.load %arg5[%c87] : memref<144xf32, #tpu.memory_space<smem>>
    %1162 = vector.extract_strided_slice %1136 {offsets = [1, 0], sizes = [8, 8], strides = [1, 1]} : vector<10x8xf32> to vector<8x8xf32>
    %1163 = vector.broadcast %1161 : f32 to vector<8x8xf32>
    %1164 = arith.mulf %1163, %1162 : vector<8x8xf32>
    %1165 = arith.addf %1160, %1164 : vector<8x8xf32>
    %c103 = arith.constant 103 : index
    %1166 = memref.load %arg5[%c103] : memref<144xf32, #tpu.memory_space<smem>>
    %1167 = vector.extract_strided_slice %1134 {offsets = [2, 0], sizes = [8, 8], strides = [1, 1]} : vector<10x8xf32> to vector<8x8xf32>
    %1168 = vector.broadcast %1166 : f32 to vector<8x8xf32>
    %1169 = arith.mulf %1168, %1167 : vector<8x8xf32>
    %1170 = arith.addf %1165, %1169 : vector<8x8xf32>
    %c119 = arith.constant 119 : index
    %1171 = memref.load %arg5[%c119] : memref<144xf32, #tpu.memory_space<smem>>
    %1172 = vector.extract_strided_slice %1135 {offsets = [2, 0], sizes = [8, 8], strides = [1, 1]} : vector<10x8xf32> to vector<8x8xf32>
    %1173 = vector.broadcast %1171 : f32 to vector<8x8xf32>
    %1174 = arith.mulf %1173, %1172 : vector<8x8xf32>
    %1175 = arith.addf %1170, %1174 : vector<8x8xf32>
    %c135 = arith.constant 135 : index
    %1176 = memref.load %arg5[%c135] : memref<144xf32, #tpu.memory_space<smem>>
    %1177 = vector.extract_strided_slice %1136 {offsets = [2, 0], sizes = [8, 8], strides = [1, 1]} : vector<10x8xf32> to vector<8x8xf32>
    %1178 = vector.broadcast %1176 : f32 to vector<8x8xf32>
    %1179 = arith.mulf %1178, %1177 : vector<8x8xf32>
    %1180 = arith.addf %1175, %1179 : vector<8x8xf32>
    %c56_269 = arith.constant 56 : index
    %1181 = memref.load %arg6[%c56_269] : memref<128xf32, #tpu.memory_space<smem>>
    %1182 = vector.broadcast %1181 : f32 to vector<8x8xf32>
    %1183 = arith.mulf %1182, %1180 : vector<8x8xf32>
    %1184 = arith.addf %1105, %1183 : vector<8x8xf32>
    %c57_270 = arith.constant 57 : index
    %1185 = memref.load %arg6[%c57_270] : memref<128xf32, #tpu.memory_space<smem>>
    %1186 = vector.broadcast %1185 : f32 to vector<8x8xf32>
    %1187 = arith.mulf %1186, %1180 : vector<8x8xf32>
    %1188 = arith.addf %1109, %1187 : vector<8x8xf32>
    %c58_271 = arith.constant 58 : index
    %1189 = memref.load %arg6[%c58_271] : memref<128xf32, #tpu.memory_space<smem>>
    %1190 = vector.broadcast %1189 : f32 to vector<8x8xf32>
    %1191 = arith.mulf %1190, %1180 : vector<8x8xf32>
    %1192 = arith.addf %1113, %1191 : vector<8x8xf32>
    %c59_272 = arith.constant 59 : index
    %1193 = memref.load %arg6[%c59_272] : memref<128xf32, #tpu.memory_space<smem>>
    %1194 = vector.broadcast %1193 : f32 to vector<8x8xf32>
    %1195 = arith.mulf %1194, %1180 : vector<8x8xf32>
    %1196 = arith.addf %1117, %1195 : vector<8x8xf32>
    %c60_273 = arith.constant 60 : index
    %1197 = memref.load %arg6[%c60_273] : memref<128xf32, #tpu.memory_space<smem>>
    %1198 = vector.broadcast %1197 : f32 to vector<8x8xf32>
    %1199 = arith.mulf %1198, %1180 : vector<8x8xf32>
    %1200 = arith.addf %1121, %1199 : vector<8x8xf32>
    %c61_274 = arith.constant 61 : index
    %1201 = memref.load %arg6[%c61_274] : memref<128xf32, #tpu.memory_space<smem>>
    %1202 = vector.broadcast %1201 : f32 to vector<8x8xf32>
    %1203 = arith.mulf %1202, %1180 : vector<8x8xf32>
    %1204 = arith.addf %1125, %1203 : vector<8x8xf32>
    %c62_275 = arith.constant 62 : index
    %1205 = memref.load %arg6[%c62_275] : memref<128xf32, #tpu.memory_space<smem>>
    %1206 = vector.broadcast %1205 : f32 to vector<8x8xf32>
    %1207 = arith.mulf %1206, %1180 : vector<8x8xf32>
    %1208 = arith.addf %1129, %1207 : vector<8x8xf32>
    %c63_276 = arith.constant 63 : index
    %1209 = memref.load %arg6[%c63_276] : memref<128xf32, #tpu.memory_space<smem>>
    %1210 = vector.broadcast %1209 : f32 to vector<8x8xf32>
    %1211 = arith.mulf %1210, %1180 : vector<8x8xf32>
    %1212 = arith.addf %1133, %1211 : vector<8x8xf32>
    %1213 = vector.extract_strided_slice %539 {offsets = [0, 0], sizes = [10, 8], strides = [1, 1]} : vector<10x10xf32> to vector<10x8xf32>
    %1214 = vector.extract_strided_slice %539 {offsets = [0, 1], sizes = [10, 8], strides = [1, 1]} : vector<10x10xf32> to vector<10x8xf32>
    %1215 = vector.extract_strided_slice %539 {offsets = [0, 2], sizes = [10, 8], strides = [1, 1]} : vector<10x10xf32> to vector<10x8xf32>
    %c8_277 = arith.constant 8 : index
    %1216 = memref.load %arg5[%c8_277] : memref<144xf32, #tpu.memory_space<smem>>
    %1217 = vector.extract_strided_slice %1213 {offsets = [0, 0], sizes = [8, 8], strides = [1, 1]} : vector<10x8xf32> to vector<8x8xf32>
    %1218 = vector.broadcast %1216 : f32 to vector<8x8xf32>
    %1219 = arith.mulf %1218, %1217 : vector<8x8xf32>
    %c24_278 = arith.constant 24 : index
    %1220 = memref.load %arg5[%c24_278] : memref<144xf32, #tpu.memory_space<smem>>
    %1221 = vector.extract_strided_slice %1214 {offsets = [0, 0], sizes = [8, 8], strides = [1, 1]} : vector<10x8xf32> to vector<8x8xf32>
    %1222 = vector.broadcast %1220 : f32 to vector<8x8xf32>
    %1223 = arith.mulf %1222, %1221 : vector<8x8xf32>
    %1224 = arith.addf %1219, %1223 : vector<8x8xf32>
    %c40_279 = arith.constant 40 : index
    %1225 = memref.load %arg5[%c40_279] : memref<144xf32, #tpu.memory_space<smem>>
    %1226 = vector.extract_strided_slice %1215 {offsets = [0, 0], sizes = [8, 8], strides = [1, 1]} : vector<10x8xf32> to vector<8x8xf32>
    %1227 = vector.broadcast %1225 : f32 to vector<8x8xf32>
    %1228 = arith.mulf %1227, %1226 : vector<8x8xf32>
    %1229 = arith.addf %1224, %1228 : vector<8x8xf32>
    %c56_280 = arith.constant 56 : index
    %1230 = memref.load %arg5[%c56_280] : memref<144xf32, #tpu.memory_space<smem>>
    %1231 = vector.extract_strided_slice %1213 {offsets = [1, 0], sizes = [8, 8], strides = [1, 1]} : vector<10x8xf32> to vector<8x8xf32>
    %1232 = vector.broadcast %1230 : f32 to vector<8x8xf32>
    %1233 = arith.mulf %1232, %1231 : vector<8x8xf32>
    %1234 = arith.addf %1229, %1233 : vector<8x8xf32>
    %c72 = arith.constant 72 : index
    %1235 = memref.load %arg5[%c72] : memref<144xf32, #tpu.memory_space<smem>>
    %1236 = vector.extract_strided_slice %1214 {offsets = [1, 0], sizes = [8, 8], strides = [1, 1]} : vector<10x8xf32> to vector<8x8xf32>
    %1237 = vector.broadcast %1235 : f32 to vector<8x8xf32>
    %1238 = arith.mulf %1237, %1236 : vector<8x8xf32>
    %1239 = arith.addf %1234, %1238 : vector<8x8xf32>
    %c88 = arith.constant 88 : index
    %1240 = memref.load %arg5[%c88] : memref<144xf32, #tpu.memory_space<smem>>
    %1241 = vector.extract_strided_slice %1215 {offsets = [1, 0], sizes = [8, 8], strides = [1, 1]} : vector<10x8xf32> to vector<8x8xf32>
    %1242 = vector.broadcast %1240 : f32 to vector<8x8xf32>
    %1243 = arith.mulf %1242, %1241 : vector<8x8xf32>
    %1244 = arith.addf %1239, %1243 : vector<8x8xf32>
    %c104 = arith.constant 104 : index
    %1245 = memref.load %arg5[%c104] : memref<144xf32, #tpu.memory_space<smem>>
    %1246 = vector.extract_strided_slice %1213 {offsets = [2, 0], sizes = [8, 8], strides = [1, 1]} : vector<10x8xf32> to vector<8x8xf32>
    %1247 = vector.broadcast %1245 : f32 to vector<8x8xf32>
    %1248 = arith.mulf %1247, %1246 : vector<8x8xf32>
    %1249 = arith.addf %1244, %1248 : vector<8x8xf32>
    %c120 = arith.constant 120 : index
    %1250 = memref.load %arg5[%c120] : memref<144xf32, #tpu.memory_space<smem>>
    %1251 = vector.extract_strided_slice %1214 {offsets = [2, 0], sizes = [8, 8], strides = [1, 1]} : vector<10x8xf32> to vector<8x8xf32>
    %1252 = vector.broadcast %1250 : f32 to vector<8x8xf32>
    %1253 = arith.mulf %1252, %1251 : vector<8x8xf32>
    %1254 = arith.addf %1249, %1253 : vector<8x8xf32>
    %c136 = arith.constant 136 : index
    %1255 = memref.load %arg5[%c136] : memref<144xf32, #tpu.memory_space<smem>>
    %1256 = vector.extract_strided_slice %1215 {offsets = [2, 0], sizes = [8, 8], strides = [1, 1]} : vector<10x8xf32> to vector<8x8xf32>
    %1257 = vector.broadcast %1255 : f32 to vector<8x8xf32>
    %1258 = arith.mulf %1257, %1256 : vector<8x8xf32>
    %1259 = arith.addf %1254, %1258 : vector<8x8xf32>
    %c64_281 = arith.constant 64 : index
    %1260 = memref.load %arg6[%c64_281] : memref<128xf32, #tpu.memory_space<smem>>
    %1261 = vector.broadcast %1260 : f32 to vector<8x8xf32>
    %1262 = arith.mulf %1261, %1259 : vector<8x8xf32>
    %1263 = arith.addf %1184, %1262 : vector<8x8xf32>
    %c65_282 = arith.constant 65 : index
    %1264 = memref.load %arg6[%c65_282] : memref<128xf32, #tpu.memory_space<smem>>
    %1265 = vector.broadcast %1264 : f32 to vector<8x8xf32>
    %1266 = arith.mulf %1265, %1259 : vector<8x8xf32>
    %1267 = arith.addf %1188, %1266 : vector<8x8xf32>
    %c66_283 = arith.constant 66 : index
    %1268 = memref.load %arg6[%c66_283] : memref<128xf32, #tpu.memory_space<smem>>
    %1269 = vector.broadcast %1268 : f32 to vector<8x8xf32>
    %1270 = arith.mulf %1269, %1259 : vector<8x8xf32>
    %1271 = arith.addf %1192, %1270 : vector<8x8xf32>
    %c67_284 = arith.constant 67 : index
    %1272 = memref.load %arg6[%c67_284] : memref<128xf32, #tpu.memory_space<smem>>
    %1273 = vector.broadcast %1272 : f32 to vector<8x8xf32>
    %1274 = arith.mulf %1273, %1259 : vector<8x8xf32>
    %1275 = arith.addf %1196, %1274 : vector<8x8xf32>
    %c68_285 = arith.constant 68 : index
    %1276 = memref.load %arg6[%c68_285] : memref<128xf32, #tpu.memory_space<smem>>
    %1277 = vector.broadcast %1276 : f32 to vector<8x8xf32>
    %1278 = arith.mulf %1277, %1259 : vector<8x8xf32>
    %1279 = arith.addf %1200, %1278 : vector<8x8xf32>
    %c69_286 = arith.constant 69 : index
    %1280 = memref.load %arg6[%c69_286] : memref<128xf32, #tpu.memory_space<smem>>
    %1281 = vector.broadcast %1280 : f32 to vector<8x8xf32>
    %1282 = arith.mulf %1281, %1259 : vector<8x8xf32>
    %1283 = arith.addf %1204, %1282 : vector<8x8xf32>
    %c70_287 = arith.constant 70 : index
    %1284 = memref.load %arg6[%c70_287] : memref<128xf32, #tpu.memory_space<smem>>
    %1285 = vector.broadcast %1284 : f32 to vector<8x8xf32>
    %1286 = arith.mulf %1285, %1259 : vector<8x8xf32>
    %1287 = arith.addf %1208, %1286 : vector<8x8xf32>
    %c71_288 = arith.constant 71 : index
    %1288 = memref.load %arg6[%c71_288] : memref<128xf32, #tpu.memory_space<smem>>
    %1289 = vector.broadcast %1288 : f32 to vector<8x8xf32>
    %1290 = arith.mulf %1289, %1259 : vector<8x8xf32>
    %1291 = arith.addf %1212, %1290 : vector<8x8xf32>
    %1292 = vector.extract_strided_slice %546 {offsets = [0, 0], sizes = [10, 8], strides = [1, 1]} : vector<10x10xf32> to vector<10x8xf32>
    %1293 = vector.extract_strided_slice %546 {offsets = [0, 1], sizes = [10, 8], strides = [1, 1]} : vector<10x10xf32> to vector<10x8xf32>
    %1294 = vector.extract_strided_slice %546 {offsets = [0, 2], sizes = [10, 8], strides = [1, 1]} : vector<10x10xf32> to vector<10x8xf32>
    %c9_289 = arith.constant 9 : index
    %1295 = memref.load %arg5[%c9_289] : memref<144xf32, #tpu.memory_space<smem>>
    %1296 = vector.extract_strided_slice %1292 {offsets = [0, 0], sizes = [8, 8], strides = [1, 1]} : vector<10x8xf32> to vector<8x8xf32>
    %1297 = vector.broadcast %1295 : f32 to vector<8x8xf32>
    %1298 = arith.mulf %1297, %1296 : vector<8x8xf32>
    %c25_290 = arith.constant 25 : index
    %1299 = memref.load %arg5[%c25_290] : memref<144xf32, #tpu.memory_space<smem>>
    %1300 = vector.extract_strided_slice %1293 {offsets = [0, 0], sizes = [8, 8], strides = [1, 1]} : vector<10x8xf32> to vector<8x8xf32>
    %1301 = vector.broadcast %1299 : f32 to vector<8x8xf32>
    %1302 = arith.mulf %1301, %1300 : vector<8x8xf32>
    %1303 = arith.addf %1298, %1302 : vector<8x8xf32>
    %c41_291 = arith.constant 41 : index
    %1304 = memref.load %arg5[%c41_291] : memref<144xf32, #tpu.memory_space<smem>>
    %1305 = vector.extract_strided_slice %1294 {offsets = [0, 0], sizes = [8, 8], strides = [1, 1]} : vector<10x8xf32> to vector<8x8xf32>
    %1306 = vector.broadcast %1304 : f32 to vector<8x8xf32>
    %1307 = arith.mulf %1306, %1305 : vector<8x8xf32>
    %1308 = arith.addf %1303, %1307 : vector<8x8xf32>
    %c57_292 = arith.constant 57 : index
    %1309 = memref.load %arg5[%c57_292] : memref<144xf32, #tpu.memory_space<smem>>
    %1310 = vector.extract_strided_slice %1292 {offsets = [1, 0], sizes = [8, 8], strides = [1, 1]} : vector<10x8xf32> to vector<8x8xf32>
    %1311 = vector.broadcast %1309 : f32 to vector<8x8xf32>
    %1312 = arith.mulf %1311, %1310 : vector<8x8xf32>
    %1313 = arith.addf %1308, %1312 : vector<8x8xf32>
    %c73 = arith.constant 73 : index
    %1314 = memref.load %arg5[%c73] : memref<144xf32, #tpu.memory_space<smem>>
    %1315 = vector.extract_strided_slice %1293 {offsets = [1, 0], sizes = [8, 8], strides = [1, 1]} : vector<10x8xf32> to vector<8x8xf32>
    %1316 = vector.broadcast %1314 : f32 to vector<8x8xf32>
    %1317 = arith.mulf %1316, %1315 : vector<8x8xf32>
    %1318 = arith.addf %1313, %1317 : vector<8x8xf32>
    %c89 = arith.constant 89 : index
    %1319 = memref.load %arg5[%c89] : memref<144xf32, #tpu.memory_space<smem>>
    %1320 = vector.extract_strided_slice %1294 {offsets = [1, 0], sizes = [8, 8], strides = [1, 1]} : vector<10x8xf32> to vector<8x8xf32>
    %1321 = vector.broadcast %1319 : f32 to vector<8x8xf32>
    %1322 = arith.mulf %1321, %1320 : vector<8x8xf32>
    %1323 = arith.addf %1318, %1322 : vector<8x8xf32>
    %c105 = arith.constant 105 : index
    %1324 = memref.load %arg5[%c105] : memref<144xf32, #tpu.memory_space<smem>>
    %1325 = vector.extract_strided_slice %1292 {offsets = [2, 0], sizes = [8, 8], strides = [1, 1]} : vector<10x8xf32> to vector<8x8xf32>
    %1326 = vector.broadcast %1324 : f32 to vector<8x8xf32>
    %1327 = arith.mulf %1326, %1325 : vector<8x8xf32>
    %1328 = arith.addf %1323, %1327 : vector<8x8xf32>
    %c121 = arith.constant 121 : index
    %1329 = memref.load %arg5[%c121] : memref<144xf32, #tpu.memory_space<smem>>
    %1330 = vector.extract_strided_slice %1293 {offsets = [2, 0], sizes = [8, 8], strides = [1, 1]} : vector<10x8xf32> to vector<8x8xf32>
    %1331 = vector.broadcast %1329 : f32 to vector<8x8xf32>
    %1332 = arith.mulf %1331, %1330 : vector<8x8xf32>
    %1333 = arith.addf %1328, %1332 : vector<8x8xf32>
    %c137 = arith.constant 137 : index
    %1334 = memref.load %arg5[%c137] : memref<144xf32, #tpu.memory_space<smem>>
    %1335 = vector.extract_strided_slice %1294 {offsets = [2, 0], sizes = [8, 8], strides = [1, 1]} : vector<10x8xf32> to vector<8x8xf32>
    %1336 = vector.broadcast %1334 : f32 to vector<8x8xf32>
    %1337 = arith.mulf %1336, %1335 : vector<8x8xf32>
    %1338 = arith.addf %1333, %1337 : vector<8x8xf32>
    %c72_293 = arith.constant 72 : index
    %1339 = memref.load %arg6[%c72_293] : memref<128xf32, #tpu.memory_space<smem>>
    %1340 = vector.broadcast %1339 : f32 to vector<8x8xf32>
    %1341 = arith.mulf %1340, %1338 : vector<8x8xf32>
    %1342 = arith.addf %1263, %1341 : vector<8x8xf32>
    %c73_294 = arith.constant 73 : index
    %1343 = memref.load %arg6[%c73_294] : memref<128xf32, #tpu.memory_space<smem>>
    %1344 = vector.broadcast %1343 : f32 to vector<8x8xf32>
    %1345 = arith.mulf %1344, %1338 : vector<8x8xf32>
    %1346 = arith.addf %1267, %1345 : vector<8x8xf32>
    %c74 = arith.constant 74 : index
    %1347 = memref.load %arg6[%c74] : memref<128xf32, #tpu.memory_space<smem>>
    %1348 = vector.broadcast %1347 : f32 to vector<8x8xf32>
    %1349 = arith.mulf %1348, %1338 : vector<8x8xf32>
    %1350 = arith.addf %1271, %1349 : vector<8x8xf32>
    %c75 = arith.constant 75 : index
    %1351 = memref.load %arg6[%c75] : memref<128xf32, #tpu.memory_space<smem>>
    %1352 = vector.broadcast %1351 : f32 to vector<8x8xf32>
    %1353 = arith.mulf %1352, %1338 : vector<8x8xf32>
    %1354 = arith.addf %1275, %1353 : vector<8x8xf32>
    %c76 = arith.constant 76 : index
    %1355 = memref.load %arg6[%c76] : memref<128xf32, #tpu.memory_space<smem>>
    %1356 = vector.broadcast %1355 : f32 to vector<8x8xf32>
    %1357 = arith.mulf %1356, %1338 : vector<8x8xf32>
    %1358 = arith.addf %1279, %1357 : vector<8x8xf32>
    %c77 = arith.constant 77 : index
    %1359 = memref.load %arg6[%c77] : memref<128xf32, #tpu.memory_space<smem>>
    %1360 = vector.broadcast %1359 : f32 to vector<8x8xf32>
    %1361 = arith.mulf %1360, %1338 : vector<8x8xf32>
    %1362 = arith.addf %1283, %1361 : vector<8x8xf32>
    %c78 = arith.constant 78 : index
    %1363 = memref.load %arg6[%c78] : memref<128xf32, #tpu.memory_space<smem>>
    %1364 = vector.broadcast %1363 : f32 to vector<8x8xf32>
    %1365 = arith.mulf %1364, %1338 : vector<8x8xf32>
    %1366 = arith.addf %1287, %1365 : vector<8x8xf32>
    %c79 = arith.constant 79 : index
    %1367 = memref.load %arg6[%c79] : memref<128xf32, #tpu.memory_space<smem>>
    %1368 = vector.broadcast %1367 : f32 to vector<8x8xf32>
    %1369 = arith.mulf %1368, %1338 : vector<8x8xf32>
    %1370 = arith.addf %1291, %1369 : vector<8x8xf32>
    %1371 = vector.extract_strided_slice %553 {offsets = [0, 0], sizes = [10, 8], strides = [1, 1]} : vector<10x10xf32> to vector<10x8xf32>
    %1372 = vector.extract_strided_slice %553 {offsets = [0, 1], sizes = [10, 8], strides = [1, 1]} : vector<10x10xf32> to vector<10x8xf32>
    %1373 = vector.extract_strided_slice %553 {offsets = [0, 2], sizes = [10, 8], strides = [1, 1]} : vector<10x10xf32> to vector<10x8xf32>
    %c10_295 = arith.constant 10 : index
    %1374 = memref.load %arg5[%c10_295] : memref<144xf32, #tpu.memory_space<smem>>
    %1375 = vector.extract_strided_slice %1371 {offsets = [0, 0], sizes = [8, 8], strides = [1, 1]} : vector<10x8xf32> to vector<8x8xf32>
    %1376 = vector.broadcast %1374 : f32 to vector<8x8xf32>
    %1377 = arith.mulf %1376, %1375 : vector<8x8xf32>
    %c26_296 = arith.constant 26 : index
    %1378 = memref.load %arg5[%c26_296] : memref<144xf32, #tpu.memory_space<smem>>
    %1379 = vector.extract_strided_slice %1372 {offsets = [0, 0], sizes = [8, 8], strides = [1, 1]} : vector<10x8xf32> to vector<8x8xf32>
    %1380 = vector.broadcast %1378 : f32 to vector<8x8xf32>
    %1381 = arith.mulf %1380, %1379 : vector<8x8xf32>
    %1382 = arith.addf %1377, %1381 : vector<8x8xf32>
    %c42_297 = arith.constant 42 : index
    %1383 = memref.load %arg5[%c42_297] : memref<144xf32, #tpu.memory_space<smem>>
    %1384 = vector.extract_strided_slice %1373 {offsets = [0, 0], sizes = [8, 8], strides = [1, 1]} : vector<10x8xf32> to vector<8x8xf32>
    %1385 = vector.broadcast %1383 : f32 to vector<8x8xf32>
    %1386 = arith.mulf %1385, %1384 : vector<8x8xf32>
    %1387 = arith.addf %1382, %1386 : vector<8x8xf32>
    %c58_298 = arith.constant 58 : index
    %1388 = memref.load %arg5[%c58_298] : memref<144xf32, #tpu.memory_space<smem>>
    %1389 = vector.extract_strided_slice %1371 {offsets = [1, 0], sizes = [8, 8], strides = [1, 1]} : vector<10x8xf32> to vector<8x8xf32>
    %1390 = vector.broadcast %1388 : f32 to vector<8x8xf32>
    %1391 = arith.mulf %1390, %1389 : vector<8x8xf32>
    %1392 = arith.addf %1387, %1391 : vector<8x8xf32>
    %c74_299 = arith.constant 74 : index
    %1393 = memref.load %arg5[%c74_299] : memref<144xf32, #tpu.memory_space<smem>>
    %1394 = vector.extract_strided_slice %1372 {offsets = [1, 0], sizes = [8, 8], strides = [1, 1]} : vector<10x8xf32> to vector<8x8xf32>
    %1395 = vector.broadcast %1393 : f32 to vector<8x8xf32>
    %1396 = arith.mulf %1395, %1394 : vector<8x8xf32>
    %1397 = arith.addf %1392, %1396 : vector<8x8xf32>
    %c90 = arith.constant 90 : index
    %1398 = memref.load %arg5[%c90] : memref<144xf32, #tpu.memory_space<smem>>
    %1399 = vector.extract_strided_slice %1373 {offsets = [1, 0], sizes = [8, 8], strides = [1, 1]} : vector<10x8xf32> to vector<8x8xf32>
    %1400 = vector.broadcast %1398 : f32 to vector<8x8xf32>
    %1401 = arith.mulf %1400, %1399 : vector<8x8xf32>
    %1402 = arith.addf %1397, %1401 : vector<8x8xf32>
    %c106 = arith.constant 106 : index
    %1403 = memref.load %arg5[%c106] : memref<144xf32, #tpu.memory_space<smem>>
    %1404 = vector.extract_strided_slice %1371 {offsets = [2, 0], sizes = [8, 8], strides = [1, 1]} : vector<10x8xf32> to vector<8x8xf32>
    %1405 = vector.broadcast %1403 : f32 to vector<8x8xf32>
    %1406 = arith.mulf %1405, %1404 : vector<8x8xf32>
    %1407 = arith.addf %1402, %1406 : vector<8x8xf32>
    %c122 = arith.constant 122 : index
    %1408 = memref.load %arg5[%c122] : memref<144xf32, #tpu.memory_space<smem>>
    %1409 = vector.extract_strided_slice %1372 {offsets = [2, 0], sizes = [8, 8], strides = [1, 1]} : vector<10x8xf32> to vector<8x8xf32>
    %1410 = vector.broadcast %1408 : f32 to vector<8x8xf32>
    %1411 = arith.mulf %1410, %1409 : vector<8x8xf32>
    %1412 = arith.addf %1407, %1411 : vector<8x8xf32>
    %c138 = arith.constant 138 : index
    %1413 = memref.load %arg5[%c138] : memref<144xf32, #tpu.memory_space<smem>>
    %1414 = vector.extract_strided_slice %1373 {offsets = [2, 0], sizes = [8, 8], strides = [1, 1]} : vector<10x8xf32> to vector<8x8xf32>
    %1415 = vector.broadcast %1413 : f32 to vector<8x8xf32>
    %1416 = arith.mulf %1415, %1414 : vector<8x8xf32>
    %1417 = arith.addf %1412, %1416 : vector<8x8xf32>
    %c80_300 = arith.constant 80 : index
    %1418 = memref.load %arg6[%c80_300] : memref<128xf32, #tpu.memory_space<smem>>
    %1419 = vector.broadcast %1418 : f32 to vector<8x8xf32>
    %1420 = arith.mulf %1419, %1417 : vector<8x8xf32>
    %1421 = arith.addf %1342, %1420 : vector<8x8xf32>
    %c81_301 = arith.constant 81 : index
    %1422 = memref.load %arg6[%c81_301] : memref<128xf32, #tpu.memory_space<smem>>
    %1423 = vector.broadcast %1422 : f32 to vector<8x8xf32>
    %1424 = arith.mulf %1423, %1417 : vector<8x8xf32>
    %1425 = arith.addf %1346, %1424 : vector<8x8xf32>
    %c82_302 = arith.constant 82 : index
    %1426 = memref.load %arg6[%c82_302] : memref<128xf32, #tpu.memory_space<smem>>
    %1427 = vector.broadcast %1426 : f32 to vector<8x8xf32>
    %1428 = arith.mulf %1427, %1417 : vector<8x8xf32>
    %1429 = arith.addf %1350, %1428 : vector<8x8xf32>
    %c83_303 = arith.constant 83 : index
    %1430 = memref.load %arg6[%c83_303] : memref<128xf32, #tpu.memory_space<smem>>
    %1431 = vector.broadcast %1430 : f32 to vector<8x8xf32>
    %1432 = arith.mulf %1431, %1417 : vector<8x8xf32>
    %1433 = arith.addf %1354, %1432 : vector<8x8xf32>
    %c84_304 = arith.constant 84 : index
    %1434 = memref.load %arg6[%c84_304] : memref<128xf32, #tpu.memory_space<smem>>
    %1435 = vector.broadcast %1434 : f32 to vector<8x8xf32>
    %1436 = arith.mulf %1435, %1417 : vector<8x8xf32>
    %1437 = arith.addf %1358, %1436 : vector<8x8xf32>
    %c85_305 = arith.constant 85 : index
    %1438 = memref.load %arg6[%c85_305] : memref<128xf32, #tpu.memory_space<smem>>
    %1439 = vector.broadcast %1438 : f32 to vector<8x8xf32>
    %1440 = arith.mulf %1439, %1417 : vector<8x8xf32>
    %1441 = arith.addf %1362, %1440 : vector<8x8xf32>
    %c86_306 = arith.constant 86 : index
    %1442 = memref.load %arg6[%c86_306] : memref<128xf32, #tpu.memory_space<smem>>
    %1443 = vector.broadcast %1442 : f32 to vector<8x8xf32>
    %1444 = arith.mulf %1443, %1417 : vector<8x8xf32>
    %1445 = arith.addf %1366, %1444 : vector<8x8xf32>
    %c87_307 = arith.constant 87 : index
    %1446 = memref.load %arg6[%c87_307] : memref<128xf32, #tpu.memory_space<smem>>
    %1447 = vector.broadcast %1446 : f32 to vector<8x8xf32>
    %1448 = arith.mulf %1447, %1417 : vector<8x8xf32>
    %1449 = arith.addf %1370, %1448 : vector<8x8xf32>
    %1450 = vector.extract_strided_slice %560 {offsets = [0, 0], sizes = [10, 8], strides = [1, 1]} : vector<10x10xf32> to vector<10x8xf32>
    %1451 = vector.extract_strided_slice %560 {offsets = [0, 1], sizes = [10, 8], strides = [1, 1]} : vector<10x10xf32> to vector<10x8xf32>
    %1452 = vector.extract_strided_slice %560 {offsets = [0, 2], sizes = [10, 8], strides = [1, 1]} : vector<10x10xf32> to vector<10x8xf32>
    %c11_308 = arith.constant 11 : index
    %1453 = memref.load %arg5[%c11_308] : memref<144xf32, #tpu.memory_space<smem>>
    %1454 = vector.extract_strided_slice %1450 {offsets = [0, 0], sizes = [8, 8], strides = [1, 1]} : vector<10x8xf32> to vector<8x8xf32>
    %1455 = vector.broadcast %1453 : f32 to vector<8x8xf32>
    %1456 = arith.mulf %1455, %1454 : vector<8x8xf32>
    %c27_309 = arith.constant 27 : index
    %1457 = memref.load %arg5[%c27_309] : memref<144xf32, #tpu.memory_space<smem>>
    %1458 = vector.extract_strided_slice %1451 {offsets = [0, 0], sizes = [8, 8], strides = [1, 1]} : vector<10x8xf32> to vector<8x8xf32>
    %1459 = vector.broadcast %1457 : f32 to vector<8x8xf32>
    %1460 = arith.mulf %1459, %1458 : vector<8x8xf32>
    %1461 = arith.addf %1456, %1460 : vector<8x8xf32>
    %c43_310 = arith.constant 43 : index
    %1462 = memref.load %arg5[%c43_310] : memref<144xf32, #tpu.memory_space<smem>>
    %1463 = vector.extract_strided_slice %1452 {offsets = [0, 0], sizes = [8, 8], strides = [1, 1]} : vector<10x8xf32> to vector<8x8xf32>
    %1464 = vector.broadcast %1462 : f32 to vector<8x8xf32>
    %1465 = arith.mulf %1464, %1463 : vector<8x8xf32>
    %1466 = arith.addf %1461, %1465 : vector<8x8xf32>
    %c59_311 = arith.constant 59 : index
    %1467 = memref.load %arg5[%c59_311] : memref<144xf32, #tpu.memory_space<smem>>
    %1468 = vector.extract_strided_slice %1450 {offsets = [1, 0], sizes = [8, 8], strides = [1, 1]} : vector<10x8xf32> to vector<8x8xf32>
    %1469 = vector.broadcast %1467 : f32 to vector<8x8xf32>
    %1470 = arith.mulf %1469, %1468 : vector<8x8xf32>
    %1471 = arith.addf %1466, %1470 : vector<8x8xf32>
    %c75_312 = arith.constant 75 : index
    %1472 = memref.load %arg5[%c75_312] : memref<144xf32, #tpu.memory_space<smem>>
    %1473 = vector.extract_strided_slice %1451 {offsets = [1, 0], sizes = [8, 8], strides = [1, 1]} : vector<10x8xf32> to vector<8x8xf32>
    %1474 = vector.broadcast %1472 : f32 to vector<8x8xf32>
    %1475 = arith.mulf %1474, %1473 : vector<8x8xf32>
    %1476 = arith.addf %1471, %1475 : vector<8x8xf32>
    %c91 = arith.constant 91 : index
    %1477 = memref.load %arg5[%c91] : memref<144xf32, #tpu.memory_space<smem>>
    %1478 = vector.extract_strided_slice %1452 {offsets = [1, 0], sizes = [8, 8], strides = [1, 1]} : vector<10x8xf32> to vector<8x8xf32>
    %1479 = vector.broadcast %1477 : f32 to vector<8x8xf32>
    %1480 = arith.mulf %1479, %1478 : vector<8x8xf32>
    %1481 = arith.addf %1476, %1480 : vector<8x8xf32>
    %c107 = arith.constant 107 : index
    %1482 = memref.load %arg5[%c107] : memref<144xf32, #tpu.memory_space<smem>>
    %1483 = vector.extract_strided_slice %1450 {offsets = [2, 0], sizes = [8, 8], strides = [1, 1]} : vector<10x8xf32> to vector<8x8xf32>
    %1484 = vector.broadcast %1482 : f32 to vector<8x8xf32>
    %1485 = arith.mulf %1484, %1483 : vector<8x8xf32>
    %1486 = arith.addf %1481, %1485 : vector<8x8xf32>
    %c123 = arith.constant 123 : index
    %1487 = memref.load %arg5[%c123] : memref<144xf32, #tpu.memory_space<smem>>
    %1488 = vector.extract_strided_slice %1451 {offsets = [2, 0], sizes = [8, 8], strides = [1, 1]} : vector<10x8xf32> to vector<8x8xf32>
    %1489 = vector.broadcast %1487 : f32 to vector<8x8xf32>
    %1490 = arith.mulf %1489, %1488 : vector<8x8xf32>
    %1491 = arith.addf %1486, %1490 : vector<8x8xf32>
    %c139 = arith.constant 139 : index
    %1492 = memref.load %arg5[%c139] : memref<144xf32, #tpu.memory_space<smem>>
    %1493 = vector.extract_strided_slice %1452 {offsets = [2, 0], sizes = [8, 8], strides = [1, 1]} : vector<10x8xf32> to vector<8x8xf32>
    %1494 = vector.broadcast %1492 : f32 to vector<8x8xf32>
    %1495 = arith.mulf %1494, %1493 : vector<8x8xf32>
    %1496 = arith.addf %1491, %1495 : vector<8x8xf32>
    %c88_313 = arith.constant 88 : index
    %1497 = memref.load %arg6[%c88_313] : memref<128xf32, #tpu.memory_space<smem>>
    %1498 = vector.broadcast %1497 : f32 to vector<8x8xf32>
    %1499 = arith.mulf %1498, %1496 : vector<8x8xf32>
    %1500 = arith.addf %1421, %1499 : vector<8x8xf32>
    %c89_314 = arith.constant 89 : index
    %1501 = memref.load %arg6[%c89_314] : memref<128xf32, #tpu.memory_space<smem>>
    %1502 = vector.broadcast %1501 : f32 to vector<8x8xf32>
    %1503 = arith.mulf %1502, %1496 : vector<8x8xf32>
    %1504 = arith.addf %1425, %1503 : vector<8x8xf32>
    %c90_315 = arith.constant 90 : index
    %1505 = memref.load %arg6[%c90_315] : memref<128xf32, #tpu.memory_space<smem>>
    %1506 = vector.broadcast %1505 : f32 to vector<8x8xf32>
    %1507 = arith.mulf %1506, %1496 : vector<8x8xf32>
    %1508 = arith.addf %1429, %1507 : vector<8x8xf32>
    %c91_316 = arith.constant 91 : index
    %1509 = memref.load %arg6[%c91_316] : memref<128xf32, #tpu.memory_space<smem>>
    %1510 = vector.broadcast %1509 : f32 to vector<8x8xf32>
    %1511 = arith.mulf %1510, %1496 : vector<8x8xf32>
    %1512 = arith.addf %1433, %1511 : vector<8x8xf32>
    %c92 = arith.constant 92 : index
    %1513 = memref.load %arg6[%c92] : memref<128xf32, #tpu.memory_space<smem>>
    %1514 = vector.broadcast %1513 : f32 to vector<8x8xf32>
    %1515 = arith.mulf %1514, %1496 : vector<8x8xf32>
    %1516 = arith.addf %1437, %1515 : vector<8x8xf32>
    %c93 = arith.constant 93 : index
    %1517 = memref.load %arg6[%c93] : memref<128xf32, #tpu.memory_space<smem>>
    %1518 = vector.broadcast %1517 : f32 to vector<8x8xf32>
    %1519 = arith.mulf %1518, %1496 : vector<8x8xf32>
    %1520 = arith.addf %1441, %1519 : vector<8x8xf32>
    %c94 = arith.constant 94 : index
    %1521 = memref.load %arg6[%c94] : memref<128xf32, #tpu.memory_space<smem>>
    %1522 = vector.broadcast %1521 : f32 to vector<8x8xf32>
    %1523 = arith.mulf %1522, %1496 : vector<8x8xf32>
    %1524 = arith.addf %1445, %1523 : vector<8x8xf32>
    %c95 = arith.constant 95 : index
    %1525 = memref.load %arg6[%c95] : memref<128xf32, #tpu.memory_space<smem>>
    %1526 = vector.broadcast %1525 : f32 to vector<8x8xf32>
    %1527 = arith.mulf %1526, %1496 : vector<8x8xf32>
    %1528 = arith.addf %1449, %1527 : vector<8x8xf32>
    %1529 = vector.extract_strided_slice %567 {offsets = [0, 0], sizes = [10, 8], strides = [1, 1]} : vector<10x10xf32> to vector<10x8xf32>
    %1530 = vector.extract_strided_slice %567 {offsets = [0, 1], sizes = [10, 8], strides = [1, 1]} : vector<10x10xf32> to vector<10x8xf32>
    %1531 = vector.extract_strided_slice %567 {offsets = [0, 2], sizes = [10, 8], strides = [1, 1]} : vector<10x10xf32> to vector<10x8xf32>
    %c12_317 = arith.constant 12 : index
    %1532 = memref.load %arg5[%c12_317] : memref<144xf32, #tpu.memory_space<smem>>
    %1533 = vector.extract_strided_slice %1529 {offsets = [0, 0], sizes = [8, 8], strides = [1, 1]} : vector<10x8xf32> to vector<8x8xf32>
    %1534 = vector.broadcast %1532 : f32 to vector<8x8xf32>
    %1535 = arith.mulf %1534, %1533 : vector<8x8xf32>
    %c28_318 = arith.constant 28 : index
    %1536 = memref.load %arg5[%c28_318] : memref<144xf32, #tpu.memory_space<smem>>
    %1537 = vector.extract_strided_slice %1530 {offsets = [0, 0], sizes = [8, 8], strides = [1, 1]} : vector<10x8xf32> to vector<8x8xf32>
    %1538 = vector.broadcast %1536 : f32 to vector<8x8xf32>
    %1539 = arith.mulf %1538, %1537 : vector<8x8xf32>
    %1540 = arith.addf %1535, %1539 : vector<8x8xf32>
    %c44_319 = arith.constant 44 : index
    %1541 = memref.load %arg5[%c44_319] : memref<144xf32, #tpu.memory_space<smem>>
    %1542 = vector.extract_strided_slice %1531 {offsets = [0, 0], sizes = [8, 8], strides = [1, 1]} : vector<10x8xf32> to vector<8x8xf32>
    %1543 = vector.broadcast %1541 : f32 to vector<8x8xf32>
    %1544 = arith.mulf %1543, %1542 : vector<8x8xf32>
    %1545 = arith.addf %1540, %1544 : vector<8x8xf32>
    %c60_320 = arith.constant 60 : index
    %1546 = memref.load %arg5[%c60_320] : memref<144xf32, #tpu.memory_space<smem>>
    %1547 = vector.extract_strided_slice %1529 {offsets = [1, 0], sizes = [8, 8], strides = [1, 1]} : vector<10x8xf32> to vector<8x8xf32>
    %1548 = vector.broadcast %1546 : f32 to vector<8x8xf32>
    %1549 = arith.mulf %1548, %1547 : vector<8x8xf32>
    %1550 = arith.addf %1545, %1549 : vector<8x8xf32>
    %c76_321 = arith.constant 76 : index
    %1551 = memref.load %arg5[%c76_321] : memref<144xf32, #tpu.memory_space<smem>>
    %1552 = vector.extract_strided_slice %1530 {offsets = [1, 0], sizes = [8, 8], strides = [1, 1]} : vector<10x8xf32> to vector<8x8xf32>
    %1553 = vector.broadcast %1551 : f32 to vector<8x8xf32>
    %1554 = arith.mulf %1553, %1552 : vector<8x8xf32>
    %1555 = arith.addf %1550, %1554 : vector<8x8xf32>
    %c92_322 = arith.constant 92 : index
    %1556 = memref.load %arg5[%c92_322] : memref<144xf32, #tpu.memory_space<smem>>
    %1557 = vector.extract_strided_slice %1531 {offsets = [1, 0], sizes = [8, 8], strides = [1, 1]} : vector<10x8xf32> to vector<8x8xf32>
    %1558 = vector.broadcast %1556 : f32 to vector<8x8xf32>
    %1559 = arith.mulf %1558, %1557 : vector<8x8xf32>
    %1560 = arith.addf %1555, %1559 : vector<8x8xf32>
    %c108 = arith.constant 108 : index
    %1561 = memref.load %arg5[%c108] : memref<144xf32, #tpu.memory_space<smem>>
    %1562 = vector.extract_strided_slice %1529 {offsets = [2, 0], sizes = [8, 8], strides = [1, 1]} : vector<10x8xf32> to vector<8x8xf32>
    %1563 = vector.broadcast %1561 : f32 to vector<8x8xf32>
    %1564 = arith.mulf %1563, %1562 : vector<8x8xf32>
    %1565 = arith.addf %1560, %1564 : vector<8x8xf32>
    %c124 = arith.constant 124 : index
    %1566 = memref.load %arg5[%c124] : memref<144xf32, #tpu.memory_space<smem>>
    %1567 = vector.extract_strided_slice %1530 {offsets = [2, 0], sizes = [8, 8], strides = [1, 1]} : vector<10x8xf32> to vector<8x8xf32>
    %1568 = vector.broadcast %1566 : f32 to vector<8x8xf32>
    %1569 = arith.mulf %1568, %1567 : vector<8x8xf32>
    %1570 = arith.addf %1565, %1569 : vector<8x8xf32>
    %c140 = arith.constant 140 : index
    %1571 = memref.load %arg5[%c140] : memref<144xf32, #tpu.memory_space<smem>>
    %1572 = vector.extract_strided_slice %1531 {offsets = [2, 0], sizes = [8, 8], strides = [1, 1]} : vector<10x8xf32> to vector<8x8xf32>
    %1573 = vector.broadcast %1571 : f32 to vector<8x8xf32>
    %1574 = arith.mulf %1573, %1572 : vector<8x8xf32>
    %1575 = arith.addf %1570, %1574 : vector<8x8xf32>
    %c96_323 = arith.constant 96 : index
    %1576 = memref.load %arg6[%c96_323] : memref<128xf32, #tpu.memory_space<smem>>
    %1577 = vector.broadcast %1576 : f32 to vector<8x8xf32>
    %1578 = arith.mulf %1577, %1575 : vector<8x8xf32>
    %1579 = arith.addf %1500, %1578 : vector<8x8xf32>
    %c97_324 = arith.constant 97 : index
    %1580 = memref.load %arg6[%c97_324] : memref<128xf32, #tpu.memory_space<smem>>
    %1581 = vector.broadcast %1580 : f32 to vector<8x8xf32>
    %1582 = arith.mulf %1581, %1575 : vector<8x8xf32>
    %1583 = arith.addf %1504, %1582 : vector<8x8xf32>
    %c98_325 = arith.constant 98 : index
    %1584 = memref.load %arg6[%c98_325] : memref<128xf32, #tpu.memory_space<smem>>
    %1585 = vector.broadcast %1584 : f32 to vector<8x8xf32>
    %1586 = arith.mulf %1585, %1575 : vector<8x8xf32>
    %1587 = arith.addf %1508, %1586 : vector<8x8xf32>
    %c99_326 = arith.constant 99 : index
    %1588 = memref.load %arg6[%c99_326] : memref<128xf32, #tpu.memory_space<smem>>
    %1589 = vector.broadcast %1588 : f32 to vector<8x8xf32>
    %1590 = arith.mulf %1589, %1575 : vector<8x8xf32>
    %1591 = arith.addf %1512, %1590 : vector<8x8xf32>
    %c100_327 = arith.constant 100 : index
    %1592 = memref.load %arg6[%c100_327] : memref<128xf32, #tpu.memory_space<smem>>
    %1593 = vector.broadcast %1592 : f32 to vector<8x8xf32>
    %1594 = arith.mulf %1593, %1575 : vector<8x8xf32>
    %1595 = arith.addf %1516, %1594 : vector<8x8xf32>
    %c101_328 = arith.constant 101 : index
    %1596 = memref.load %arg6[%c101_328] : memref<128xf32, #tpu.memory_space<smem>>
    %1597 = vector.broadcast %1596 : f32 to vector<8x8xf32>
    %1598 = arith.mulf %1597, %1575 : vector<8x8xf32>
    %1599 = arith.addf %1520, %1598 : vector<8x8xf32>
    %c102_329 = arith.constant 102 : index
    %1600 = memref.load %arg6[%c102_329] : memref<128xf32, #tpu.memory_space<smem>>
    %1601 = vector.broadcast %1600 : f32 to vector<8x8xf32>
    %1602 = arith.mulf %1601, %1575 : vector<8x8xf32>
    %1603 = arith.addf %1524, %1602 : vector<8x8xf32>
    %c103_330 = arith.constant 103 : index
    %1604 = memref.load %arg6[%c103_330] : memref<128xf32, #tpu.memory_space<smem>>
    %1605 = vector.broadcast %1604 : f32 to vector<8x8xf32>
    %1606 = arith.mulf %1605, %1575 : vector<8x8xf32>
    %1607 = arith.addf %1528, %1606 : vector<8x8xf32>
    %1608 = vector.extract_strided_slice %574 {offsets = [0, 0], sizes = [10, 8], strides = [1, 1]} : vector<10x10xf32> to vector<10x8xf32>
    %1609 = vector.extract_strided_slice %574 {offsets = [0, 1], sizes = [10, 8], strides = [1, 1]} : vector<10x10xf32> to vector<10x8xf32>
    %1610 = vector.extract_strided_slice %574 {offsets = [0, 2], sizes = [10, 8], strides = [1, 1]} : vector<10x10xf32> to vector<10x8xf32>
    %c13_331 = arith.constant 13 : index
    %1611 = memref.load %arg5[%c13_331] : memref<144xf32, #tpu.memory_space<smem>>
    %1612 = vector.extract_strided_slice %1608 {offsets = [0, 0], sizes = [8, 8], strides = [1, 1]} : vector<10x8xf32> to vector<8x8xf32>
    %1613 = vector.broadcast %1611 : f32 to vector<8x8xf32>
    %1614 = arith.mulf %1613, %1612 : vector<8x8xf32>
    %c29_332 = arith.constant 29 : index
    %1615 = memref.load %arg5[%c29_332] : memref<144xf32, #tpu.memory_space<smem>>
    %1616 = vector.extract_strided_slice %1609 {offsets = [0, 0], sizes = [8, 8], strides = [1, 1]} : vector<10x8xf32> to vector<8x8xf32>
    %1617 = vector.broadcast %1615 : f32 to vector<8x8xf32>
    %1618 = arith.mulf %1617, %1616 : vector<8x8xf32>
    %1619 = arith.addf %1614, %1618 : vector<8x8xf32>
    %c45_333 = arith.constant 45 : index
    %1620 = memref.load %arg5[%c45_333] : memref<144xf32, #tpu.memory_space<smem>>
    %1621 = vector.extract_strided_slice %1610 {offsets = [0, 0], sizes = [8, 8], strides = [1, 1]} : vector<10x8xf32> to vector<8x8xf32>
    %1622 = vector.broadcast %1620 : f32 to vector<8x8xf32>
    %1623 = arith.mulf %1622, %1621 : vector<8x8xf32>
    %1624 = arith.addf %1619, %1623 : vector<8x8xf32>
    %c61_334 = arith.constant 61 : index
    %1625 = memref.load %arg5[%c61_334] : memref<144xf32, #tpu.memory_space<smem>>
    %1626 = vector.extract_strided_slice %1608 {offsets = [1, 0], sizes = [8, 8], strides = [1, 1]} : vector<10x8xf32> to vector<8x8xf32>
    %1627 = vector.broadcast %1625 : f32 to vector<8x8xf32>
    %1628 = arith.mulf %1627, %1626 : vector<8x8xf32>
    %1629 = arith.addf %1624, %1628 : vector<8x8xf32>
    %c77_335 = arith.constant 77 : index
    %1630 = memref.load %arg5[%c77_335] : memref<144xf32, #tpu.memory_space<smem>>
    %1631 = vector.extract_strided_slice %1609 {offsets = [1, 0], sizes = [8, 8], strides = [1, 1]} : vector<10x8xf32> to vector<8x8xf32>
    %1632 = vector.broadcast %1630 : f32 to vector<8x8xf32>
    %1633 = arith.mulf %1632, %1631 : vector<8x8xf32>
    %1634 = arith.addf %1629, %1633 : vector<8x8xf32>
    %c93_336 = arith.constant 93 : index
    %1635 = memref.load %arg5[%c93_336] : memref<144xf32, #tpu.memory_space<smem>>
    %1636 = vector.extract_strided_slice %1610 {offsets = [1, 0], sizes = [8, 8], strides = [1, 1]} : vector<10x8xf32> to vector<8x8xf32>
    %1637 = vector.broadcast %1635 : f32 to vector<8x8xf32>
    %1638 = arith.mulf %1637, %1636 : vector<8x8xf32>
    %1639 = arith.addf %1634, %1638 : vector<8x8xf32>
    %c109 = arith.constant 109 : index
    %1640 = memref.load %arg5[%c109] : memref<144xf32, #tpu.memory_space<smem>>
    %1641 = vector.extract_strided_slice %1608 {offsets = [2, 0], sizes = [8, 8], strides = [1, 1]} : vector<10x8xf32> to vector<8x8xf32>
    %1642 = vector.broadcast %1640 : f32 to vector<8x8xf32>
    %1643 = arith.mulf %1642, %1641 : vector<8x8xf32>
    %1644 = arith.addf %1639, %1643 : vector<8x8xf32>
    %c125 = arith.constant 125 : index
    %1645 = memref.load %arg5[%c125] : memref<144xf32, #tpu.memory_space<smem>>
    %1646 = vector.extract_strided_slice %1609 {offsets = [2, 0], sizes = [8, 8], strides = [1, 1]} : vector<10x8xf32> to vector<8x8xf32>
    %1647 = vector.broadcast %1645 : f32 to vector<8x8xf32>
    %1648 = arith.mulf %1647, %1646 : vector<8x8xf32>
    %1649 = arith.addf %1644, %1648 : vector<8x8xf32>
    %c141 = arith.constant 141 : index
    %1650 = memref.load %arg5[%c141] : memref<144xf32, #tpu.memory_space<smem>>
    %1651 = vector.extract_strided_slice %1610 {offsets = [2, 0], sizes = [8, 8], strides = [1, 1]} : vector<10x8xf32> to vector<8x8xf32>
    %1652 = vector.broadcast %1650 : f32 to vector<8x8xf32>
    %1653 = arith.mulf %1652, %1651 : vector<8x8xf32>
    %1654 = arith.addf %1649, %1653 : vector<8x8xf32>
    %c104_337 = arith.constant 104 : index
    %1655 = memref.load %arg6[%c104_337] : memref<128xf32, #tpu.memory_space<smem>>
    %1656 = vector.broadcast %1655 : f32 to vector<8x8xf32>
    %1657 = arith.mulf %1656, %1654 : vector<8x8xf32>
    %1658 = arith.addf %1579, %1657 : vector<8x8xf32>
    %c105_338 = arith.constant 105 : index
    %1659 = memref.load %arg6[%c105_338] : memref<128xf32, #tpu.memory_space<smem>>
    %1660 = vector.broadcast %1659 : f32 to vector<8x8xf32>
    %1661 = arith.mulf %1660, %1654 : vector<8x8xf32>
    %1662 = arith.addf %1583, %1661 : vector<8x8xf32>
    %c106_339 = arith.constant 106 : index
    %1663 = memref.load %arg6[%c106_339] : memref<128xf32, #tpu.memory_space<smem>>
    %1664 = vector.broadcast %1663 : f32 to vector<8x8xf32>
    %1665 = arith.mulf %1664, %1654 : vector<8x8xf32>
    %1666 = arith.addf %1587, %1665 : vector<8x8xf32>
    %c107_340 = arith.constant 107 : index
    %1667 = memref.load %arg6[%c107_340] : memref<128xf32, #tpu.memory_space<smem>>
    %1668 = vector.broadcast %1667 : f32 to vector<8x8xf32>
    %1669 = arith.mulf %1668, %1654 : vector<8x8xf32>
    %1670 = arith.addf %1591, %1669 : vector<8x8xf32>
    %c108_341 = arith.constant 108 : index
    %1671 = memref.load %arg6[%c108_341] : memref<128xf32, #tpu.memory_space<smem>>
    %1672 = vector.broadcast %1671 : f32 to vector<8x8xf32>
    %1673 = arith.mulf %1672, %1654 : vector<8x8xf32>
    %1674 = arith.addf %1595, %1673 : vector<8x8xf32>
    %c109_342 = arith.constant 109 : index
    %1675 = memref.load %arg6[%c109_342] : memref<128xf32, #tpu.memory_space<smem>>
    %1676 = vector.broadcast %1675 : f32 to vector<8x8xf32>
    %1677 = arith.mulf %1676, %1654 : vector<8x8xf32>
    %1678 = arith.addf %1599, %1677 : vector<8x8xf32>
    %c110 = arith.constant 110 : index
    %1679 = memref.load %arg6[%c110] : memref<128xf32, #tpu.memory_space<smem>>
    %1680 = vector.broadcast %1679 : f32 to vector<8x8xf32>
    %1681 = arith.mulf %1680, %1654 : vector<8x8xf32>
    %1682 = arith.addf %1603, %1681 : vector<8x8xf32>
    %c111 = arith.constant 111 : index
    %1683 = memref.load %arg6[%c111] : memref<128xf32, #tpu.memory_space<smem>>
    %1684 = vector.broadcast %1683 : f32 to vector<8x8xf32>
    %1685 = arith.mulf %1684, %1654 : vector<8x8xf32>
    %1686 = arith.addf %1607, %1685 : vector<8x8xf32>
    %1687 = vector.extract_strided_slice %581 {offsets = [0, 0], sizes = [10, 8], strides = [1, 1]} : vector<10x10xf32> to vector<10x8xf32>
    %1688 = vector.extract_strided_slice %581 {offsets = [0, 1], sizes = [10, 8], strides = [1, 1]} : vector<10x10xf32> to vector<10x8xf32>
    %1689 = vector.extract_strided_slice %581 {offsets = [0, 2], sizes = [10, 8], strides = [1, 1]} : vector<10x10xf32> to vector<10x8xf32>
    %c14_343 = arith.constant 14 : index
    %1690 = memref.load %arg5[%c14_343] : memref<144xf32, #tpu.memory_space<smem>>
    %1691 = vector.extract_strided_slice %1687 {offsets = [0, 0], sizes = [8, 8], strides = [1, 1]} : vector<10x8xf32> to vector<8x8xf32>
    %1692 = vector.broadcast %1690 : f32 to vector<8x8xf32>
    %1693 = arith.mulf %1692, %1691 : vector<8x8xf32>
    %c30_344 = arith.constant 30 : index
    %1694 = memref.load %arg5[%c30_344] : memref<144xf32, #tpu.memory_space<smem>>
    %1695 = vector.extract_strided_slice %1688 {offsets = [0, 0], sizes = [8, 8], strides = [1, 1]} : vector<10x8xf32> to vector<8x8xf32>
    %1696 = vector.broadcast %1694 : f32 to vector<8x8xf32>
    %1697 = arith.mulf %1696, %1695 : vector<8x8xf32>
    %1698 = arith.addf %1693, %1697 : vector<8x8xf32>
    %c46_345 = arith.constant 46 : index
    %1699 = memref.load %arg5[%c46_345] : memref<144xf32, #tpu.memory_space<smem>>
    %1700 = vector.extract_strided_slice %1689 {offsets = [0, 0], sizes = [8, 8], strides = [1, 1]} : vector<10x8xf32> to vector<8x8xf32>
    %1701 = vector.broadcast %1699 : f32 to vector<8x8xf32>
    %1702 = arith.mulf %1701, %1700 : vector<8x8xf32>
    %1703 = arith.addf %1698, %1702 : vector<8x8xf32>
    %c62_346 = arith.constant 62 : index
    %1704 = memref.load %arg5[%c62_346] : memref<144xf32, #tpu.memory_space<smem>>
    %1705 = vector.extract_strided_slice %1687 {offsets = [1, 0], sizes = [8, 8], strides = [1, 1]} : vector<10x8xf32> to vector<8x8xf32>
    %1706 = vector.broadcast %1704 : f32 to vector<8x8xf32>
    %1707 = arith.mulf %1706, %1705 : vector<8x8xf32>
    %1708 = arith.addf %1703, %1707 : vector<8x8xf32>
    %c78_347 = arith.constant 78 : index
    %1709 = memref.load %arg5[%c78_347] : memref<144xf32, #tpu.memory_space<smem>>
    %1710 = vector.extract_strided_slice %1688 {offsets = [1, 0], sizes = [8, 8], strides = [1, 1]} : vector<10x8xf32> to vector<8x8xf32>
    %1711 = vector.broadcast %1709 : f32 to vector<8x8xf32>
    %1712 = arith.mulf %1711, %1710 : vector<8x8xf32>
    %1713 = arith.addf %1708, %1712 : vector<8x8xf32>
    %c94_348 = arith.constant 94 : index
    %1714 = memref.load %arg5[%c94_348] : memref<144xf32, #tpu.memory_space<smem>>
    %1715 = vector.extract_strided_slice %1689 {offsets = [1, 0], sizes = [8, 8], strides = [1, 1]} : vector<10x8xf32> to vector<8x8xf32>
    %1716 = vector.broadcast %1714 : f32 to vector<8x8xf32>
    %1717 = arith.mulf %1716, %1715 : vector<8x8xf32>
    %1718 = arith.addf %1713, %1717 : vector<8x8xf32>
    %c110_349 = arith.constant 110 : index
    %1719 = memref.load %arg5[%c110_349] : memref<144xf32, #tpu.memory_space<smem>>
    %1720 = vector.extract_strided_slice %1687 {offsets = [2, 0], sizes = [8, 8], strides = [1, 1]} : vector<10x8xf32> to vector<8x8xf32>
    %1721 = vector.broadcast %1719 : f32 to vector<8x8xf32>
    %1722 = arith.mulf %1721, %1720 : vector<8x8xf32>
    %1723 = arith.addf %1718, %1722 : vector<8x8xf32>
    %c126 = arith.constant 126 : index
    %1724 = memref.load %arg5[%c126] : memref<144xf32, #tpu.memory_space<smem>>
    %1725 = vector.extract_strided_slice %1688 {offsets = [2, 0], sizes = [8, 8], strides = [1, 1]} : vector<10x8xf32> to vector<8x8xf32>
    %1726 = vector.broadcast %1724 : f32 to vector<8x8xf32>
    %1727 = arith.mulf %1726, %1725 : vector<8x8xf32>
    %1728 = arith.addf %1723, %1727 : vector<8x8xf32>
    %c142 = arith.constant 142 : index
    %1729 = memref.load %arg5[%c142] : memref<144xf32, #tpu.memory_space<smem>>
    %1730 = vector.extract_strided_slice %1689 {offsets = [2, 0], sizes = [8, 8], strides = [1, 1]} : vector<10x8xf32> to vector<8x8xf32>
    %1731 = vector.broadcast %1729 : f32 to vector<8x8xf32>
    %1732 = arith.mulf %1731, %1730 : vector<8x8xf32>
    %1733 = arith.addf %1728, %1732 : vector<8x8xf32>
    %c112_350 = arith.constant 112 : index
    %1734 = memref.load %arg6[%c112_350] : memref<128xf32, #tpu.memory_space<smem>>
    %1735 = vector.broadcast %1734 : f32 to vector<8x8xf32>
    %1736 = arith.mulf %1735, %1733 : vector<8x8xf32>
    %1737 = arith.addf %1658, %1736 : vector<8x8xf32>
    %c113_351 = arith.constant 113 : index
    %1738 = memref.load %arg6[%c113_351] : memref<128xf32, #tpu.memory_space<smem>>
    %1739 = vector.broadcast %1738 : f32 to vector<8x8xf32>
    %1740 = arith.mulf %1739, %1733 : vector<8x8xf32>
    %1741 = arith.addf %1662, %1740 : vector<8x8xf32>
    %c114_352 = arith.constant 114 : index
    %1742 = memref.load %arg6[%c114_352] : memref<128xf32, #tpu.memory_space<smem>>
    %1743 = vector.broadcast %1742 : f32 to vector<8x8xf32>
    %1744 = arith.mulf %1743, %1733 : vector<8x8xf32>
    %1745 = arith.addf %1666, %1744 : vector<8x8xf32>
    %c115_353 = arith.constant 115 : index
    %1746 = memref.load %arg6[%c115_353] : memref<128xf32, #tpu.memory_space<smem>>
    %1747 = vector.broadcast %1746 : f32 to vector<8x8xf32>
    %1748 = arith.mulf %1747, %1733 : vector<8x8xf32>
    %1749 = arith.addf %1670, %1748 : vector<8x8xf32>
    %c116_354 = arith.constant 116 : index
    %1750 = memref.load %arg6[%c116_354] : memref<128xf32, #tpu.memory_space<smem>>
    %1751 = vector.broadcast %1750 : f32 to vector<8x8xf32>
    %1752 = arith.mulf %1751, %1733 : vector<8x8xf32>
    %1753 = arith.addf %1674, %1752 : vector<8x8xf32>
    %c117_355 = arith.constant 117 : index
    %1754 = memref.load %arg6[%c117_355] : memref<128xf32, #tpu.memory_space<smem>>
    %1755 = vector.broadcast %1754 : f32 to vector<8x8xf32>
    %1756 = arith.mulf %1755, %1733 : vector<8x8xf32>
    %1757 = arith.addf %1678, %1756 : vector<8x8xf32>
    %c118_356 = arith.constant 118 : index
    %1758 = memref.load %arg6[%c118_356] : memref<128xf32, #tpu.memory_space<smem>>
    %1759 = vector.broadcast %1758 : f32 to vector<8x8xf32>
    %1760 = arith.mulf %1759, %1733 : vector<8x8xf32>
    %1761 = arith.addf %1682, %1760 : vector<8x8xf32>
    %c119_357 = arith.constant 119 : index
    %1762 = memref.load %arg6[%c119_357] : memref<128xf32, #tpu.memory_space<smem>>
    %1763 = vector.broadcast %1762 : f32 to vector<8x8xf32>
    %1764 = arith.mulf %1763, %1733 : vector<8x8xf32>
    %1765 = arith.addf %1686, %1764 : vector<8x8xf32>
    %1766 = vector.extract_strided_slice %588 {offsets = [0, 0], sizes = [10, 8], strides = [1, 1]} : vector<10x10xf32> to vector<10x8xf32>
    %1767 = vector.extract_strided_slice %588 {offsets = [0, 1], sizes = [10, 8], strides = [1, 1]} : vector<10x10xf32> to vector<10x8xf32>
    %1768 = vector.extract_strided_slice %588 {offsets = [0, 2], sizes = [10, 8], strides = [1, 1]} : vector<10x10xf32> to vector<10x8xf32>
    %c15_358 = arith.constant 15 : index
    %1769 = memref.load %arg5[%c15_358] : memref<144xf32, #tpu.memory_space<smem>>
    %1770 = vector.extract_strided_slice %1766 {offsets = [0, 0], sizes = [8, 8], strides = [1, 1]} : vector<10x8xf32> to vector<8x8xf32>
    %1771 = vector.broadcast %1769 : f32 to vector<8x8xf32>
    %1772 = arith.mulf %1771, %1770 : vector<8x8xf32>
    %c31_359 = arith.constant 31 : index
    %1773 = memref.load %arg5[%c31_359] : memref<144xf32, #tpu.memory_space<smem>>
    %1774 = vector.extract_strided_slice %1767 {offsets = [0, 0], sizes = [8, 8], strides = [1, 1]} : vector<10x8xf32> to vector<8x8xf32>
    %1775 = vector.broadcast %1773 : f32 to vector<8x8xf32>
    %1776 = arith.mulf %1775, %1774 : vector<8x8xf32>
    %1777 = arith.addf %1772, %1776 : vector<8x8xf32>
    %c47_360 = arith.constant 47 : index
    %1778 = memref.load %arg5[%c47_360] : memref<144xf32, #tpu.memory_space<smem>>
    %1779 = vector.extract_strided_slice %1768 {offsets = [0, 0], sizes = [8, 8], strides = [1, 1]} : vector<10x8xf32> to vector<8x8xf32>
    %1780 = vector.broadcast %1778 : f32 to vector<8x8xf32>
    %1781 = arith.mulf %1780, %1779 : vector<8x8xf32>
    %1782 = arith.addf %1777, %1781 : vector<8x8xf32>
    %c63_361 = arith.constant 63 : index
    %1783 = memref.load %arg5[%c63_361] : memref<144xf32, #tpu.memory_space<smem>>
    %1784 = vector.extract_strided_slice %1766 {offsets = [1, 0], sizes = [8, 8], strides = [1, 1]} : vector<10x8xf32> to vector<8x8xf32>
    %1785 = vector.broadcast %1783 : f32 to vector<8x8xf32>
    %1786 = arith.mulf %1785, %1784 : vector<8x8xf32>
    %1787 = arith.addf %1782, %1786 : vector<8x8xf32>
    %c79_362 = arith.constant 79 : index
    %1788 = memref.load %arg5[%c79_362] : memref<144xf32, #tpu.memory_space<smem>>
    %1789 = vector.extract_strided_slice %1767 {offsets = [1, 0], sizes = [8, 8], strides = [1, 1]} : vector<10x8xf32> to vector<8x8xf32>
    %1790 = vector.broadcast %1788 : f32 to vector<8x8xf32>
    %1791 = arith.mulf %1790, %1789 : vector<8x8xf32>
    %1792 = arith.addf %1787, %1791 : vector<8x8xf32>
    %c95_363 = arith.constant 95 : index
    %1793 = memref.load %arg5[%c95_363] : memref<144xf32, #tpu.memory_space<smem>>
    %1794 = vector.extract_strided_slice %1768 {offsets = [1, 0], sizes = [8, 8], strides = [1, 1]} : vector<10x8xf32> to vector<8x8xf32>
    %1795 = vector.broadcast %1793 : f32 to vector<8x8xf32>
    %1796 = arith.mulf %1795, %1794 : vector<8x8xf32>
    %1797 = arith.addf %1792, %1796 : vector<8x8xf32>
    %c111_364 = arith.constant 111 : index
    %1798 = memref.load %arg5[%c111_364] : memref<144xf32, #tpu.memory_space<smem>>
    %1799 = vector.extract_strided_slice %1766 {offsets = [2, 0], sizes = [8, 8], strides = [1, 1]} : vector<10x8xf32> to vector<8x8xf32>
    %1800 = vector.broadcast %1798 : f32 to vector<8x8xf32>
    %1801 = arith.mulf %1800, %1799 : vector<8x8xf32>
    %1802 = arith.addf %1797, %1801 : vector<8x8xf32>
    %c127 = arith.constant 127 : index
    %1803 = memref.load %arg5[%c127] : memref<144xf32, #tpu.memory_space<smem>>
    %1804 = vector.extract_strided_slice %1767 {offsets = [2, 0], sizes = [8, 8], strides = [1, 1]} : vector<10x8xf32> to vector<8x8xf32>
    %1805 = vector.broadcast %1803 : f32 to vector<8x8xf32>
    %1806 = arith.mulf %1805, %1804 : vector<8x8xf32>
    %1807 = arith.addf %1802, %1806 : vector<8x8xf32>
    %c143 = arith.constant 143 : index
    %1808 = memref.load %arg5[%c143] : memref<144xf32, #tpu.memory_space<smem>>
    %1809 = vector.extract_strided_slice %1768 {offsets = [2, 0], sizes = [8, 8], strides = [1, 1]} : vector<10x8xf32> to vector<8x8xf32>
    %1810 = vector.broadcast %1808 : f32 to vector<8x8xf32>
    %1811 = arith.mulf %1810, %1809 : vector<8x8xf32>
    %1812 = arith.addf %1807, %1811 : vector<8x8xf32>
    %c120_365 = arith.constant 120 : index
    %1813 = memref.load %arg6[%c120_365] : memref<128xf32, #tpu.memory_space<smem>>
    %1814 = vector.broadcast %1813 : f32 to vector<8x8xf32>
    %1815 = arith.mulf %1814, %1812 : vector<8x8xf32>
    %1816 = arith.addf %1737, %1815 : vector<8x8xf32>
    %c121_366 = arith.constant 121 : index
    %1817 = memref.load %arg6[%c121_366] : memref<128xf32, #tpu.memory_space<smem>>
    %1818 = vector.broadcast %1817 : f32 to vector<8x8xf32>
    %1819 = arith.mulf %1818, %1812 : vector<8x8xf32>
    %1820 = arith.addf %1741, %1819 : vector<8x8xf32>
    %c122_367 = arith.constant 122 : index
    %1821 = memref.load %arg6[%c122_367] : memref<128xf32, #tpu.memory_space<smem>>
    %1822 = vector.broadcast %1821 : f32 to vector<8x8xf32>
    %1823 = arith.mulf %1822, %1812 : vector<8x8xf32>
    %1824 = arith.addf %1745, %1823 : vector<8x8xf32>
    %c123_368 = arith.constant 123 : index
    %1825 = memref.load %arg6[%c123_368] : memref<128xf32, #tpu.memory_space<smem>>
    %1826 = vector.broadcast %1825 : f32 to vector<8x8xf32>
    %1827 = arith.mulf %1826, %1812 : vector<8x8xf32>
    %1828 = arith.addf %1749, %1827 : vector<8x8xf32>
    %c124_369 = arith.constant 124 : index
    %1829 = memref.load %arg6[%c124_369] : memref<128xf32, #tpu.memory_space<smem>>
    %1830 = vector.broadcast %1829 : f32 to vector<8x8xf32>
    %1831 = arith.mulf %1830, %1812 : vector<8x8xf32>
    %1832 = arith.addf %1753, %1831 : vector<8x8xf32>
    %c125_370 = arith.constant 125 : index
    %1833 = memref.load %arg6[%c125_370] : memref<128xf32, #tpu.memory_space<smem>>
    %1834 = vector.broadcast %1833 : f32 to vector<8x8xf32>
    %1835 = arith.mulf %1834, %1812 : vector<8x8xf32>
    %1836 = arith.addf %1757, %1835 : vector<8x8xf32>
    %c126_371 = arith.constant 126 : index
    %1837 = memref.load %arg6[%c126_371] : memref<128xf32, #tpu.memory_space<smem>>
    %1838 = vector.broadcast %1837 : f32 to vector<8x8xf32>
    %1839 = arith.mulf %1838, %1812 : vector<8x8xf32>
    %1840 = arith.addf %1761, %1839 : vector<8x8xf32>
    %c127_372 = arith.constant 127 : index
    %1841 = memref.load %arg6[%c127_372] : memref<128xf32, #tpu.memory_space<smem>>
    %1842 = vector.broadcast %1841 : f32 to vector<8x8xf32>
    %1843 = arith.mulf %1842, %1812 : vector<8x8xf32>
    %1844 = arith.addf %1765, %1843 : vector<8x8xf32>
    %c0_373 = arith.constant 0 : index
    %1845 = memref.load %arg7[%c0_373] : memref<8xf32, #tpu.memory_space<smem>>
    %1846 = vector.broadcast %1845 : f32 to vector<8x8xf32>
    %1847 = arith.addf %1816, %1846 : vector<8x8xf32>
    %c0_374 = arith.constant 0 : index
    %c0_375 = arith.constant 0 : index
    %c0_376 = arith.constant 0 : index
    %c1_377 = arith.constant 1 : index
    %1848 = vector.load %arg1[%c0_374, %c0_375, %c0_376, %c1_377] : memref<1x16x11x11xf32, #tpu.memory_space<vmem>>, vector<1x1x11x8xf32>
    %1849 = vector.shape_cast %1848 : vector<1x1x11x8xf32> to vector<11x8xf32>
    %1850 = vector.extract_strided_slice %1849 {offsets = [1, 0], sizes = [8, 8], strides = [1, 1]} : vector<11x8xf32> to vector<8x8xf32>
    %c0_378 = arith.constant 0 : index
    %c4_379 = arith.constant 4 : index
    %c0_380 = arith.constant 0 : index
    %c1_381 = arith.constant 1 : index
    %1851 = vector.load %arg1[%c0_378, %c4_379, %c0_380, %c1_381] : memref<1x16x11x11xf32, #tpu.memory_space<vmem>>, vector<1x1x11x8xf32>
    %1852 = vector.shape_cast %1851 : vector<1x1x11x8xf32> to vector<11x8xf32>
    %1853 = vector.extract_strided_slice %1852 {offsets = [1, 0], sizes = [8, 8], strides = [1, 1]} : vector<11x8xf32> to vector<8x8xf32>
    %1854 = arith.maximumf %1850, %1853 : vector<8x8xf32>
    %c0_382 = arith.constant 0 : index
    %c8_383 = arith.constant 8 : index
    %c0_384 = arith.constant 0 : index
    %c1_385 = arith.constant 1 : index
    %1855 = vector.load %arg1[%c0_382, %c8_383, %c0_384, %c1_385] : memref<1x16x11x11xf32, #tpu.memory_space<vmem>>, vector<1x1x11x8xf32>
    %1856 = vector.shape_cast %1855 : vector<1x1x11x8xf32> to vector<11x8xf32>
    %1857 = vector.extract_strided_slice %1856 {offsets = [1, 0], sizes = [8, 8], strides = [1, 1]} : vector<11x8xf32> to vector<8x8xf32>
    %1858 = arith.maximumf %1854, %1857 : vector<8x8xf32>
    %c0_386 = arith.constant 0 : index
    %c12_387 = arith.constant 12 : index
    %c0_388 = arith.constant 0 : index
    %c1_389 = arith.constant 1 : index
    %1859 = vector.load %arg1[%c0_386, %c12_387, %c0_388, %c1_389] : memref<1x16x11x11xf32, #tpu.memory_space<vmem>>, vector<1x1x11x8xf32>
    %1860 = vector.shape_cast %1859 : vector<1x1x11x8xf32> to vector<11x8xf32>
    %1861 = vector.extract_strided_slice %1860 {offsets = [1, 0], sizes = [8, 8], strides = [1, 1]} : vector<11x8xf32> to vector<8x8xf32>
    %1862 = arith.maximumf %1858, %1861 : vector<8x8xf32>
    %1863 = arith.addf %1847, %1862 : vector<8x8xf32>
    %c0_390 = arith.constant 0 : index
    %c0_391 = arith.constant 0 : index
    %c0_392 = arith.constant 0 : index
    %c0_393 = arith.constant 0 : index
    %1864 = vector.load %arg8[%c0_390, %c0_391, %c0_392, %c0_393] : memref<1x8x8x8xf32, #tpu.memory_space<vmem>>, vector<1x1x8x8xf32>
    %1865 = vector.shape_cast %1864 : vector<1x1x8x8xf32> to vector<8x8xf32>
    %1866 = vector.shape_cast %1863 : vector<8x8xf32> to vector<1x1x8x8xf32>
    tpu.vector_store %arg8[%c0_390, %c0_391, %c0_392, %c0_393], %1866 {strides = array<i32>} : memref<1x8x8x8xf32, #tpu.memory_space<vmem>>, vector<1x1x8x8xf32>,
    %c1_394 = arith.constant 1 : index
    %1867 = memref.load %arg7[%c1_394] : memref<8xf32, #tpu.memory_space<smem>>
    %1868 = vector.broadcast %1867 : f32 to vector<8x8xf32>
    %1869 = arith.addf %1820, %1868 : vector<8x8xf32>
    %c0_395 = arith.constant 0 : index
    %c1_396 = arith.constant 1 : index
    %c0_397 = arith.constant 0 : index
    %c1_398 = arith.constant 1 : index
    %1870 = vector.load %arg1[%c0_395, %c1_396, %c0_397, %c1_398] : memref<1x16x11x11xf32, #tpu.memory_space<vmem>>, vector<1x1x11x8xf32>
    %1871 = vector.shape_cast %1870 : vector<1x1x11x8xf32> to vector<11x8xf32>
    %1872 = vector.extract_strided_slice %1871 {offsets = [1, 0], sizes = [8, 8], strides = [1, 1]} : vector<11x8xf32> to vector<8x8xf32>
    %c0_399 = arith.constant 0 : index
    %c5_400 = arith.constant 5 : index
    %c0_401 = arith.constant 0 : index
    %c1_402 = arith.constant 1 : index
    %1873 = vector.load %arg1[%c0_399, %c5_400, %c0_401, %c1_402] : memref<1x16x11x11xf32, #tpu.memory_space<vmem>>, vector<1x1x11x8xf32>
    %1874 = vector.shape_cast %1873 : vector<1x1x11x8xf32> to vector<11x8xf32>
    %1875 = vector.extract_strided_slice %1874 {offsets = [1, 0], sizes = [8, 8], strides = [1, 1]} : vector<11x8xf32> to vector<8x8xf32>
    %1876 = arith.maximumf %1872, %1875 : vector<8x8xf32>
    %c0_403 = arith.constant 0 : index
    %c9_404 = arith.constant 9 : index
    %c0_405 = arith.constant 0 : index
    %c1_406 = arith.constant 1 : index
    %1877 = vector.load %arg1[%c0_403, %c9_404, %c0_405, %c1_406] : memref<1x16x11x11xf32, #tpu.memory_space<vmem>>, vector<1x1x11x8xf32>
    %1878 = vector.shape_cast %1877 : vector<1x1x11x8xf32> to vector<11x8xf32>
    %1879 = vector.extract_strided_slice %1878 {offsets = [1, 0], sizes = [8, 8], strides = [1, 1]} : vector<11x8xf32> to vector<8x8xf32>
    %1880 = arith.maximumf %1876, %1879 : vector<8x8xf32>
    %c0_407 = arith.constant 0 : index
    %c13_408 = arith.constant 13 : index
    %c0_409 = arith.constant 0 : index
    %c1_410 = arith.constant 1 : index
    %1881 = vector.load %arg1[%c0_407, %c13_408, %c0_409, %c1_410] : memref<1x16x11x11xf32, #tpu.memory_space<vmem>>, vector<1x1x11x8xf32>
    %1882 = vector.shape_cast %1881 : vector<1x1x11x8xf32> to vector<11x8xf32>
    %1883 = vector.extract_strided_slice %1882 {offsets = [1, 0], sizes = [8, 8], strides = [1, 1]} : vector<11x8xf32> to vector<8x8xf32>
    %1884 = arith.maximumf %1880, %1883 : vector<8x8xf32>
    %1885 = arith.addf %1869, %1884 : vector<8x8xf32>
    %c0_411 = arith.constant 0 : index
    %c1_412 = arith.constant 1 : index
    %c0_413 = arith.constant 0 : index
    %c0_414 = arith.constant 0 : index
    %1886 = vector.load %arg8[%c0_411, %c1_412, %c0_413, %c0_414] : memref<1x8x8x8xf32, #tpu.memory_space<vmem>>, vector<1x1x8x8xf32>
    %1887 = vector.shape_cast %1886 : vector<1x1x8x8xf32> to vector<8x8xf32>
    %1888 = vector.shape_cast %1885 : vector<8x8xf32> to vector<1x1x8x8xf32>
    tpu.vector_store %arg8[%c0_411, %c1_412, %c0_413, %c0_414], %1888 {strides = array<i32>} : memref<1x8x8x8xf32, #tpu.memory_space<vmem>>, vector<1x1x8x8xf32>,
    %c2_415 = arith.constant 2 : index
    %1889 = memref.load %arg7[%c2_415] : memref<8xf32, #tpu.memory_space<smem>>
    %1890 = vector.broadcast %1889 : f32 to vector<8x8xf32>
    %1891 = arith.addf %1824, %1890 : vector<8x8xf32>
    %c0_416 = arith.constant 0 : index
    %c2_417 = arith.constant 2 : index
    %c0_418 = arith.constant 0 : index
    %c1_419 = arith.constant 1 : index
    %1892 = vector.load %arg1[%c0_416, %c2_417, %c0_418, %c1_419] : memref<1x16x11x11xf32, #tpu.memory_space<vmem>>, vector<1x1x11x8xf32>
    %1893 = vector.shape_cast %1892 : vector<1x1x11x8xf32> to vector<11x8xf32>
    %1894 = vector.extract_strided_slice %1893 {offsets = [1, 0], sizes = [8, 8], strides = [1, 1]} : vector<11x8xf32> to vector<8x8xf32>
    %c0_420 = arith.constant 0 : index
    %c6_421 = arith.constant 6 : index
    %c0_422 = arith.constant 0 : index
    %c1_423 = arith.constant 1 : index
    %1895 = vector.load %arg1[%c0_420, %c6_421, %c0_422, %c1_423] : memref<1x16x11x11xf32, #tpu.memory_space<vmem>>, vector<1x1x11x8xf32>
    %1896 = vector.shape_cast %1895 : vector<1x1x11x8xf32> to vector<11x8xf32>
    %1897 = vector.extract_strided_slice %1896 {offsets = [1, 0], sizes = [8, 8], strides = [1, 1]} : vector<11x8xf32> to vector<8x8xf32>
    %1898 = arith.maximumf %1894, %1897 : vector<8x8xf32>
    %c0_424 = arith.constant 0 : index
    %c10_425 = arith.constant 10 : index
    %c0_426 = arith.constant 0 : index
    %c1_427 = arith.constant 1 : index
    %1899 = vector.load %arg1[%c0_424, %c10_425, %c0_426, %c1_427] : memref<1x16x11x11xf32, #tpu.memory_space<vmem>>, vector<1x1x11x8xf32>
    %1900 = vector.shape_cast %1899 : vector<1x1x11x8xf32> to vector<11x8xf32>
    %1901 = vector.extract_strided_slice %1900 {offsets = [1, 0], sizes = [8, 8], strides = [1, 1]} : vector<11x8xf32> to vector<8x8xf32>
    %1902 = arith.maximumf %1898, %1901 : vector<8x8xf32>
    %c0_428 = arith.constant 0 : index
    %c14_429 = arith.constant 14 : index
    %c0_430 = arith.constant 0 : index
    %c1_431 = arith.constant 1 : index
    %1903 = vector.load %arg1[%c0_428, %c14_429, %c0_430, %c1_431] : memref<1x16x11x11xf32, #tpu.memory_space<vmem>>, vector<1x1x11x8xf32>
    %1904 = vector.shape_cast %1903 : vector<1x1x11x8xf32> to vector<11x8xf32>
    %1905 = vector.extract_strided_slice %1904 {offsets = [1, 0], sizes = [8, 8], strides = [1, 1]} : vector<11x8xf32> to vector<8x8xf32>
    %1906 = arith.maximumf %1902, %1905 : vector<8x8xf32>
    %1907 = arith.addf %1891, %1906 : vector<8x8xf32>
    %c0_432 = arith.constant 0 : index
    %c2_433 = arith.constant 2 : index
    %c0_434 = arith.constant 0 : index
    %c0_435 = arith.constant 0 : index
    %1908 = vector.load %arg8[%c0_432, %c2_433, %c0_434, %c0_435] : memref<1x8x8x8xf32, #tpu.memory_space<vmem>>, vector<1x1x8x8xf32>
    %1909 = vector.shape_cast %1908 : vector<1x1x8x8xf32> to vector<8x8xf32>
    %1910 = vector.shape_cast %1907 : vector<8x8xf32> to vector<1x1x8x8xf32>
    tpu.vector_store %arg8[%c0_432, %c2_433, %c0_434, %c0_435], %1910 {strides = array<i32>} : memref<1x8x8x8xf32, #tpu.memory_space<vmem>>, vector<1x1x8x8xf32>,
    %c3_436 = arith.constant 3 : index
    %1911 = memref.load %arg7[%c3_436] : memref<8xf32, #tpu.memory_space<smem>>
    %1912 = vector.broadcast %1911 : f32 to vector<8x8xf32>
    %1913 = arith.addf %1828, %1912 : vector<8x8xf32>
    %c0_437 = arith.constant 0 : index
    %c3_438 = arith.constant 3 : index
    %c0_439 = arith.constant 0 : index
    %c1_440 = arith.constant 1 : index
    %1914 = vector.load %arg1[%c0_437, %c3_438, %c0_439, %c1_440] : memref<1x16x11x11xf32, #tpu.memory_space<vmem>>, vector<1x1x11x8xf32>
    %1915 = vector.shape_cast %1914 : vector<1x1x11x8xf32> to vector<11x8xf32>
    %1916 = vector.extract_strided_slice %1915 {offsets = [1, 0], sizes = [8, 8], strides = [1, 1]} : vector<11x8xf32> to vector<8x8xf32>
    %c0_441 = arith.constant 0 : index
    %c7_442 = arith.constant 7 : index
    %c0_443 = arith.constant 0 : index
    %c1_444 = arith.constant 1 : index
    %1917 = vector.load %arg1[%c0_441, %c7_442, %c0_443, %c1_444] : memref<1x16x11x11xf32, #tpu.memory_space<vmem>>, vector<1x1x11x8xf32>
    %1918 = vector.shape_cast %1917 : vector<1x1x11x8xf32> to vector<11x8xf32>
    %1919 = vector.extract_strided_slice %1918 {offsets = [1, 0], sizes = [8, 8], strides = [1, 1]} : vector<11x8xf32> to vector<8x8xf32>
    %1920 = arith.maximumf %1916, %1919 : vector<8x8xf32>
    %c0_445 = arith.constant 0 : index
    %c11_446 = arith.constant 11 : index
    %c0_447 = arith.constant 0 : index
    %c1_448 = arith.constant 1 : index
    %1921 = vector.load %arg1[%c0_445, %c11_446, %c0_447, %c1_448] : memref<1x16x11x11xf32, #tpu.memory_space<vmem>>, vector<1x1x11x8xf32>
    %1922 = vector.shape_cast %1921 : vector<1x1x11x8xf32> to vector<11x8xf32>
    %1923 = vector.extract_strided_slice %1922 {offsets = [1, 0], sizes = [8, 8], strides = [1, 1]} : vector<11x8xf32> to vector<8x8xf32>
    %1924 = arith.maximumf %1920, %1923 : vector<8x8xf32>
    %c0_449 = arith.constant 0 : index
    %c15_450 = arith.constant 15 : index
    %c0_451 = arith.constant 0 : index
    %c1_452 = arith.constant 1 : index
    %1925 = vector.load %arg1[%c0_449, %c15_450, %c0_451, %c1_452] : memref<1x16x11x11xf32, #tpu.memory_space<vmem>>, vector<1x1x11x8xf32>
    %1926 = vector.shape_cast %1925 : vector<1x1x11x8xf32> to vector<11x8xf32>
    %1927 = vector.extract_strided_slice %1926 {offsets = [1, 0], sizes = [8, 8], strides = [1, 1]} : vector<11x8xf32> to vector<8x8xf32>
    %1928 = arith.maximumf %1924, %1927 : vector<8x8xf32>
    %1929 = arith.addf %1913, %1928 : vector<8x8xf32>
    %c0_453 = arith.constant 0 : index
    %c3_454 = arith.constant 3 : index
    %c0_455 = arith.constant 0 : index
    %c0_456 = arith.constant 0 : index
    %1930 = vector.load %arg8[%c0_453, %c3_454, %c0_455, %c0_456] : memref<1x8x8x8xf32, #tpu.memory_space<vmem>>, vector<1x1x8x8xf32>
    %1931 = vector.shape_cast %1930 : vector<1x1x8x8xf32> to vector<8x8xf32>
    %1932 = vector.shape_cast %1929 : vector<8x8xf32> to vector<1x1x8x8xf32>
    tpu.vector_store %arg8[%c0_453, %c3_454, %c0_455, %c0_456], %1932 {strides = array<i32>} : memref<1x8x8x8xf32, #tpu.memory_space<vmem>>, vector<1x1x8x8xf32>,
    %c4_457 = arith.constant 4 : index
    %1933 = memref.load %arg7[%c4_457] : memref<8xf32, #tpu.memory_space<smem>>
    %1934 = vector.broadcast %1933 : f32 to vector<8x8xf32>
    %1935 = arith.addf %1832, %1934 : vector<8x8xf32>
    %c0_458 = arith.constant 0 : index
    %c4_459 = arith.constant 4 : index
    %c0_460 = arith.constant 0 : index
    %c0_461 = arith.constant 0 : index
    %1936 = vector.load %arg8[%c0_458, %c4_459, %c0_460, %c0_461] : memref<1x8x8x8xf32, #tpu.memory_space<vmem>>, vector<1x1x8x8xf32>
    %1937 = vector.shape_cast %1936 : vector<1x1x8x8xf32> to vector<8x8xf32>
    %1938 = vector.shape_cast %1935 : vector<8x8xf32> to vector<1x1x8x8xf32>
    tpu.vector_store %arg8[%c0_458, %c4_459, %c0_460, %c0_461], %1938 {strides = array<i32>} : memref<1x8x8x8xf32, #tpu.memory_space<vmem>>, vector<1x1x8x8xf32>,
    %c5_462 = arith.constant 5 : index
    %1939 = memref.load %arg7[%c5_462] : memref<8xf32, #tpu.memory_space<smem>>
    %1940 = vector.broadcast %1939 : f32 to vector<8x8xf32>
    %1941 = arith.addf %1836, %1940 : vector<8x8xf32>
    %c0_463 = arith.constant 0 : index
    %c5_464 = arith.constant 5 : index
    %c0_465 = arith.constant 0 : index
    %c0_466 = arith.constant 0 : index
    %1942 = vector.load %arg8[%c0_463, %c5_464, %c0_465, %c0_466] : memref<1x8x8x8xf32, #tpu.memory_space<vmem>>, vector<1x1x8x8xf32>
    %1943 = vector.shape_cast %1942 : vector<1x1x8x8xf32> to vector<8x8xf32>
    %1944 = vector.shape_cast %1941 : vector<8x8xf32> to vector<1x1x8x8xf32>
    tpu.vector_store %arg8[%c0_463, %c5_464, %c0_465, %c0_466], %1944 {strides = array<i32>} : memref<1x8x8x8xf32, #tpu.memory_space<vmem>>, vector<1x1x8x8xf32>,
    %c6_467 = arith.constant 6 : index
    %1945 = memref.load %arg7[%c6_467] : memref<8xf32, #tpu.memory_space<smem>>
    %1946 = vector.broadcast %1945 : f32 to vector<8x8xf32>
    %1947 = arith.addf %1840, %1946 : vector<8x8xf32>
    %c0_468 = arith.constant 0 : index
    %c6_469 = arith.constant 6 : index
    %c0_470 = arith.constant 0 : index
    %c0_471 = arith.constant 0 : index
    %1948 = vector.load %arg8[%c0_468, %c6_469, %c0_470, %c0_471] : memref<1x8x8x8xf32, #tpu.memory_space<vmem>>, vector<1x1x8x8xf32>
    %1949 = vector.shape_cast %1948 : vector<1x1x8x8xf32> to vector<8x8xf32>
    %1950 = vector.shape_cast %1947 : vector<8x8xf32> to vector<1x1x8x8xf32>
    tpu.vector_store %arg8[%c0_468, %c6_469, %c0_470, %c0_471], %1950 {strides = array<i32>} : memref<1x8x8x8xf32, #tpu.memory_space<vmem>>, vector<1x1x8x8xf32>,
    %c7_472 = arith.constant 7 : index
    %1951 = memref.load %arg7[%c7_472] : memref<8xf32, #tpu.memory_space<smem>>
    %1952 = vector.broadcast %1951 : f32 to vector<8x8xf32>
    %1953 = arith.addf %1844, %1952 : vector<8x8xf32>
    %c0_473 = arith.constant 0 : index
    %c7_474 = arith.constant 7 : index
    %c0_475 = arith.constant 0 : index
    %c0_476 = arith.constant 0 : index
    %1954 = vector.load %arg8[%c0_473, %c7_474, %c0_475, %c0_476] : memref<1x8x8x8xf32, #tpu.memory_space<vmem>>, vector<1x1x8x8xf32>
    %1955 = vector.shape_cast %1954 : vector<1x1x8x8xf32> to vector<8x8xf32>
    %1956 = vector.shape_cast %1953 : vector<8x8xf32> to vector<1x1x8x8xf32>
    tpu.vector_store %arg8[%c0_473, %c7_474, %c0_475, %c0_476], %1956 {strides = array<i32>} : memref<1x8x8x8xf32, #tpu.memory_space<vmem>>, vector<1x1x8x8xf32>,
    return
  }
  func.func @transform_0(%arg0: i32) -> (i32, i32, i32, i32) {
    %c0_i32 = arith.constant 0 : i32
    %c0_i32_0 = arith.constant 0 : i32
    %c0_i32_1 = arith.constant 0 : i32
    %c0_i32_2 = arith.constant 0 : i32
    return %arg0, %c0_i32, %c0_i32_0, %c0_i32_1 : i32, i32, i32, i32
  }
  func.func @transform_1(%arg0: i32) -> i32 {
    %c0_i32 = arith.constant 0 : i32
    %c0_i32_0 = arith.constant 0 : i32
    return %c0_i32 : i32
  }
  func.func @transform_2(%arg0: i32) -> i32 {
    %c0_i32 = arith.constant 0 : i32
    %c0_i32_0 = arith.constant 0 : i32
    return %c0_i32 : i32
  }
  func.func @transform_3(%arg0: i32) -> i32 {
    %c0_i32 = arith.constant 0 : i32
    %c0_i32_0 = arith.constant 0 : i32
    return %c0_i32 : i32
  }
  func.func @transform_4(%arg0: i32) -> i32 {
    %c0_i32 = arith.constant 0 : i32
    %c0_i32_0 = arith.constant 0 : i32
    return %c0_i32 : i32
  }
  func.func @transform_5(%arg0: i32) -> i32 {
    %c0_i32 = arith.constant 0 : i32
    %c0_i32_0 = arith.constant 0 : i32
    return %c0_i32 : i32
  }
  func.func @transform_6(%arg0: i32) -> i32 {
    %c0_i32 = arith.constant 0 : i32
    %c0_i32_0 = arith.constant 0 : i32
    return %c0_i32 : i32
  }
  func.func @transform_7(%arg0: i32) -> (i32, i32, i32, i32) {
    %c0_i32 = arith.constant 0 : i32
    %c0_i32_0 = arith.constant 0 : i32
    %c0_i32_1 = arith.constant 0 : i32
    %c0_i32_2 = arith.constant 0 : i32
    return %arg0, %c0_i32, %c0_i32_0, %c0_i32_1 : i32, i32, i32, i32
  }
}

</mosaic_0001>

<bundles_post_ra>
// kernel: tpu_custom_call.1
= control target key start
LH: loop header
LB: loop body
LE: loop exit
PB: predicated region body
PF: predicated region fallthrough
CT: control target
= control target key end

     0   :  { %s8260_s0 = inlined_call_operand.vmem [shape: f32[2,16,11,11], index: 0, kind: input, shape index: {}]   ;;  %s8261_s1 = inlined_call_operand.vmem [shape: f32[36], index: 1, kind: input, shape index: {}]   ;;  %s8262_s2 = inlined_call_operand.vmem [shape: f32[64], index: 2, kind: input, shape index: {}]   ;;  %s8263_s3 = inlined_call_operand.vmem [shape: f32[16], index: 3, kind: input, shape index: {}]   ;;  %s8264_s4 = inlined_call_operand.vmem [shape: f32[144], index: 4, kind: input, shape index: {}]   ;;  %s8265_s5 = inlined_call_operand.vmem [shape: f32[128], index: 5, kind: input, shape index: {}]   ;;  %s8266_s6 = inlined_call_operand.vmem [shape: f32[8], index: 6, kind: input, shape index: {}]   ;;  %s8267_s7 = inlined_call_operand.hbm [shape: f32[2,8,8,8], index: 7, kind: output, shape index: {}]  }
   0x1   :  { %8540 = sst [smem:[#allocation162_spill]] %s8260_s0 }
   0x2   :  { %8541 = sst [smem:[#allocation163_spill]] %s8261_s1 }
   0x3   :  { %8542 = sst [smem:[#allocation164_spill]] %s8262_s2 }
   0x4   :  { %8543 = sst [smem:[#allocation165_spill]] %s8263_s3 }
   0x5   :  { %8544 = sst [smem:[#allocation166_spill]] %s8264_s4 }
   0x6   :  { %8545 = sst [smem:[#allocation167_spill]] %s8265_s5 }
   0x7   :  { %8546 = sst [smem:[#allocation168_spill]] %s8266_s6 }
   0x8   :  { %8547 = sst [smem:[#allocation169_spill]] %s8267_s7 }
   0x9   :  { %12 = vsyncpa [#allocation4], 0 }
   0xa   :  { %13 = vsyncpa [#allocation6], 0 }
   0xb   :  { %14 = vsyncpa [#allocation9], 0 }
   0xc   :  { %15 = vsyncpa [#allocation12], 0 }
   0xd   :  { %16 = vsyncpa [#allocation3], 0 }
   0xe   :  { %18 = vsyncpa [#allocation3 + $0x1], 0  ;;  %s4327_s24 = smov 0   ;;  %s4329_s25 = smov 0  }
   0xf   :  { %s4331_s26 = smov 0   ;;  %s4333_s27 = smov 0  }
  0x10 LB: > { %8548 = sst [smem:[#allocation19_spill]] %s4262_s24  ;;  %s4348_s28 = sadd.s32 4294967295, %s4274_s27   ;;  %s4274_s27 = sphi %s4333_s27, %s9208_s27   ;;  %s4270_s26 = sphi %s4331_s26, %s9211_s26   ;;  %s4266_s25 = sphi %s4329_s25, %s9210_s25   ;;  %s4262_s24 = sphi %s4327_s24, %s9209_s24  }
  0x11   : > { %8549 = sst [smem:[#allocation20_spill]] %s4266_s25  ;;  %s3524_s29 = sadd.s32 4294967294, %s4274_s27  }
  0x12   : > { %8550 = sst [smem:[#allocation21_spill]] %s4270_s26  ;;  %s4352_s30 = sadd.s32 1, %s4274_s27  }
  0x13   : > { %8551 = sst [smem:[#allocation22_spill]] %s4274_s27  ;;  %s183_s8 = sadd.s32 1, %s4270_s26 }
  0x14   : > { %8552 = sst [smem:[#allocation23_spill]] %s4348_s28  ;;  %s180_s9 = ssub.s32 %s4274_s27, %s4352_s30 }
  0x15   : > { %8553 = sst [smem:[#allocation24_spill]] %s4352_s30  ;;  %p193_p0 = scmp.ne.s32.totalorder %s4270_s26, %s4266_s25 }
  0x16   : > { %p181_p1 = scmp.eq.s32.totalorder %s180_s9, 0  ;;  %p194_p2 = scmp.eq.s32.totalorder %s4348_s28, 1 }
  0x17   : > { %p199_p3 = scmp.ne.s32.totalorder %s4266_s25, %s4262_s24  ;;  %p200_p4 = scmp.eq.s32.totalorder %s3524_s29, 1 }
  0x18   : > { %s4363_s10 = scalar_select %p181_p1, %s4270_s26, %s183_s8  }
  0x19   : > { %p4365_p5 = por %p194_p2, %p193_p0  ;;  %p4369_p6 = por %p200_p4, %p199_p3 }
  0x1a   : > { %8554 = sst [smem:[#allocation25_spill]] %s4363_s10  ;;  %p3525_p7 = scmp.ge.s32.totalorder %s4274_s27, 1 }
  0x1b   : > { %s8555_s11 = scalar_select %p4365_p5, 1, 0 }
  0x1c   : > { %s8557_s12 = scalar_select %p4369_p6, 1, 0 }
  0x1d   : > { %8556 = sst [smem:[#allocation26_spill]] %s8555_s11  ;;  %p207_p8 = scmp.lt.s32.totalorder %s4274_s27, 3 }
  0x1e   : > { %8558 = sst [smem:[#allocation27_spill]] %s8557_s12  ;;  %p8268_p9 = scmp.eq.s32.totalorder %s4348_s28, 0 }
  0x1f   : > { %p4376_p10 = pnand %p3525_p7, %p207_p8  ;;  %s8560_s2 = sld [smem:[#allocation164_spill]] }
  0x20   : > { %s8561_s4 = sld [smem:[#allocation166_spill]]  ;;  %s8563_s1 = sld [smem:[#allocation163_spill]] }
  0x21   : > { %s8559_s13 = scalar_select %p4376_p10, 1, 0 }
  0x22   : > { %p4027_p11 = pneg %p4376_p10  ;;  %s8564_s3 = sld [smem:[#allocation165_spill]] }
  0x24   : > { %p4390_p12 = pnand %p8268_p9, %p4027_p11 }
  0x25   : > { %s231_s16 = sshll.u32 %s8560_s2, 4  ;;  %s232_s16 = int_to_ptr.vmem [resolvable:$true] %s231_s16 }
  0x26   : > { %s253_s19 = sshll.u32 %s8561_s4, 4  ;;  %s220_s23 = sshll.u32 %s8563_s1, 4  ;;  %s254_s19 = int_to_ptr.vmem [resolvable:$true] %s253_s19  ;;  %s4397_s23 = int_to_ptr.vmem [resolvable:$true] %s220_s23 }
  0x27   : > { %s4106_s14 = scalar_lea.vmem %s232_s16, 16  ;;  %p4404_p0 = pneg %p4390_p12 }
  0x28   : > { %s242_s9 = sshll.u32 %s8564_s3, 4  ;;  %p4107_p13 = scmp.ne.s32.totalorder %s232_s16, %s4106_s14  ;;  %s243_s9 = int_to_ptr.vmem [resolvable:$true] %s242_s9 }
  0x29   : > { %p4114_p3 = scmp.lt.s32.totalorder %s232_s16, %s232_s16  ;;  %p4115_p4 = scmp.lt.s32.totalorder %s4106_s14, %s4106_s14 }
  0x2a   : > { %p4109_p1 = pnand %p4404_p0, %p4107_p13 }
  0x2b   : > { %p4116_p7 = por %p4115_p4, %p4114_p3 }
  0x2c   : > { %p4110_p2 = pneg %p4109_p1 }
  0x2e   : > { %p4117_p8 = pnand %p4116_p7, %p4110_p2 }
  0x30   : > { %4120 = shalt.err (!%p4117_p8)
}
  0x31   : > { %s4276_s17 = smov [#allocation5]   ;;  %s4121_s18 = scalar_lea.vmem %s254_s19, 32 }
  0x32   : > { %4033 = dma.vmem_to_smem (!%p4390_p12), %s232_s16, 16, %s4276_s17, [#allocation6]  }
  0x33   : > { %p4122_p11 = scmp.ne.s32.totalorder %s254_s19, %s4121_s18  ;;  %p4129_p5 = scmp.lt.s32.totalorder %s254_s19, %s254_s19 }
  0x34   : > { %p4130_p10 = scmp.lt.s32.totalorder %s4121_s18, %s4121_s18 }
  0x35   : > { %p4124_p9 = pnand %p4122_p11, %p4404_p0 }
  0x36   : > { %p4131_p13 = por %p4130_p10, %p4129_p5 }
  0x37   : > { %p4125_p6 = pneg %p4124_p9 }
  0x39   : > { %p4132_p1 = pnand %p4131_p13, %p4125_p6 }
  0x3b   : > { %4135 = shalt.err (!%p4132_p1)
}
  0x3c   : > { %s4277_s21 = smov [#allocation8]   ;;  %s4136_s22 = scalar_lea.vmem %s4397_s23, 16 }
  0x3d   : > { %4039 = dma.vmem_to_smem (!%p4390_p12), %s254_s19, 32, %s4277_s21, [#allocation9]  }
  0x3e   : > { %p4137_p2 = scmp.ne.s32.totalorder %s4397_s23, %s4136_s22  ;;  %p4144_p9 = scmp.lt.s32.totalorder %s4397_s23, %s4397_s23 }
  0x3f   : > { %p4145_p7 = scmp.lt.s32.totalorder %s4136_s22, %s4136_s22 }
  0x40   : > { %p4139_p3 = pnand %p4137_p2, %p4404_p0 }
  0x41   : > { %p4146_p8 = por %p4145_p7, %p4144_p9 }
  0x42   : > { %p4140_p4 = pneg %p4139_p3 }
  0x44   : > { %p4147_p5 = pnand %p4146_p8, %p4140_p4 }
  0x46   : > { %4150 = shalt.err (!%p4147_p5)
}
  0x47   : > { %s4278_s16 = smov [#allocation2]   ;;  %s4151_s19 = scalar_lea.vmem %s243_s9, 16 }
  0x48   : > { %4030 = dma.vmem_to_smem (!%p4390_p12), %s4397_s23, 16, %s4278_s16, [#allocation4]  }
  0x49   : > { %p4152_p6 = scmp.ne.s32.totalorder %s243_s9, %s4151_s19  ;;  %p4159_p13 = scmp.lt.s32.totalorder %s243_s9, %s243_s9 }
  0x4a   : > { %p4160_p1 = scmp.lt.s32.totalorder %s4151_s19, %s4151_s19 }
  0x4b   : > { %p4154_p10 = pnand %p4152_p6, %p4404_p0 }
  0x4c   : > { %p4161_p2 = por %p4160_p1, %p4159_p13 }
  0x4d   : > { %p4155_p11 = pneg %p4154_p10 }
  0x4f   : > { %p4162_p3 = pnand %p4161_p2, %p4155_p11 }
  0x51   : > { %4165 = shalt.err (!%p4162_p3)
}
  0x52   : > { %s4279_s14 = smov [#allocation7]   ;;  %s8566_s5 = sld [smem:[#allocation167_spill]] }
  0x53   : > { %4036 = dma.vmem_to_smem (!%p4390_p12), %s243_s9, 16, %s4279_s14, [#allocation6]  }
  0x54   : > { %s8567_s6 = sld [smem:[#allocation168_spill]] }
  0x58   : > { %s264_s18 = sshll.u32 %s8566_s5, 4  ;;  %s265_s18 = int_to_ptr.vmem [resolvable:$true] %s264_s18 }
  0x59   : > { %s4166_s29 = scalar_lea.vmem %s265_s18, 16  ;;  %p4174_p8 = scmp.lt.s32.totalorder %s265_s18, %s265_s18 }
  0x5a   : > { %s275_s16 = sshll.u32 %s8567_s6, 4  ;;  %p4167_p4 = scmp.ne.s32.totalorder %s265_s18, %s4166_s29  ;;  %s276_s16 = int_to_ptr.vmem [resolvable:$true] %s275_s16 }
  0x5b   : > { %p4175_p5 = scmp.lt.s32.totalorder %s4166_s29, %s4166_s29 }
  0x5c   : > { %p4169_p9 = pnand %p4167_p4, %p4404_p0 }
  0x5d   : > { %p4176_p6 = por %p4175_p5, %p4174_p8 }
  0x5e   : > { %p4170_p7 = pneg %p4169_p9 }
  0x60   : > { %p4177_p10 = pnand %p4176_p6, %p4170_p7 }
  0x62   : > { %4180 = shalt.err (!%p4177_p10)
}
  0x63   : > { %s4280_s9 = smov [#allocation10]   ;;  %s4181_s8 = scalar_lea.vmem %s276_s16, 16 }
  0x64   : > { %4042 = dma.vmem_to_smem (!%p4390_p12), %s265_s18, 16, %s4280_s9, [#allocation9]  }
  0x65   : > { %p4182_p11 = scmp.ne.s32.totalorder %s276_s16, %s4181_s8  ;;  %p4189_p2 = scmp.lt.s32.totalorder %s276_s16, %s276_s16 }
  0x66   : > { %p4190_p3 = scmp.lt.s32.totalorder %s4181_s8, %s4181_s8 }
  0x67   : > { %p4184_p13 = pnand %p4182_p11, %p4404_p0 }
  0x68   : > { %p4191_p4 = por %p4190_p3, %p4189_p2 }
  0x69   : > { %p4185_p1 = pneg %p4184_p13 }
  0x6b   : > { %p4192_p9 = pnand %p4191_p4, %p4185_p1 }
  0x6d   : > { %4195 = shalt.err (!%p4192_p9)
}
  0x6e   : > { %s4281_s19 = smov [#allocation11]   ;;  %p8568_p7 = scmp.ne.s32.totalorder %s8559_s13, 0 }
  0x6f   : > { %4045 = dma.vmem_to_smem (!%p4390_p12), %s276_s16, 16, %s4281_s19, [#allocation12]  }
  0x70   : > { %296 = sbr.rel (%p8568_p7) target bundleno = 757 (0x2f5), region = 48 }
  0x77   : > { %p8569_p8 = scmp.eq.s32.totalorder %s4348_s28, 0 }
  0x79   : > { %4241 = dma.done.wait (%p8569_p8), [#allocation4], 16   ;;  %p8570_p5 = pmov %p8569_p8 }
  0x7b   : > { %4243 = vsyncadd (%p8570_p5), [#allocation4], 4294967280  ;;  %p8571_p0 = pmov %p8570_p5 }
  0x7d   : > { %4245 = dma.done.wait (%p8571_p0), [#allocation6], 32   ;;  %p8572_p6 = pmov %p8571_p0 }
  0x7e   : > { %p8573_p10 = pmov %p8571_p0 }
  0x7f   : > { %4247 = vsyncadd (%p8572_p6), [#allocation6], 4294967264 }
  0x80   : > { %4249 = dma.done.wait (%p8573_p10), [#allocation9], 48   ;;  %p8574_p12 = pmov %p8571_p0 }
  0x81   : > { %p8575_p11 = pmov %p8571_p0 }
  0x82   : > { %4251 = vsyncadd (%p8574_p12), [#allocation9], 4294967248 }
  0x83   : > { %4253 = dma.done.wait (%p8575_p11), [#allocation12], 16   ;;  %p8576_p13 = pmov %p8571_p0 }
  0x85   : > { %4255 = vsyncadd (%p8576_p13), [#allocation12], 4294967280 }
  0x86   : > { %322 = sfence }
  0x87   : > { %p349_p1 = scmp.lt.s32.totalorder %s4348_s28, 1  ;;  %s3553_s13 = sld [smem:[#allocation2 + $0x14]]  ;;  %vm438_vm0 = vcmask 1046528   ;;  %vm1333_vm9 = vcmask 1045504   ;;  %vm3282_vm10 = vcmask 64512  }
  0x88   : > { %s3546_s20 = sld [smem:[#allocation2 + $0x8]]  ;;  %s4467_s17 = sld [smem:[#allocation2 + $0x9]] }
  0x89   : > { %s350_s15 = scalar_select %p349_p1, %s4348_s28, 1 }
  0x8a   : > { %s3556_s14 = sld [smem:[#allocation2 + $0x20]]  ;;  %s4498_s16 = sld [smem:[#allocation2 + $0x21]] }
  0x8b   : > { %s3999_s23 = sshll.u32 %s350_s15, 8  ;;  %s8577_s0 = sld [smem:[#allocation162_spill]] }
  0x8c   : > { %s8271_s29 = smov 127   ;;  %s3585_s9 = sld [smem:[#allocation2 + $0x15]] }
  0x8d   : > { %v419_v2 = vstv %s3553_s13  ;;  %s3554_s8 = sld [smem:[#allocation2 + $0x18]]  ;;  %s4534_s19 = sld [smem:[#allocation2 + $0xa]] }
  0x8e   : > { %v387_v9 = vstv %s3546_s20  ;;  %v557_v22 = vstv %s4467_s17  ;;  %s4542_s13 = sld [smem:[#allocation2 + $0x22]]  ;;  %s4548_s20 = sld [smem:[#allocation2 + $0x16]] }
  0x8f   : > { %s3586_s15 = sld [smem:[#allocation2 + $0x19]]  ;;  %s4590_s17 = sld [smem:[#allocation2 + $0x23]] }
  0x90   : > { %v460_v12 = vstv %s3556_s14  ;;  %v629_v27 = vstv %s4498_s16  ;;  %s3619_s14 = sld [smem:[#allocation2 + $0x1a]]  ;;  %s4597_s18 = sld [smem:[#allocation2 + $0x17]] }
  0x91   : > { %s4472_s22 = scalar_lea.vmem %s8577_s0, %s3999_s23  ;;  %s4579_s23 = sld [smem:[#allocation2 + $0xb]] }
  0x92   : > { %8578 = sst [smem:[#allocation28_spill]] %s4472_s22  ;;  %v4475_v0 = vld [vmem:[%s4472_s22 + $0x80] sm:$0xff]  ;;  %v4478_v1 = vld [vmem:[%s4472_s22 + $0x88] sm:$0x7]  ;;  %v4518_v21 = vld [vmem:[%s4472_s22 + $0x10] sm:$0xff]  ;;  %v589_v30 = vstv %s3585_s9  ;;  %s3652_s21 = sld [smem:[#allocation2 + $0x1b]] }
  0x93   : > { %v4481_v3 = vld [vmem:[%s4472_s22] sm:$0xff]  ;;  %v420_v5 = vmul.f32 %v4475_v0, %v419_v2  ;;  %v4488_v6 = vld [vmem:[%s4472_s22 + $0x8] sm:$0x7]  ;;  %v421_v13 = vmul.f32 %v4478_v1, %v419_v2  ;;  %v558_v24 = vmul.f32 %v4518_v21, %v557_v22  ;;  %v4525_v25 = vld [vmem:[%s4472_s22 + $0x18] sm:$0x7]  ;;  %v630_v33 = vmul.f32 %v4518_v21, %v629_v27  ;;  %s4657_s16 = sld [smem:[#allocation2]] }
  0x94   : > { %v4484_v4 = vld [vmem:[%s4472_s22 + $0x40] sm:$0xff]  ;;  %v4491_v7 = vld [vmem:[%s4472_s22 + $0x48] sm:$0x7]  ;;  %v388_v11 = vmul.f32 %v387_v9, %v4481_v3  ;;  %v462_v15 = vmul.f32 %v460_v12, %v4488_v6  ;;  %v389_v18 = vmul.f32 %v387_v9, %v4488_v6  ;;  %v461_v20 = vmul.f32 %v460_v12, %v4481_v3  ;;  %v4532_v29 = vld [vmem:[%s4472_s22 + $0x98] sm:$0x7]  ;;  %s4659_s9 = sld [smem:[#allocation2 + $0x4]] }
  0x95   : > { %v3267_v8 = vmax.f32 %v4481_v3, %v4484_v4  ;;  %v3268_v10 = vmax.f32 %v4488_v6, %v4491_v7  ;;  %424 = vrot.lane.b32.xlu1 %v420_v5, %s8271_s29  ;;  %v4507_v16 = vld [vmem:[%s4472_s22 + $0xc0] sm:$0xff]  ;;  %v559_v28 = vmul.f32 %v4525_v25, %v557_v22  ;;  %v4538_v32 = vld [vmem:[%s4472_s22 + $0x90] sm:$0xff]  ;;  %v631_v34 = vmul.f32 %v4525_v25, %v629_v27  ;;  %v4557_v42 = vld [vmem:[%s4472_s22 + $0x28] sm:$0x7]  ;;  %s4683_s0 = sld [smem:[#allocation2 + $0x12]]  ;;  %s4685_s1 = sld [smem:[#allocation2 + $0x1e]] }
  0x96   : > { %8580 = vst [vmem:[#allocation30_spill] sm:$0xff] %v4507_v16  ;;  %392 = vrot.lane.b32.xlu0 %v388_v11, %s8271_s29  ;;  %v466_v23 = vrot.slane %v462_v15, 1  ;;  %v465_v26 = vrot.slane %v461_v20, 1  ;;  %v591_v35 = vmul.f32 %v4532_v29, %v589_v30  ;;  %v590_v36 = vmul.f32 %v4538_v32, %v589_v30  ;;  %v4562_v45 = vld [vmem:[%s4472_s22 + $0x20] sm:$0xff]  ;;  %v4576_v52 = vld [vmem:[%s4472_s22 + $0xa8] sm:$0x7] }
  0x97   : > { %v4503_v14 = vmax.f32 %v3267_v8, %v4475_v0  ;;  %v4510_v17 = vmax.f32 %v3268_v10, %v4478_v1  ;;  %v635_v37 = vrot.slane %v631_v34, 1  ;;  %v634_v38 = vrot.slane %v630_v33, 1  ;;  %v4582_v55 = vld [vmem:[%s4472_s22 + $0xa0] sm:$0xff]  ;;  %v4607_v10 = vld [vmem:[%s4472_s22 + $0x38] sm:$0x7]  ;;  %s4687_s2 = sld [smem:[#allocation2 + $0x3]] }
  0x98   : > { %v467_v31 = vsel %vm438_vm0, %v465_v26, %v466_v23  ;;  %v433_v39 = vstv %s3554_s8  ;;  %v758_v43 = vstv %s4534_s19  ;;  %v830_v48 = vstv %s4542_s13  ;;  %v4625_v27 = vld [vmem:[%s4472_s22 + $0xb8] sm:$0x7]  ;;  %s4661_s8 = sld [smem:[#allocation2 + $0xc]]  ;;  %s4663_s19 = sld [smem:[#allocation2 + $0x10]] }
  0x99   : > { %8579 = vst [vmem:[#allocation29_spill] sm:$0xff] %v4503_v14  ;;  %8581 = vst [vmem:[#allocation31_spill] sm:$0xff] %v4510_v17  ;;  %426 = vrot.lane.b32.xlu1 %v421_v13, %s8271_s29  ;;  %v434_v40 = vmul.f32 %v433_v39, %v4481_v3  ;;  %v4553_v41 = vmul.f32 %v433_v39, %v4488_v6  ;;  %v636_v44 = vsel %vm438_vm0, %v634_v38, %v635_v37  ;;  %s4665_s13 = sld [smem:[#allocation2 + $0x1c]]  ;;  %s4689_s3 = sld [smem:[#allocation2 + $0x7]]  ;;  %v3650_v19 = vld [vmem:[%s4472_s22 + $0xf8] sm:$0x7] }
  0x9a   : > { %394 = vrot.lane.b32.xlu0 %v389_v18, %s8271_s29  ;;  %v760_v49 = vmul.f32 %v4557_v42, %v758_v43  ;;  %v759_v51 = vmul.f32 %v4562_v45, %v758_v43  ;;  %v790_v53 = vstv %s4548_s20  ;;  %v603_v54 = vstv %s3586_s15  ;;  %v4616_v18 = vld [vmem:[%s4472_s22 + $0x30] sm:$0xff]  ;;  %s4667_s20 = sld [smem:[#allocation2 + $0x1]]  ;;  %s4669_s15 = sld [smem:[#allocation2 + $0x5]] }
  0x9b   : > { %v439_v46 = vrot.slane %v434_v40, 1  ;;  %v440_v47 = vrot.slane %v4553_v41, 1  ;;  %v831_v56 = vmul.f32 %v4562_v45, %v830_v48  ;;  %v832_v57 = vmul.f32 %v4557_v42, %v830_v48  ;;  %s4691_s4 = sld [smem:[#allocation5]]  ;;  %s4695_s6 = sld [smem:[#allocation5 + $0x1]] }
  0x9c   : > { %v604_v58 = vmul.f32 %v4518_v21, %v603_v54  ;;  %v4588_v59 = vmul.f32 %v4525_v25, %v603_v54  ;;  %v792_v60 = vmul.f32 %v4576_v52, %v790_v53  ;;  %v791_v63 = vmul.f32 %v4582_v55, %v790_v53  ;;  %s4693_s5 = sld [smem:[#allocation5 + $0x10]]  ;;  %s4697_s10 = sld [smem:[#allocation5 + $0x11]] }
  0x9d   : > { %470 = vrot.lane.b32.xlu1 %v466_v23, %s8271_s29  ;;  %v4571_v50 = vsel %vm438_vm0, %v439_v46, %v440_v47  ;;  %v836_v2 = vrot.slane %v832_v57, 1  ;;  %v835_v5 = vrot.slane %v831_v56, 1  ;;  %v804_v9 = vstv %s3619_s14  ;;  %s4671_s14 = sld [smem:[#allocation2 + $0xd]]  ;;  %s4699_s26 = sld [smem:[#allocation2 + $0xf]] }
  0x9e   : > { %562 = vrot.lane.b32.xlu0 %v558_v24, %s8271_s29  ;;  %v608_v61 = vrot.slane %v604_v58, 1  ;;  %v609_v62 = vrot.slane %v4588_v59, 1  ;;  %v959_v11 = vstv %s4579_s23  ;;  %v805_v12 = vmul.f32 %v4562_v45, %v804_v9  ;;  %s4673_s23 = sld [smem:[#allocation2 + $0x11]]  ;;  %s4701_s30 = sld [smem:[#allocation5 + $0x2]] }
  0x9f   : > { %v4612_v13 = vmul.f32 %v4557_v42, %v804_v9  ;;  %v837_v15 = vsel %vm438_vm0, %v835_v5, %v836_v2  ;;  %v1031_v20 = vstv %s4590_s17  ;;  %v961_v24 = vmul.f32 %v4607_v10, %v959_v11  ;;  %s4675_s17 = sld [smem:[#allocation2 + $0x1d]]  ;;  %s4703_s12 = sld [smem:[#allocation5 + $0x12]]  ;;  %v3576_v5 = vld [vmem:[%s4472_s22 + $0x50] sm:$0xff] }
  0xa0   : > { %v4602_v8 = vsel %vm438_vm0, %v608_v61, %v609_v62  ;;  %v809_v22 = vrot.slane %v805_v12, 1  ;;  %v960_v26 = vmul.f32 %v4616_v18, %v959_v11  ;;  %v1032_v33 = vmul.f32 %v4616_v18, %v1031_v20  ;;  %s4705_s24 = sld [smem:[#allocation5 + $0x3]]  ;;  %s4709_s7 = sld [smem:[#allocation5 + $0x20]] }
  0xa1   : > { %564 = vrot.lane.b32.xlu1 %v559_v28, %s8271_s29  ;;  %v8309_v23 = vrot.slane %v4612_v13, 1  ;;  %v991_v28 = vstv %s4597_s18  ;;  %v1033_v34 = vmul.f32 %v4607_v10, %v1031_v20  ;;  %s4677_s18 = sld [smem:[#allocation2 + $0x2]]  ;;  %8584 = sst [smem:[#allocation34_spill]] %s4695_s6  ;;  %v381_v53 = vstv %s4659_s9  ;;  %v3577_v20 = vld [vmem:[%s4472_s22 + $0x58] sm:$0x7] }
  0xa2   : > { %468 = vrot.lane.b32.xlu0 %v467_v31, %s8271_s29  ;;  %v4634_v31 = vld [vmem:[%s4472_s22 + $0xb0] sm:$0xff]  ;;  %v993_v38 = vmul.f32 %v4625_v27, %v991_v28  ;;  %v1036_v46 = vrot.slane %v1032_v33, 1  ;;  %8582 = sst [smem:[#allocation32_spill]] %s4691_s4  ;;  %s4707_s27 = sld [smem:[#allocation2 + $0x13]]  ;;  %v374_v54 = vstv %s4657_s16  ;;  %v404_v58 = vstv %s4661_s8 }
  0xa3   : > { %v4631_v30 = vsel %vm438_vm0, %v809_v22, %v8309_v23  ;;  %v992_v39 = vmul.f32 %v4634_v31, %v991_v28  ;;  %8583 = sst [smem:[#allocation33_spill]] %s4693_s5  ;;  %s4711_s11 = sld [smem:[#allocation5 + $0x21]]  ;;  %v413_v61 = vstv %s4663_s19  ;;  %v551_v9 = vstv %s4669_s15 }
  0xa4   : > { %8585 = sst [smem:[#allocation35_spill]] %s4697_s10  ;;  %s4713_s28 = sld [smem:[#allocation5 + $0x22]]  ;;  %v375_v11 = vmul.f32 %v374_v54, %v4481_v3  ;;  %v376_v12 = vmul.f32 %v374_v54, %v4488_v6  ;;  %v4775_v3 = vmul.f32 %v4507_v16, %v413_v61  ;;  %v574_v28 = vstv %s4671_s14 }
  0xa5   : > { %596 = vrot.lane.b32.xlu1 %v591_v35, %s8271_s29  ;;  %v1005_v35 = vstv %s3652_s21  ;;  %s4679_s21 = sld [smem:[#allocation2 + $0x6]]  ;;  %8587 = sst [smem:[#allocation37_spill]] %s4703_s12  ;;  %v616_v22 = vstv %s4675_s17  ;;  %v553_v33 = vmul.f32 %v3577_v20, %v551_v9  ;;  %v354_v23 = vlaneseq }
  0xa6   : > { %594 = vrot.lane.b32.xlu0 %v590_v36, %s8271_s29  ;;  %v1006_v36 = vmul.f32 %v4616_v18, %v1005_v35  ;;  %8586 = sst [smem:[#allocation36_spill]] %s4701_s30  ;;  %s4715_s25 = sld [smem:[#allocation2 + $0x1f]] }
  0xa7   : > { %8588 = sst [smem:[#allocation38_spill]] %s4705_s24  ;;  %s4717_s10 = sld [smem:[#allocation5 + $0x13]]  ;;  %v745_v54 = vstv %s4677_s18 }
  0xa8   : > { %v1010_v40 = vrot.slane %v1006_v36, 1  ;;  %8589 = sst [smem:[#allocation39_spill]] %s4709_s7  ;;  %s4720_s30 = sld [smem:[#allocation5 + $0x23]] }
  0xa9   : > { %639 = vrot.lane.b32.xlu1 %v635_v37, %s8271_s29  ;;  %v4640_v37 = vmul.f32 %v4607_v10, %v1005_v35  ;;  %8590 = sst [smem:[#allocation40_spill]] %s4711_s11  ;;  %s4722_s12 = sld [smem:[#allocation5 + $0x4]]  ;;  %v4784_v35 = vmul.f32 %v3577_v20, %v616_v22  ;;  %v946_v20 = vstv %s4687_s2 }
  0xaa   : > { %637 = vrot.lane.b32.xlu0 %v636_v44, %s8271_s29  ;;  %v1037_v44 = vrot.slane %v1033_v34, 1  ;;  %8591 = sst [smem:[#allocation41_spill]] %s4713_s28  ;;  %s4724_s24 = sld [smem:[#allocation5 + $0x14]]  ;;  %v617_v34 = vmul.f32 %v3576_v5, %v616_v22  ;;  %v3643_v22 = vld [vmem:[%s4472_s22 + $0x78] sm:$0x7] }
  0xab   : > { %v8308_v43 = vrot.slane %v4640_v37, 1  ;;  %s4726_s6 = sld [smem:[#allocation5 + $0x24]]  ;;  %s4729_s28 = sld [smem:[#allocation5 + $0x5]] }
  0xac   : > { %s4731_s11 = sld [smem:[#allocation5 + $0x15]]  ;;  %s4745_s9 = sld [smem:[#allocation5 + $0x26]] }
  0xad   : > { %765 = vrot.lane.b32.xlu1 %v760_v49, %s8271_s29  ;;  %v4650_v48 = vsel %vm438_vm0, %v1010_v40, %v8308_v43  ;;  %v1038_v49 = vsel %vm438_vm0, %v1036_v46, %v1037_v44  ;;  %8592 = sst [smem:[#allocation42_spill]] %s4717_s10  ;;  %s4753_s16 = sld [smem:[#allocation5 + $0x7]]  ;;  %v4805_v40 = vmul.f32 %v4538_v32, %v574_v28  ;;  %v3583_v46 = vld [vmem:[%s4472_s22 + $0xd0] sm:$0xff]  ;;  %v583_v32 = vstv %s4673_s23 }
  0xae   : > { %763 = vrot.lane.b32.xlu0 %v759_v51, %s8271_s29  ;;  %v447_v51 = vstv %s4665_s13  ;;  %8593 = sst [smem:[#allocation43_spill]] %s4720_s30  ;;  %s4762_s8 = sld [smem:[#allocation5 + $0x27]]  ;;  %v3649_v43 = vld [vmem:[%s4472_s22 + $0xf0] sm:$0xff] }
  0xaf   : > { %8594 = sst [smem:[#allocation44_spill]] %s4722_s12  ;;  %v448_v56 = vmul.f32 %v4484_v4, %v447_v51  ;;  %v4736_v57 = vmul.f32 %v4491_v7, %v447_v51  ;;  %s4738_s13 = sld [smem:[#allocation5 + $0x25]]  ;;  %v817_v51 = vstv %s4685_s1 }
  0xb0   : > { %8595 = sst [smem:[#allocation45_spill]] %s4724_s24  ;;  %s4740_s24 = sld [smem:[#allocation5 + $0x6]] }
  0xb1   : > { %797 = vrot.lane.b32.xlu1 %v792_v60, %s8271_s29  ;;  %8596 = sst [smem:[#allocation46_spill]] %s4726_s6  ;;  %s4743_s6 = sld [smem:[#allocation5 + $0x16]]  ;;  %v382_v60 = vmul.f32 %v4484_v4, %v381_v53  ;;  %v4767_v4 = vmul.f32 %v4475_v0, %v404_v58 }
  0xb2   : > { %795 = vrot.lane.b32.xlu0 %v791_v63, %s8271_s29  ;;  %8597 = sst [smem:[#allocation47_spill]] %s4729_s28  ;;  %v3552_v63 = vld [vmem:[%s4472_s22 + $0xc8] sm:$0x7]  ;;  %s4764_s19 = sld [smem:[#allocation5 + $0x8]] }
  0xb3   : > { %8598 = sst [smem:[#allocation48_spill]] %s4731_s11  ;;  %s4755_s11 = sld [smem:[#allocation5 + $0x17]] }
  0xb4   : > { %8602 = sst [smem:[#allocation52_spill]] %s4745_s9  ;;  %s4772_s15 = sld [smem:[#allocation5 + $0x31]] }
  0xb5   : > { %840 = vrot.lane.b32.xlu1 %v836_v2, %s8271_s29  ;;  %8599 = sst [smem:[#allocation49_spill]] %s4738_s13  ;;  %v544_v2 = vstv %s4667_s20  ;;  %s4770_s20 = sld [smem:[#allocation5 + $0x30]] }
  0xb6   : > { %838 = vrot.lane.b32.xlu0 %v837_v15, %s8271_s29  ;;  %8600 = sst [smem:[#allocation50_spill]] %s4740_s24  ;;  %v383_v15 = vmul.f32 %v4491_v7, %v381_v53  ;;  %v545_v6 = vmul.f32 %v4518_v21, %v544_v2  ;;  %v552_v7 = vmul.f32 %v3576_v5, %v551_v9  ;;  %s4779_s17 = sld [smem:[#allocation5 + $0x32]]  ;;  %v546_v0 = vmul.f32 %v4525_v25, %v544_v2 }
  0xb7   : > { %8601 = sst [smem:[#allocation51_spill]] %s4743_s6  ;;  %v4790_v21 = vadd.f32 %v382_v60, %v375_v11  ;;  %v4797_v25 = vmul.f32 %v3552_v63, %v413_v61  ;;  %s4820_s9 = sld [smem:[#allocation7 + $0x1]]  ;;  %v621_v60 = vrot.slane %v617_v34, 1  ;;  %v8377_v61 = vrot.slane %v4784_v35, 1 }
  0xb8   : > { %8603 = sst [smem:[#allocation53_spill]] %s4753_s16  ;;  %v4792_v36 = vadd.f32 %v383_v15, %v376_v12  ;;  %s4800_s14 = sld [smem:[#allocation5 + $0x35]]  ;;  %v4822_v53 = vadd.f32 %v552_v7, %v545_v6  ;;  %v1018_v11 = vstv %s4715_s25  ;;  %v747_v12 = vmul.f32 %v4557_v42, %v745_v54  ;;  %v3642_v42 = vld [vmem:[%s4472_s22 + $0x70] sm:$0xff] }
  0xb9   : > { %966 = vrot.lane.b32.xlu1 %v961_v24, %s8271_s29  ;;  %8604 = sst [smem:[#allocation54_spill]] %s4755_s11  ;;  %v452_v24 = vrot.slane %v448_v56, 1  ;;  %v3609_v56 = vld [vmem:[%s4472_s22 + $0x60] sm:$0xff]  ;;  %s4830_s6 = sld [smem:[#allocation7 + $0x3]]  ;;  %v4857_v6 = vmul.f32 %v3583_v46, %v583_v32  ;;  %v4872_v34 = vsel %vm438_vm0, %v621_v60, %v8377_v61  ;;  %v947_v60 = vmul.f32 %v4616_v18, %v946_v20 }
  0xba   : > { %964 = vrot.lane.b32.xlu0 %v960_v26, %s8271_s29  ;;  %8605 = sst [smem:[#allocation55_spill]] %s4762_s8  ;;  %v453_v26 = vrot.slane %v4736_v57, 1  ;;  %s4786_s8 = sld [smem:[#allocation5 + $0x34]]  ;;  %v818_v5 = vmul.f32 %v3609_v56, %v817_v51  ;;  %v3616_v46 = vld [vmem:[%s4472_s22 + $0xe0] sm:$0xff] }
  0xbb   : > { %8606 = sst [smem:[#allocation56_spill]] %s4764_s19  ;;  %s4781_s19 = sld [smem:[#allocation5 + $0x33]] }
  0xbc   : > { %8607 = sst [smem:[#allocation57_spill]] %s4770_s20  ;;  %s4788_s11 = sld [smem:[#allocation5 + $0x18]] }
  0xbd   : > { %998 = vrot.lane.b32.xlu1 %v993_v38, %s8271_s29  ;;  %8608 = sst [smem:[#allocation58_spill]] %s4772_s15  ;;  %v4795_v38 = vmul.f32 %v4478_v1, %v404_v58  ;;  %s4802_s16 = sld [smem:[#allocation5 + $0x28]]  ;;  %v4813_v1 = vsel %vm438_vm0, %v452_v24, %v453_v26  ;;  %v4832_v58 = vadd.f32 %v553_v33, %v546_v0  ;;  %v953_v24 = vstv %s4689_s3  ;;  %v3617_v33 = vld [vmem:[%s4472_s22 + $0xe8] sm:$0x7] }
  0xbe   : > { %996 = vrot.lane.b32.xlu0 %v992_v39, %s8271_s29  ;;  %8609 = sst [smem:[#allocation59_spill]] %s4779_s17  ;;  %v3584_v39 = vld [vmem:[%s4472_s22 + $0xd8] sm:$0x7]  ;;  %s4836_s1 = sld [smem:[#allocation7 + $0x4]] }
  0xbf   : > { %8613 = sst [smem:[#allocation63_spill]] %s4800_s14  ;;  %s4838_s24 = sld [smem:[#allocation5 + $0x36]]  ;;  %v4840_v2 = vmul.f32 %v3584_v39, %v583_v32  ;;  %v784_v39 = vstv %s4683_s0  ;;  %v948_v32 = vmul.f32 %v4607_v10, %v946_v20 }
  0xc0   : > { %8611 = sst [smem:[#allocation61_spill]] %s4786_s8  ;;  %s4845_s23 = sld [smem:[#allocation7 + $0x5]]  ;;  %v4908_v18 = vmul.f32 %v3617_v33, %v784_v39 }
  0xc1   : > { %1041 = vrot.lane.b32.xlu1 %v1037_v44, %s8271_s29  ;;  %8610 = sst [smem:[#allocation60_spill]] %s4781_s19  ;;  %v4808_v44 = vmul.f32 %v4532_v29, %v574_v28  ;;  %v752_v29 = vstv %s4679_s21  ;;  %s4855_s21 = sld [smem:[#allocation5 + $0x37]]  ;;  %v746_v28 = vmul.f32 %v4562_v45, %v745_v54  ;;  %v822_v45 = vrot.slane %v818_v5, 1 }
  0xc2   : > { %1039 = vrot.lane.b32.xlu0 %v1038_v49, %s8271_s29  ;;  %s4681_s29 = sld [smem:[#allocation2 + $0xe]]  ;;  %8612 = sst [smem:[#allocation62_spill]] %s4788_s11  ;;  %v3610_v49 = vld [vmem:[%s4472_s22 + $0x68] sm:$0x7]  ;;  %v753_v0 = vmul.f32 %v3609_v56, %v752_v29  ;;  %v955_v54 = vmul.f32 %v3643_v22, %v953_v24  ;;  %v976_v56 = vstv %s4699_s26 }
  0xc3   : > { %8614 = sst [smem:[#allocation64_spill]] %s4802_s16  ;;  %s4818_s11 = sld [smem:[#allocation7]]  ;;  %v4842_v9 = vmul.f32 %v3610_v49, %v817_v51  ;;  %v754_v15 = vmul.f32 %v3610_v49, %v752_v29  ;;  %v4876_v49 = vmul.f32 %v3643_v22, %v1018_v11  ;;  %v985_v22 = vstv %s4707_s27 }
  0xc4   : > { %8616 = sst [smem:[#allocation66_spill]] %s4820_s9  ;;  %s4828_s16 = sld [smem:[#allocation7 + $0x2]]  ;;  %v4897_v5 = vadd.f32 %v753_v0, %v746_v28  ;;  %v4928_v28 = vmul.f32 %v4634_v31, %v976_v56  ;;  %v4936_v33 = vmul.f32 %v3650_v19, %v985_v22  ;;  %v4947_v31 = vand.u32 127, %v354_v23 }
  0xc5   : > { %8618 = sst [smem:[#allocation68_spill]] %s4830_s6  ;;  %s4865_s25 = sld [smem:[#allocation8 + $0x10]]  ;;  %v8348_v51 = vrot.slane %v4842_v9, 1  ;;  %v4888_v29 = vadd.f32 %v754_v15, %v747_v12  ;;  %v4910_v12 = vmul.f32 %v3616_v46, %v784_v39  ;;  %v8337_v20 = vrot.slane %v4876_v49, 1 }
  0xc6   : > { %8619 = sst [smem:[#allocation69_spill]] %s4836_s1  ;;  %s4847_s18 = sld [smem:[#allocation7 + $0x6]]  ;;  %v477_v39 = vstv %s4691_s4  ;;  %vm365_vm2 = vcmp.ge.s32.totalorder %v4947_v31, 1  ;;  %vm368_vm3 = vcmp.lt.s32.totalorder %v4947_v31, 9 }
  0xc7   : > { %8620 = sst [smem:[#allocation70_spill]] %s4838_s24  ;;  %s4867_s2 = sld [smem:[#allocation8 + $0x21]] }
  0xc8   : > { %v775_v63 = vstv %s4681_s29  ;;  %8621 = sst [smem:[#allocation71_spill]] %s4845_s23  ;;  %s4853_s29 = sld [smem:[#allocation8 + $0x20]] }
  0xc9   : > { %8615 = sst [smem:[#allocation65_spill]] %s4818_s11  ;;  %v4860_v7 = vmul.f32 %v4576_v52, %v775_v63  ;;  %v1019_v52 = vmul.f32 %v3642_v42, %v1018_v11  ;;  %s4878_s3 = sld [smem:[#allocation8 + $0x11]]  ;;  %v954_v11 = vmul.f32 %v3642_v42, %v953_v24  ;;  %v4900_v10 = vmul.f32 %v4582_v55, %v775_v63 }
  0xca   : > { %8617 = sst [smem:[#allocation67_spill]] %s4828_s16  ;;  %s4886_s0 = sld [smem:[#allocation8 + $0x23]]  ;;  %v4920_v55 = vsel %vm438_vm0, %v822_v45, %v8348_v51  ;;  %v4922_v63 = vadd.f32 %v955_v54, %v948_v32  ;;  %v4925_v24 = vmul.f32 %v4625_v27, %v976_v56  ;;  %v4938_v42 = vmul.f32 %v3649_v43, %v985_v22 }
  0xcb   : > { %8624 = sst [smem:[#allocation74_spill]] %s4855_s21  ;;  %s4880_s21 = sld [smem:[#allocation8 + $0x22]]  ;;  %v1023_v15 = vrot.slane %v1019_v52, 1  ;;  %v4934_v0 = vadd.f32 %v954_v11, %v947_v60  ;;  %v4945_v27 = vshrl.u32 %v354_v23, 7 }
  0xcc   : > { %8622 = sst [smem:[#allocation72_spill]] %s4847_s18  ;;  %s4893_s24 = sld [smem:[#allocation8 + $0x13]] }
  0xcd   : > { %8625 = sst [smem:[#allocation75_spill]] %s4865_s25  ;;  %s4884_s18 = sld [smem:[#allocation8 + $0x12]]  ;;  %v4958_v19 = vsel %vm438_vm0, %v1023_v15, %v8337_v20  ;;  %v5083_v51 = vadd.s32 8, %v4945_v27  ;;  %vm359_vm1 = vcmp.ge.s32.totalorder %v4945_v27, 1 }
  0xce   : > { %8623 = sst [smem:[#allocation73_spill]] %s4853_s29  ;;  %s4895_s23 = sld [smem:[#allocation8 + $0x24]]  ;;  %vm5533_vm4 = vmand %vm359_vm1, %vm365_vm2 }
  0xcf   : > { %8626 = sst [smem:[#allocation76_spill]] %s4867_s2  ;;  %s4913_s26 = sld [smem:[#allocation8 + $0x15]]  ;;  %vm362_vm5 = vcmp.lt.s32.totalorder %v5083_v51, 9  ;;  %vm5551_vm6 = vmand %vm5533_vm4, %vm368_vm3 }
  0xd0   : > { %8627 = sst [smem:[#allocation77_spill]] %s4878_s3  ;;  %s4930_s27 = sld [smem:[#allocation8 + $0x16]]  ;;  %vm5658_vm7 = vmand %vm362_vm5, %vm365_vm2 }
  0xd1   : > { %8628 = sst [smem:[#allocation78_spill]] %s4880_s21  ;;  %s4932_s22 = sld [smem:[#allocation7 + $0x7]]  ;;  %vm5700_vm8 = vmand %vm5658_vm7, %vm368_vm3 }
  0xd2   : > { %8630 = sst [smem:[#allocation80_spill]] %s4886_s0  ;;  %s4904_s0 = sld [smem:[#allocation8 + $0x14]] }
  0xd3   : > { %8629 = sst [smem:[#allocation79_spill]] %s4884_s18  ;;  %s4906_s18 = sld [smem:[#allocation8 + $0x25]] }
  0xd4   : > { %8631 = sst [smem:[#allocation81_spill]] %s4893_s24  ;;  %s4943_s24 = sld [smem:[#allocation8 + $0x17]] }
  0xd5   : > { %8632 = sst [smem:[#allocation82_spill]] %s4895_s23  ;;  %s4915_s23 = sld [smem:[#allocation8 + $0x26]] }
  0xd6   : > { %8635 = sst [smem:[#allocation85_spill]] %s4913_s26  ;;  %s4951_s14 = sld [smem:[#allocation5 + $0x38]] }
  0xd7   : > { %8637 = sst [smem:[#allocation87_spill]] %s4930_s27  ;;  %s4953_s21 = sld [smem:[#allocation7 + $0x8]] }
  0xd8   : > { %8633 = sst [smem:[#allocation83_spill]] %s4904_s0  ;;  %s4941_s0 = sld [smem:[#allocation8 + $0x27]] }
  0xd9   : > { %8634 = sst [smem:[#allocation84_spill]] %s4906_s18  ;;  %s8649_s4 = sld [smem:[#allocation38_spill]] }
  0xda   : > { %8638 = sst [smem:[#allocation88_spill]] %s4932_s22  ;;  %s8644_s22 = sld [smem:[#allocation36_spill]] }
  0xdb   : > { %8636 = sst [smem:[#allocation86_spill]] %s4915_s23  ;;  %s8639_s23 = sld [smem:[#allocation34_spill]] }
  0xdc   : > { %8643 = sst [smem:[#allocation90_spill]] %s4943_s24  ;;  %s4963_s5 = sld [smem:[#allocation5 + $0x9]] }
  0xdd   : > { %8646 = sst [smem:[#allocation91_spill]] %s4951_s14  ;;  %s4965_s7 = sld [smem:[#allocation5 + $0x19]] }
  0xde   : > { %8642 = sst [smem:[#allocation89_spill]] %s4941_s0  ;;  %s4973_s20 = sld [smem:[#allocation5 + $0x39]] }
  0xdf   : > { %8648 = sst [smem:[#allocation92_spill]] %s4953_s21  ;;  %s4971_s21 = sld [smem:[#allocation5 + $0x29]]  ;;  %v489_v20 = vstv %s8649_s4 }
  0xe0   : > { %v485_v11 = vstv %s8644_s22  ;;  %s4981_s18 = sld [smem:[#allocation5 + $0xa]]  ;;  %s4987_s9 = sld [smem:[#allocation8 + $0x28]] }
  0xe1   : > { %v481_v23 = vstv %s8639_s23  ;;  %s4989_s15 = sld [smem:[#allocation5 + $0x1a]]  ;;  %s4995_s27 = sld [smem:[#allocation8 + $0x18]] }
  0xe2   : > { %8650 = sst [smem:[#allocation93_spill]] %s4963_s5  ;;  %s4997_s26 = sld [smem:[#allocation8 + $0x19]] }
  0xe3   : > { %8651 = sst [smem:[#allocation94_spill]] %s4965_s7  ;;  %s4979_s7 = sld [smem:[#allocation7 + $0x9]] }
  0xe4   : > { %8653 = sst [smem:[#allocation96_spill]] %s4973_s20  ;;  %s5003_s22 = sld [smem:[#allocation8 + $0x29]] }
  0xe5   : > { %8652 = sst [smem:[#allocation95_spill]] %s4971_s21  ;;  %s5005_s6 = sld [smem:[#allocation5 + $0x2a]] }
  0xe6   : > { %8657 = sst [smem:[#allocation98_spill]] %s4981_s18  ;;  %s5013_s23 = sld [smem:[#allocation7 + $0xa]]  ;;  %v8445_v46 = vstv %s4981_s18 }
  0xe7   : > { %8658 = sst [smem:[#allocation99_spill]] %s4987_s9  ;;  %s5021_s2 = sld [smem:[#allocation8 + $0x40]] }
  0xe8   : > { %8659 = sst [smem:[#allocation100_spill]] %s4989_s15  ;;  %s5029_s17 = sld [smem:[#allocation8 + $0x70]] }
  0xe9   : > { %8656 = sst [smem:[#allocation97_spill]] %s4979_s7  ;;  %s5037_s30 = sld [smem:[#allocation8 + $0x41]] }
  0xea   : > { %8662 = sst [smem:[#allocation101_spill]] %s4995_s27  ;;  %s5043_s12 = sld [smem:[#allocation8 + $0x51]] }
  0xeb   : > { %8664 = sst [smem:[#allocation102_spill]] %s4997_s26  ;;  %s5011_s26 = sld [smem:[#allocation5 + $0x3a]] }
  0xec   : > { %8668 = sst [smem:[#allocation103_spill]] %s5003_s22  ;;  %s5053_s29 = sld [smem:[#allocation8 + $0x42]] }
  0xed   : > { %8670 = sst [smem:[#allocation104_spill]] %s5005_s6  ;;  %s5051_s8 = sld [smem:[#allocation8 + $0x81]] }
  0xee   : > { %8676 = sst [smem:[#allocation106_spill]] %s5013_s23  ;;  %s5019_s6 = sld [smem:[#allocation8 + $0x1a]] }
  0xef   : > { %8682 = sst [smem:[#allocation108_spill]] %s5021_s2  ;;  %s5027_s23 = sld [smem:[#allocation8 + $0x50]] }
  0xf0   : > { %8688 = sst [smem:[#allocation110_spill]] %s5029_s17  ;;  %s5059_s1 = sld [smem:[#allocation8 + $0x52]] }
  0xf1   : > { %8674 = sst [smem:[#allocation105_spill]] %s5011_s26  ;;  %s5061_s26 = sld [smem:[#allocation8 + $0x72]] }
  0xf2   : > { %8692 = sst [smem:[#allocation111_spill]] %s5037_s30  ;;  %s5067_s28 = sld [smem:[#allocation8 + $0x82]] }
  0xf3   : > { %8695 = sst [smem:[#allocation112_spill]] %s5043_s12  ;;  %s5069_s10 = sld [smem:[#allocation8 + $0x43]] }
  0xf4   : > { %8680 = sst [smem:[#allocation107_spill]] %s5019_s6  ;;  %s5035_s6 = sld [smem:[#allocation8 + $0x80]] }
  0xf5   : > { %8686 = sst [smem:[#allocation109_spill]] %s5027_s23  ;;  %s5045_s23 = sld [smem:[#allocation8 + $0x71]] }
  0xf6   : > { %8700 = sst [smem:[#allocation114_spill]] %s5051_s8  ;;  %s5075_s4 = sld [smem:[#allocation8 + $0x53]] }
  0xf7   : > { %8701 = sst [smem:[#allocation115_spill]] %s5053_s29  ;;  %s5077_s25 = sld [smem:[#allocation8 + $0x73]] }
  0xf8   : > { %8704 = sst [smem:[#allocation116_spill]] %s5067_s28  ;;  %s5085_s11 = sld [smem:[#allocation8 + $0x83]] }
  0xf9   : > { %8705 = sst [smem:[#allocation117_spill]] %s5069_s10  ;;  %s8708_s17 = sld [smem:[#allocation100_spill]] }
  0xfa   : > { %s5087_s2 = sld [smem:[#allocation8 + $0x44]]  ;;  %s8711_s22 = sld [smem:[#allocation104_spill]] }
  0xfb   : > { %8697 = sst [smem:[#allocation113_spill]] %s5045_s23  ;;  %s5093_s15 = sld [smem:[#allocation8 + $0x54]] }
  0xfc   : > { %8706 = sst [smem:[#allocation118_spill]] %s5075_s4  ;;  %s8712_s14 = sld [smem:[#allocation105_spill]] }
  0xfd   : > { %s8713_s13 = sld [smem:[#allocation106_spill]]  ;;  %s5103_s3 = sld [smem:[#allocation5 + $0xb]] }
  0xfe   : > { %8709 = sst [smem:[#allocation119_spill]] %s5085_s11  ;;  %s5095_s21 = sld [smem:[#allocation8 + $0x74]] }
  0xff   : > { %s5101_s19 = sld [smem:[#allocation8 + $0x84]]  ;;  %s5109_s18 = sld [smem:[#allocation8 + $0x45]] }
 0x100   : > { %s5117_s0 = sld [smem:[#allocation8 + $0x75]]  ;;  %s5126_s24 = sld [smem:[#allocation5 + $0x1b]] }
 0x101   : > { %s5119_s27 = sld [smem:[#allocation8 + $0x85]]  ;;  %s5128_s9 = sld [smem:[#allocation5 + $0xc]] }
 0x102   : > { %s5134_s16 = sld [smem:[#allocation8 + $0x46]]  ;;  %s5150_s23 = sld [smem:[#allocation8 + $0x47]] }
 0x103   : > { %8718 = sst [smem:[#allocation121_spill]] %s5103_s3  ;;  %s5136_s5 = sld [smem:[#allocation8 + $0x56]]  ;;  %v8446_v43 = vstv %s5103_s3 }
 0x104   : > { %8714 = sst [smem:[#allocation106_spill]] %s5095_s21  ;;  %s5111_s21 = sld [smem:[#allocation8 + $0x55]] }
 0x105   : > { %8717 = sst [smem:[#allocation120_spill]] %s5101_s19  ;;  %s5142_s20 = sld [smem:[#allocation8 + $0x76]] }
 0x106   : > { %8721 = sst [smem:[#allocation122_spill]] %s5109_s18  ;;  %s5144_s7 = sld [smem:[#allocation8 + $0x86]] }
 0x107   : > { %v425_v45 = vpop.permute.xlu1 %424  ;;  %8723 = sst [smem:[#allocation124_spill]] %s5117_s0  ;;  %s5152_s12 = sld [smem:[#allocation5 + $0x1c]] }
 0x108   : > { %v393_v56 = vpop.permute.xlu0 %392  ;;  %8724 = sst [smem:[#allocation125_spill]] %s5119_s27  ;;  %s8733_s8 = sld [smem:[#allocation106_spill]] }
 0x109   : > { %v398_v15 = vadd.f32 %v393_v56, %v4790_v21  ;;  %8725 = sst [smem:[#allocation126_spill]] %s5126_s24  ;;  %s5157_s30 = sld [smem:[#allocation8 + $0x57]] }
 0x10a   : > { %8722 = sst [smem:[#allocation123_spill]] %s5111_s21  ;;  %s5159_s29 = sld [smem:[#allocation8 + $0x77]] }
 0x10b   : > { %v407_v21 = vadd.f32 %v4767_v4, %v398_v15  ;;  %v427_v56 = vpop.permute.xlu1 %426  ;;  %8726 = sst [smem:[#allocation127_spill]] %s5128_s9  ;;  %s5165_s28 = sld [smem:[#allocation8 + $0x87]] }
 0x10c   : > { %v395_v32 = vpop.permute.xlu0 %394  ;;  %8727 = sst [smem:[#allocation128_spill]] %s5134_s16  ;;  %s5167_s10 = sld [smem:[#allocation5 + $0xd]] }
 0x10d   : > { %v416_v4 = vadd.f32 %v4775_v3, %v407_v21  ;;  %v399_v15 = vadd.f32 %v395_v32, %v4792_v36  ;;  %8728 = sst [smem:[#allocation129_spill]] %s5136_s5  ;;  %s5176_s11 = sld [smem:[#allocation5 + $0xe]] }
 0x10e   : > { %8729 = sst [smem:[#allocation130_spill]] %s5142_s20  ;;  %s5174_s4 = sld [smem:[#allocation5 + $0x2b]] }
 0x10f   : > { %v408_v3 = vadd.f32 %v4795_v38, %v399_v15  ;;  %v5122_v36 = vpop.permute.xlu1 %470  ;;  %v430_v32 = vadd.f32 %v425_v45, %v416_v4  ;;  %8730 = sst [smem:[#allocation131_spill]] %s5144_s7  ;;  %s8745_s5 = sld [smem:[#allocation44_spill]] }
 0x110   : > { %v563_v60 = vpop.permute.xlu0 %562  ;;  %8731 = sst [smem:[#allocation132_spill]] %s5150_s23  ;;  %s8748_s7 = sld [smem:[#allocation50_spill]] }
 0x111   : > { %v417_v38 = vadd.f32 %v4797_v25, %v408_v3  ;;  %v568_v45 = vadd.f32 %v563_v60, %v4822_v53  ;;  %v444_v4 = vadd.f32 %v4571_v50, %v430_v32  ;;  %8732 = sst [smem:[#allocation133_spill]] %s5152_s12  ;;  %s8747_s12 = sld [smem:[#allocation47_spill]] }
 0x112   : > { %8734 = sst [smem:[#allocation106_spill]] %s5157_s30  ;;  %s8749_s20 = sld [smem:[#allocation53_spill]] }
 0x113   : > { %v431_v25 = vadd.f32 %v427_v56, %v417_v38  ;;  %v577_v50 = vadd.f32 %v4805_v40, %v568_v45  ;;  %v565_v53 = vpop.permute.xlu1 %564  ;;  %8735 = sst [smem:[#allocation134_spill]] %s5159_s29  ;;  %v457_v38 = vadd.f32 %v4813_v1, %v444_v4  ;;  %s8751_s18 = sld [smem:[#allocation56_spill]] }
 0x114   : > { %v569_v32 = vadd.f32 %v565_v53, %v4832_v58  ;;  %v469_v54 = vpop.permute.xlu0 %468  ;;  %8736 = sst [smem:[#allocation135_spill]] %s5165_s28  ;;  %s5210_s16 = sld [smem:[#allocation8 + $0x48]] }
 0x115   : > { %8737 = sst [smem:[#allocation136_spill]] %s5167_s10  ;;  %v445_v40 = vadd.f32 %v440_v47, %v431_v25  ;;  %v586_v47 = vadd.f32 %v4857_v6, %v577_v50  ;;  %v5191_v45 = vadd.f32 %v469_v54, %v457_v38  ;;  %s5212_s23 = sld [smem:[#allocation8 + $0x58]] }
 0x116   : > { %8738 = sst [smem:[#allocation137_spill]] %s5174_s4  ;;  %v578_v53 = vadd.f32 %v4808_v44, %v569_v32  ;;  %s5219_s29 = sld [smem:[#allocation8 + $0x78]] }
 0x117   : > { %8739 = sst [smem:[#allocation138_spill]] %s5176_s11  ;;  %v597_v41 = vpop.permute.xlu1 %596  ;;  %v458_v58 = vadd.f32 %v453_v26, %v445_v40  ;;  %8740 = vst [vmem:[#allocation139_spill] sm:$0xff] %v5191_v45  ;;  %s8754_s30 = sld [smem:[#allocation93_spill]]  ;;  %v8757_v1 = vstv %s8747_s12 }
 0x118   : > { %v587_v44 = vadd.f32 %v4840_v2, %v578_v53  ;;  %v595_v32 = vpop.permute.xlu0 %594  ;;  %v498_v59 = vmul.f32 %v8757_v1, %v5191_v45  ;;  %s5253_s11 = sld [smem:[#allocation5 + $0x3b]]  ;;  %s8767_s24 = sld [smem:[#allocation35_spill]] }
 0x119   : > { %v600_v3 = vadd.f32 %v595_v32, %v586_v47  ;;  %v5205_v53 = vadd.f32 %v5122_v36, %v458_v58  ;;  %v478_v36 = vmul.f32 %v477_v39, %v5191_v45  ;;  %v482_v58 = vmul.f32 %v481_v23, %v5191_v45  ;;  %s5255_s10 = sld [smem:[#allocation7 + $0xb]]  ;;  %s8768_s0 = sld [smem:[#allocation37_spill]] }
 0x11a   : > { %v601_v4 = vadd.f32 %v597_v41, %v587_v44  ;;  %8750 = sst [smem:[#allocation32_spill]] %s5210_s16  ;;  %v490_v32 = vmul.f32 %v489_v20, %v5191_v45  ;;  %v8760_v54 = vstv %s8751_s18  ;;  %s8764_s19 = sld [smem:[#allocation33_spill]] }
 0x11b   : > { %v613_v26 = vadd.f32 %v4602_v8, %v600_v3  ;;  %v5199_v2 = vpop.permute.xlu1 %639  ;;  %8746 = vst [vmem:[#allocation140_spill] sm:$0xff] %v5205_v53  ;;  %8752 = sst [smem:[#allocation34_spill]] %s5212_s23  ;;  %v8759_v8 = vstv %s8749_s20  ;;  %v5251_v40 = vmul.f32 %v8760_v54, %v5191_v45  ;;  %v5271_v54 = vmul.f32 %v477_v39, %v5205_v53  ;;  %s8785_s27 = sld [smem:[#allocation94_spill]] }
 0x11c   : > { %v614_v41 = vadd.f32 %v609_v62, %v601_v4  ;;  %v638_v47 = vpop.permute.xlu0 %637  ;;  %8753 = sst [smem:[#allocation36_spill]] %s5219_s29  ;;  %v486_v4 = vmul.f32 %v485_v11, %v5191_v45  ;;  %v8758_v62 = vstv %s8748_s7  ;;  %v5246_v38 = vmul.f32 %v8759_v8, %v5191_v45  ;;  %s8770_s21 = sld [smem:[#allocation42_spill]] }
 0x11d   : > { %v626_v44 = vadd.f32 %v4872_v34, %v613_v26  ;;  %v8756_v34 = vstv %s8745_s5  ;;  %v5241_v22 = vmul.f32 %v8758_v62, %v5191_v45  ;;  %v5266_v8 = vmul.f32 %v8445_v46, %v5191_v45  ;;  %s8825_s3 = sld [smem:[#allocation57_spill]]  ;;  %s8832_s29 = sld [smem:[#allocation70_spill]] }
 0x11e   : > { %v494_v26 = vmul.f32 %v8756_v34, %v5191_v45  ;;  %8761 = sst [smem:[#allocation38_spill]] %s5253_s11  ;;  %v8763_v34 = vstv %s8754_s30  ;;  %v5290_v39 = vmul.f32 %v489_v20, %v5205_v53  ;;  %v8771_v20 = vstv %s8749_s20  ;;  %s8842_s23 = sld [smem:[#allocation65_spill]] }
 0x11f   : > { %v766_v3 = vpop.permute.xlu1 %765  ;;  %8762 = sst [smem:[#allocation44_spill]] %s5255_s10  ;;  %v5261_v57 = vmul.f32 %v8763_v34, %v5191_v45  ;;  %v5273_v25 = vadd.f32 %v638_v47, %v626_v44  ;;  %v5284_v34 = vmul.f32 %v485_v11, %v5205_v53  ;;  %v8765_v47 = vstv %s8745_s5  ;;  %s8774_s5 = sld [smem:[#allocation45_spill]] }
 0x120   : > { %v770_v1 = vadd.f32 %v766_v3, %v4888_v29  ;;  %v764_v62 = vpop.permute.xlu0 %763  ;;  %v5279_v3 = vmul.f32 %v481_v23, %v5205_v53  ;;  %v8766_v23 = vstv %s8747_s12  ;;  %v5311_v50 = vmul.f32 %v8771_v20, %v5205_v53  ;;  %s8777_s12 = sld [smem:[#allocation51_spill]]  ;;  %s8779_s20 = sld [smem:[#allocation54_spill]] }
 0x121   : > { %v769_v29 = vadd.f32 %v764_v62, %v4897_v5  ;;  %v5295_v5 = vmul.f32 %v8765_v47, %v5205_v53  ;;  %v5300_v44 = vmul.f32 %v8766_v23, %v5205_v53  ;;  %v8772_v47 = vstv %s8751_s18  ;;  %s8784_s18 = sld [smem:[#allocation62_spill]]  ;;  %s8828_s10 = sld [smem:[#allocation59_spill]] }
 0x122   : > { %v779_v46 = vadd.f32 %v4860_v7, %v770_v1  ;;  %v8769_v7 = vstv %s8748_s7  ;;  %v5316_v6 = vmul.f32 %v8772_v47, %v5205_v53  ;;  %v8773_v23 = vrot.slane %v4784_v35, 1  ;;  %s8776_s7 = sld [smem:[#allocation48_spill]]  ;;  %s8851_s16 = sld [smem:[#allocation68_spill]] }
 0x123   : > { %v778_v11 = vadd.f32 %v4900_v10, %v769_v29  ;;  %v798_v62 = vpop.permute.xlu1 %797  ;;  %v5306_v1 = vmul.f32 %v8769_v7, %v5205_v53  ;;  %v8775_v20 = vstv %s8764_s19  ;;  %v5331_v35 = vmul.f32 %v8446_v43, %v5191_v45  ;;  %s8853_s11 = sld [smem:[#allocation69_spill]]  ;;  %s8856_s4 = sld [smem:[#allocation71_spill]] }
 0x124   : > { %v627_v60 = vadd.f32 %v8773_v23, %v614_v41  ;;  %v788_v10 = vadd.f32 %v4908_v18, %v779_v46  ;;  %v796_v29 = vpop.permute.xlu0 %795  ;;  %v647_v61 = vmul.f32 %v8775_v20, %v5273_v25  ;;  %v8778_v18 = vstv %s8767_s24  ;;  %s8857_s28 = sld [smem:[#allocation72_spill]] }
 0x125   : > { %v787_v15 = vadd.f32 %v4910_v12, %v778_v11  ;;  %v653_v46 = vmul.f32 %v8778_v18, %v5273_v25  ;;  %v8780_v23 = vstv %s8768_s0  ;;  %v8781_v11 = vstv %s8770_s21 }
 0x126   : > { %v802_v41 = vadd.f32 %v798_v62, %v788_v10  ;;  %v659_v12 = vmul.f32 %v8780_v23, %v5273_v25  ;;  %v665_v7 = vmul.f32 %v8781_v11, %v5273_v25  ;;  %v8782_v47 = vstv %s8774_s5 }
 0x127   : > { %v801_v20 = vadd.f32 %v796_v29, %v787_v15  ;;  %v841_v52 = vpop.permute.xlu1 %840  ;;  %v671_v21 = vmul.f32 %v8782_v47, %v5273_v25  ;;  %v5348_v62 = vadd.f32 %v5199_v2, %v627_v60  ;;  %v8783_v10 = vrot.slane %v4612_v13, 1 }
 0x128   : > { %v839_v16 = vpop.permute.xlu0 %838  ;;  %v8786_v23 = vstv %s8776_s7  ;;  %v8787_v15 = vstv %s8754_s30  ;;  %v8789_v11 = vstv %s8777_s12  ;;  %v8790_v2 = vstv %s8779_s20  ;;  %s8801_s30 = sld [smem:[#allocation39_spill]] }
 0x129   : > { %v815_v18 = vadd.f32 %v8783_v10, %v802_v41  ;;  %v677_v14 = vmul.f32 %v8786_v23, %v5273_v25  ;;  %v5358_v29 = vmul.f32 %v8787_v15, %v5205_v53  ;;  %v814_v47 = vadd.f32 %v4631_v30, %v801_v20 }
 0x12a   : > { %v683_v60 = vmul.f32 %v8789_v11, %v5273_v25  ;;  %v689_v13 = vmul.f32 %v8790_v2, %v5273_v25  ;;  %v8791_v41 = vstv %s5128_s9  ;;  %v649_v56 = vadd.f32 %v647_v61, %v478_v36  ;;  %s8809_s9 = sld [smem:[#allocation49_spill]] }
 0x12b   : > { %8788 = vst [vmem:[#allocation141_spill] sm:$0xff] %v5358_v29  ;;  %v5370_v10 = vmul.f32 %v8791_v41, %v5191_v45  ;;  %v655_v23 = vadd.f32 %v653_v46, %v482_v58  ;;  %v661_v43 = vadd.f32 %v659_v12, %v486_v4  ;;  %v667_v15 = vadd.f32 %v665_v7, %v490_v32  ;;  %v967_v30 = vpop.permute.xlu1 %966 }
 0x12c   : > { %v827_v17 = vadd.f32 %v4920_v55, %v814_v47  ;;  %v673_v20 = vadd.f32 %v671_v21, %v494_v26  ;;  %v8793_v11 = vstv %s8784_s18  ;;  %v8794_v2 = vstv %s8785_s27  ;;  %v965_v45 = vpop.permute.xlu0 %964  ;;  %s8831_s27 = sld [smem:[#allocation63_spill]]  ;;  %s8864_s18 = sld [smem:[#allocation75_spill]] }
 0x12d   : > { %8792 = vst [vmem:[#allocation142_spill] sm:$0xff] %v5370_v10  ;;  %v695_v53 = vmul.f32 %v8793_v11, %v5273_v25  ;;  %v701_v29 = vmul.f32 %v8794_v2, %v5273_v25  ;;  %v971_v41 = vadd.f32 %v967_v30, %v4922_v63  ;;  %v679_v61 = vadd.f32 %v677_v14, %v498_v59 }
 0x12e   : > { %v8795_v36 = vstv %s8708_s17  ;;  %v8796_v4 = vstv %s8764_s19  ;;  %v970_v32 = vadd.f32 %v965_v45, %v4934_v0  ;;  %v685_v21 = vadd.f32 %v683_v60, %v5241_v22  ;;  %s8802_s19 = sld [smem:[#allocation40_spill]]  ;;  %s8826_s17 = sld [smem:[#allocation58_spill]] }
 0x12f   : > { %v707_v58 = vmul.f32 %v8795_v36, %v5273_v25  ;;  %v648_v55 = vmul.f32 %v8796_v4, %v5348_v62  ;;  %v5389_v26 = vadd.f32 %v689_v13, %v5246_v38  ;;  %v8797_v7 = vstv %s8767_s24  ;;  %v999_v60 = vpop.permute.xlu1 %998  ;;  %s8804_s24 = sld [smem:[#allocation41_spill]] }
 0x130   : > { %v654_v46 = vmul.f32 %v8797_v7, %v5348_v62  ;;  %v8798_v63 = vrot.slane %v4842_v9, 1  ;;  %v980_v59 = vadd.f32 %v4925_v24, %v971_v41  ;;  %v8799_v12 = vstv %s8768_s0  ;;  %s8805_s0 = sld [smem:[#allocation43_spill]] }
 0x131   : > { %v660_v47 = vmul.f32 %v8799_v12, %v5348_v62  ;;  %v8800_v0 = vstv %s8770_s21  ;;  %v5403_v45 = vadd.f32 %v839_v16, %v827_v17  ;;  %v979_v38 = vadd.f32 %v4928_v28, %v970_v32  ;;  %s8807_s21 = sld [smem:[#allocation46_spill]] }
 0x132   : > { %v828_v14 = vadd.f32 %v8798_v63, %v815_v18  ;;  %v666_v22 = vmul.f32 %v8800_v0, %v5348_v62  ;;  %v5407_v13 = vadd.f32 %v695_v53, %v5251_v40  ;;  %v5410_v9 = vadd.f32 %v701_v29, %v5261_v57  ;;  %v997_v18 = vpop.permute.xlu0 %996 }
 0x133   : > { %v989_v24 = vadd.f32 %v4936_v33, %v980_v59  ;;  %v5414_v30 = vadd.f32 %v707_v58, %v5266_v8  ;;  %v650_v16 = vadd.f32 %v648_v55, %v5271_v54  ;;  %v8803_v17 = vstv %s8774_s5  ;;  %s8810_s5 = sld [smem:[#allocation52_spill]] }
 0x134   : > { %v672_v28 = vmul.f32 %v8803_v17, %v5348_v62  ;;  %v988_v40 = vadd.f32 %v4938_v42, %v979_v38  ;;  %v5422_v57 = vadd.f32 %v654_v46, %v5279_v3  ;;  %v8806_v33 = vstv %s8776_s7  ;;  %s8819_s7 = sld [smem:[#allocation55_spill]] }
 0x135   : > { %v678_v53 = vmul.f32 %v8806_v33, %v5348_v62  ;;  %v8808_v8 = vstv %s8777_s12  ;;  %v5430_v11 = vadd.f32 %v841_v52, %v828_v14  ;;  %v1003_v54 = vadd.f32 %v999_v60, %v989_v24  ;;  %s8821_s12 = sld [smem:[#allocation64_spill]] }
 0x136   : > { %v684_v29 = vmul.f32 %v8808_v8, %v5348_v62  ;;  %v5435_v42 = vadd.f32 %v660_v47, %v5284_v34  ;;  %v5438_v3 = vadd.f32 %v666_v22, %v5290_v39  ;;  %v1002_v2 = vadd.f32 %v997_v18, %v988_v40  ;;  %v1040_v38 = vpop.permute.xlu0 %1039 }
 0x137   : > { %v8811_v41 = vstv %s8801_s30  ;;  %v8812_v36 = vstv %s8802_s19  ;;  %v8813_v4 = vstv %s8779_s20  ;;  %v8814_v32 = vrot.slane %v4640_v37, 1  ;;  %s8824_s20 = sld [smem:[#allocation95_spill]]  ;;  %s8829_s30 = sld [smem:[#allocation60_spill]] }
 0x138   : > { %v848_v52 = vmul.f32 %v8811_v41, %v5403_v45  ;;  %v854_v58 = vmul.f32 %v8812_v36, %v5403_v45  ;;  %v690_v55 = vmul.f32 %v8813_v4, %v5348_v62  ;;  %v8815_v7 = vstv %s8804_s24  ;;  %s8830_s19 = sld [smem:[#allocation61_spill]]  ;;  %s8839_s24 = sld [smem:[#allocation74_spill]] }
 0x139   : > { %v1016_v34 = vadd.f32 %v8814_v32, %v1003_v54  ;;  %v860_v46 = vmul.f32 %v8815_v7, %v5403_v45  ;;  %v8816_v39 = vstv %s8805_s0  ;;  %v8817_v14 = vstv %s8807_s21 }
 0x13a   : > { %v866_v63 = vmul.f32 %v8816_v39, %v5403_v45  ;;  %v872_v59 = vmul.f32 %v8817_v14, %v5403_v45  ;;  %v1015_v12 = vadd.f32 %v4650_v48, %v1002_v2  ;;  %v8818_v47 = vstv %s8809_s9 }
 0x13b   : > { %v878_v0 = vmul.f32 %v8818_v47, %v5403_v45  ;;  %v5466_v37 = vadd.f32 %v672_v28, %v5295_v5  ;;  %v5469_v22 = vadd.f32 %v678_v53, %v5300_v44  ;;  %v8820_v60 = vstv %s8810_s5 }
 0x13c   : > { %v884_v24 = vmul.f32 %v8820_v60, %v5403_v45  ;;  %v8822_v18 = vmov %v8811_v41  ;;  %v8823_v17 = vmov %v8812_v36  ;;  %v5481_v5 = vadd.f32 %v684_v29, %v5306_v1 }
 0x13d   : > { %v849_v48 = vmul.f32 %v8822_v18, %v5430_v11  ;;  %v855_v40 = vmul.f32 %v8823_v17, %v5430_v11  ;;  %v1028_v44 = vadd.f32 %v4958_v19, %v1015_v12  ;;  %v850_v28 = vadd.f32 %v848_v52, %v649_v56  ;;  %v1042_v17 = vpop.permute.xlu1 %1041 }
 0x13e   : > { %v856_v33 = vadd.f32 %v854_v58, %v655_v23  ;;  %v8827_v53 = vmov %v8815_v7  ;;  %v862_v54 = vadd.f32 %v860_v46, %v661_v43  ;;  %v868_v2 = vadd.f32 %v866_v63, %v667_v15 }
 0x13f   : > { %v861_v8 = vmul.f32 %v8827_v53, %v5430_v11  ;;  %v874_v41 = vadd.f32 %v872_v59, %v673_v20  ;;  %v5488_v36 = vadd.f32 %v690_v55, %v5311_v50  ;;  %v5490_v1 = vadd.f32 %v1040_v38, %v1028_v44 }
 0x140   : > { %v880_v19 = vadd.f32 %v878_v0, %v679_v61  ;;  %v8833_v56 = vstv %s8819_s7  ;;  %v8834_v29 = vstv %s8821_s12  ;;  %v886_v58 = vadd.f32 %v884_v24, %v685_v21  ;;  %s8863_s12 = sld [smem:[#allocation73_spill]] }
 0x141   : > { %v890_v23 = vmul.f32 %v8833_v56, %v5403_v45  ;;  %v896_v52 = vmul.f32 %v8834_v29, %v5403_v45  ;;  %v8835_v43 = vstv %s8824_s20  ;;  %v8836_v20 = vstv %s8711_s22  ;;  %s8844_s22 = sld [smem:[#allocation66_spill]]  ;;  %s8850_s20 = sld [smem:[#allocation67_spill]] }
 0x142   : > { %v902_v15 = vmul.f32 %v8835_v43, %v5403_v45  ;;  %v908_v4 = vmul.f32 %v8836_v20, %v5403_v45  ;;  %v5504_v32 = vadd.f32 %v849_v48, %v650_v16  ;;  %v8837_v50 = vstv %s8825_s3 }
 0x143   : > { %v1049_v55 = vmul.f32 %v8837_v50, %v5490_v1  ;;  %v8838_v61 = vstv %s8826_s17  ;;  %v8840_v46 = vstv %s8828_s10  ;;  %v8841_v21 = vstv %s8829_s30 }
 0x144   : > { %v1055_v7 = vmul.f32 %v8838_v61, %v5490_v1  ;;  %v1061_v39 = vmul.f32 %v8840_v46, %v5490_v1  ;;  %v1067_v63 = vmul.f32 %v8841_v21, %v5490_v1  ;;  %v8843_v14 = vrot.slane %v4876_v49, 1 }
 0x145   : > { %v8845_v16 = vstv %s8830_s19  ;;  %v8846_v47 = vstv %s8831_s27  ;;  %v8847_v38 = vstv %s8832_s29  ;;  %v1051_v49 = vadd.f32 %v1049_v55, %v850_v28  ;;  %s8882_s29 = smov 127  }
 0x146   : > { %v1029_v59 = vadd.f32 %v8843_v14, %v1016_v34  ;;  %v1073_v12 = vmul.f32 %v8845_v16, %v5490_v1  ;;  %v1079_v0 = vmul.f32 %v8846_v47, %v5490_v1  ;;  %v1085_v60 = vmul.f32 %v8847_v38, %v5490_v1 }
 0x147   : > { %v1057_v34 = vadd.f32 %v1055_v7, %v856_v33  ;;  %v1063_v18 = vadd.f32 %v1061_v39, %v862_v54  ;;  %v1069_v48 = vadd.f32 %v1067_v63, %v868_v2  ;;  %v892_v53 = vadd.f32 %v890_v23, %v5389_v26 }
 0x148   : > { %v1075_v44 = vadd.f32 %v1073_v12, %v874_v41  ;;  %v8852_v56 = vstv %s8839_s24  ;;  %v898_v27 = vadd.f32 %v896_v52, %v5407_v13  ;;  %v8854_v43 = vstv %s8842_s23  ;;  %s8870_s24 = sld [smem:[#allocation88_spill]] }
 0x149   : > { %v1091_v29 = vmul.f32 %v8852_v56, %v5490_v1  ;;  %v1145_v20 = vadd.f32 %v8854_v43, %v1051_v49  ;;  %v8855_v50 = vstv %s8844_s22  ;;  %v1081_v28 = vadd.f32 %v1079_v0, %v880_v19 }
 0x14a   : > { %v1153_v61 = vadd.f32 %v8855_v50, %v1057_v34  ;;  %v1087_v33 = vadd.f32 %v1085_v60, %v886_v58  ;;  %v8858_v26 = vmov 0  ;;  %v8861_v13 = vstv %s8850_s20 }
 0x14b   : > { %v8859_v26 = vsel %vm5551_vm6, 4294967295, %v8858_v26  ;;  %v1161_v54 = vadd.f32 %v8861_v13, %v1063_v18  ;;  %v8862_v2 = vstv %s8851_s16  ;;  %v904_v19 = vadd.f32 %v902_v15, %v5410_v9 }
 0x14c   : > { %8860 = vst [vmem:[#allocation143_spill] sm:$0xff] %v8859_v26  ;;  %v1169_v41 = vadd.f32 %v8862_v2, %v1069_v48  ;;  %v910_v23 = vadd.f32 %v908_v4, %v5414_v30  ;;  %v5561_v52 = vadd.f32 %v1042_v17, %v1029_v59  ;;  %v1147_v58 = vmax.f32 %v1145_v20, 0.0 }
 0x14d   : > { %v1155_v55 = vmax.f32 %v1153_v61, 0.0  ;;  %v857_v7 = vadd.f32 %v855_v40, %v5422_v57  ;;  %v8865_v46 = vstv %s8853_s11  ;;  %v1093_v21 = vadd.f32 %v1091_v29, %v892_v53 }
 0x14e   : > { %v1177_v39 = vadd.f32 %v8865_v46, %v1075_v44  ;;  %v8866_v63 = vstv %s8805_s0  ;;  %v8867_v16 = vstv %s8807_s21  ;;  %v5574_v30 = vsel %vm5551_vm6, %v1147_v58, 0.0  ;;  %s8874_s0 = sld [smem:[#allocation76_spill]]  ;;  %s8877_s21 = sld [smem:[#allocation77_spill]] }
 0x14f   : > { %v867_v14 = vmul.f32 %v8866_v63, %v5430_v11  ;;  %v873_v9 = vmul.f32 %v8867_v16, %v5430_v11  ;;  %8868 = vst [vmem:[#allocation144_spill] sm:$0xff] %v5574_v30  ;;  %v8869_v15 = vstv %s8856_s4  ;;  %v8871_v59 = vstv %s8857_s28  ;;  %s8881_s28 = sld [smem:[#allocation96_spill]] }
 0x150   : > { %v1185_v4 = vadd.f32 %v8869_v15, %v1081_v28  ;;  %v1193_v12 = vadd.f32 %v8871_v59, %v1087_v33  ;;  %v5581_v57 = vadd.f32 %v861_v8, %v5435_v42  ;;  %v8872_v40 = vstv %s8863_s12  ;;  %s8471_s12 = smov 126  }
 0x151   : > { %v1284_v47 = vmul.f32 %v8872_v40, %v5574_v30  ;;  %v8873_v0 = vstv %s8864_s18  ;;  %v1163_v60 = vmax.f32 %v1161_v54, 0.0  ;;  %v1171_v24 = vmax.f32 %v1169_v41, 0.0  ;;  %s8880_s18 = sld [smem:[#allocation91_spill]] }
 0x152   : > { %v1276_v38 = vmul.f32 %v8873_v0, %v5574_v30  ;;  %v5591_v49 = vsel %vm5551_vm6, %v1155_v55, 0.0  ;;  %v8876_v34 = vstv %s8825_s3  ;;  %v8878_v8 = vstv %s8809_s9  ;;  %s8892_s9 = sld [smem:[#allocation78_spill]]  ;;  %s8895_s3 = sld [smem:[#allocation80_spill]] }
 0x153   : > { %8875 = vst [vmem:[#allocation145_spill] sm:$0xff] %v5591_v49  ;;  %v1050_v42 = vmul.f32 %v8876_v34, %v5561_v52  ;;  %v5599_v18 = vmul.f32 %v8878_v8, %v5430_v11  ;;  %v8879_v48 = vstv %s8810_s5  ;;  %1286 = vrot.lane.b32.xlu1 %v1284_v47, %s8471_s12  ;;  %v1179_v44 = vmax.f32 %v1177_v39, 0.0  ;;  %s8896_s5 = sld [smem:[#allocation81_spill]] }
 0x154   : > { %v5604_v17 = vmul.f32 %v8879_v48, %v5430_v11  ;;  %1278 = vrot.lane.b32.xlu0 %v1276_v38, %s8882_s29  ;;  %v8883_v53 = vstv %s8870_s24  ;;  %v5611_v29 = vadd.f32 %v867_v14, %v5438_v3  ;;  %v5614_v43 = vadd.f32 %v873_v9, %v5466_v37 }
 0x155   : > { %v1201_v56 = vadd.f32 %v8883_v53, %v1093_v21  ;;  %v1187_v20 = vmax.f32 %v1185_v4, 0.0  ;;  %v1195_v50 = vmax.f32 %v1193_v12, 0.0  ;;  %v8884_v61 = vstv %s8826_s17  ;;  %s8894_s17 = sld [smem:[#allocation79_spill]] }
 0x156   : > { %v1056_v28 = vmul.f32 %v8884_v61, %v5561_v52  ;;  %v8885_v33 = vstv %s8819_s7  ;;  %v8886_v54 = vstv %s8874_s0  ;;  %v8887_v3 = vstv %s8877_s21  ;;  %s8898_s7 = sld [smem:[#allocation92_spill]]  ;;  %s8903_s0 = sld [smem:[#allocation82_spill]] }
 0x157   : > { %v5622_v13 = vmul.f32 %v8885_v33, %v5430_v11  ;;  %v1402_v2 = vmul.f32 %v8886_v54, %v5591_v49  ;;  %v1394_v41 = vmul.f32 %v8887_v3, %v5591_v49  ;;  %v5632_v37 = vsel %vm5551_vm6, %v1163_v60, 0.0  ;;  %s8905_s21 = sld [smem:[#allocation97_spill]] }
 0x158   : > { %8888 = vst [vmem:[#allocation146_spill] sm:$0xff] %v5632_v37  ;;  %v5636_v58 = vsel %vm5551_vm6, %v1171_v24, 0.0  ;;  %v8890_v55 = vstv %s8880_s18  ;;  %v8891_v39 = vstv %s8881_s28  ;;  %v8893_v63 = vstv %s8712_s14  ;;  %s8907_s14 = sld [smem:[#allocation83_spill]]  ;;  %s8927_s28 = sld [smem:[#allocation87_spill]] }
 0x159   : > { %8889 = vst [vmem:[#allocation147_spill] sm:$0xff] %v5636_v58  ;;  %v1097_v46 = vmul.f32 %v8890_v55, %v5490_v1  ;;  %v1103_v21 = vmul.f32 %v8891_v39, %v5490_v1  ;;  %v1109_v14 = vmul.f32 %v8893_v63, %v5490_v1  ;;  %v1052_v16 = vadd.f32 %v1050_v42, %v5504_v32 }
 0x15a   : > { %1404 = vrot.lane.b32.xlu1 %v1402_v2, %s8471_s12  ;;  %1396 = vrot.lane.b32.xlu0 %v1394_v41, %s8882_s29  ;;  %v5652_v9 = vsel %vm5551_vm6, %v1179_v44, 0.0  ;;  %v1203_v15 = vmax.f32 %v1201_v56, 0.0  ;;  %v8901_v32 = vstv %s8828_s10  ;;  %v8902_v12 = vstv %s8829_s30  ;;  %s5672_s12 = sld [smem:[#allocation8 + $0x1b]]  ;;  %s8909_s10 = sld [smem:[#allocation84_spill]] }
 0x15b   : > { %8897 = vst [vmem:[#allocation148_spill] sm:$0xff] %v5652_v9  ;;  %v1062_v59 = vmul.f32 %v8901_v32, %v5561_v52  ;;  %v5668_v40 = vmul.f32 %v8902_v12, %v5561_v52  ;;  %v1099_v47 = vadd.f32 %v1097_v46, %v898_v27  ;;  %v1105_v0 = vadd.f32 %v1103_v21, %v904_v19  ;;  %s8911_s30 = sld [smem:[#allocation108_spill]] }
 0x15c   : > { %v1111_v38 = vadd.f32 %v1109_v14, %v910_v23  ;;  %v8904_v60 = vstv %s8842_s23  ;;  %v8906_v51 = vstv %s8892_s9  ;;  %v8908_v42 = vstv %s8894_s17  ;;  %s8914_s23 = sld [smem:[#allocation85_spill]]  ;;  %s8915_s9 = sld [smem:[#allocation86_spill]] }
 0x15d   : > { %v1146_v24 = vadd.f32 %v8904_v60, %v1052_v16  ;;  %v1527_v34 = vmul.f32 %v8906_v51, %v5632_v37  ;;  %v1519_v8 = vmul.f32 %v8908_v42, %v5632_v37  ;;  %v8910_v48 = vstv %s8895_s3  ;;  %s8920_s17 = sld [smem:[#allocation109_spill]]  ;;  %s8921_s3 = smov 126  }
 0x15e   : > { %v1652_v27 = vmul.f32 %v8910_v48, %v5636_v58  ;;  %v5685_v19 = vsel %vm5551_vm6, %v1187_v20, 0.0  ;;  %v8913_v23 = vstv %s8896_s5  ;;  %v5692_v53 = vsel %vm5551_vm6, %v1195_v50, 0.0  ;;  %s8922_s5 = sld [smem:[#allocation110_spill]] }
 0x15f   : > { %8912 = vst [vmem:[#allocation149_spill] sm:$0xff] %v5685_v19  ;;  %v1644_v44 = vmul.f32 %v8913_v23, %v5636_v58  ;;  %8916 = vst [vmem:[#allocation150_spill] sm:$0xff] %v5692_v53  ;;  %v8917_v56 = vstv %s8898_s7  ;;  %v1148_v20 = vmax.f32 %v1146_v24, 0.0  ;;  %1529 = vrot.lane.b32.xlu1 %v1527_v34, %s8921_s3  ;;  %1521 = vrot.lane.b32.xlu0 %v1519_v8, %s8882_s29  ;;  %v8923_v50 = vstv %s8903_s0  ;;  %s8929_s7 = sld [smem:[#allocation89_spill]]  ;;  %s8931_s0 = sld [smem:[#allocation90_spill]] }
 0x160   : > { %v1209_v61 = vadd.f32 %v8917_v56, %v1099_v47  ;;  %v1777_v54 = vmul.f32 %v8923_v50, %v5652_v9  ;;  %v5711_v31 = vsel %vm5551_vm6, %v1203_v15, 0.0  ;;  %v8925_v2 = vstv %s8905_s21 }
 0x161   : > { %8924 = vst [vmem:[#allocation151_spill] sm:$0xff] %v5711_v31  ;;  %v1217_v3 = vadd.f32 %v8925_v2, %v1105_v0  ;;  %v1058_v41 = vadd.f32 %v1056_v28, %v857_v7  ;;  %v8926_v55 = vstv %s8907_s14  ;;  %v8928_v39 = vstv %s8909_s10  ;;  %s8943_s14 = sld [smem:[#allocation111_spill]]  ;;  %s8946_s10 = sld [smem:[#allocation99_spill]] }
 0x162   : > { %v1769_v46 = vmul.f32 %v8926_v55, %v5652_v9  ;;  %v1902_v21 = vmul.f32 %v8928_v39, %v5685_v19  ;;  %v8930_v63 = vstv %s8713_s13  ;;  %v8932_v16 = vstv %s8911_s30  ;;  %s8952_s30 = sld [smem:[#allocation103_spill]] }
 0x163   : > { %v1225_v14 = vadd.f32 %v8930_v63, %v1111_v38  ;;  %v1303_v4 = vmul.f32 %v8932_v16, %v5574_v30  ;;  %v8933_v15 = vstv %s8914_s23  ;;  %v8934_v12 = vstv %s8915_s9  ;;  %1654 = vrot.lane.b32.xlu1 %v1652_v27, %s8921_s3  ;;  %1646 = vrot.lane.b32.xlu0 %v1644_v44, %s8882_s29  ;;  %s8953_s23 = sld [smem:[#allocation113_spill]]  ;;  %s8959_s9 = sld [smem:[#allocation114_spill]] }
 0x164   : > { %v1894_v32 = vmul.f32 %v8933_v15, %v5685_v19  ;;  %v2027_v7 = vmul.f32 %v8934_v12, %v5692_v53  ;;  %v1211_v28 = vmax.f32 %v1209_v61, 0.0  ;;  %v5734_v47 = vsel %vm5700_vm8, %v1148_v20, 0.0 }
 0x165   : > { %8935 = vst [vmem:[#allocation152_spill] sm:$0xff] %v5734_v47  ;;  %v8936_v0 = vstv %s8920_s17  ;;  %v8937_v38 = vstv %s8922_s5  ;;  %v8938_v51 = vstv %s5035_s6  ;;  %v8939_v42 = vstv %s8844_s22  ;;  %s8945_s22 = sld [smem:[#allocation112_spill]]  ;;  %s8957_s6 = sld [smem:[#allocation107_spill]] }
 0x166   : > { %v1316_v60 = vmul.f32 %v8936_v0, %v5574_v30  ;;  %v1341_v24 = vmul.f32 %v8937_v38, %v5574_v30  ;;  %v1354_v34 = vmul.f32 %v8938_v51, %v5574_v30  ;;  %v1154_v8 = vadd.f32 %v8939_v42, %v1058_v41  ;;  %s8974_s17 = sld [smem:[#allocation116_spill]]  ;;  %s8976_s5 = sld [smem:[#allocation117_spill]] }
 0x167   : > { %v8940_v48 = vstv %s8927_s28  ;;  %v8941_v56 = vstv %s8929_s7  ;;  %v8942_v20 = vstv %s8931_s0  ;;  %v1219_v2 = vmax.f32 %v1217_v3, 0.0  ;;  %s8950_s28 = sld [smem:[#allocation101_spill]]  ;;  %s8951_s7 = sld [smem:[#allocation102_spill]]  ;;  %1779 = vrot.lane.b32.xlu1 %v1777_v54, %s8921_s3 }
 0x168   : > { %v2019_v23 = vmul.f32 %v8940_v48, %v5692_v53  ;;  %v5755_v61 = vmul.f32 %v8941_v56, %v5711_v31  ;;  %v5760_v50 = vmul.f32 %v8942_v20, %v5711_v31  ;;  %v1227_v55 = vmax.f32 %v1225_v14, 0.0  ;;  %1771 = vrot.lane.b32.xlu0 %v1769_v46, %s8882_s29  ;;  %s9023_s0 = sld [smem:[#allocation130_spill]] }
 0x169   : > { %v8944_v41 = vmov %v8932_v16  ;;  %v1307_v39 = vrot.slane %v1303_v4, 1  ;;  %v5768_v63 = vsel %vm5551_vm6, %v1211_v28, 0.0  ;;  %v8948_v16 = vmov %v8936_v0 }
 0x16a   : > { %v1304_v27 = vmul.f32 %v8944_v41, %v5734_v47  ;;  %8947 = vst [vmem:[#allocation153_spill] sm:$0xff] %v5768_v63  ;;  %v1317_v15 = vmul.f32 %v8948_v16, %v5734_v47  ;;  %v8949_v12 = vmov %v8937_v38  ;;  %v1156_v3 = vmax.f32 %v1154_v8, 0.0 }
 0x16b   : > { %v1342_v0 = vmul.f32 %v8949_v12, %v5734_v47  ;;  %v1320_v14 = vrot.slane %v1316_v60, 1  ;;  %v1345_v38 = vrot.slane %v1341_v24, 2  ;;  %v1355_v4 = vmul.f32 %v8938_v51, %v5734_v47  ;;  %1904 = vrot.lane.b32.xlu1 %v1902_v21, %s8921_s3 }
 0x16c   : > { %v1358_v42 = vrot.slane %v1354_v34, 2  ;;  %v5783_v28 = vsel %vm5551_vm6, %v1219_v2, 0.0  ;;  %v8955_v8 = vstv %s8943_s14  ;;  %v8956_v24 = vstv %s8945_s22  ;;  %1896 = vrot.lane.b32.xlu0 %v1894_v32, %s8882_s29 }
 0x16d   : > { %8954 = vst [vmem:[#allocation154_spill] sm:$0xff] %v5783_v28  ;;  %v1421_v60 = vmul.f32 %v8955_v8, %v5591_v49  ;;  %v1434_v48 = vmul.f32 %v8956_v24, %v5591_v49  ;;  %v1064_v56 = vadd.f32 %v1062_v59, %v5581_v57  ;;  %v8958_v34 = vstv %s8946_s10  ;;  %s9035_s10 = sld [smem:[#allocation64_spill]] }
 0x16e   : > { %v5795_v54 = vmul.f32 %v8958_v34, %v5768_v63  ;;  %v5799_v46 = vsel %vm5551_vm6, %v1227_v55, 0.0  ;;  %v1308_v20 = vrot.slane %v1304_v27, 1  ;;  %v5803_v2 = vsel %vm5700_vm8, %v1156_v3, 0.0 }
 0x16f   : > { %8960 = vst [vmem:[#allocation155_spill] sm:$0xff] %v5803_v2  ;;  %v8961_v41 = vstv %s8950_s28  ;;  %v1321_v57 = vrot.slane %v1317_v15, 1  ;;  %v1346_v59 = vrot.slane %v1342_v0, 2  ;;  %v8962_v12 = vstv %s8850_s20  ;;  %s8967_s20 = sld [smem:[#allocation115_spill]]  ;;  %2029 = vrot.lane.b32.xlu1 %v2027_v7, %s8921_s3 }
 0x170   : > { %v2269_v16 = vmul.f32 %v8961_v41, %v5768_v63  ;;  %v1162_v51 = vadd.f32 %v8962_v12, %v1064_v56  ;;  %v8963_v8 = vstv %s8951_s7  ;;  %v8964_v55 = vstv %s8952_s30  ;;  %2021 = vrot.lane.b32.xlu0 %v2019_v23, %s8882_s29  ;;  %s9036_s28 = sld [smem:[#allocation131_spill]]  ;;  %s9037_s7 = sld [smem:[#allocation132_spill]] }
 0x171   : > { %v5813_v24 = vmul.f32 %v8963_v8, %v5783_v28  ;;  %v5818_v27 = vmul.f32 %v8964_v55, %v5783_v28  ;;  %v1359_v3 = vrot.slane %v1355_v4, 2  ;;  %v8965_v34 = vstv %s8953_s23  ;;  %s9039_s30 = sld [smem:[#allocation106_spill]] }
 0x172   : > { %v1458_v44 = vmul.f32 %v8965_v34, %v5591_v49  ;;  %v8966_v15 = vstv %s8957_s6  ;;  %v8968_v56 = vstv %s8943_s14  ;;  %v8969_v12 = vstv %s8959_s9  ;;  %s9024_s14 = sld [smem:[#allocation74_spill]]  ;;  %s9041_s6 = sld [smem:[#allocation135_spill]] }
 0x173   : > { %v5828_v0 = vmul.f32 %v8966_v15, %v5799_v46  ;;  %v1422_v41 = vmul.f32 %v8968_v56, %v5803_v2  ;;  %v1471_v8 = vmul.f32 %v8969_v12, %v5591_v49  ;;  %v1164_v55 = vmax.f32 %v1162_v51, 0.0  ;;  %2154 = vrot.lane.b32.xlu1 %v5755_v61, %s8921_s3  ;;  %s9058_s9 = sld [smem:[#allocation137_spill]] }
 0x174   : > { %v5837_v4 = vsel %vm438_vm0, %v1307_v39, %v1308_v20  ;;  %v1425_v34 = vrot.slane %v1421_v60, 1  ;;  %v8970_v21 = vstv %s8945_s22  ;;  %v8971_v47 = vstv %s8953_s23  ;;  %2146 = vrot.lane.b32.xlu0 %v5760_v50, %s8882_s29  ;;  %s9030_s22 = sld [smem:[#allocation62_spill]] }
 0x175   : > { %v1435_v32 = vmul.f32 %v8970_v21, %v5803_v2  ;;  %v1459_v30 = vmul.f32 %v8971_v47, %v5803_v2  ;;  %v5846_v15 = vsel %vm438_vm0, %v1320_v14, %v1321_v57  ;;  %v5849_v56 = vsel %vm1333_vm9, %v1345_v38, %v1346_v59  ;;  %s9040_s23 = sld [smem:[#allocation134_spill]] }
 0x176   : > { %v8972_v51 = vmov %v8969_v12  ;;  %v5856_v60 = vsel %vm5700_vm8, %v1164_v55, 0.0  ;;  %v5859_v20 = vsel %vm1333_vm9, %v1358_v42, %v1359_v3  ;;  %v1438_v47 = vrot.slane %v1434_v48, 1 }
 0x177   : > { %v1472_v39 = vmul.f32 %v8972_v51, %v5803_v2  ;;  %8973 = vst [vmem:[#allocation156_spill] sm:$0xff] %v5856_v60  ;;  %v1462_v14 = vrot.slane %v1458_v44, 2  ;;  %v8975_v57 = vstv %s8967_s20  ;;  %v1426_v59 = vrot.slane %v1422_v41, 1  ;;  %2279 = vrot.lane.b32.xlu1 %v5795_v54, %s8921_s3  ;;  %s9062_s20 = sld [smem:[#allocation38_spill]] }
 0x178   : > { %v1546_v38 = vmul.f32 %v8975_v57, %v5632_v37  ;;  %v1475_v12 = vrot.slane %v1471_v8, 2  ;;  %v8977_v55 = vmov %v8975_v57  ;;  %v1070_v48 = vadd.f32 %v5668_v40, %v5611_v29  ;;  %2271 = vrot.lane.b32.xlu0 %v2269_v16, %s8882_s29 }
 0x179   : > { %v1547_v42 = vmul.f32 %v8977_v55, %v5856_v60  ;;  %v1439_v3 = vrot.slane %v1435_v32, 1  ;;  %v1463_v44 = vrot.slane %v1459_v30, 2  ;;  %v8978_v21 = vstv %s5059_s1  ;;  %s8988_s1 = sld [smem:[#allocation119_spill]] }
 0x17a   : > { %v1559_v51 = vmul.f32 %v8978_v21, %v5632_v37  ;;  %v8979_v7 = vmov %v8978_v21  ;;  %v1476_v2 = vrot.slane %v1472_v39, 2  ;;  %v8980_v23 = vstv %s5061_s26  ;;  %s8994_s26 = sld [smem:[#allocation120_spill]] }
 0x17b   : > { %v1560_v57 = vmul.f32 %v8979_v7, %v5856_v60  ;;  %v1583_v41 = vmul.f32 %v8980_v23, %v5632_v37  ;;  %v8981_v8 = vstv %s8974_s17  ;;  %v8982_v55 = vstv %s8851_s16  ;;  %s8986_s16 = sld [smem:[#allocation118_spill]]  ;;  %2396 = vrot.lane.b32.xlu1 %v5813_v24, %s8882_s29  ;;  %s9063_s17 = sld [smem:[#allocation32_spill]] }
 0x17c   : > { %v1596_v49 = vmul.f32 %v8981_v8, %v5632_v37  ;;  %v1170_v26 = vadd.f32 %v8982_v55, %v1070_v48  ;;  %v1550_v10 = vrot.slane %v1546_v38, 1  ;;  %v8983_v29 = vmov %v8980_v23  ;;  %2404 = vrot.lane.b32.xlu0 %v5818_v27, %s8921_s3 }
 0x17d   : > { %v1584_v30 = vmul.f32 %v8983_v29, %v5856_v60  ;;  %v8984_v40 = vmov %v8981_v8  ;;  %v8985_v21 = vstv %s8976_s5  ;;  %v5901_v39 = vsel %vm438_vm0, %v1425_v34, %v1426_v59 }
 0x17e   : > { %v1597_v32 = vmul.f32 %v8984_v40, %v5856_v60  ;;  %v5894_v28 = vmul.f32 %v8985_v21, %v5636_v58  ;;  %v1551_v38 = vrot.slane %v1547_v42, 1  ;;  %v1172_v48 = vmax.f32 %v1170_v26, 0.0 }
 0x17f   : > { %v8987_v7 = vstv %s8830_s19  ;;  %v5907_v8 = vsel %vm438_vm0, %v1438_v47, %v1439_v3  ;;  %v5910_v55 = vsel %vm1333_vm9, %v1462_v14, %v1463_v44  ;;  %v1563_v61 = vrot.slane %v1559_v51, 1  ;;  %s9008_s19 = sld [smem:[#allocation70_spill]]  ;;  %2521 = vrot.lane.b32.xlu1 %v5828_v0, %s8882_s29 }
 0x180   : > { %v1074_v23 = vmul.f32 %v8987_v7, %v5561_v52  ;;  %v1564_v29 = vrot.slane %v1560_v57, 1  ;;  %v5913_v50 = vsel %vm1333_vm9, %v1475_v12, %v1476_v2  ;;  %v1587_v34 = vrot.slane %v1583_v41, 2  ;;  %1310 = vrot.lane.b32.xlu0 %v5837_v4, %s8882_s29 }
 0x181   : > { %v1600_v26 = vrot.slane %v1596_v49, 2  ;;  %v1588_v47 = vrot.slane %v1584_v30, 2  ;;  %v1601_v42 = vrot.slane %v1597_v32, 2  ;;  %v1675_v14 = vrot.slane %v5894_v28, 1 }
 0x182   : > { %v1076_v59 = vadd.f32 %v1074_v23, %v5614_v43  ;;  %v8989_v3 = vstv %s8986_s16  ;;  %v5924_v49 = vsel %vm438_vm0, %v1550_v10, %v1551_v38  ;;  %v5928_v43 = vsel %vm5700_vm8, %v1172_v48, 0.0  ;;  %s9066_s16 = sld [smem:[#allocation36_spill]] }
 0x183   : > { %v1684_v44 = vmul.f32 %v8989_v3, %v5636_v58  ;;  %8990 = vst [vmem:[#allocation157_spill] sm:$0xff] %v5928_v43  ;;  %v8991_v28 = vstv %s5077_s25  ;;  %v8992_v12 = vstv %s8853_s11  ;;  %v5936_v57 = vsel %vm438_vm0, %v1563_v61, %v1564_v29  ;;  %s9003_s11 = sld [smem:[#allocation122_spill]]  ;;  %s9004_s25 = sld [smem:[#allocation123_spill]]  ;;  %1323 = vrot.lane.b32.xlu1 %v5846_v15, %s8921_s3 }
 0x184   : > { %v1708_v2 = vmul.f32 %v8991_v28, %v5636_v58  ;;  %v1178_v51 = vadd.f32 %v8992_v12, %v1076_v59  ;;  %v8993_v54 = vstv %s8988_s1  ;;  %v8995_v41 = vstv %s5087_s2  ;;  %1348 = vrot.lane.b32.xlu0 %v5849_v56, %s8882_s29  ;;  %s9068_s1 = sld [smem:[#allocation94_spill]] }
 0x185   : > { %v1721_v16 = vmul.f32 %v8993_v54, %v5636_v58  ;;  %v5944_v10 = vmul.f32 %v8995_v41, %v5652_v9  ;;  %v8996_v30 = vstv %s5093_s15  ;;  %v8997_v21 = vstv %s8733_s8 }
 0x186   : > { %v5949_v40 = vmul.f32 %v8996_v30, %v5652_v9  ;;  %v1180_v32 = vmax.f32 %v1178_v51, 0.0  ;;  %v5954_v38 = vmul.f32 %v8997_v21, %v5652_v9  ;;  %v881_v48 = vadd.f32 %v5599_v18, %v5469_v22 }
 0x187   : > { %v8998_v7 = vstv %s8831_s27  ;;  %v8999_v61 = vstv %s8976_s5  ;;  %v9000_v59 = vmov %v8989_v3  ;;  %v1709_v12 = vmul.f32 %v8991_v28, %v5928_v43  ;;  %s9007_s27 = sld [smem:[#allocation124_spill]]  ;;  %1361 = vrot.lane.b32.xlu1 %v5859_v20, %s8921_s3  ;;  %s9064_s5 = sld [smem:[#allocation34_spill]] }
 0x188   : > { %v1080_v23 = vmul.f32 %v8998_v7, %v5561_v52  ;;  %v1672_v29 = vmul.f32 %v8999_v61, %v5928_v43  ;;  %v1685_v3 = vmul.f32 %v9000_v59, %v5928_v43  ;;  %v9001_v51 = vmov %v8993_v54  ;;  %1428 = vrot.lane.b32.xlu0 %v5901_v39, %s8882_s29 }
 0x189   : > { %v1722_v54 = vmul.f32 %v9001_v51, %v5928_v43  ;;  %v5978_v22 = vsel %vm1333_vm9, %v1587_v34, %v1588_v47  ;;  %v1688_v18 = vrot.slane %v1684_v44, 1  ;;  %v9002_v41 = vstv %s8994_s26  ;;  %s6211_s26 = sld [smem:[#allocation8 + $0x2a]] }
 0x18a   : > { %v5983_v30 = vmul.f32 %v9002_v41, %v5652_v9  ;;  %v1082_v21 = vadd.f32 %v1080_v23, %v881_v48  ;;  %v5986_v7 = vsel %vm1333_vm9, %v1600_v26, %v1601_v42  ;;  %v1712_v61 = vrot.slane %v1708_v2, 2 }
 0x18b   : > { %v1725_v59 = vrot.slane %v1721_v16, 2  ;;  %v1800_v24 = vrot.slane %v5944_v10, 1  ;;  %v5991_v27 = vsel %vm5700_vm8, %v1180_v32, 0.0  ;;  %v1813_v34 = vrot.slane %v5949_v40, 1  ;;  %1441 = vrot.lane.b32.xlu1 %v5907_v8, %s8921_s3 }
 0x18c   : > { %9005 = vst [vmem:[#allocation158_spill] sm:$0xff] %v5991_v27  ;;  %v1837_v47 = vrot.slane %v5954_v38, 2  ;;  %v9006_v26 = vstv %s8856_s4  ;;  %v1676_v44 = vrot.slane %v1672_v29, 1  ;;  %v1689_v2 = vrot.slane %v1685_v3, 1  ;;  %s9013_s4 = sld [smem:[#allocation125_spill]]  ;;  %1465 = vrot.lane.b32.xlu0 %v5910_v55, %s8882_s29 }
 0x18d   : > { %v1186_v42 = vadd.f32 %v9006_v26, %v1082_v21  ;;  %v1713_v16 = vrot.slane %v1709_v12, 2  ;;  %v1726_v48 = vrot.slane %v1722_v54, 2  ;;  %v1850_v10 = vrot.slane %v5983_v30, 2 }
 0x18e   : > { %v9009_v32 = vstv %s9003_s11  ;;  %v9010_v23 = vstv %s9004_s25  ;;  %v9011_v29 = vstv %s5087_s2  ;;  %v9012_v12 = vstv %s5093_s15  ;;  %s9020_s15 = sld [smem:[#allocation128_spill]]  ;;  %s9021_s2 = sld [smem:[#allocation129_spill]] }
 0x18f   : > { %v1188_v40 = vmax.f32 %v1186_v42, 0.0  ;;  %v1921_v38 = vmul.f32 %v9009_v32, %v5685_v19  ;;  %v6008_v28 = vmul.f32 %v9010_v23, %v5685_v19  ;;  %v1797_v3 = vmul.f32 %v9011_v29, %v5991_v27  ;;  %1478 = vrot.lane.b32.xlu1 %v5913_v50, %s8921_s3 }
 0x190   : > { %v1810_v0 = vmul.f32 %v9012_v12, %v5991_v27  ;;  %v9014_v51 = vstv %s8733_s8  ;;  %v9015_v54 = vmov %v9002_v41  ;;  %v9017_v21 = vstv %s9007_s27  ;;  %s9019_s8 = sld [smem:[#allocation72_spill]]  ;;  %1553 = vrot.lane.b32.xlu0 %v5924_v49, %s8882_s29 }
 0x191   : > { %v1834_v4 = vmul.f32 %v9014_v51, %v5991_v27  ;;  %v1847_v41 = vmul.f32 %v9015_v54, %v5991_v27  ;;  %v6024_v30 = vsel %vm5700_vm8, %v1188_v40, 0.0  ;;  %v1958_v26 = vmul.f32 %v9017_v21, %v5685_v19 }
 0x192   : > { %9016 = vst [vmem:[#allocation159_spill] sm:$0xff] %v6024_v30  ;;  %v887_v42 = vadd.f32 %v5604_v17, %v5481_v5  ;;  %v9018_v32 = vstv %s9008_s19  ;;  %v6035_v29 = vsel %vm438_vm0, %v1675_v14, %v1676_v44  ;;  %v6038_v12 = vsel %vm438_vm0, %v1688_v18, %v1689_v2  ;;  %s6241_s19 = sld [smem:[#allocation8 + $0x49]] }
 0x193   : > { %v1086_v23 = vmul.f32 %v9018_v32, %v5561_v52  ;;  %v6041_v40 = vsel %vm1333_vm9, %v1712_v61, %v1713_v16  ;;  %v6044_v51 = vsel %vm1333_vm9, %v1725_v59, %v1726_v48  ;;  %v1925_v5 = vrot.slane %v1921_v38, 1  ;;  %1566 = vrot.lane.b32.xlu1 %v5936_v57, %s8921_s3 }
 0x194   : > { %v1938_v17 = vrot.slane %v6008_v28, 1  ;;  %v9022_v14 = vstv %s9013_s4  ;;  %v1801_v44 = vrot.slane %v1797_v3, 1  ;;  %v1814_v59 = vrot.slane %v1810_v0, 1  ;;  %1590 = vrot.lane.b32.xlu0 %v5978_v22, %s8882_s29  ;;  %s9077_s4 = sld [smem:[#allocation96_spill]] }
 0x195   : > { %v1971_v18 = vmul.f32 %v9022_v14, %v5685_v19  ;;  %v1088_v61 = vadd.f32 %v1086_v23, %v887_v42  ;;  %v1838_v2 = vrot.slane %v1834_v4, 2  ;;  %v9025_v15 = vstv %s9003_s11  ;;  %s9071_s11 = sld [smem:[#allocation95_spill]] }
 0x196   : > { %v1922_v16 = vmul.f32 %v9025_v15, %v6024_v30  ;;  %v1851_v48 = vrot.slane %v1847_v41, 2  ;;  %v1962_v54 = vrot.slane %v1958_v26, 2  ;;  %v9026_v56 = vstv %s9019_s8  ;;  %s6247_s8 = sld [smem:[#allocation8 + $0x2b]] }
 0x197   : > { %v1194_v21 = vadd.f32 %v9026_v56, %v1088_v61  ;;  %v893_v38 = vadd.f32 %v5622_v13, %v5488_v36  ;;  %v9027_v28 = vstv %s9004_s25  ;;  %v9028_v42 = vstv %s9007_s27  ;;  %s6219_s25 = sld [smem:[#allocation5 + $0x2c]]  ;;  %s6236_s27 = sld [smem:[#allocation8]]  ;;  %1603 = vrot.lane.b32.xlu1 %v5986_v7, %s8921_s3 }
 0x198   : > { %v1935_v32 = vmul.f32 %v9027_v28, %v6024_v30  ;;  %v1959_v3 = vmul.f32 %v9028_v42, %v6024_v30  ;;  %v9029_v0 = vstv %s9020_s15  ;;  %v9031_v23 = vstv %s9021_s2  ;;  %1678 = vrot.lane.b32.xlu0 %v6035_v29, %s8882_s29 }
 0x199   : > { %v6070_v4 = vmul.f32 %v9029_v0, %v5692_v53  ;;  %v6075_v41 = vmul.f32 %v9031_v23, %v5692_v53  ;;  %v9032_v36 = vmov %v9022_v14  ;;  %v1975_v26 = vrot.slane %v1971_v18, 2 }
 0x19a   : > { %v1972_v13 = vmul.f32 %v9032_v36, %v6024_v30  ;;  %v9033_v14 = vstv %s9023_s0  ;;  %v9034_v15 = vstv %s9024_s14  ;;  %v6093_v28 = vsel %vm438_vm0, %v1800_v24, %v1801_v44  ;;  %s9086_s14 = sld [smem:[#allocation133_spill]] }
 0x19b   : > { %v6087_v61 = vmul.f32 %v9033_v14, %v5692_v53  ;;  %v1092_v56 = vmul.f32 %v9034_v15, %v5561_v52  ;;  %v6096_v20 = vsel %vm438_vm0, %v1813_v34, %v1814_v59  ;;  %v1926_v39 = vrot.slane %v1922_v16, 1  ;;  %1691 = vrot.lane.b32.xlu1 %v6038_v12, %s8921_s3 }
 0x19c   : > { %v1196_v42 = vmax.f32 %v1194_v21, 0.0  ;;  %v6099_v0 = vsel %vm1333_vm9, %v1837_v47, %v1838_v2  ;;  %v6102_v18 = vsel %vm1333_vm9, %v1850_v10, %v1851_v48  ;;  %v9038_v36 = vstv %s9030_s22  ;;  %1715 = vrot.lane.b32.xlu0 %v6041_v40, %s8882_s29  ;;  %s6297_s22 = sld [smem:[#allocation8 + $0x59]] }
 0x19d   : > { %v1094_v23 = vadd.f32 %v1092_v56, %v893_v38  ;;  %v696_v24 = vmul.f32 %v9038_v36, %v5348_v62  ;;  %v1939_v44 = vrot.slane %v1935_v32, 1  ;;  %v1963_v14 = vrot.slane %v1959_v3, 2 }
 0x19e   : > { %v1976_v47 = vrot.slane %v1972_v13, 2  ;;  %v9042_v2 = vstv %s8870_s24  ;;  %v9043_v48 = vstv %s9035_s10  ;;  %v6120_v38 = vsel %vm438_vm0, %v1925_v5, %v1926_v39  ;;  %s9050_s24 = sld [smem:[#allocation126_spill]]  ;;  %s6323_s10 = sld [smem:[#allocation5 + $0x1d]] }
 0x19f   : > { %v1202_v16 = vadd.f32 %v9042_v2, %v1094_v23  ;;  %v897_v21 = vmul.f32 %v9043_v48, %v5430_v11  ;;  %v6124_v8 = vsel %vm5700_vm8, %v1196_v42, 0.0  ;;  %v9045_v32 = vstv %s9036_s28  ;;  %1728 = vrot.lane.b32.xlu1 %v6044_v51, %s8921_s3 }
 0x1a0   : > { %9044 = vst [vmem:[#allocation160_spill] sm:$0xff] %v6124_v8  ;;  %v6129_v55 = vmul.f32 %v9045_v32, %v5692_v53  ;;  %v9046_v3 = vstv %s9037_s7  ;;  %v9047_v56 = vstv %s9039_s30  ;;  %v698_v39 = vadd.f32 %v696_v24, %v5316_v6  ;;  %1803 = vrot.lane.b32.xlu0 %v6093_v28, %s8882_s29 }
 0x1a1   : > { %v6134_v13 = vmul.f32 %v9046_v3, %v5711_v31  ;;  %v1204_v15 = vmax.f32 %v1202_v16, 0.0  ;;  %v6139_v5 = vmul.f32 %v9047_v56, %v5711_v31  ;;  %v9048_v42 = vstv %s8880_s18  ;;  %s9055_s18 = sld [smem:[#allocation92_spill]] }
 0x1a2   : > { %v1098_v23 = vmul.f32 %v9048_v42, %v5561_v52  ;;  %v6146_v36 = vsel %vm438_vm0, %v1938_v17, %v1939_v44  ;;  %v6149_v2 = vsel %vm1333_vm9, %v1962_v54, %v1963_v14  ;;  %v9049_v48 = vstv %s9040_s23 }
 0x1a3   : > { %v6154_v16 = vmul.f32 %v9049_v48, %v5711_v31  ;;  %v9051_v32 = vstv %s9041_s6  ;;  %v6166_v6 = vsel %vm1333_vm9, %v1975_v26, %v1976_v47  ;;  %v9052_v17 = vstv %s9020_s15  ;;  %s6252_s15 = sld [smem:[#allocation5 + $0x3c]]  ;;  %1816 = vrot.lane.b32.xlu1 %v6096_v20, %s8921_s3 }
 0x1a4   : > { %v6159_v3 = vmul.f32 %v9051_v32, %v5711_v31  ;;  %v2047_v54 = vmul.f32 %v9052_v17, %v6124_v8  ;;  %v6173_v24 = vsel %vm5700_vm8, %v1204_v15, 0.0  ;;  %v899_v44 = vadd.f32 %v897_v21, %v698_v39  ;;  %1840 = vrot.lane.b32.xlu0 %v6099_v0, %s8882_s29 }
 0x1a5   : > { %9053 = vst [vmem:[#allocation161_spill] sm:$0xff] %v6173_v24  ;;  %v9054_v14 = vstv %s9021_s2  ;;  %v9056_v50 = vstv %s9023_s0  ;;  %v9057_v49 = vstv %s9036_s28  ;;  %v2100_v47 = vrot.slane %v6129_v55, 2  ;;  %s9082_s2 = sld [smem:[#allocation44_spill]]  ;;  %s6265_s0 = sld [smem:[#allocation8 + $0x1]] }
 0x1a6   : > { %v2060_v56 = vmul.f32 %v9054_v14, %v6124_v8  ;;  %v2084_v42 = vmul.f32 %v9056_v50, %v6124_v8  ;;  %v2097_v26 = vmul.f32 %v9057_v49, %v6124_v8  ;;  %v2175_v48 = vrot.slane %v6134_v13, 1  ;;  %s9093_s28 = sld [smem:[#allocation98_spill]] }
 0x1a7   : > { %v2188_v32 = vrot.slane %v6139_v5, 1  ;;  %v1100_v15 = vadd.f32 %v1098_v23, %v899_v44  ;;  %v9059_v21 = vstv %s9050_s24  ;;  %v9060_v17 = vstv %s9037_s7  ;;  %s6334_s7 = sld [smem:[#allocation7 + $0xc]]  ;;  %1853 = vrot.lane.b32.xlu1 %v6102_v18, %s8921_s3 }
 0x1a8   : > { %v713_v39 = vmul.f32 %v9059_v21, %v5273_v25  ;;  %v2172_v14 = vmul.f32 %v9060_v17, %v6173_v24  ;;  %v9061_v50 = vstv %s9039_s30  ;;  %v2212_v49 = vrot.slane %v6154_v16, 2  ;;  %s9095_s30 = sld [smem:[#allocation104_spill]]  ;;  %1928 = vrot.lane.b32.xlu0 %v6120_v38, %s8882_s29 }
 0x1a9   : > { %v2185_v10 = vmul.f32 %v9061_v50, %v6173_v24  ;;  %v2225_v55 = vrot.slane %v6159_v3, 2  ;;  %v2051_v13 = vrot.slane %v2047_v54, 1  ;;  %v9065_v5 = vstv %s9055_s18  ;;  %s6344_s18 = sld [smem:[#allocation5 + $0x3d]] }
 0x1aa   : > { %v1210_v23 = vadd.f32 %v9065_v5, %v1100_v15  ;;  %v715_v44 = vadd.f32 %v713_v39, %v5331_v35  ;;  %v9067_v21 = vstv %s9058_s9  ;;  %v2064_v17 = vrot.slane %v2060_v56, 1 }
 0x1ab   : > { %v914_v16 = vmul.f32 %v9067_v21, %v5403_v45  ;;  %v2088_v3 = vrot.slane %v2084_v42, 2  ;;  %v2101_v50 = vrot.slane %v2097_v26, 2  ;;  %v9069_v57 = vstv %s9040_s23  ;;  %s6336_s23 = sld [smem:[#allocation8 + $0x4a]]  ;;  %1941 = vrot.lane.b32.xlu1 %v6146_v36, %s8921_s3 }
 0x1ac   : > { %v2209_v59 = vmul.f32 %v9069_v57, %v6173_v24  ;;  %v9070_v22 = vstv %s9041_s6  ;;  %v1212_v34 = vmax.f32 %v1210_v23, 0.0  ;;  %v9072_v35 = vstv %s9062_s20  ;;  %s6342_s6 = sld [smem:[#allocation5 + $0x2d]]  ;;  %1965 = vrot.lane.b32.xlu0 %v6149_v2, %s8882_s29 }
 0x1ad   : > { %v2222_v54 = vmul.f32 %v9070_v22, %v6173_v24  ;;  %v916_v15 = vadd.f32 %v914_v16, %v715_v44  ;;  %v1115_v39 = vmul.f32 %v9072_v35, %v5490_v1  ;;  %v9073_v56 = vstv %s9063_s17 }
 0x1ae   : > { %v6224_v42 = vmul.f32 %v9073_v56, %v5768_v63  ;;  %v9074_v26 = vstv %s9064_s5  ;;  %v9075_v21 = vstv %s9066_s16  ;;  %v9076_v23 = vstv %s9068_s1  ;;  %s6388_s1 = sld [smem:[#allocation8 + $0x3]] }
 0x1af   : > { %v6229_v5 = vmul.f32 %v9074_v26, %v5768_v63  ;;  %v6234_v57 = vmul.f32 %v9075_v21, %v5768_v63  ;;  %v702_v44 = vmul.f32 %v9076_v23, %v5348_v62  ;;  %v2176_v16 = vrot.slane %v2172_v14, 1  ;;  %1978 = vrot.lane.b32.xlu1 %v6166_v6, %s8921_s3 }
 0x1b0   : > { %v2189_v22 = vrot.slane %v2185_v10, 1  ;;  %v1117_v35 = vadd.f32 %v1115_v39, %v916_v15  ;;  %v9078_v56 = vstv %s9071_s11  ;;  %v9079_v21 = vrot.slane %v6070_v4, 1  ;;  %v9081_v10 = vld [vmem:[#allocation141_spill] sm:$0xff]  ;;  %s6406_s11 = sld [smem:[#allocation7 + $0xd]] }
 0x1b1   : > { %v903_v26 = vmul.f32 %v9078_v56, %v5430_v11  ;;  %v9080_v7 = vrot.slane %v6075_v41, 1  ;;  %v2213_v29 = vrot.slane %v2209_v59, 2  ;;  %v704_v14 = vadd.f32 %v702_v44, %v9081_v10 }
 0x1b2   : > { %v6257_v23 = vsel %vm438_vm0, %v9079_v21, %v2051_v13  ;;  %v9083_v15 = vrot.slane %v6087_v61, 2  ;;  %v2226_v4 = vrot.slane %v2222_v54, 2  ;;  %v6274_v41 = vsel %vm5700_vm8, %v1212_v34, 0.0 }
 0x1b3   : > { %v6262_v24 = vsel %vm438_vm0, %v9080_v7, %v2064_v17  ;;  %9084 = vst [vmem:[#allocation141_spill] sm:$0xff] %v6274_v41  ;;  %v9085_v13 = vstv %s9077_s4  ;;  %v6280_v17 = vsel %vm1333_vm9, %v2100_v47, %v2101_v50  ;;  %v2300_v44 = vrot.slane %v6224_v42, 1  ;;  %s9112_s4 = sld [smem:[#allocation121_spill]]  ;;  %2053 = vrot.lane.b32.xlu0 %v6257_v23, %s8882_s29 }
 0x1b4   : > { %v6270_v39 = vsel %vm1333_vm9, %v9083_v15, %v2088_v3  ;;  %v1104_v59 = vmul.f32 %v9085_v13, %v5561_v52  ;;  %v2313_v61 = vrot.slane %v6229_v5, 1  ;;  %v905_v3 = vadd.f32 %v903_v26, %v704_v14  ;;  %2066 = vrot.lane.b32.xlu1 %v6262_v24, %s8921_s3 }
 0x1b5   : > { %v6289_v34 = vsel %vm438_vm0, %v2175_v48, %v2176_v16  ;;  %v6292_v47 = vsel %vm438_vm0, %v2188_v32, %v2189_v22  ;;  %v2337_v50 = vrot.slane %v6234_v57, 2  ;;  %v9087_v54 = vstv %s9082_s2 }
 0x1b6   : > { %v1233_v42 = vadd.f32 %v9087_v54, %v1117_v35  ;;  %v6300_v12 = vsel %vm1333_vm9, %v2212_v49, %v2213_v29  ;;  %v9088_v5 = vstv %s9063_s17  ;;  %v2526_v56 = vstv %s6211_s26  ;;  %s9098_s17 = sld [smem:[#allocation105_spill]]  ;;  %s9109_s26 = sld [smem:[#allocation136_spill]] }
 0x1b7   : > { %v2297_v40 = vmul.f32 %v9088_v5, %v6274_v41  ;;  %v1106_v48 = vadd.f32 %v1104_v59, %v905_v3  ;;  %v6307_v16 = vsel %vm1333_vm9, %v2225_v55, %v2226_v4  ;;  %v9089_v32 = vstv %s9064_s5  ;;  %v9096_v5 = vld [vmem:[#allocation154_spill] sm:$0xff]  ;;  %s6353_s5 = sld [smem:[#allocation8 + $0x1c]]  ;;  %2090 = vrot.lane.b32.xlu0 %v6270_v39, %s8882_s29 }
 0x1b8   : > { %v2310_v57 = vmul.f32 %v9089_v32, %v6274_v41  ;;  %v9090_v22 = vstv %s9066_s16  ;;  %v9091_v26 = vstv %s9086_s14  ;;  %v1272_v21 = vstv %s6236_s27  ;;  %s6379_s16 = sld [smem:[#allocation8 + $0x2]]  ;;  %2103 = vrot.lane.b32.xlu1 %v6280_v17, %s8921_s3 }
 0x1b9   : > { %v2334_v35 = vmul.f32 %v9090_v22, %v6274_v41  ;;  %v719_v49 = vmul.f32 %v9091_v26, %v5273_v25  ;;  %v9092_v7 = vstv %s8905_s21  ;;  %v2420_v10 = vstv %s6241_s19  ;;  %s9094_s21 = sld [smem:[#allocation100_spill]]  ;;  %v9099_v22 = vld [vmem:[#allocation140_spill] sm:$0xff]  ;;  %s6420_s27 = sld [smem:[#allocation8 + $0x5a]] }
 0x1ba   : > { %v1218_v29 = vadd.f32 %v9092_v7, %v1106_v48  ;;  %v8488_v14 = vstv %s6219_s25  ;;  %v1235_v55 = vmax.f32 %v1233_v42, 0.0  ;;  %v6330_v15 = vmul.f32 %v2526_v56, %v5799_v46  ;;  %v9097_v48 = vld [vmem:[#allocation142_spill] sm:$0xff]  ;;  %s6425_s19 = sld [smem:[#allocation8 + $0x88]] }
 0x1bb   : > { %v2651_v4 = vstv %s6247_s8  ;;  %v8489_v13 = vstv %s6252_s15  ;;  %v2301_v59 = vrot.slane %v2297_v40, 1  ;;  %v1390_v51 = vstv %s6265_s0  ;;  %s6453_s8 = sld [smem:[#allocation8 + $0x4b]]  ;;  %s6464_s0 = sld [smem:[#allocation5 + $0x2e]]  ;;  %2178 = vrot.lane.b32.xlu0 %v6289_v34, %s8882_s29 }
 0x1bc   : > { %v1220_v3 = vmax.f32 %v1218_v29, 0.0  ;;  %v920_v28 = vmul.f32 %v8488_v14, %v5403_v45  ;;  %v2314_v54 = vrot.slane %v2310_v57, 1  ;;  %v2338_v42 = vrot.slane %v2334_v35, 2  ;;  %2191 = vrot.lane.b32.xlu1 %v6292_v47, %s8921_s3 }
 0x1bd   : > { %v6347_v56 = vmul.f32 %v2420_v10, %v9096_v5  ;;  %v721_v32 = vadd.f32 %v719_v49, %v9097_v48  ;;  %v1121_v40 = vmul.f32 %v8489_v13, %v5490_v1  ;;  %v9100_v26 = vstv %s9093_s28  ;;  %v9104_v13 = vld [vmem:[#allocation144_spill] sm:$0xff]  ;;  %s6472_s28 = sld [smem:[#allocation8 + $0x4]] }
 0x1be   : > { %v519_v7 = vmul.f32 %v9100_v26, %v9099_v22  ;;  %v9102_v57 = vstv %s9095_s30  ;;  %v6370_v48 = vsel %vm5551_vm6, %v1235_v55, 0.0  ;;  %v6373_v8 = vmul.f32 %v1272_v21, %v9104_v13  ;;  %v9105_v26 = vld [vmem:[#allocation145_spill] sm:$0xff]  ;;  %s6523_s30 = sld [smem:[#allocation7 + $0xe]] }
 0x1bf   : > { %v9101_v29 = vstv %s9094_s21  ;;  %v909_v35 = vmul.f32 %v9102_v57, %v5430_v11  ;;  %v6376_v30 = vmul.f32 %v1390_v51, %v9105_v26  ;;  %v6383_v20 = vsel %vm5700_vm8, %v1220_v3, 0.0  ;;  %s6513_s21 = sld [smem:[#allocation8 + $0x2d]]  ;;  %2215 = vrot.lane.b32.xlu0 %v6300_v12, %s8882_s29 }
 0x1c0   : > { %v708_v14 = vmul.f32 %v9101_v29, %v5348_v62  ;;  %v2433_v29 = vstv %s6297_s22  ;;  %9106 = vst [vmem:[#allocation142_spill] sm:$0xff] %v6383_v20  ;;  %v922_v57 = vadd.f32 %v920_v28, %v721_v32  ;;  %v9107_v0 = vstv %s9098_s17  ;;  %s6466_s22 = sld [smem:[#allocation5 + $0x3e]]  ;;  %s6541_s17 = sld [smem:[#allocation8 + $0x5b]]  ;;  %2228 = vrot.lane.b32.xlu1 %v6307_v16, %s8921_s3 }
 0x1c1   : > { %v1110_v55 = vmul.f32 %v9107_v0, %v5561_v52  ;;  %v6391_v21 = vsel %vm438_vm0, %v2300_v44, %v2301_v59  ;;  %v6394_v51 = vsel %vm438_vm0, %v2313_v61, %v2314_v54  ;;  %v6397_v43 = vsel %vm1333_vm9, %v2337_v50, %v2338_v42 }
 0x1c2   : > { %v710_v27 = vadd.f32 %v708_v14, %v519_v7  ;;  %v2425_v3 = vrot.slane %v6347_v56, 1  ;;  %v9108_v14 = vstv %s5672_s12  ;;  %v2434_v32 = vmul.f32 %v2433_v29, %v9096_v5  ;;  %s6417_s12 = sld [smem:[#allocation8 + $0x2c]]  ;;  %v9110_v56 = vld [vmem:[#allocation139_spill] sm:$0xff] }
 0x1c3   : > { %v6403_v28 = vmul.f32 %v9108_v14, %v6370_v48  ;;  %v1123_v7 = vadd.f32 %v1121_v40, %v922_v57  ;;  %v6413_v61 = vmul.f32 %v2651_v4, %v6370_v48  ;;  %v2422_v50 = vmul.f32 %v2420_v10, %v6383_v20  ;;  %2303 = vrot.lane.b32.xlu0 %v6391_v21, %s8882_s29 }
 0x1c4   : > { %v911_v44 = vadd.f32 %v909_v35, %v710_v27  ;;  %v8500_v59 = vstv %s6334_s7  ;;  %v2545_v27 = vstv %s6336_s23  ;;  %v8499_v54 = vstv %s6323_s10  ;;  %s6530_s23 = sld [smem:[#allocation8 + $0x6]]  ;;  %2316 = vrot.lane.b32.xlu1 %v6394_v51, %s8921_s3 }
 0x1c5   : > { %v8498_v42 = vstv %s6342_s6  ;;  %v2435_v4 = vmul.f32 %v2433_v29, %v6383_v20  ;;  %v9111_v10 = vstv %s9109_s26  ;;  %v725_v35 = vmul.f32 %v8499_v54, %v5273_v25 }
 0x1c6   : > { %v1112_v18 = vadd.f32 %v1110_v55, %v911_v44  ;;  %v530_v40 = vmul.f32 %v9111_v10, %v9110_v56  ;;  %v926_v57 = vmul.f32 %v8498_v42, %v5403_v45  ;;  %v2438_v0 = vrot.slane %v2434_v32, 1 }
 0x1c7   : > { %v1241_v55 = vadd.f32 %v8500_v59, %v1123_v7  ;;  %v9113_v44 = vstv %s8713_s13  ;;  %v1515_v29 = vstv %s6379_s16  ;;  %v6448_v10 = vmul.f32 %v2545_v27, %v5799_v46  ;;  %s6455_s13 = sld [smem:[#allocation5 + $0x1e]]  ;;  %2340 = vrot.lane.b32.xlu0 %v6397_v43, %s8882_s29 }
 0x1c8   : > { %v1226_v38 = vadd.f32 %v9113_v44, %v1112_v18  ;;  %v727_v42 = vadd.f32 %v725_v35, %v530_v40  ;;  %v9114_v32 = vstv %s6344_s18  ;;  %v1640_v36 = vstv %s6388_s1  ;;  %s6557_s16 = sld [smem:[#allocation8 + $0x1e]]  ;;  %s6559_s1 = sld [smem:[#allocation5 + $0x1f]]  ;;  %2646 = vrot.lane.b32.xlu1 %v6403_v28, %s8882_s29 }
 0x1c9   : > { %v1127_v54 = vmul.f32 %v9114_v32, %v5490_v1  ;;  %v9115_v18 = vstv %s9112_s4  ;;  %v9116_v44 = vstv %s9050_s24  ;;  %v2426_v40 = vrot.slane %v2422_v50, 1  ;;  %s6477_s24 = sld [smem:[#allocation8 + $0x5]]  ;;  %s6588_s4 = sld [smem:[#allocation8 + $0x4c]] }
 0x1ca   : > { %v1228_v7 = vmax.f32 %v1226_v38, 0.0  ;;  %v523_v2 = vmul.f32 %v9115_v18, %v9099_v22  ;;  %v714_v59 = vmul.f32 %v9116_v44, %v5348_v62  ;;  %v2439_v35 = vrot.slane %v2435_v4, 1 }
 0x1cb   : > { %v928_v32 = vadd.f32 %v926_v57, %v727_v42  ;;  %v9117_v14 = vstv %s9058_s9  ;;  %v1243_v38 = vmax.f32 %v1241_v55, 0.0  ;;  %v8505_v26 = vstv %s6406_s11  ;;  %s6505_s9 = sld [smem:[#allocation8 + $0x1d]]  ;;  %2529 = vrot.lane.b32.xlu0 %v6330_v15, %s8921_s3  ;;  %v1279_v15 = vpop.permute.xlu0 %1278 }
 0x1cc   : > { %v915_v60 = vmul.f32 %v9117_v14, %v5430_v11  ;;  %v716_v18 = vadd.f32 %v714_v59, %v523_v2  ;;  %v9118_v13 = vstv %s9062_s20  ;;  %v2776_v50 = vstv %s6417_s12  ;;  %s9119_s20 = sld [smem:[#allocation138_spill]]  ;;  %s6566_s12 = sld [smem:[#allocation8 + $0x89]]  ;;  %2654 = vrot.lane.b32.xlu1 %v6413_v61, %s8921_s3 }
 0x1cd   : > { %v1116_v44 = vmul.f32 %v9118_v13, %v5561_v52  ;;  %v6486_v42 = vsel %vm5700_vm8, %v1228_v7, 0.0  ;;  %v2558_v4 = vstv %s6420_s27  ;;  %v1129_v57 = vadd.f32 %v1127_v54, %v928_v32  ;;  %s6576_s27 = sld [smem:[#allocation5 + $0xf]] }
 0x1ce   : > { %v6490_v59 = vmul.f32 %v1515_v29, %v5632_v37  ;;  %v6493_v13 = vmul.f32 %v1640_v36, %v5636_v58  ;;  %v917_v55 = vadd.f32 %v915_v60, %v716_v18  ;;  %v2345_v14 = vstv %s6425_s19  ;;  %s6586_s19 = sld [smem:[#allocation8 + $0x7]] }
 0x1cf   : > { %v6497_v6 = vsel %vm438_vm0, %v2425_v3, %v2426_v40  ;;  %v6500_v23 = vsel %vm438_vm0, %v2438_v0, %v2439_v35  ;;  %v2550_v7 = vrot.slane %v6448_v10, 1  ;;  %v1249_v54 = vadd.f32 %v8505_v26, %v1129_v57 }
 0x1d0   : > { %v6509_v60 = vsel %vm5551_vm6, %v1243_v38, 0.0  ;;  %v2547_v3 = vmul.f32 %v2545_v27, %v6486_v42  ;;  %v2559_v29 = vmul.f32 %v2558_v4, %v5799_v46  ;;  %v1118_v0 = vadd.f32 %v1116_v44, %v917_v55  ;;  %2428 = vrot.lane.b32.xlu0 %v6497_v6, %s8882_s29  ;;  %2441 = vrot.lane.b32.xlu1 %v6500_v23, %s8921_s3  ;;  %v9134_v23 = vld [vmem:[#allocation144_spill] sm:$0xff] }
 0x1d1   : > { %v2560_v10 = vmul.f32 %v2558_v4, %v6486_v42  ;;  %v2670_v36 = vstv %s6453_s8  ;;  %v2346_v27 = vmul.f32 %v2345_v14, %v5768_v63  ;;  %v2347_v2 = vmul.f32 %v2345_v14, %v6274_v41  ;;  %s6602_s8 = sld [smem:[#allocation5 + $0x2f]] }
 0x1d2   : > { %v9120_v40 = vstv %s9082_s2  ;;  %v8504_v32 = vstv %s6455_s13  ;;  %v8503_v38 = vstv %s6464_s0  ;;  %v8511_v18 = vstv %s6466_s22  ;;  %s6548_s2 = sld [smem:[#allocation8 + $0x79]] }
 0x1d3   : > { %v1234_v35 = vadd.f32 %v9120_v40, %v1118_v0  ;;  %v1251_v24 = vmax.f32 %v1249_v54, 0.0  ;;  %v9121_v39 = vstv %s9119_s20  ;;  %v731_v4 = vmul.f32 %v8504_v32, %v5273_v25 }
 0x1d4   : > { %v534_v44 = vmul.f32 %v9121_v39, %v9110_v56  ;;  %v932_v57 = vmul.f32 %v8503_v38, %v5403_v45  ;;  %v2563_v55 = vrot.slane %v2559_v29, 1  ;;  %v1765_v14 = vstv %s6472_s28  ;;  %s6614_s28 = sld [smem:[#allocation5 + $0x3f]] }
 0x1d5   : > { %v6545_v0 = vmul.f32 %v2670_v36, %v6370_v48  ;;  %v1890_v40 = vstv %s6477_s24  ;;  %v2551_v54 = vrot.slane %v2547_v3, 1  ;;  %v1236_v39 = vmax.f32 %v1234_v35, 0.0  ;;  %s6657_s24 = sld [smem:[#allocation8 + $0x7a]] }
 0x1d6   : > { %v733_v38 = vadd.f32 %v731_v4, %v534_v44  ;;  %v1133_v29 = vmul.f32 %v8511_v18, %v5490_v1  ;;  %v9122_v32 = vstv %s6353_s5  ;;  %v2564_v41 = vrot.slane %v2560_v10, 1  ;;  %s9123_s5 = sld [smem:[#allocation127_spill]] }
 0x1d7   : > { %v6564_v26 = vmul.f32 %v9122_v32, %v6509_v60  ;;  %v2350_v17 = vrot.slane %v2346_v27, 2  ;;  %v2351_v58 = vrot.slane %v2347_v2, 2  ;;  %v6569_v34 = vmul.f32 %v2776_v50, %v6509_v60 }
 0x1d8   : > { %v6573_v3 = vsel %vm5551_vm6, %v1251_v24, 0.0  ;;  %v2893_v35 = vstv %s6505_s9  ;;  %v934_v44 = vadd.f32 %v932_v57, %v733_v38  ;;  %v6579_v32 = vmul.f32 %v1765_v14, %v5652_v9  ;;  %s6661_s9 = sld [smem:[#allocation8 + $0x5c]] }
 0x1d9   : > { %v2901_v10 = vstv %s6513_s21  ;;  %v6584_v50 = vmul.f32 %v1890_v40, %v5685_v19  ;;  %v6595_v2 = vsel %vm438_vm0, %v2550_v7, %v2551_v54  ;;  %v6599_v38 = vsel %vm5700_vm8, %v1236_v39, 0.0  ;;  %s6672_s21 = sld [smem:[#allocation7 + $0xf]]  ;;  %2771 = vrot.lane.b32.xlu0 %v6564_v26, %s8882_s29  ;;  %2779 = vrot.lane.b32.xlu1 %v6569_v34, %s8921_s3 }
 0x1da   : > { %v1135_v24 = vadd.f32 %v1133_v29, %v934_v44  ;;  %v8510_v4 = vstv %s6523_s30  ;;  %v6605_v57 = vsel %vm438_vm0, %v2563_v55, %v2564_v41  ;;  %v6608_v47 = vmul.f32 %v2893_v35, %v6573_v3 }
 0x1db   : > { %v6611_v12 = vsel %vm1333_vm9, %v2350_v17, %v2351_v58  ;;  %v2015_v7 = vstv %s6530_s23  ;;  %v2683_v14 = vstv %s6541_s17  ;;  %v9125_v39 = vstv %s9086_s14  ;;  %s6646_s14 = sld [smem:[#allocation8 + $0x8]]  ;;  %s6739_s17 = sld [smem:[#allocation8 + $0x2f]] }
 0x1dc   : > { %v9124_v40 = vstv %s9123_s5  ;;  %v720_v29 = vmul.f32 %v9125_v39, %v5348_v62  ;;  %v9126_v41 = vstv %s6219_s25  ;;  %v6627_v35 = vmul.f32 %v2901_v10, %v6573_v3  ;;  %s6641_s25 = sld [smem:[#allocation8 + $0x2e]]  ;;  %s6687_s23 = sld [smem:[#allocation8 + $0x30]] }
 0x1dd   : > { %v527_v54 = vmul.f32 %v9124_v40, %v9099_v22  ;;  %v921_v55 = vmul.f32 %v9126_v41, %v5430_v11  ;;  %v2672_v58 = vmul.f32 %v2670_v36, %v6599_v38  ;;  %v1257_v17 = vadd.f32 %v8510_v4, %v1135_v24  ;;  %s6782_s5 = sld [smem:[#allocation8 + $0x4d]]  ;;  %2553 = vrot.lane.b32.xlu0 %v6595_v2, %s8882_s29 }
 0x1de   : > { %v2457_v44 = vstv %s6548_s2  ;;  %v6639_v39 = vmul.f32 %v2015_v7, %v5692_v53  ;;  %v9127_v36 = vstv %s6252_s15  ;;  %v2684_v41 = vmul.f32 %v2683_v14, %v6370_v48  ;;  %s6655_s15 = sld [smem:[#allocation8 + $0x9]]  ;;  %s6741_s2 = sld [smem:[#allocation8 + $0x60]]  ;;  %2566 = vrot.lane.b32.xlu1 %v6605_v57, %s8921_s3 }
 0x1df   : > { %v722_v10 = vadd.f32 %v720_v29, %v527_v54  ;;  %v1122_v24 = vmul.f32 %v9127_v36, %v5561_v52  ;;  %v2685_v16 = vmul.f32 %v2683_v14, %v6599_v38  ;;  %v2470_v4 = vstv %s6566_s12  ;;  %s6761_s12 = sld [smem:[#allocation8 + $0x8a]] }
 0x1e0   : > { %v8516_v21 = vstv %s6559_s1  ;;  %v2458_v7 = vmul.f32 %v2457_v44, %v9096_v5  ;;  %v2459_v18 = vmul.f32 %v2457_v44, %v6383_v20  ;;  %v8524_v54 = vstv %s6576_s27 }
 0x1e1   : > { %v923_v40 = vadd.f32 %v921_v55, %v722_v10  ;;  %v2676_v29 = vrot.slane %v2672_v58, 1  ;;  %v1259_v36 = vmax.f32 %v1257_v17, 0.0  ;;  %v2140_v14 = vstv %s6586_s19  ;;  %2896 = vrot.lane.b32.xlu0 %v6608_v47, %s8882_s29  ;;  %s6852_s19 = sld [smem:[#allocation8 + $0x61]] }
 0x1e2   : > { %v2795_v27 = vstv %s6588_s4  ;;  %v2471_v44 = vmul.f32 %v2470_v4, %v9096_v5  ;;  %v737_v10 = vmul.f32 %v8516_v21, %v5273_v25  ;;  %v8522_v58 = vstv %s6602_s8  ;;  %2904 = vrot.lane.b32.xlu1 %v6627_v35, %s8921_s3  ;;  %s6858_s4 = sld [smem:[#allocation10 + $0x6]] }
 0x1e3   : > { %v1124_v55 = vadd.f32 %v1122_v24, %v923_v40  ;;  %v2472_v17 = vmul.f32 %v2470_v4, %v6383_v20  ;;  %v538_v53 = vmul.f32 %v8524_v54, %v9110_v56  ;;  %v938_v51 = vmul.f32 %v8522_v58, %v5403_v45 }
 0x1e4   : > { %v8521_v43 = vstv %s6614_s28  ;;  %v2688_v40 = vrot.slane %v2684_v41, 1  ;;  %v2689_v24 = vrot.slane %v2685_v16, 1  ;;  %v6683_v19 = vmul.f32 %v2140_v14, %v5711_v31  ;;  %v1287_v14 = vpop.permute.xlu1 %1286 }
 0x1e5   : > { %v9128_v25 = vstv %s6334_s7  ;;  %v2462_v9 = vrot.slane %v2458_v7, 2  ;;  %v2463_v37 = vrot.slane %v2459_v18, 2  ;;  %v739_v4 = vadd.f32 %v737_v10, %v538_v53  ;;  %s6701_s7 = sld [smem:[#allocation8 + $0x1f]] }
 0x1e6   : > { %v1242_v21 = vadd.f32 %v9128_v25, %v1124_v55  ;;  %v1139_v56 = vmul.f32 %v8521_v43, %v5490_v1  ;;  %v3026_v45 = vstv %s6641_s25  ;;  %v6698_v16 = vmul.f32 %v2795_v27, %v6509_v60  ;;  %s6866_s25 = sld [smem:[#allocation8 + $0x7c]]  ;;  %2353 = vrot.lane.b32.xlu1 %v6611_v12, %s8921_s3 }
 0x1e7   : > { %v2265_v7 = vstv %s6646_s14  ;;  %v6705_v1 = vsel %vm5551_vm6, %v1259_v36, 0.0  ;;  %v2475_v53 = vrot.slane %v2471_v44, 2  ;;  %v2476_v28 = vrot.slane %v2472_v17, 2  ;;  %s6874_s14 = sld [smem:[#allocation8 + $0x8b]] }
 0x1e8   : > { %v1244_v41 = vmax.f32 %v1242_v21, 0.0  ;;  %v940_v18 = vadd.f32 %v938_v51, %v739_v4  ;;  %v9129_v21 = vrot.slane %v6545_v0, 1  ;;  %v6713_v10 = vsel %vm438_vm0, %v2688_v40, %v2689_v24 }
 0x1e9   : > { %v2390_v25 = vstv %s6655_s15  ;;  %v2582_v43 = vstv %s6657_s24  ;;  %v6718_v36 = vsel %vm1333_vm9, %v2462_v9, %v2463_v37  ;;  %v2808_v51 = vstv %s6661_s9  ;;  %s6962_s15 = sld [smem:[#allocation8 + $0x62]]  ;;  %s6968_s24 = sld [smem:[#allocation10 + $0xd]] }
 0x1ea   : > { %v6710_v55 = vsel %vm438_vm0, %v9129_v21, %v2676_v29  ;;  %v6722_v44 = vsel %vm5700_vm8, %v1244_v41, 0.0  ;;  %v1141_v17 = vadd.f32 %v1139_v56, %v940_v18  ;;  %v9130_v0 = vstv %s6557_s16  ;;  %s6753_s16 = sld [smem:[#allocation8 + $0x7b]]  ;;  %v1405_v56 = vpop.permute.xlu1 %1404  ;;  %v1397_v41 = vpop.permute.xlu0 %1396  ;;  %2691 = vrot.lane.b32.xlu1 %v6713_v10, %s8921_s3  ;;  %s6975_s9 = sld [smem:[#allocation10 + $0xe]] }
 0x1eb   : > { %v6732_v29 = vmul.f32 %v9130_v0, %v6705_v1  ;;  %v2800_v37 = vrot.slane %v6698_v16, 1  ;;  %v6736_v9 = vmul.f32 %v2265_v7, %v5768_v63  ;;  %v8523_v40 = vstv %s6672_s21  ;;  %2678 = vrot.lane.b32.xlu0 %v6710_v55, %s8882_s29 }
 0x1ec   : > { %v6744_v61 = vmul.f32 %v3026_v45, %v6705_v1  ;;  %v6747_v6 = vsel %vm1333_vm9, %v2475_v53, %v2476_v28  ;;  %v6750_v24 = vmul.f32 %v2390_v25, %v9096_v5  ;;  %v2583_v4 = vmul.f32 %v2582_v43, %v5799_v46 }
 0x1ed   : > { %v2797_v16 = vmul.f32 %v2795_v27, %v6722_v44  ;;  %v6757_v45 = vmul.f32 %v2808_v51, %v6509_v60  ;;  %v2584_v7 = vmul.f32 %v2582_v43, %v6486_v42  ;;  %v1291_v53 = vstv %s6687_s23  ;;  %s6981_s23 = sld [smem:[#allocation10 + $0xf]] }
 0x1ee   : > { %v1281_v28 = vadd.f32 %v1279_v15, %v6373_v8  ;;  %v1399_v18 = vadd.f32 %v1397_v41, %v6376_v30  ;;  %v1265_v21 = vadd.f32 %v8523_v40, %v1141_v17  ;;  %v2810_v25 = vmul.f32 %v2808_v51, %v6722_v44  ;;  %v9135_v40 = vld [vmem:[#allocation152_spill] sm:$0xff]  ;;  %v1530_v54 = vpop.permute.xlu1 %1529  ;;  %v1522_v20 = vpop.permute.xlu0 %1521  ;;  %3029 = vrot.lane.b32.xlu1 %v6744_v61, %s8921_s3 }
 0x1ef   : > { %v3143_v27 = vstv %s6701_s7  ;;  %v9131_v43 = vstv %s9109_s26  ;;  %v9132_v58 = vstv %s6323_s10  ;;  %v9133_v30 = vstv %s6342_s6  ;;  %s6809_s10 = sld [smem:[#allocation8 + $0x31]]  ;;  %s6827_s6 = sld [smem:[#allocation8 + $0x5d]] }
 0x1f0   : > { %v531_v0 = vmul.f32 %v9131_v43, %v9099_v22  ;;  %v726_v8 = vmul.f32 %v9132_v58, %v5348_v62  ;;  %v927_v15 = vmul.f32 %v9133_v30, %v5430_v11  ;;  %v6784_v17 = vadd.f32 %v1405_v56, %v1399_v18  ;;  %s6844_s26 = sld [smem:[#allocation10 + $0x5]]  ;;  %3021 = vrot.lane.b32.xlu0 %v6732_v29, %s8882_s29 }
 0x1f1   : > { %v2587_v51 = vrot.slane %v2583_v4, 2  ;;  %v1292_v41 = vmul.f32 %v1291_v53, %v9134_v23  ;;  %v1293_v26 = vmul.f32 %v1291_v53, %v9135_v40  ;;  %v2801_v43 = vrot.slane %v2797_v16, 1  ;;  %s6995_s7 = sld [smem:[#allocation8 + $0x7d]] }
 0x1f2   : > { %v2588_v5 = vrot.slane %v2584_v7, 2  ;;  %v728_v58 = vadd.f32 %v726_v8, %v531_v0  ;;  %v9136_v63 = vstv %s6344_s18  ;;  %v1289_v31 = vadd.f32 %v1287_v14, %v1281_v28  ;;  %s6834_s18 = sld [smem:[#allocation10 + $0x4]]  ;;  %2478 = vrot.lane.b32.xlu1 %v6747_v6, %s8921_s3 }
 0x1f3   : > { %v1128_v30 = vmul.f32 %v9136_v63, %v5561_v52  ;;  %v1524_v56 = vadd.f32 %v1522_v20, %v6490_v59  ;;  %v1267_v18 = vmax.f32 %v1265_v21, 0.0  ;;  %v2813_v4 = vrot.slane %v6757_v45, 1  ;;  %v1655_v59 = vpop.permute.xlu1 %1654  ;;  %v1647_v45 = vpop.permute.xlu0 %1646 }
 0x1f4   : > { %v2814_v16 = vrot.slane %v2810_v25, 1  ;;  %v3151_v7 = vstv %s6739_s17  ;;  %v929_v53 = vadd.f32 %v927_v15, %v728_v58  ;;  %v1328_v0 = vstv %s6741_s2  ;;  %2465 = vrot.lane.b32.xlu0 %v6718_v36, %s8882_s29  ;;  %s6997_s17 = sld [smem:[#allocation8 + $0x8c]]  ;;  %s7055_s2 = sld [smem:[#allocation10 + $0x15]] }
 0x1f5   : > { %v6799_v8 = vadd.f32 %v1530_v54, %v1524_v56  ;;  %v1296_v63 = vrot.slane %v1292_v41, 1  ;;  %v1297_v14 = vrot.slane %v1293_v26, 1  ;;  %v2707_v20 = vstv %s6753_s16  ;;  %s7067_s16 = sld [smem:[#allocation10 + $0x17]] }
 0x1f6   : > { %v6803_v28 = vsel %vm438_vm0, %v2800_v37, %v2801_v43  ;;  %v6806_v34 = vsel %vm1333_vm9, %v2587_v51, %v2588_v5  ;;  %v1130_v2 = vadd.f32 %v1128_v30, %v929_v53  ;;  %v2595_v21 = vstv %s6761_s12  ;;  %s7069_s12 = sld [smem:[#allocation8 + $0x63]] }
 0x1f7   : > { %v1649_v54 = vadd.f32 %v1647_v45, %v6493_v13  ;;  %v6814_v25 = vsel %vm5551_vm6, %v1267_v18, 0.0  ;;  %v1329_v15 = vmul.f32 %v1328_v0, %v9134_v23  ;;  %v1330_v41 = vmul.f32 %v1328_v0, %v9135_v40  ;;  %v1780_v47 = vpop.permute.xlu1 %1779  ;;  %v1772_v43 = vpop.permute.xlu0 %1771 }
 0x1f8   : > { %v9137_v5 = vstv %s6406_s11  ;;  %v2920_v51 = vstv %s6782_s5  ;;  %v2708_v26 = vmul.f32 %v2707_v20, %v6370_v48  ;;  %v2709_v13 = vmul.f32 %v2707_v20, %v6599_v38  ;;  %s6846_s11 = sld [smem:[#allocation8 + $0x4e]]  ;;  %2803 = vrot.lane.b32.xlu0 %v6803_v28, %s8882_s29 }
 0x1f9   : > { %v1250_v37 = vadd.f32 %v9137_v5, %v1130_v2  ;;  %v6829_v49 = vadd.f32 %v1655_v59, %v1649_v54  ;;  %v1298_v23 = vsel %vm438_vm0, %v1296_v63, %v1297_v14  ;;  %v2596_v40 = vmul.f32 %v2595_v21, %v5799_v46  ;;  %s7091_s5 = sld [smem:[#allocation8 + $0x8e]] }
 0x1fa   : > { %v2597_v57 = vmul.f32 %v2595_v21, %v6486_v42  ;;  %v6837_v58 = vmul.f32 %v3143_v27, %v6814_v25  ;;  %v6840_v30 = vsel %vm438_vm0, %v2813_v4, %v2814_v16  ;;  %v6842_v56 = vadd.f32 %v1298_v23, %v1289_v31 }
 0x1fb   : > { %v1252_v18 = vmax.f32 %v1250_v37, 0.0  ;;  %v1774_v53 = vadd.f32 %v1772_v43, %v6579_v32  ;;  %v6850_v0 = vmul.f32 %v2920_v51, %v6573_v3  ;;  %v1334_v63 = vrot.slane %v1329_v15, 2  ;;  %v1905_v2 = vpop.permute.xlu1 %1904  ;;  %v1897_v21 = vpop.permute.xlu0 %1896  ;;  %2816 = vrot.lane.b32.xlu1 %v6840_v30, %s8921_s3 }
 0x1fc   : > { %v1335_v27 = vrot.slane %v1330_v41, 2  ;;  %v2712_v31 = vrot.slane %v2708_v26, 2  ;;  %v2713_v4 = vrot.slane %v2709_v13, 2  ;;  %v9138_v32 = vstv %s9119_s20  ;;  %s6951_s20 = sld [smem:[#allocation8 + $0x5e]]  ;;  %3146 = vrot.lane.b32.xlu0 %v6837_v58, %s8882_s29 }
 0x1fd   : > { %v535_v16 = vmul.f32 %v9138_v32, %v9099_v22  ;;  %v9139_v14 = vstv %s6455_s13  ;;  %v6868_v59 = vadd.f32 %v1780_v47, %v1774_v53  ;;  %v6872_v35 = vsel %vm5700_vm8, %v1252_v18, 0.0  ;;  %s6901_s13 = sld [smem:[#allocation10 + $0x7]] }
 0x1fe   : > { %v732_v20 = vmul.f32 %v9139_v14, %v5348_v62  ;;  %v2600_v55 = vrot.slane %v2596_v40, 2  ;;  %v2601_v45 = vrot.slane %v2597_v57, 2  ;;  %v1409_v54 = vstv %s6809_s10  ;;  %s7093_s10 = sld [smem:[#allocation8 + $0x7e]] }
 0x1ff   : > { %v9140_v41 = vstv %s6464_s0  ;;  %v9141_v37 = vstv %s6466_s22  ;;  %v1899_v13 = vadd.f32 %v1897_v21, %v6584_v50  ;;  %v6887_v23 = vmul.f32 %v3151_v7, %v6814_v25  ;;  %v2030_v29 = vpop.permute.xlu1 %2029  ;;  %s6929_s0 = sld [smem:[#allocation8 + $0x32]]  ;;  %s6938_s22 = sld [smem:[#allocation8 + $0x4f]] }
 0x200   : > { %v734_v15 = vadd.f32 %v732_v20, %v535_v16  ;;  %v933_v5 = vmul.f32 %v9140_v41, %v5430_v11  ;;  %v1134_v26 = vmul.f32 %v9141_v37, %v5561_v52  ;;  %v2925_v40 = vrot.slane %v6850_v0, 1  ;;  %v9142_v0 = vld [vmem:[#allocation145_spill] sm:$0xff]  ;;  %2590 = vrot.lane.b32.xlu0 %v6806_v34, %s8882_s29 }
 0x201   : > { %v6891_v57 = vsel %vm1333_vm9, %v1334_v63, %v1335_v27  ;;  %v2922_v47 = vmul.f32 %v2920_v51, %v6872_v35  ;;  %v6899_v50 = vsel %vm1333_vm9, %v2712_v31, %v2713_v4  ;;  %v2933_v43 = vstv %s6827_s6  ;;  %v9143_v63 = vld [vmem:[#allocation155_spill] sm:$0xff]  ;;  %v2022_v51 = vpop.permute.xlu0 %2021  ;;  %3154 = vrot.lane.b32.xlu1 %v6887_v23, %s8921_s3  ;;  %s7114_s6 = sld [smem:[#allocation10 + $0x1c]] }
 0x202   : > { %v935_v7 = vadd.f32 %v933_v5, %v734_v15  ;;  %v6904_v18 = vadd.f32 %v1905_v2, %v1899_v13  ;;  %v1378_v53 = vstv %s6834_s18  ;;  %v1410_v12 = vmul.f32 %v1409_v54, %v9142_v0  ;;  %s7141_s18 = sld [smem:[#allocation10 + $0x1f]] }
 0x203   : > { %v1411_v27 = vmul.f32 %v1409_v54, %v9143_v63  ;;  %v6910_v31 = vsel %vm1333_vm9, %v2600_v55, %v2601_v45  ;;  %v1381_v4 = vstv %s6844_s26  ;;  %v3045_v16 = vstv %s6846_s11  ;;  %v2155_v13 = vpop.permute.xlu1 %2154  ;;  %s7129_s11 = sld [smem:[#allocation10 + $0x1d]]  ;;  %s7146_s26 = sld [smem:[#allocation8 + $0x34]] }
 0x204   : > { %v1136_v32 = vadd.f32 %v1134_v26, %v935_v7  ;;  %v2024_v14 = vadd.f32 %v2022_v51, %v6639_v39  ;;  %v2934_v20 = vmul.f32 %v2933_v43, %v6573_v3  ;;  %v2935_v2 = vmul.f32 %v2933_v43, %v6872_v35 }
 0x205   : > { %v1446_v21 = vstv %s6852_s19  ;;  %v2926_v54 = vrot.slane %v2922_v47, 1  ;;  %v1384_v55 = vstv %s6858_s4  ;;  %v9144_v45 = vstv %s6523_s30  ;;  %v2147_v7 = vpop.permute.xlu0 %2146  ;;  %s6960_s30 = sld [smem:[#allocation10 + $0xc]]  ;;  %2715 = vrot.lane.b32.xlu1 %v6899_v50, %s8882_s29  ;;  %s7131_s19 = sld [smem:[#allocation10 + $0x1e]] }
 0x206   : > { %v1258_v15 = vadd.f32 %v9144_v45, %v1136_v32  ;;  %v2832_v41 = vstv %s6866_s25  ;;  %v6926_v5 = vadd.f32 %v2030_v29, %v2024_v14  ;;  %v1414_v37 = vrot.slane %v1410_v12, 1  ;;  %s7148_s4 = sld [smem:[#allocation8 + $0x8f]] }
 0x207   : > { %v1415_v39 = vrot.slane %v1411_v27, 1  ;;  %v2720_v26 = vstv %s6874_s14  ;;  %v6932_v10 = vmul.f32 %v3045_v16, %v6705_v1  ;;  %v1447_v36 = vmul.f32 %v1446_v21, %v9142_v0  ;;  %s7159_s25 = sld [smem:[#allocation8 + $0x7f]]  ;;  %s7161_s14 = sld [smem:[#allocation8 + $0x64]] }
 0x208   : > { %v1260_v43 = vmax.f32 %v1258_v15, 0.0  ;;  %v1448_v47 = vmul.f32 %v1446_v21, %v9143_v63  ;;  %v2149_v51 = vadd.f32 %v2147_v7, %v6683_v19  ;;  %v2938_v29 = vrot.slane %v2934_v20, 1 }
 0x209   : > { %v2939_v32 = vrot.slane %v2935_v2, 1  ;;  %v2833_v12 = vmul.f32 %v2832_v41, %v6509_v60  ;;  %v1387_v27 = vstv %s6901_s13  ;;  %v2834_v63 = vmul.f32 %v2832_v41, %v6722_v44  ;;  %v2280_v2 = vpop.permute.xlu1 %2279  ;;  %v2272_v21 = vpop.permute.xlu0 %2271  ;;  %s9157_s13 = sld [smem:[#allocation28_spill]] }
 0x20a   : > { %v6947_v0 = vsel %vm5700_vm8, %v1260_v43, 0.0  ;;  %v2721_v19 = vmul.f32 %v2720_v26, %v6370_v48  ;;  %v6953_v14 = vadd.f32 %v2155_v13, %v2149_v51  ;;  %v6956_v20 = vsel %vm438_vm0, %v2925_v40, %v2926_v54 }
 0x20b   : > { %v1416_v61 = vsel %vm438_vm0, %v1414_v37, %v1415_v39  ;;  %v2722_v28 = vmul.f32 %v2720_v26, %v6599_v38  ;;  %v3050_v15 = vrot.slane %v6932_v10, 1  ;;  %v1451_v41 = vrot.slane %v1447_v36, 2  ;;  %2928 = vrot.lane.b32.xlu0 %v6956_v20, %s8882_s29 }
 0x20c   : > { %v6965_v45 = vadd.f32 %v1416_v61, %v6784_v17  ;;  %v1452_v40 = vrot.slane %v1448_v47, 2  ;;  %v2274_v54 = vadd.f32 %v2272_v21, %v6736_v9  ;;  %v3047_v37 = vmul.f32 %v3045_v16, %v6947_v0 }
 0x20d   : > { %v6973_v39 = vsel %vm438_vm0, %v2938_v29, %v2939_v32  ;;  %v2837_v26 = vrot.slane %v2833_v12, 2  ;;  %v2838_v17 = vrot.slane %v2834_v63, 2  ;;  %v2725_v13 = vrot.slane %v2721_v19, 2  ;;  %v2397_v58 = vpop.permute.xlu1 %2396  ;;  %v2405_v29 = vpop.permute.xlu0 %2404  ;;  %v9148_v32 = vld [vmem:[#allocation146_spill] sm:$0xff]  ;;  %v9149_v12 = vld [vmem:[#allocation156_spill] sm:$0xff] }
 0x20e   : > { %v9145_v9 = vstv %s6576_s27  ;;  %v9146_v7 = vstv %s6559_s1  ;;  %v6989_v10 = vadd.f32 %v2280_v2, %v2274_v54  ;;  %v2726_v36 = vrot.slane %v2722_v28, 2  ;;  %s7021_s1 = sld [smem:[#allocation10 + $0x14]]  ;;  %s7032_s27 = sld [smem:[#allocation8 + $0x33]] }
 0x20f   : > { %v539_v16 = vmul.f32 %v9145_v9, %v9099_v22  ;;  %v738_v43 = vmul.f32 %v9146_v7, %v5348_v62  ;;  %v1534_v47 = vstv %s6929_s0  ;;  %v9147_v6 = vstv %s6602_s8  ;;  %s7038_s8 = sld [smem:[#allocation8 + $0x8d]]  ;;  %2603 = vrot.lane.b32.xlu0 %v6910_v31, %s8921_s3  ;;  %s7195_s0 = sld [smem:[#allocation10 + $0x24]] }
 0x210   : > { %v939_v51 = vmul.f32 %v9147_v6, %v5430_v11  ;;  %v1535_v22 = vmul.f32 %v1534_v47, %v9148_v32  ;;  %v1536_v62 = vmul.f32 %v1534_v47, %v9149_v12  ;;  %v9150_v19 = vstv %s6614_s28  ;;  %s7049_s28 = sld [smem:[#allocation8 + $0x5f]] }
 0x211   : > { %v740_v63 = vadd.f32 %v738_v43, %v539_v16  ;;  %v1140_v61 = vmul.f32 %v9150_v19, %v5561_v52  ;;  %v2399_v28 = vadd.f32 %v2397_v58, %v6750_v24  ;;  %v3051_v11 = vrot.slane %v3047_v37, 1  ;;  %v7023_v37 = vpop.permute.xlu1 %2521  ;;  %v1311_v30 = vpop.permute.xlu0 %1310 }
 0x212   : > { %v7006_v2 = vsel %vm1333_vm9, %v1451_v41, %v1452_v40  ;;  %v3170_v21 = vstv %s6938_s22  ;;  %v1539_v54 = vrot.slane %v1535_v22, 1  ;;  %v1540_v9 = vrot.slane %v1536_v62, 1  ;;  %s7223_s22 = sld [smem:[#allocation10 + $0x25]] }
 0x213   : > { %v941_v16 = vadd.f32 %v939_v51, %v740_v63  ;;  %v3058_v7 = vstv %s6951_s20  ;;  %v7014_v52 = vadd.f32 %v2405_v29, %v2399_v28  ;;  %v7017_v24 = vsel %vm1333_vm9, %v2837_v26, %v2838_v17  ;;  %2941 = vrot.lane.b32.xlu0 %v6973_v39, %s8921_s3  ;;  %s7229_s20 = sld [smem:[#allocation10 + $0x26]] }
 0x214   : > { %v1499_v41 = vstv %s6960_s30  ;;  %v1571_v40 = vstv %s6962_s15  ;;  %v7026_v34 = vsel %vm1333_vm9, %v2725_v13, %v2726_v36  ;;  %v1503_v43 = vstv %s6968_s24  ;;  %s7231_s30 = sld [smem:[#allocation10 + $0x27]]  ;;  %s7284_s15 = sld [smem:[#allocation8 + $0x65]] }
 0x215   : > { %v1142_v47 = vadd.f32 %v1140_v61, %v941_v16  ;;  %v7030_v6 = vmul.f32 %v3170_v21, %v6814_v25  ;;  %v3052_v26 = vsel %vm438_vm0, %v3050_v15, %v3051_v11  ;;  %v1507_v17 = vstv %s6975_s9  ;;  %v1324_v23 = vpop.permute.xlu1 %1323  ;;  %v1349_v28 = vpop.permute.xlu0 %1348  ;;  %s7299_s24 = sld [smem:[#allocation8 + $0x36]] }
 0x216   : > { %v3059_v51 = vmul.f32 %v3058_v7, %v6705_v1  ;;  %v3060_v58 = vmul.f32 %v3058_v7, %v6947_v0  ;;  %v1511_v13 = vstv %s6981_s23  ;;  %v1541_v36 = vsel %vm438_vm0, %v1539_v54, %v1540_v9  ;;  %3053 = vrot.lane.b32.xlu1 %v3052_v26, %s8882_s29  ;;  %s7315_s9 = sld [smem:[#allocation8 + $0x66]]  ;;  %s7330_s23 = sld [smem:[#allocation8 + $0x37]] }
 0x217   : > { %v9151_v29 = vstv %s6672_s21  ;;  %v1572_v15 = vmul.f32 %v1571_v40, %v9148_v32  ;;  %v1313_v62 = vadd.f32 %v1311_v30, %v6842_v56  ;;  %v1573_v63 = vmul.f32 %v1571_v40, %v9149_v12  ;;  %s7062_s21 = sld [smem:[#allocation10 + $0x16]]  ;;  %2728 = vrot.lane.b32.xlu0 %v7026_v34, %s8921_s3 }
 0x218   : > { %v1266_v22 = vadd.f32 %v9151_v29, %v1142_v47  ;;  %v2957_v19 = vstv %s6995_s7  ;;  %v2845_v61 = vstv %s6997_s17  ;;  %v7058_v20 = vadd.f32 %v1541_v36, %v6799_v8  ;;  %s7334_s7 = sld [smem:[#allocation10 + $0x2c]]  ;;  %s7337_s17 = sld [smem:[#allocation10 + $0x2d]] }
 0x219   : > { %v3175_v54 = vrot.slane %v7030_v6, 1  ;;  %v2958_v32 = vmul.f32 %v2957_v19, %v6573_v3  ;;  %v1326_v56 = vadd.f32 %v1324_v23, %v1313_v62  ;;  %v2959_v12 = vmul.f32 %v2957_v19, %v6872_v35  ;;  %v1429_v50 = vpop.permute.xlu0 %1428 }
 0x21a   : > { %v1268_v11 = vmax.f32 %v1266_v22, 0.0  ;;  %v2846_v9 = vmul.f32 %v2845_v61, %v6509_v60  ;;  %v2847_v16 = vmul.f32 %v2845_v61, %v6722_v44  ;;  %v3063_v7 = vrot.slane %v3059_v51, 1  ;;  %v1362_v22 = vpop.permute.xlu1 %1361  ;;  %2840 = vrot.lane.b32.xlu1 %v7017_v24, %s8882_s29 }
 0x21b   : > { %v3064_v40 = vrot.slane %v3060_v58, 1  ;;  %v1576_v30 = vrot.slane %v1572_v15, 2  ;;  %v1338_v47 = vadd.f32 %v6891_v57, %v1326_v56  ;;  %v1577_v36 = vrot.slane %v1573_v63, 2  ;;  %v9153_v63 = vld [vmem:[#allocation157_spill] sm:$0xff] }
 0x21c   : > { %v7077_v8 = vsel %vm5700_vm8, %v1268_v11, 0.0  ;;  %v1624_v29 = vstv %s7021_s1  ;;  %v2962_v62 = vrot.slane %v2958_v32, 2  ;;  %v2963_v19 = vrot.slane %v2959_v12, 2  ;;  %s7339_s1 = sld [smem:[#allocation10 + $0x2e]] }
 0x21d   : > { %v3172_v6 = vmul.f32 %v3170_v21, %v7077_v8  ;;  %v2850_v31 = vrot.slane %v2846_v9, 2  ;;  %v1659_v61 = vstv %s7032_s27  ;;  %v1351_v33 = vadd.f32 %v1349_v28, %v1338_v47  ;;  %v9152_v21 = vld [vmem:[#allocation147_spill] sm:$0xff]  ;;  %v1466_v12 = vpop.permute.xlu0 %1465  ;;  %s7344_s27 = sld [smem:[#allocation10 + $0x2f]] }
 0x21e   : > { %v1431_v51 = vadd.f32 %v1429_v50, %v6965_v45  ;;  %v2851_v23 = vrot.slane %v2847_v16, 2  ;;  %v2970_v58 = vstv %s7038_s8  ;;  %v1660_v15 = vmul.f32 %v1659_v61, %v9152_v21  ;;  %v1442_v56 = vpop.permute.xlu1 %1441  ;;  %s7348_s8 = sld [smem:[#allocation8 + $0x67]] }
 0x21f   : > { %v3176_v57 = vrot.slane %v3172_v6, 1  ;;  %v1661_v11 = vmul.f32 %v1659_v61, %v9153_v63  ;;  %v3183_v32 = vstv %s7049_s28  ;;  %v7095_v45 = vadd.f32 %v1362_v22, %v1351_v33  ;;  %s7353_s28 = sld [smem:[#allocation10 + $0x34]] }
 0x220   : > { %v3065_v26 = vsel %vm438_vm0, %v3063_v7, %v3064_v40  ;;  %v7099_v28 = vsel %vm1333_vm9, %v1576_v30, %v1577_v36  ;;  %v1628_v39 = vstv %s7055_s2  ;;  %v1664_v9 = vrot.slane %v1660_v15, 1  ;;  %s7364_s2 = sld [smem:[#allocation10 + $0x35]] }
 0x221   : > { %9154 = vst [vmem:[#allocation140_spill] sm:$0xff] %v7095_v45  ;;  %v1665_v16 = vrot.slane %v1661_v11, 1  ;;  %v2971_v47 = vmul.f32 %v2970_v58, %v6573_v3  ;;  %v2972_v6 = vmul.f32 %v2970_v58, %v6872_v35  ;;  %v1632_v50 = vstv %s7062_s21  ;;  %3066 = vrot.lane.b32.xlu0 %v3065_v26, %s8921_s3  ;;  %s7374_s21 = sld [smem:[#allocation8 + $0x38]] }
 0x222   : > { %v3184_v61 = vmul.f32 %v3183_v32, %v6814_v25  ;;  %v1696_v7 = vstv %s7069_s12  ;;  %v3177_v40 = vsel %vm438_vm0, %v3175_v54, %v3176_v57  ;;  %v2964_v30 = vsel %vm1333_vm9, %v2962_v62, %v2963_v19  ;;  %v1479_v54 = vpop.permute.xlu1 %1478  ;;  %v1554_v62 = vpop.permute.xlu0 %1553  ;;  %s7386_s12 = sld [smem:[#allocation10 + $0x37]] }
 0x223   : > { %v2852_v36 = vsel %vm1333_vm9, %v2850_v31, %v2851_v23  ;;  %v3185_v33 = vmul.f32 %v3183_v32, %v7077_v8  ;;  %v7119_v58 = vmul.f32 %v1378_v53, %v7095_v45  ;;  %v1382_v15 = vmul.f32 %v1381_v4, %v7095_v45  ;;  %3178 = vrot.lane.b32.xlu1 %v3177_v40, %s8882_s29 }
 0x224   : > { %v1385_v24 = vmul.f32 %v1384_v55, %v7095_v45  ;;  %v1444_v11 = vadd.f32 %v1442_v56, %v1431_v51  ;;  %v1666_v53 = vsel %vm438_vm0, %v1664_v9, %v1665_v16  ;;  %v2975_v19 = vrot.slane %v2971_v47, 2 }
 0x225   : > { %v2976_v31 = vrot.slane %v2972_v6, 2  ;;  %v1697_v4 = vmul.f32 %v1696_v7, %v9152_v21  ;;  %v1556_v51 = vadd.f32 %v1554_v62, %v7058_v20  ;;  %v3188_v34 = vrot.slane %v3184_v61, 1  ;;  %2853 = vrot.lane.b32.xlu0 %v2852_v36, %s8921_s3 }
 0x226   : > { %v1455_v55 = vadd.f32 %v7006_v2, %v1444_v11  ;;  %v1698_v23 = vmul.f32 %v1696_v7, %v9153_v63  ;;  %v3189_v57 = vrot.slane %v3185_v33, 1  ;;  %v3095_v56 = vstv %s7091_s5  ;;  %v1567_v16 = vpop.permute.xlu1 %1566  ;;  %v1591_v47 = vpop.permute.xlu0 %1590  ;;  %s7397_s5 = sld [smem:[#allocation8 + $0xa]] }
 0x227   : > { %v1701_v32 = vrot.slane %v1697_v4, 2  ;;  %v3082_v22 = vstv %s7093_s10  ;;  %v3096_v2 = vmul.f32 %v3095_v56, %v6705_v1  ;;  %v3097_v20 = vmul.f32 %v3095_v56, %v6947_v0  ;;  %2965 = vrot.lane.b32.xlu1 %v2964_v30, %s8882_s29  ;;  %s7414_s10 = sld [smem:[#allocation8 + $0x39]] }
 0x228   : > { %v1468_v9 = vadd.f32 %v1466_v12, %v1455_v55  ;;  %v1702_v21 = vrot.slane %v1698_v23, 2  ;;  %v1388_v63 = vmul.f32 %v1387_v27, %v7095_v45  ;;  %v1668_v6 = vadd.f32 %v1666_v53, %v6829_v49 }
 0x229   : > { %v3083_v12 = vmul.f32 %v3082_v22, %v6705_v1  ;;  %v3084_v26 = vmul.f32 %v3082_v22, %v6947_v0  ;;  %v1569_v7 = vadd.f32 %v1567_v16, %v1556_v51  ;;  %v2977_v40 = vsel %vm1333_vm9, %v2975_v19, %v2976_v31  ;;  %v9155_v16 = vld [vmem:[#allocation148_spill] sm:$0xff] }
 0x22a   : > { %v7156_v61 = vadd.f32 %v1479_v54, %v1468_v9  ;;  %v3100_v27 = vrot.slane %v3096_v2, 2  ;;  %v3190_v49 = vsel %vm438_vm0, %v3188_v34, %v3189_v57  ;;  %v3101_v22 = vrot.slane %v3097_v20, 2  ;;  %v1604_v36 = vpop.permute.xlu1 %1603  ;;  %v1679_v51 = vpop.permute.xlu0 %1678 }
 0x22b   : > { %v3087_v33 = vrot.slane %v3083_v12, 2  ;;  %v3088_v11 = vrot.slane %v3084_v26, 2  ;;  %v1703_v54 = vsel %vm1333_vm9, %v1701_v32, %v1702_v21  ;;  %v1749_v62 = vstv %s7114_s6  ;;  %2978 = vrot.lane.b32.xlu1 %v2977_v40, %s8921_s3  ;;  %3191 = vrot.lane.b32.xlu0 %v3190_v49, %s8921_s3  ;;  %s7416_s6 = sld [smem:[#allocation10 + $0x3c]] }
 0x22c   : > { %v1753_v53 = vstv %s7129_s11  ;;  %v1757_v19 = vstv %s7131_s19  ;;  %v1500_v31 = vmul.f32 %v1499_v41, %v7156_v61  ;;  %v1504_v4 = vmul.f32 %v1503_v43, %v7156_v61  ;;  %s7418_s11 = sld [smem:[#allocation10 + $0x3d]]  ;;  %s7429_s19 = sld [smem:[#allocation10 + $0x3e]] }
 0x22d   : > { %v1508_v30 = vmul.f32 %v1507_v17, %v7156_v61  ;;  %v1512_v55 = vmul.f32 %v1511_v13, %v7156_v61  ;;  %v1580_v34 = vadd.f32 %v7099_v28, %v1569_v7  ;;  %v1681_v23 = vadd.f32 %v1679_v51, %v1668_v6 }
 0x22e   : > { %v3102_v57 = vsel %vm1333_vm9, %v3100_v27, %v3101_v22  ;;  %v3089_v41 = vsel %vm1333_vm9, %v3087_v33, %v3088_v11  ;;  %v1501_v43 = vadd.f32 %v1500_v31, %v7119_v58  ;;  %v1505_v32 = vadd.f32 %v1504_v4, %v1382_v15  ;;  %v1692_v2 = vpop.permute.xlu1 %1691  ;;  %v1716_v20 = vpop.permute.xlu0 %1715  ;;  %v9156_v58 = vld [vmem:[#allocation158_spill] sm:$0xff] }
 0x22f   : > { %v1509_v56 = vadd.f32 %v1508_v30, %v1385_v24  ;;  %v1513_v9 = vadd.f32 %v1512_v55, %v1388_v63  ;;  %v1593_v17 = vadd.f32 %v1591_v47, %v1580_v34  ;;  %v1761_v13 = vstv %s7141_s18  ;;  %3103 = vrot.lane.b32.xlu1 %v3102_v57, %s8921_s3  ;;  %3090 = vrot.lane.b32.xlu0 %v3089_v41, %s8882_s29  ;;  %v3957_v55 = vld [vmem:[%s9157_s13 + $0x10] sm:$0xff]  ;;  %s7431_s18 = sld [smem:[#allocation10 + $0x3f]] }
 0x230   : > { %v1784_v21 = vstv %s7146_s26  ;;  %v3220_v28 = vstv %s7148_s4  ;;  %v1694_v12 = vadd.f32 %v1692_v2, %v1681_v23  ;;  %v3207_v26 = vstv %s7159_s25  ;;  %v3958_v57 = vld [vmem:[%s9157_s13 + $0x18] sm:$0x7]  ;;  %s7433_s26 = sld [smem:[#allocation10]]  ;;  %s7437_s4 = sld [smem:[#allocation10 + $0x1]] }
 0x231   : > { %v1785_v6 = vmul.f32 %v1784_v21, %v9155_v16  ;;  %v1786_v15 = vmul.f32 %v1784_v21, %v9156_v58  ;;  %v3221_v24 = vmul.f32 %v3220_v28, %v6814_v25  ;;  %v3222_v63 = vmul.f32 %v3220_v28, %v7077_v8  ;;  %s7443_s25 = sld [smem:[#allocation10 + $0x3]] }
 0x232   : > { %v7197_v47 = vadd.f32 %v1604_v36, %v1593_v17  ;;  %v1821_v7 = vstv %s7161_s14  ;;  %v9158_v4 = vstv %s7067_s16  ;;  %v1705_v36 = vadd.f32 %v1703_v54, %v1694_v12  ;;  %v1729_v51 = vpop.permute.xlu1 %1728  ;;  %v1804_v23 = vpop.permute.xlu0 %1803  ;;  %v3959_v17 = vld [vmem:[%s9157_s13 + $0x50] sm:$0xff]  ;;  %s7384_s16 = sld [smem:[#allocation10 + $0x36]]  ;;  %s7455_s14 = sld [smem:[#allocation8 + $0xb]] }
 0x233   : > { %v1789_v40 = vrot.slane %v1785_v6, 1  ;;  %v1790_v27 = vrot.slane %v1786_v15, 1  ;;  %v3225_v49 = vrot.slane %v3221_v24, 2  ;;  %v3226_v22 = vrot.slane %v3222_v63, 2  ;;  %v3962_v15 = vld [vmem:[%s9157_s13 + $0x98] sm:$0x7] }
 0x234   : > { %v1625_v33 = vmul.f32 %v1624_v29, %v7197_v47  ;;  %v1629_v11 = vmul.f32 %v1628_v39, %v7197_v47  ;;  %v1633_v31 = vmul.f32 %v1632_v50, %v7197_v47  ;;  %v1637_v30 = vmul.f32 %v9158_v4, %v7197_v47  ;;  %v3960_v50 = vld [vmem:[%s9157_s13 + $0x58] sm:$0x7]  ;;  %v3961_v12 = vld [vmem:[%s9157_s13 + $0x90] sm:$0xff] }
 0x235   : > { %v1791_v34 = vsel %vm438_vm0, %v1789_v40, %v1790_v27  ;;  %v3227_v29 = vsel %vm1333_vm9, %v3225_v49, %v3226_v22  ;;  %v3208_v39 = vmul.f32 %v3207_v26, %v6814_v25  ;;  %v1718_v54 = vadd.f32 %v1716_v20, %v1705_v36  ;;  %v3963_v49 = vld [vmem:[%s9157_s13 + $0xd0] sm:$0xff] }
 0x236   : > { %v1626_v21 = vadd.f32 %v1625_v33, %v1501_v43  ;;  %v1630_v28 = vadd.f32 %v1629_v11, %v1505_v32  ;;  %v1634_v2 = vadd.f32 %v1633_v31, %v1509_v56  ;;  %v1638_v6 = vadd.f32 %v1637_v30, %v1513_v9  ;;  %3228 = vrot.lane.b32.xlu1 %v3227_v29, %s8921_s3  ;;  %s7235_s3 = sld [smem:[#allocation8 + $0x35]]  ;;  %v1817_v40 = vpop.permute.xlu1 %1816  ;;  %v1841_v27 = vpop.permute.xlu0 %1840 }
 0x237   : > { %v1793_v41 = vadd.f32 %v1791_v34, %v6868_v59  ;;  %v3209_v24 = vmul.f32 %v3207_v26, %v7077_v8  ;;  %v3212_v63 = vrot.slane %v3208_v39, 2  ;;  %v1822_v43 = vmul.f32 %v1821_v7, %v9155_v16 }
 0x238   : > { %v1823_v32 = vmul.f32 %v1821_v7, %v9156_v58  ;;  %v3291_v56 = vmax.f32 %v3957_v55, %v3959_v17  ;;  %v3292_v59 = vmax.f32 %v3958_v57, %v3960_v50  ;;  %v7237_v9 = vadd.f32 %v1729_v51, %v1718_v54  ;;  %v3964_v55 = vld [vmem:[%s9157_s13 + $0xd8] sm:$0x7]  ;;  %v3977_v57 = vld [vmem:[%s9157_s13 + $0x30] sm:$0xff] }
 0x239   : > { %v1806_v20 = vadd.f32 %v1804_v23, %v1793_v41  ;;  %v3213_v26 = vrot.slane %v3209_v24, 2  ;;  %v1874_v22 = vstv %s7195_s0  ;;  %v1826_v16 = vrot.slane %v1822_v43, 2  ;;  %v3979_v17 = vld [vmem:[%s9157_s13 + $0x70] sm:$0xff]  ;;  %v3980_v54 = vld [vmem:[%s9157_s13 + $0x78] sm:$0x7]  ;;  %s7460_s0 = sld [smem:[#allocation10 + $0x8]] }
 0x23a   : > { %v1827_v33 = vrot.slane %v1823_v32, 2  ;;  %v3295_v11 = vmax.f32 %v3291_v56, %v3961_v12  ;;  %v3296_v58 = vmax.f32 %v3292_v59, %v3962_v15  ;;  %v1750_v7 = vmul.f32 %v1749_v62, %v7237_v9  ;;  %v1854_v29 = vpop.permute.xlu1 %1853  ;;  %v7265_v39 = vpop.permute.xlu0 %1928  ;;  %v3981_v41 = vld [vmem:[%s9157_s13 + $0xb0] sm:$0xff]  ;;  %v9160_v32 = vld [vmem:[#allocation29_spill] sm:$0xff]  ;;  %v9161_v56 = vld [vmem:[#allocation30_spill] sm:$0xff] }
 0x23b   : > { %v1754_v31 = vmul.f32 %v1753_v53, %v7237_v9  ;;  %v1758_v4 = vmul.f32 %v1757_v19, %v7237_v9  ;;  %v1762_v30 = vmul.f32 %v1761_v13, %v7237_v9  ;;  %v3214_v36 = vsel %vm1333_vm9, %v3212_v63, %v3213_v26  ;;  %v4105_v63 = vld [vmem:[%s9157_s13 + $0xc8] sm:$0x7]  ;;  %v9159_v12 = vld [vmem:[#allocation31_spill] sm:$0xff]  ;;  %v3967_v26 = vld [vmem:[%s9157_s13 + $0x20] sm:$0xff] }
 0x23c   : > { %v1819_v51 = vadd.f32 %v1817_v40, %v1806_v20  ;;  %v1828_v34 = vsel %vm1333_vm9, %v1826_v16, %v1827_v33  ;;  %v3299_v62 = vmax.f32 %v3295_v11, %v3963_v49  ;;  %v7256_v23 = vadd.f32 %v1750_v7, %v1626_v21  ;;  %3215 = vrot.lane.b32.xlu0 %v3214_v36, %s8882_s29  ;;  %v3969_v40 = vld [vmem:[%s9157_s13 + $0x60] sm:$0xff] }
 0x23d   : > { %v7258_v53 = vadd.f32 %v1754_v31, %v1630_v28  ;;  %v7260_v19 = vadd.f32 %v1758_v4, %v1634_v2  ;;  %v7262_v13 = vadd.f32 %v1762_v30, %v1638_v6  ;;  %v3300_v21 = vmax.f32 %v3296_v58, %v3964_v55  ;;  %v3978_v2 = vld [vmem:[%s9157_s13 + $0x38] sm:$0x7]  ;;  %v9163_v31 = vld [vmem:[#allocation149_spill] sm:$0xff] }
 0x23e   : > { %v1830_v50 = vadd.f32 %v1828_v34, %v1819_v51  ;;  %v3303_v28 = vrot.slane %v3299_v62, 1  ;;  %v1878_v15 = vstv %s7223_s22  ;;  %v1882_v6 = vstv %s7229_s20  ;;  %v3982_v58 = vld [vmem:[%s9157_s13 + $0xb8] sm:$0x7]  ;;  %v3983_v51 = vld [vmem:[%s9157_s13 + $0xf0] sm:$0xff]  ;;  %v1942_v34 = vpop.permute.xlu1 %1941  ;;  %v7289_v62 = vpop.permute.xlu0 %1965  ;;  %s7462_s22 = sld [smem:[#allocation10 + $0x9]]  ;;  %s7470_s20 = sld [smem:[#allocation8 + $0x3b]] }
 0x23f   : > { %v1886_v24 = vstv %s7231_s30  ;;  %v3272_v43 = vmax.f32 %v9159_v12, %v4105_v63  ;;  %v9162_v59 = vmax.f32 %v9160_v32, %v9161_v56  ;;  %v3304_v16 = vrot.slane %v3300_v21, 1  ;;  %v9164_v30 = vld [vmem:[#allocation159_spill] sm:$0xff]  ;;  %v3970_v63 = vld [vmem:[%s9157_s13 + $0x68] sm:$0x7]  ;;  %s7472_s30 = sld [smem:[#allocation10 + $0xb]] }
 0x240   : > { %v1843_v49 = vadd.f32 %v1841_v27, %v1830_v50  ;;  %v1909_v33 = vstv %s7235_s3  ;;  %v3347_v11 = vmax.f32 %v3977_v57, %v3979_v17  ;;  %v3348_v36 = vmax.f32 %v3978_v2, %v3980_v54  ;;  %v3984_v57 = vld [vmem:[%s9157_s13 + $0xf8] sm:$0x7]  ;;  %v3968_v17 = vld [vmem:[%s9157_s13 + $0x28] sm:$0x7]  ;;  %s7478_s3 = sld [smem:[#allocation8 + $0xc]] }
 0x241   : > { %v3275_v20 = vrot.slane %v9162_v59, 1  ;;  %v3276_v7 = vrot.slane %v3272_v43, 1  ;;  %v1910_v4 = vmul.f32 %v1909_v33, %v9163_v31  ;;  %v1911_v55 = vmul.f32 %v1909_v33, %v9164_v30  ;;  %v3971_v59 = vld [vmem:[%s9157_s13 + $0xa0] sm:$0xff] }
 0x242   : > { %v3305_v27 = vsel %vm438_vm0, %v3303_v28, %v3304_v16  ;;  %v7292_v50 = vadd.f32 %v1854_v29, %v1843_v49  ;;  %v3351_v21 = vmax.f32 %v3347_v11, %v3981_v41  ;;  %v3319_v12 = vmax.f32 %v3967_v26, %v3969_v40  ;;  %v3972_v16 = vld [vmem:[%s9157_s13 + $0xa8] sm:$0x7]  ;;  %v7311_v33 = vpop.permute.xlu1 %1978 }
 0x243   : > { %3306 = vrot.lane.b32.xlu1 %v3305_v27, %s8882_s29  ;;  %v3277_v2 = vsel %vm438_vm0, %v3275_v20, %v3276_v7  ;;  %v1914_v54 = vrot.slane %v1910_v4, 1  ;;  %v1915_v43 = vrot.slane %v1911_v55, 1  ;;  %v3352_v32 = vmax.f32 %v3348_v36, %v3982_v58  ;;  %v3973_v58 = vld [vmem:[%s9157_s13 + $0xe0] sm:$0xff] }
 0x244   : > { %v1875_v29 = vmul.f32 %v1874_v22, %v7292_v50  ;;  %v1879_v28 = vmul.f32 %v1878_v15, %v7292_v50  ;;  %v1883_v41 = vmul.f32 %v1882_v6, %v7292_v50  ;;  %v1887_v56 = vmul.f32 %v1886_v24, %v7292_v50  ;;  %3278 = vrot.lane.b32.xlu0 %v3277_v2, %s8882_s29  ;;  %v7313_v22 = vpop.permute.xlu0 %2053 }
 0x245   : > { %v1916_v20 = vsel %vm438_vm0, %v1914_v54, %v1915_v43  ;;  %v3355_v26 = vmax.f32 %v3351_v21, %v3983_v51  ;;  %v3356_v40 = vmax.f32 %v3352_v32, %v3984_v57  ;;  %v3320_v49 = vmax.f32 %v3968_v17, %v3970_v63  ;;  %v3974_v51 = vld [vmem:[%s9157_s13 + $0xe8] sm:$0x7]  ;;  %v9165_v32 = vld [vmem:[#allocation150_spill] sm:$0xff]  ;;  %s7457_s13 = sld [smem:[#allocation8 + $0x3a]] }
 0x246   : > { %v7318_v15 = vadd.f32 %v1875_v29, %v7256_v23  ;;  %v7321_v6 = vadd.f32 %v1879_v28, %v7258_v53  ;;  %v7324_v24 = vadd.f32 %v1883_v41, %v7260_v19  ;;  %v7327_v11 = vadd.f32 %v1887_v56, %v7262_v13  ;;  %v2067_v21 = vpop.permute.xlu1 %2066  ;;  %v9166_v28 = vld [vmem:[#allocation160_spill] sm:$0xff] }
 0x247   : > { %v1918_v7 = vadd.f32 %v1916_v20, %v6904_v18  ;;  %v3359_v4 = vrot.slane %v3355_v26, 1  ;;  %v3360_v55 = vrot.slane %v3356_v40, 1  ;;  %v3323_v36 = vmax.f32 %v3319_v12, %v3971_v59 }
 0x248   : > { %v3324_v23 = vmax.f32 %v3320_v49, %v3972_v16  ;;  %v1946_v53 = vstv %s7284_s15  ;;  %v7346_v57 = vpop.permute.xlu0 %2090  ;;  %v2034_v54 = vstv %s7299_s24  ;;  %v2071_v56 = vstv %s7315_s9  ;;  %s7498_s15 = sld [smem:[#allocation8 + $0xd]]  ;;  %s7508_s24 = sld [smem:[#allocation10 + $0x44]] }
 0x249   : > { %v1931_v19 = vadd.f32 %v7265_v39, %v1918_v7  ;;  %v3361_v13 = vsel %vm438_vm0, %v3359_v4, %v3360_v55  ;;  %v3327_v27 = vmax.f32 %v3323_v36, %v3973_v58  ;;  %v1947_v18 = vmul.f32 %v1946_v53, %v9163_v31  ;;  %s7510_s9 = sld [smem:[#allocation8 + $0x69]] }
 0x24a   : > { %3362 = vrot.lane.b32.xlu1 %v3361_v13, %s8882_s29  ;;  %v3328_v17 = vmax.f32 %v3324_v23, %v3974_v51  ;;  %v1948_v63 = vmul.f32 %v1946_v53, %v9164_v30  ;;  %v2035_v29 = vmul.f32 %v2034_v54, %v9165_v32  ;;  %v2036_v41 = vmul.f32 %v2034_v54, %v9166_v28  ;;  %v7358_v59 = vpop.permute.xlu1 %2103 }
 0x24b   : > { %v1944_v12 = vadd.f32 %v1942_v34, %v1931_v19  ;;  %v3331_v39 = vrot.slane %v3327_v27, 1  ;;  %v1951_v2 = vrot.slane %v1947_v18, 2  ;;  %v1999_v16 = vstv %s7334_s7  ;;  %s7522_s7 = sld [smem:[#allocation10 + $0x45]] }
 0x24c   : > { %v3332_v31 = vrot.slane %v3328_v17, 1  ;;  %v1952_v43 = vrot.slane %v1948_v63, 2  ;;  %v7360_v30 = vpop.permute.xlu0 %2178  ;;  %v2039_v26 = vrot.slane %v2035_v29, 1  ;;  %v2040_v40 = vrot.slane %v2036_v41, 1 }
 0x24d   : > { %v2072_v58 = vmul.f32 %v2071_v56, %v9165_v32  ;;  %v2073_v7 = vmul.f32 %v2071_v56, %v9166_v28  ;;  %v2003_v4 = vstv %s7337_s17  ;;  %v2007_v55 = vstv %s7339_s1  ;;  %s7524_s17 = sld [smem:[#allocation8 + $0xe]] }
 0x24e   : > { %v3333_v34 = vsel %vm438_vm0, %v3331_v39, %v3332_v31  ;;  %v1953_v20 = vsel %vm1333_vm9, %v1951_v2, %v1952_v43  ;;  %v2041_v36 = vsel %vm438_vm0, %v2039_v26, %v2040_v40  ;;  %v2159_v51 = vstv %s7330_s23  ;;  %v2192_v13 = vpop.permute.xlu1 %2191  ;;  %v9168_v2 = vld [vmem:[#allocation161_spill] sm:$0xff]  ;;  %s7517_s23 = sld [smem:[#allocation8 + $0x3c]]  ;;  %s7530_s1 = sld [smem:[#allocation10 + $0x46]] }
 0x24f   : > { %3334 = vrot.lane.b32.xlu0 %v3333_v34, %s8882_s29  ;;  %v1955_v49 = vadd.f32 %v1953_v20, %v1944_v12  ;;  %v2011_v53 = vstv %s7344_s27  ;;  %v2043_v19 = vadd.f32 %v2041_v36, %v6926_v5  ;;  %v2196_v27 = vstv %s7348_s8  ;;  %s7382_s29 = sld [smem:[#allocation8 + $0x68]]  ;;  %v9167_v12 = vld [vmem:[#allocation151_spill] sm:$0xff]  ;;  %s7544_s27 = sld [smem:[#allocation10 + $0x47]] }
 0x250   : > { %v7380_v18 = vpop.permute.xlu0 %2215  ;;  %v2076_v17 = vrot.slane %v2072_v58, 2  ;;  %v2077_v63 = vrot.slane %v2073_v7, 2  ;;  %v2160_v39 = vmul.f32 %v2159_v51, %v9167_v12  ;;  %v2161_v54 = vmul.f32 %v2159_v51, %v9168_v2  ;;  %s7552_s8 = sld [smem:[#allocation8 + $0x6a]] }
 0x251   : > { %v1968_v23 = vadd.f32 %v7289_v62, %v1955_v49  ;;  %v2056_v5 = vadd.f32 %v7313_v22, %v2043_v19  ;;  %v2124_v31 = vstv %s7353_s28  ;;  %v2197_v29 = vmul.f32 %v2196_v27, %v9167_v12  ;;  %v9170_v19 = vld [vmem:[#allocation141_spill] sm:$0xff]  ;;  %s7556_s28 = sld [smem:[#allocation10 + $0x4c]] }
 0x252   : > { %v2164_v43 = vrot.slane %v2160_v39, 1  ;;  %v2165_v32 = vrot.slane %v2161_v54, 1  ;;  %v2198_v28 = vmul.f32 %v2196_v27, %v9168_v2  ;;  %v7403_v20 = vpop.permute.xlu1 %2228  ;;  %v2078_v40 = vsel %vm1333_vm9, %v2076_v17, %v2077_v63 }
 0x253   : > { %v7391_v62 = vadd.f32 %v7311_v33, %v1968_v23  ;;  %v2069_v26 = vadd.f32 %v2067_v21, %v2056_v5  ;;  %v2128_v49 = vstv %s7364_s2  ;;  %v2201_v21 = vrot.slane %v2197_v29, 2  ;;  %s7564_s2 = sld [smem:[#allocation8 + $0x3d]] }
 0x254   : > { %v2304_v22 = vpop.permute.xlu0 %2303  ;;  %v2166_v58 = vsel %vm438_vm0, %v2164_v43, %v2165_v32  ;;  %v2284_v23 = vstv %s7374_s21  ;;  %v2132_v63 = vstv %s7384_s16  ;;  %v2136_v12 = vstv %s7386_s12  ;;  %s7579_s21 = sld [smem:[#allocation8 + $0x6b]]  ;;  %s7593_s16 = sld [smem:[#allocation10 + $0x4e]] }
 0x255   : > { %v2000_v41 = vmul.f32 %v1999_v16, %v7391_v62  ;;  %v2004_v56 = vmul.f32 %v2003_v4, %v7391_v62  ;;  %v2008_v33 = vmul.f32 %v2007_v55, %v7391_v62  ;;  %v2012_v34 = vmul.f32 %v2011_v53, %v7391_v62  ;;  %s7597_s12 = sld [smem:[#allocation10 + $0x4f]] }
 0x256   : > { %v2080_v36 = vadd.f32 %v2078_v40, %v2069_v26  ;;  %v2168_v51 = vadd.f32 %v2166_v58, %v6953_v14  ;;  %v2202_v53 = vrot.slane %v2198_v28, 2  ;;  %v2317_v27 = vpop.permute.xlu1 %2316  ;;  %v2321_v17 = vstv %s7382_s29  ;;  %s7591_s29 = sld [smem:[#allocation10 + $0x4d]] }
 0x257   : > { %v2001_v7 = vadd.f32 %v2000_v41, %v7318_v15  ;;  %v2005_v16 = vadd.f32 %v2004_v56, %v7321_v6  ;;  %v2009_v4 = vadd.f32 %v2008_v33, %v7324_v24  ;;  %v2013_v55 = vadd.f32 %v2012_v34, %v7327_v11  ;;  %v9169_v15 = vld [vmem:[#allocation153_spill] sm:$0xff] }
 0x258   : > { %v2285_v6 = vmul.f32 %v2284_v23, %v9169_v15  ;;  %v2286_v24 = vmul.f32 %v2284_v23, %v9170_v19  ;;  %v7423_v11 = vpop.permute.xlu0 %2340  ;;  %v2093_v14 = vadd.f32 %v7346_v57, %v2080_v36  ;;  %v2181_v39 = vadd.f32 %v7360_v30, %v2168_v51 }
 0x259   : > { %v2322_v5 = vmul.f32 %v2321_v17, %v9169_v15  ;;  %v2323_v43 = vmul.f32 %v2321_v17, %v9170_v19  ;;  %v2515_v29 = vstv %s7397_s5  ;;  %v2203_v30 = vsel %vm1333_vm9, %v2201_v21, %v2202_v53  ;;  %s7599_s5 = sld [smem:[#allocation8 + $0xf]] }
 0x25a   : > { %v2289_v2 = vrot.slane %v2285_v6, 1  ;;  %v2290_v54 = vrot.slane %v2286_v24, 1  ;;  %v7440_v57 = vadd.f32 %v7358_v59, %v2093_v14  ;;  %v2194_v32 = vadd.f32 %v2192_v13, %v2181_v39  ;;  %v7447_v41 = vpop.permute.xlu1 %2646  ;;  %v9172_v39 = vld [vmem:[#allocation142_spill] sm:$0xff] }
 0x25b   : > { %v2326_v58 = vrot.slane %v2322_v5, 2  ;;  %v2327_v36 = vrot.slane %v2323_v43, 2  ;;  %v2409_v15 = vstv %s7414_s10  ;;  %v2249_v19 = vstv %s7416_s6  ;;  %s7610_s10 = sld [smem:[#allocation10 + $0x54]]  ;;  %s7616_s6 = sld [smem:[#allocation8 + $0x3e]] }
 0x25c   : > { %v2291_v28 = vsel %vm438_vm0, %v2289_v2, %v2290_v54  ;;  %v7449_v56 = vpop.permute.xlu0 %2529  ;;  %v2125_v33 = vmul.f32 %v2124_v31, %v7440_v57  ;;  %v2129_v34 = vmul.f32 %v2128_v49, %v7440_v57  ;;  %v2133_v26 = vmul.f32 %v2132_v63, %v7440_v57  ;;  %v9171_v63 = vld [vmem:[#allocation154_spill] sm:$0xff] }
 0x25d   : > { %v2137_v59 = vmul.f32 %v2136_v12, %v7440_v57  ;;  %v2205_v13 = vadd.f32 %v2203_v30, %v2194_v32  ;;  %v2293_v40 = vadd.f32 %v2291_v28, %v6989_v10  ;;  %v2253_v24 = vstv %s7418_s11  ;;  %s7618_s11 = sld [smem:[#allocation8 + $0x6c]] }
 0x25e   : > { %v2126_v31 = vadd.f32 %v2125_v33, %v2001_v7  ;;  %v2130_v49 = vadd.f32 %v2129_v34, %v2005_v16  ;;  %v2134_v51 = vadd.f32 %v2133_v26, %v2009_v4  ;;  %v7465_v10 = vpop.permute.xlu1 %2654  ;;  %v2257_v7 = vstv %s7429_s19  ;;  %s7623_s19 = sld [smem:[#allocation10 + $0x55]] }
 0x25f   : > { %v2138_v21 = vadd.f32 %v2137_v59, %v2013_v55  ;;  %v2218_v23 = vadd.f32 %v7380_v18, %v2205_v13  ;;  %v2306_v53 = vadd.f32 %v2304_v22, %v2293_v40  ;;  %v2261_v16 = vstv %s7431_s18  ;;  %s7637_s18 = sld [smem:[#allocation8 + $0x3f]] }
 0x260   : > { %v7468_v6 = vpop.permute.xlu0 %2428  ;;  %v2516_v18 = vmul.f32 %v2515_v29, %v5799_v46  ;;  %v1366_v22 = vstv %s7433_s26  ;;  %v1369_v17 = vstv %s7437_s4  ;;  %v2328_v14 = vsel %vm1333_vm9, %v2326_v58, %v2327_v36  ;;  %s7639_s26 = sld [smem:[#allocation8 + $0x6d]]  ;;  %s7664_s4 = sld [smem:[#allocation10 + $0x56]] }
 0x261   : > { %v7483_v4 = vadd.f32 %v7403_v20, %v2218_v23  ;;  %v2319_v55 = vadd.f32 %v2317_v27, %v2306_v53  ;;  %v2410_v12 = vmul.f32 %v2409_v15, %v9171_v63  ;;  %v2411_v2 = vmul.f32 %v2409_v15, %v9172_v39 }
 0x262   : > { %v7493_v20 = vpop.permute.xlu1 %2441  ;;  %v1375_v29 = vstv %s7443_s25  ;;  %v2640_v28 = vstv %s7455_s14  ;;  %v2534_v33 = vstv %s7457_s13  ;;  %v1483_v40 = vstv %s7460_s0  ;;  %s7666_s25 = sld [smem:[#allocation10 + $0x57]]  ;;  %s7670_s14 = sld [smem:[#allocation10 + $0x5c]] }
 0x263   : > { %v2250_v54 = vmul.f32 %v2249_v19, %v7483_v4  ;;  %v2254_v5 = vmul.f32 %v2253_v24, %v7483_v4  ;;  %v2258_v43 = vmul.f32 %v2257_v7, %v7483_v4  ;;  %v2262_v32 = vmul.f32 %v2261_v16, %v7483_v4  ;;  %s7680_s13 = sld [smem:[#allocation10 + $0x5d]]  ;;  %s7688_s0 = sld [smem:[#allocation10 + $0x5e]] }
 0x264   : > { %v2772_v27 = vpop.permute.xlu0 %2771  ;;  %v2330_v30 = vadd.f32 %v2328_v14, %v2319_v55  ;;  %v1487_v58 = vstv %s7462_s22  ;;  %v2659_v15 = vstv %s7470_s20  ;;  %v2524_v19 = vadd.f32 %v7023_v37, %v2516_v18  ;;  %s7690_s22 = sld [smem:[#allocation10 + $0x5f]]  ;;  %s7698_s20 = sld [smem:[#allocation10 + $0x64]] }
 0x265   : > { %v7500_v34 = vadd.f32 %v2250_v54, %v2126_v31  ;;  %v7502_v26 = vadd.f32 %v2254_v5, %v2130_v49  ;;  %v7504_v59 = vadd.f32 %v2258_v43, %v2134_v51  ;;  %v7506_v13 = vadd.f32 %v2262_v32, %v2138_v21 }
 0x266   : > { %v7515_v36 = vadd.f32 %v7423_v11, %v2330_v30  ;;  %v2414_v31 = vrot.slane %v2410_v12, 1  ;;  %v2415_v49 = vrot.slane %v2411_v2, 1  ;;  %v2780_v23 = vpop.permute.xlu1 %2779  ;;  %v2535_v51 = vmul.f32 %v2534_v33, %v5799_v46 }
 0x267   : > { %v2536_v21 = vmul.f32 %v2534_v33, %v6486_v42  ;;  %v1495_v24 = vstv %s7472_s30  ;;  %v2641_v11 = vmul.f32 %v2640_v28, %v6370_v48  ;;  %v2765_v7 = vstv %s7478_s3  ;;  %s7700_s30 = sld [smem:[#allocation8 + $0x6e]]  ;;  %s7706_s3 = sld [smem:[#allocation10 + $0x65]] }
 0x268   : > { %v2554_v53 = vpop.permute.xlu0 %2553  ;;  %v7533_v16 = vmul.f32 %v1366_v22, %v7095_v45  ;;  %v7536_v55 = vmul.f32 %v1369_v17, %v7095_v45  ;;  %v7539_v14 = vmul.f32 %v1375_v29, %v7095_v45  ;;  %v7542_v12 = vmul.f32 %v1483_v40, %v7156_v61 }
 0x269   : > { %v7547_v37 = vmul.f32 %v1487_v58, %v7156_v61  ;;  %v2649_v18 = vadd.f32 %v7447_v41, %v2641_v11  ;;  %v2660_v22 = vmul.f32 %v2659_v15, %v6370_v48  ;;  %v2661_v2 = vmul.f32 %v2659_v15, %v6599_v38 }
 0x26a   : > { %v2416_v17 = vsel %vm438_vm0, %v2414_v31, %v2415_v49  ;;  %v2766_v54 = vmul.f32 %v2765_v7, %v6509_v60  ;;  %v2539_v5 = vrot.slane %v2535_v51, 1  ;;  %v2540_v43 = vrot.slane %v2536_v21, 1  ;;  %v2567_v32 = vpop.permute.xlu1 %2566 }
 0x26b   : > { %v7559_v41 = vmul.f32 %v1495_v24, %v7156_v61  ;;  %v2532_v30 = vadd.f32 %v7449_v56, %v2524_v19  ;;  %v2418_v28 = vadd.f32 %v2416_v17, %v7014_v52  ;;  %v2890_v33 = vstv %s7498_s15  ;;  %s7708_s15 = sld [smem:[#allocation10 + $0x66]] }
 0x26c   : > { %v2897_v29 = vpop.permute.xlu0 %2896  ;;  %v2657_v40 = vadd.f32 %v7465_v10, %v2649_v18  ;;  %v2774_v58 = vadd.f32 %v2772_v27, %v2766_v54  ;;  %v2374_v31 = vstv %s7508_s24  ;;  %v2446_v49 = vstv %s7510_s9  ;;  %s7722_s24 = sld [smem:[#allocation10 + $0x67]] }
 0x26d   : > { %v2431_v51 = vadd.f32 %v7468_v6, %v2418_v28  ;;  %v2664_v21 = vrot.slane %v2660_v22, 1  ;;  %v2665_v15 = vrot.slane %v2661_v2, 1  ;;  %v2784_v24 = vstv %s7517_s23  ;;  %s7724_s9 = sld [smem:[#allocation8 + $0x6f]]  ;;  %s7728_s23 = sld [smem:[#allocation10 + $0x6c]] }
 0x26e   : > { %v2541_v56 = vsel %vm438_vm0, %v2539_v5, %v2540_v43  ;;  %v2891_v52 = vmul.f32 %v2890_v33, %v6573_v3  ;;  %v7573_v19 = vpop.permute.xlu1 %2904  ;;  %v2378_v7 = vstv %s7522_s7  ;;  %v3015_v10 = vstv %s7524_s17  ;;  %s7730_s7 = sld [smem:[#allocation10 + $0x6d]]  ;;  %s7739_s17 = sld [smem:[#allocation10 + $0x6e]] }
 0x26f   : > { %v7582_v27 = vadd.f32 %v7493_v20, %v2431_v51  ;;  %v2543_v6 = vadd.f32 %v2541_v56, %v2532_v30  ;;  %v2382_v18 = vstv %s7530_s1  ;;  %v2447_v22 = vmul.f32 %v2446_v49, %v9171_v63  ;;  %s7744_s1 = sld [smem:[#allocation10 + $0x6f]] }
 0x270   : > { %v7575_v11 = vpop.permute.xlu0 %2678  ;;  %v7586_v2 = vadd.f32 %v2780_v23, %v2774_v58  ;;  %v2386_v17 = vstv %s7544_s27  ;;  %v2448_v54 = vmul.f32 %v2446_v49, %v9172_v39  ;;  %v2785_v5 = vmul.f32 %v2784_v24, %v6509_v60  ;;  %s7751_s27 = sld [smem:[#allocation10 + $0x74]] }
 0x271   : > { %v2556_v43 = vadd.f32 %v2554_v53, %v2543_v6  ;;  %v2666_v20 = vsel %vm438_vm0, %v2664_v21, %v2665_v15  ;;  %v3016_v30 = vmul.f32 %v3015_v10, %v6705_v1  ;;  %v2571_v63 = vstv %s7552_s8  ;;  %s7753_s8 = sld [smem:[#allocation10 + $0x75]] }
 0x272   : > { %v2899_v23 = vadd.f32 %v2897_v29, %v2891_v52  ;;  %v2668_v28 = vadd.f32 %v2666_v20, %v2657_v40  ;;  %v2354_v39 = vpop.permute.xlu1 %2353  ;;  %v2786_v58 = vmul.f32 %v2784_v24, %v6722_v44  ;;  %v2499_v49 = vstv %s7556_s28  ;;  %s7761_s28 = sld [smem:[#allocation10 + $0x76]] }
 0x273   : > { %v2569_v51 = vadd.f32 %v2567_v32, %v2556_v43  ;;  %v7605_v56 = vadd.f32 %v2354_v39, %v7515_v36  ;;  %v2451_v53 = vrot.slane %v2447_v22, 2  ;;  %v2909_v21 = vstv %s7564_s2  ;;  %s7763_s2 = sld [smem:[#allocation10 + $0x77]] }
 0x274   : > { %v3022_v33 = vpop.permute.xlu0 %3021  ;;  %v2452_v15 = vrot.slane %v2448_v54, 2  ;;  %v2789_v10 = vrot.slane %v2785_v5, 1  ;;  %v2572_v6 = vmul.f32 %v2571_v63, %v5799_v46  ;;  %v2573_v45 = vmul.f32 %v2571_v63, %v6486_v42 }
 0x275   : > { %v2375_v29 = vmul.f32 %v2374_v31, %v7605_v56  ;;  %v2379_v40 = vmul.f32 %v2378_v7, %v7605_v56  ;;  %v2383_v32 = vmul.f32 %v2382_v18, %v7605_v56  ;;  %v2387_v36 = vmul.f32 %v2386_v17, %v7605_v56  ;;  %9173 = sst [smem:[#allocation47_spill]] %s7744_s1 }
 0x276   : > { %v2692_v24 = vpop.permute.xlu1 %2691  ;;  %v2790_v52 = vrot.slane %v2786_v58, 1  ;;  %v2910_v42 = vmul.f32 %v2909_v21, %v6573_v3  ;;  %v2911_v31 = vmul.f32 %v2909_v21, %v6872_v35  ;;  %v2696_v7 = vstv %s7579_s21  ;;  %s7771_s21 = sld [smem:[#allocation10 + $0x11]] }
 0x277   : > { %v7626_v18 = vadd.f32 %v2375_v29, %v7500_v34  ;;  %v7629_v22 = vadd.f32 %v2379_v40, %v7502_v26  ;;  %v7632_v17 = vadd.f32 %v2383_v32, %v7504_v59  ;;  %v7635_v54 = vadd.f32 %v2387_v36, %v7506_v13 }
 0x278   : > { %v2466_v46 = vpop.permute.xlu0 %2465  ;;  %v2503_v5 = vstv %s7591_s29  ;;  %v2507_v43 = vstv %s7593_s16  ;;  %v2576_v20 = vrot.slane %v2572_v6, 2  ;;  %v2577_v63 = vrot.slane %v2573_v45, 2  ;;  %9174 = sst [smem:[#allocation50_spill]] %s7761_s28  ;;  %s7773_s29 = sld [smem:[#allocation10 + $0x19]] }
 0x279   : > { %v2453_v34 = vsel %vm1333_vm9, %v2451_v53, %v2452_v15  ;;  %v2511_v39 = vstv %s7597_s12  ;;  %v3140_v26 = vstv %s7599_s5  ;;  %v2697_v58 = vmul.f32 %v2696_v7, %v6370_v48  ;;  %s7781_s16 = sld [smem:[#allocation10 + $0x7c]]  ;;  %s7783_s12 = sld [smem:[#allocation10 + $0x7d]] }
 0x27a   : > { %v7647_v59 = vpop.permute.xlu1 %3029  ;;  %v2791_v13 = vsel %vm438_vm0, %v2789_v10, %v2790_v52  ;;  %v2914_v29 = vrot.slane %v2910_v42, 1  ;;  %v2915_v40 = vrot.slane %v2911_v31, 1  ;;  %v2698_v6 = vmul.f32 %v2696_v7, %v6599_v38  ;;  %s7789_s5 = sld [smem:[#allocation10 + $0x21]] }
 0x27b   : > { %v2907_v45 = vadd.f32 %v7573_v19, %v2899_v23  ;;  %v2681_v53 = vadd.f32 %v7575_v11, %v2668_v28  ;;  %v2455_v15 = vadd.f32 %v2453_v34, %v7582_v27  ;;  %v7657_v48 = vadd.f32 %v2791_v13, %v7586_v2  ;;  %s7855_s28 = sld [smem:[#allocation10 + $0x51]] }
 0x27c   : > { %v7650_v21 = vpop.permute.xlu0 %2803  ;;  %v3024_v32 = vadd.f32 %v3022_v33, %v3016_v30  ;;  %v7660_v10 = vmul.f32 %v3140_v26, %v6814_v25  ;;  %v2578_v36 = vsel %vm1333_vm9, %v2576_v20, %v2577_v63  ;;  %v2624_v52 = vstv %s7610_s10  ;;  %s7806_s10 = sld [smem:[#allocation10 + $0x7f]] }
 0x27d   : > { %v2468_v38 = vadd.f32 %v2466_v46, %v2455_v15  ;;  %v2701_v19 = vrot.slane %v2697_v58, 2  ;;  %v3034_v11 = vstv %s7616_s6  ;;  %v2821_v27 = vstv %s7618_s11  ;;  %s7799_s6 = sld [smem:[#allocation10 + $0x7e]]  ;;  %s7808_s11 = sld [smem:[#allocation10 + $0x29]] }
 0x27e   : > { %v2479_v2 = vpop.permute.xlu1 %2478  ;;  %v7674_v23 = vadd.f32 %v2578_v36, %v2569_v51  ;;  %v2916_v28 = vsel %vm438_vm0, %v2914_v29, %v2915_v40  ;;  %v2702_v33 = vrot.slane %v2698_v6, 2  ;;  %v2628_v42 = vstv %s7623_s19  ;;  %s7822_s19 = sld [smem:[#allocation11 + $0x4]] }
 0x27f   : > { %v2694_v31 = vadd.f32 %v2692_v24, %v2681_v53  ;;  %v7678_v46 = vadd.f32 %v2479_v2, %v2468_v38  ;;  %v3159_v7 = vstv %s7637_s18  ;;  %v2946_v20 = vstv %s7639_s26  ;;  %9175 = sst [smem:[#allocation53_spill]] %s7781_s16  ;;  %s7824_s18 = sld [smem:[#allocation11 + $0x5]] }
 0x280   : > { %v7672_v30 = vpop.permute.xlu0 %3146  ;;  %v3035_v63 = vmul.f32 %v3034_v11, %v6705_v1  ;;  %v3036_v34 = vmul.f32 %v3034_v11, %v6947_v0  ;;  %v2822_v26 = vmul.f32 %v2821_v27, %v6509_v60  ;;  %v2823_v51 = vmul.f32 %v2821_v27, %v6722_v44  ;;  %9176 = sst [smem:[#allocation56_spill]] %s7783_s12  ;;  %s7831_s26 = sld [smem:[#allocation11 + $0x6]] }
 0x281   : > { %v2500_v24 = vmul.f32 %v2499_v49, %v7678_v46  ;;  %v2504_v58 = vmul.f32 %v2503_v5, %v7678_v46  ;;  %v2508_v13 = vmul.f32 %v2507_v43, %v7678_v46  ;;  %v2512_v29 = vmul.f32 %v2511_v39, %v7678_v46  ;;  %s7867_s12 = sld [smem:[#allocation10 + $0x69]] }
 0x282   : > { %v2817_v60 = vpop.permute.xlu1 %2816  ;;  %v3160_v40 = vmul.f32 %v3159_v7, %v6814_v25  ;;  %v3161_v6 = vmul.f32 %v3159_v7, %v7077_v8  ;;  %v2947_v53 = vmul.f32 %v2946_v20, %v6573_v3  ;;  %v2948_v49 = vmul.f32 %v2946_v20, %v6872_v35  ;;  %s7876_s16 = sld [smem:[#allocation10 + $0x79]] }
 0x283   : > { %v7711_v5 = vadd.f32 %v2500_v24, %v7626_v18  ;;  %v7714_v43 = vadd.f32 %v2504_v58, %v7629_v22  ;;  %v7717_v39 = vadd.f32 %v2508_v13, %v7632_v17  ;;  %v7720_v15 = vadd.f32 %v2512_v29, %v7635_v54  ;;  %9177 = sst [smem:[#allocation93_spill]] %s7799_s6  ;;  %s7881_s6 = sld [smem:[#allocation11 + $0x1]] }
 0x284   : > { %v2591_v44 = vpop.permute.xlu0 %2590  ;;  %v2703_v3 = vsel %vm1333_vm9, %v2701_v19, %v2702_v33  ;;  %v2632_v35 = vstv %s7664_s4  ;;  %v3039_v36 = vrot.slane %v3035_v63, 1  ;;  %v3040_v18 = vrot.slane %v3036_v34, 1  ;;  %s7833_s4 = sld [smem:[#allocation10 + $0x31]] }
 0x285   : > { %v3032_v22 = vadd.f32 %v7647_v59, %v3024_v32  ;;  %v7733_v17 = vadd.f32 %v2916_v28, %v2907_v45  ;;  %v2636_v54 = vstv %s7666_s25  ;;  %v2749_v38 = vstv %s7670_s14  ;;  %s7840_s25 = sld [smem:[#allocation11 + $0x7]]  ;;  %s7924_s14 = sld [smem:[#allocation10 + $0x30]] }
 0x286   : > { %v3155_v11 = vpop.permute.xlu1 %3154  ;;  %v2826_v19 = vrot.slane %v2822_v26, 2  ;;  %v2827_v2 = vrot.slane %v2823_v51, 2  ;;  %v3164_v33 = vrot.slane %v3160_v40, 1  ;;  %v3165_v7 = vrot.slane %v3161_v6, 1  ;;  %9178 = sst [smem:[#allocation33_spill]] %s7831_s26  ;;  %s7909_s26 = sld [smem:[#allocation10 + $0x28]] }
 0x287   : > { %v7741_v20 = vadd.f32 %v2703_v3, %v2694_v31  ;;  %v2753_v63 = vstv %s7680_s13  ;;  %v2951_v59 = vrot.slane %v2947_v53, 2  ;;  %v2952_v45 = vrot.slane %v2948_v49, 2  ;;  %s7943_s13 = sld [smem:[#allocation10 + $0x38]] }
 0x288   : > { %v7737_v27 = vpop.permute.xlu0 %2928  ;;  %v2806_v32 = vadd.f32 %v7650_v21, %v7657_v48  ;;  %v3041_v28 = vsel %vm438_vm0, %v3039_v36, %v3040_v18  ;;  %v2757_v34 = vstv %s7688_s0  ;;  %v2761_v26 = vstv %s7690_s22  ;;  %s7968_s22 = sld [smem:[#allocation10 + $0x40]]  ;;  %s8111_s0 = sld [smem:[#allocation10 + $0x1a]] }
 0x289   : > { %v3149_v31 = vadd.f32 %v7672_v30, %v7660_v10  ;;  %v2593_v51 = vadd.f32 %v2591_v44, %v7674_v23  ;;  %v7758_v24 = vadd.f32 %v3041_v28, %v3032_v22  ;;  %v2874_v58 = vstv %s7698_s20  ;;  %s7978_s20 = sld [smem:[#allocation10 + $0x48]] }
 0x28a   : > { %v7765_v21 = vpop.permute.xlu1 %2715  ;;  %v2828_v13 = vsel %vm1333_vm9, %v2826_v19, %v2827_v2  ;;  %v3166_v10 = vsel %vm438_vm0, %v3164_v33, %v3165_v7  ;;  %v2878_v30 = vstv %s7706_s3  ;;  %v2882_v23 = vstv %s7708_s15  ;;  %s9181_s3 = sld [smem:[#allocation50_spill]]  ;;  %s9183_s15 = sld [smem:[#allocation20_spill]] }
 0x28b   : > { %v2819_v29 = vadd.f32 %v2817_v60, %v2806_v32  ;;  %v7778_v40 = vsel %vm1333_vm9, %v2951_v59, %v2952_v45  ;;  %v3071_v6 = vstv %s7700_s30  ;;  %v2886_v53 = vstv %s7722_s24  ;;  %9179 = sst [smem:[#allocation35_spill]] %s7840_s25  ;;  %s7842_s30 = sld [smem:[#allocation10 + $0x39]] }
 0x28c   : > { %v2604_v48 = vpop.permute.xlu0 %2603  ;;  %v2999_v49 = vstv %s7728_s23  ;;  %v3003_v3 = vstv %s7730_s7  ;;  %v3196_v36 = vstv %s7724_s9  ;;  %v3157_v2 = vadd.f32 %v3155_v11, %v3149_v31  ;;  %s7846_s9 = sld [smem:[#allocation10 + $0x41]]  ;;  %s7907_s25 = sld [smem:[#allocation10 + $0x20]] }
 0x28d   : > { %v7775_v44 = vadd.f32 %v2604_v48, %v2593_v51  ;;  %v3007_v59 = vstv %s7739_s17  ;;  %v3072_v45 = vmul.f32 %v3071_v6, %v6705_v1  ;;  %v3073_v32 = vmul.f32 %v3071_v6, %v6947_v0  ;;  %s8007_s24 = sld [smem:[#allocation10 + $0x13]]  ;;  %s9186_s17 = sld [smem:[#allocation53_spill]] }
 0x28e   : > { %v7801_v33 = vpop.permute.xlu1 %3053  ;;  %v7826_v0 = vadd.f32 %v2828_v13, %v2819_v29  ;;  %v1612_v51 = vstv %s7771_s21  ;;  %v1737_v48 = vstv %s7773_s29  ;;  %s7858_s21 = sld [smem:[#allocation10 + $0x59]]  ;;  %v3285_v28 = vstv %s7881_s6  ;;  %s8009_s23 = sld [smem:[#allocation10 + $0x1b]] }
 0x28f   : > { %v2625_v60 = vmul.f32 %v2624_v52, %v7775_v44  ;;  %v2629_v18 = vmul.f32 %v2628_v42, %v7775_v44  ;;  %v2633_v22 = vmul.f32 %v2632_v35, %v7775_v44  ;;  %v2637_v19 = vmul.f32 %v2636_v54, %v7775_v44  ;;  %s7860_s29 = sld [smem:[#allocation10 + $0x61]]  ;;  %s8090_s6 = sld [smem:[#allocation10 + $0x70]] }
 0x290   : > { %v2942_v7 = vpop.permute.xlu0 %2941  ;;  %v3011_v54 = vstv %s7744_s1  ;;  %v3077_v31 = vrot.slane %v3073_v32, 2  ;;  %s7848_s1 = sld [smem:[#allocation10 + $0x49]]  ;;  %s346_s7 = sand.u32 1, %s9183_s15  }
 0x291   : > { %v7811_v52 = vadd.f32 %v2625_v60, %v7711_v5  ;;  %v7814_v42 = vadd.f32 %v2629_v18, %v7714_v43  ;;  %v7817_v35 = vadd.f32 %v2633_v22, %v7717_v39  ;;  %v7820_v1 = vadd.f32 %v2637_v19, %v7720_v15 }
 0x292   : > { %v3197_v5 = vmul.f32 %v3196_v36, %v6814_v25  ;;  %v3198_v43 = vmul.f32 %v3196_v36, %v7077_v8  ;;  %v2931_v39 = vadd.f32 %v7737_v27, %v7733_v17  ;;  %v3124_v15 = vstv %s7751_s27  ;;  %v2841_v25 = vpop.permute.xlu1 %2840  ;;  %s9188_s27 = sld [smem:[#allocation93_spill]] }
 0x293   : > { %v3076_v8 = vrot.slane %v3072_v45, 2  ;;  %v7850_v27 = vadd.f32 %v3166_v10, %v3157_v2  ;;  %v1862_v18 = vstv %s7789_s5  ;;  %v1489_v22 = vadd.f32 %v7547_v37, %v7536_v55  ;;  %s7874_s5 = sld [smem:[#allocation10 + $0x71]] }
 0x294   : > { %v2729_v17 = vpop.permute.xlu0 %2728  ;;  %v3201_v36 = vrot.slane %v3197_v5, 2  ;;  %v3202_v60 = vrot.slane %v3198_v43, 2  ;;  %v2718_v10 = vadd.f32 %v7765_v21, %v7741_v20  ;;  %v1613_v2 = vmul.f32 %v1612_v51, %v7197_v47 }
 0x295   : > { %v1738_v45 = vmul.f32 %v1737_v48, %v7237_v9  ;;  %v2944_v32 = vadd.f32 %v2942_v7, %v2931_v39  ;;  %v3078_v43 = vsel %vm1333_vm9, %v3076_v8, %v3077_v31  ;;  %v1987_v55 = vstv %s7808_s11  ;;  %s7894_s11 = sld [smem:[#allocation10 + $0x10]] }
 0x296   : > { %v3179_v5 = vpop.permute.xlu1 %3178  ;;  %v7878_v37 = vadd.f32 %v2729_v17, %v2718_v10  ;;  %v1614_v7 = vadd.f32 %v1613_v2, %v1489_v22  ;;  %v1863_v39 = vmul.f32 %v1862_v18, %v7292_v50  ;;  %v7885_v8 = vsel %vm1333_vm9, %v3201_v36, %v3202_v60 }
 0x297   : > { %v2112_v48 = vstv %s7833_s4  ;;  %v3056_v17 = vadd.f32 %v7801_v33, %v7758_v24  ;;  %v1988_v6 = vmul.f32 %v1987_v55, %v7391_v62  ;;  %v2955_v36 = vadd.f32 %v7778_v40, %v2944_v32  ;;  %s7900_s4 = sld [smem:[#allocation10 + $0x18]] }
 0x298   : > { %v3067_v20 = vpop.permute.xlu0 %3066  ;;  %v1739_v21 = vadd.f32 %v1738_v45, %v1614_v7  ;;  %v2237_v60 = vstv %s7842_s30  ;;  %v2362_v22 = vstv %s7846_s9  ;;  %v2487_v2 = vstv %s7848_s1  ;;  %s9187_s1 = sld [smem:[#allocation56_spill]]  ;;  %s9194_s30 = sld [smem:[#allocation35_spill]] }
 0x299   : > { %v2750_v24 = vmul.f32 %v2749_v38, %v7878_v37  ;;  %v2612_v45 = vstv %s7855_s28  ;;  %v2113_v7 = vmul.f32 %v2112_v48, %v7440_v57  ;;  %v2843_v40 = vadd.f32 %v2841_v25, %v7826_v0  ;;  %s8024_s28 = sld [smem:[#allocation10 + $0x50]]  ;;  %s8048_s9 = sld [smem:[#allocation10 + $0x33]] }
 0x29a   : > { %v2966_v18 = vpop.permute.xlu1 %2965  ;;  %v1864_v55 = vadd.f32 %v1863_v39, %v1739_v21  ;;  %v2754_v32 = vmul.f32 %v2753_v63, %v7878_v37  ;;  %v2737_v10 = vstv %s7858_s21  ;;  %v2862_v51 = vstv %s7860_s29  ;;  %s8065_s21 = sld [smem:[#allocation10 + $0x68]]  ;;  %s8067_s29 = sld [smem:[#allocation10 + $0xa]] }
 0x29b   : > { %v2758_v38 = vmul.f32 %v2757_v34, %v7878_v37  ;;  %v2762_v21 = vmul.f32 %v2761_v26, %v7878_v37  ;;  %v2987_v39 = vstv %s7867_s12  ;;  %v3069_v31 = vadd.f32 %v3067_v20, %v3056_v17  ;;  %s3540_s12 = sshll.u32 %s346_s7, 6 }
 0x29c   : > { %v2854_v33 = vpop.permute.xlu0 %2853  ;;  %v1989_v48 = vadd.f32 %v1988_v6, %v1864_v55  ;;  %v3112_v19 = vstv %s7874_s5  ;;  %v3237_v0 = vstv %s7876_s16  ;;  %v2238_v25 = vmul.f32 %v2237_v60, %v7483_v4  ;;  %s8055_s16 = sld [smem:[#allocation10 + $0x3b]] }
 0x29d   : > { %v2751_v63 = vadd.f32 %v2750_v24, %v7811_v52  ;;  %v3181_v29 = vadd.f32 %v3179_v5, %v7850_v27  ;;  %v2755_v26 = vadd.f32 %v2754_v32, %v7814_v42  ;;  %v2968_v6 = vadd.f32 %v2966_v18, %v2955_v36  ;;  %s8073_s5 = sld [smem:[#allocation10 + $0x43]] }
 0x29e   : > { %v2979_v13 = vpop.permute.xlu1 %2978  ;;  %v2114_v11 = vadd.f32 %v2113_v7, %v1989_v48  ;;  %v7933_v20 = vadd.f32 %v2854_v33, %v2843_v40  ;;  %v2363_v17 = vmul.f32 %v2362_v22, %v7605_v56  ;;  %v2759_v52 = vadd.f32 %v2758_v38, %v7817_v35 }
 0x29f   : > { %v2763_v27 = vadd.f32 %v2762_v21, %v7820_v1  ;;  %v2488_v5 = vmul.f32 %v2487_v2, %v7678_v46  ;;  %v1608_v60 = vstv %s7894_s11  ;;  %v7940_v24 = vadd.f32 %v2979_v13, %v2968_v6  ;;  %s8097_s11 = sld [smem:[#allocation10 + $0x4b]] }
 0x2a0   : > { %v3192_v34 = vpop.permute.xlu0 %3191  ;;  %v3080_v42 = vadd.f32 %v3078_v43, %v3069_v31  ;;  %v2239_v18 = vadd.f32 %v2238_v25, %v2114_v11  ;;  %v1733_v36 = vstv %s7900_s4  ;;  %v2613_v33 = vmul.f32 %v2612_v45, %v7775_v44  ;;  %s8099_s4 = sld [smem:[#allocation10 + $0x12]] }
 0x2a1   : > { %v2738_v35 = vmul.f32 %v2737_v10, %v7878_v37  ;;  %v1858_v1 = vstv %s7907_s25  ;;  %v1983_v2 = vstv %s7909_s26  ;;  %v2875_v13 = vmul.f32 %v2874_v58, %v7933_v20  ;;  %s8042_s26 = sld [smem:[#allocation10 + $0x58]]  ;;  %s9193_s25 = sld [smem:[#allocation33_spill]] }
 0x2a2   : > { %v2879_v43 = vmul.f32 %v2878_v30, %v7933_v20  ;;  %v2364_v31 = vadd.f32 %v2363_v17, %v2239_v18  ;;  %v2883_v55 = vmul.f32 %v2882_v23, %v7933_v20  ;;  %v1609_v7 = vmul.f32 %v1608_v60, %v7197_v47  ;;  %v3104_v32 = vpop.permute.xlu1 %3103 }
 0x2a3   : > { %v1734_v45 = vmul.f32 %v1733_v36, %v7237_v9  ;;  %v2108_v40 = vstv %s7924_s14  ;;  %v2887_v10 = vmul.f32 %v2886_v53, %v7933_v20  ;;  %v3000_v58 = vmul.f32 %v2999_v49, %v7940_v24  ;;  %s8102_s14 = sld [smem:[#allocation10 + $0x78]] }
 0x2a4   : > { %v3091_v22 = vpop.permute.xlu0 %3090  ;;  %v2489_v30 = vadd.f32 %v2488_v5, %v2364_v31  ;;  %v1859_v38 = vmul.f32 %v1858_v1, %v7292_v50  ;;  %v3004_v23 = vmul.f32 %v3003_v3, %v7940_v24  ;;  %v3194_v21 = vadd.f32 %v3192_v34, %v3181_v29 }
 0x2a5   : > { %v3093_v11 = vadd.f32 %v3091_v22, %v3080_v42  ;;  %v7976_v53 = vmul.f32 %v1983_v2, %v7391_v62  ;;  %v2876_v49 = vadd.f32 %v2875_v13, %v2751_v63  ;;  %v2880_v25 = vadd.f32 %v2879_v43, %v2755_v26 }
 0x2a6   : > { %v2863_v6 = vmul.f32 %v2862_v51, %v7933_v20  ;;  %v7982_v17 = vmul.f32 %v2108_v40, %v7440_v57  ;;  %v2884_v3 = vadd.f32 %v2883_v55, %v2759_v52  ;;  %v3008_v29 = vmul.f32 %v3007_v59, %v7940_v24 }
 0x2a7   : > { %v7973_v48 = vadd.f32 %v3104_v32, %v3093_v11  ;;  %v3012_v34 = vmul.f32 %v3011_v54, %v7940_v24  ;;  %v2614_v5 = vadd.f32 %v2613_v33, %v2489_v30  ;;  %v2888_v60 = vadd.f32 %v2887_v10, %v2763_v27 }
 0x2a8   : > { %v3001_v42 = vadd.f32 %v3000_v58, %v2876_v49  ;;  %v2988_v63 = vmul.f32 %v2987_v39, %v7940_v24  ;;  %v2233_v18 = vstv %s7943_s13  ;;  %v3005_v26 = vadd.f32 %v3004_v23, %v2880_v25  ;;  %v3229_v11 = vpop.permute.xlu1 %3228  ;;  %s8109_s13 = sld [smem:[#allocation10 + $0x53]] }
 0x2a9   : > { %v3125_v51 = vmul.f32 %v3124_v15, %v7973_v48  ;;  %v9182_v36 = vstv %s7753_s8  ;;  %v3205_v22 = vadd.f32 %v7885_v8, %v3194_v21  ;;  %v9184_v59 = vstv %s9181_s3  ;;  %s8019_s8 = sld [smem:[#allocation10 + $0x23]]  ;;  %s8122_s3 = sld [smem:[#allocation11]] }
 0x2aa   : > { %v3129_v52 = vmul.f32 %v9182_v36, %v7973_v48  ;;  %v3133_v54 = vmul.f32 %v9184_v59, %v7973_v48  ;;  %v9185_v27 = vstv %s7763_s2  ;;  %v2739_v1 = vadd.f32 %v2738_v35, %v2614_v5  ;;  %s8026_s2 = sld [smem:[#allocation10 + $0x2b]] }
 0x2ab   : > { %v3137_v33 = vmul.f32 %v9185_v27, %v7973_v48  ;;  %v1485_v15 = vadd.f32 %v7542_v12, %v7533_v16  ;;  %v3009_v8 = vadd.f32 %v3008_v29, %v2884_v3  ;;  %v3013_v2 = vadd.f32 %v3012_v34, %v2888_v60 }
 0x2ac   : > { %v8012_v43 = vmul.f32 %v2233_v18, %v7483_v4  ;;  %v2864_v31 = vadd.f32 %v2863_v6, %v2739_v1  ;;  %v3113_v35 = vmul.f32 %v3112_v19, %v7973_v48  ;;  %v2358_v16 = vstv %s7968_s22  ;;  %s8117_s22 = sld [smem:[#allocation10 + $0x5b]] }
 0x2ad   : > { %v1610_v12 = vadd.f32 %v1609_v7, %v1485_v15  ;;  %v3126_v55 = vadd.f32 %v3125_v51, %v3001_v42  ;;  %v3130_v40 = vadd.f32 %v3129_v52, %v3005_v26  ;;  %v2483_v58 = vstv %s7978_s20  ;;  %s8119_s20 = sld [smem:[#allocation10 + $0x22]] }
 0x2ae   : > { %v3216_v39 = vpop.permute.xlu0 %3215  ;;  %v3134_v32 = vadd.f32 %v3133_v54, %v3009_v8  ;;  %v3138_v30 = vadd.f32 %v3137_v33, %v3013_v2  ;;  %v2989_v23 = vadd.f32 %v2988_v63, %v2864_v31  ;;  %v9189_v19 = vstv %s9186_s17  ;;  %s8137_s17 = sld [smem:[#allocation10 + $0x6b]] }
 0x2af   : > { %v3218_v13 = vadd.f32 %v3216_v39, %v3205_v22  ;;  %v1735_v21 = vadd.f32 %v1734_v45, %v1610_v12  ;;  %v9190_v49 = vstv %s9187_s1  ;;  %v9191_v6 = vstv %s9188_s27  ;;  %s8140_s1 = sld [smem:[#allocation10 + $0x32]]  ;;  %s8147_s27 = sld [smem:[#allocation10 + $0x73]] }
 0x2b0   : > { %v9192_v29 = vstv %s7806_s10  ;;  %v3114_v45 = vadd.f32 %v3113_v35, %v2989_v23  ;;  %v2359_v60 = vmul.f32 %v2358_v16, %v7605_v56  ;;  %s8050_s10 = sld [smem:[#allocation10 + $0x60]]  ;;  %v1620_v22 = vstv %s8007_s24  ;;  %s8128_s24 = sld [smem:[#allocation10 + $0x63]] }
 0x2b1   : > { %v8021_v10 = vadd.f32 %v3229_v11, %v3218_v13  ;;  %v1860_v42 = vadd.f32 %v1859_v38, %v1735_v21  ;;  %v9195_v59 = vstv %s7822_s19  ;;  %v9196_v38 = vstv %s7824_s18  ;;  %s8077_s19 = sld [smem:[#allocation10 + $0x2]]  ;;  %s8079_s18 = scalar_lea.vmem [#allocation13], %s3540_s12 }
 0x2b2   : > { %v9197_v33 = vstv %s9193_s25  ;;  %v9198_v1 = vstv %s9194_s30  ;;  %v1870_v2 = vstv %s8019_s8  ;;  %v1497_v13 = vadd.f32 %v7559_v41, %v7539_v14  ;;  %s8150_s8 = sld [smem:[#allocation10 + $0x3a]]  ;;  %s8178_s25 = sld [smem:[#allocation11 + $0x3]] }
 0x2b3   : > { %v3250_v7 = vmul.f32 %v9189_v19, %v8021_v10  ;;  %v3254_v25 = vmul.f32 %v9190_v49, %v8021_v10  ;;  %v3258_v3 = vmul.f32 %v9191_v6, %v8021_v10  ;;  %v3262_v34 = vmul.f32 %v9192_v29, %v8021_v10  ;;  %s8167_s12 = sld [smem:[#allocation10 + $0x4a]] }
 0x2b4   : > { %v3238_v5 = vmul.f32 %v3237_v0, %v8021_v10  ;;  %v1985_v52 = vadd.f32 %v7976_v53, %v1860_v42  ;;  %v1745_v0 = vstv %s8009_s23  ;;  %v2608_v14 = vstv %s8024_s28  ;;  %s8130_s23 = sld [smem:[#allocation10 + $0x2a]]  ;;  %s8157_s28 = sld [smem:[#allocation10 + $0x7b]] }
 0x2b5   : > { %v3251_v63 = vadd.f32 %v3250_v7, %v3126_v55  ;;  %v3255_v18 = vadd.f32 %v3254_v25, %v3130_v40  ;;  %v3259_v26 = vadd.f32 %v3258_v3, %v3134_v32  ;;  %v3263_v51 = vadd.f32 %v3262_v34, %v3138_v30  ;;  %v3307_v11 = vpop.permute.xlu1 %3306  ;;  %s8181_s30 = sld [smem:[#allocation10 + $0x5a]] }
 0x2b6   : > { %v3239_v36 = vadd.f32 %v3238_v5, %v3114_v45  ;;  %v2110_v53 = vadd.f32 %v7982_v17, %v1985_v52  ;;  %v1621_v41 = vmul.f32 %v1620_v22, %v7197_v47  ;;  %v2484_v31 = vmul.f32 %v2483_v58, %v7678_v46 }
 0x2b7   : > { %v3370_v54 = vadd.f32 %v9195_v59, %v3251_v63  ;;  %v3375_v27 = vadd.f32 %v9196_v38, %v3255_v18  ;;  %v3380_v39 = vadd.f32 %v9197_v33, %v3259_v26  ;;  %v3385_v15 = vadd.f32 %v9198_v1, %v3263_v51  ;;  %v9199_v1 = vld [vmem:[#allocation140_spill] sm:$0xff] }
 0x2b8   : > { %v3286_v8 = vadd.f32 %v3285_v28, %v3239_v36  ;;  %v1746_v28 = vmul.f32 %v1745_v0, %v7237_v9  ;;  %v2235_v35 = vadd.f32 %v8012_v43, %v2110_v53  ;;  %v1995_v16 = vstv %s8026_s2  ;;  %s8160_s2 = sld [smem:[#allocation10 + $0x42]] }
 0x2b9   : > { %3987 = vst.msk [vmem:[%s8079_s18 + $0x20] sm:$0xff] %vm3282_vm10, %v3370_v54  ;;  %3989 = vst.msk [vmem:[%s8079_s18 + $0x28] sm:$0xff] %vm3282_vm10, %v3375_v27  ;;  %v2733_v12 = vstv %s8042_s26  ;;  %v1622_v55 = vadd.f32 %v1621_v41, %v1497_v13  ;;  %v1871_v40 = vmul.f32 %v1870_v2, %v7292_v50  ;;  %v2609_v32 = vmul.f32 %v2608_v14, %v7775_v44  ;;  %s8173_s26 = sld [smem:[#allocation10 + $0x52]] }
 0x2ba   : > { %3991 = vst.msk [vmem:[%s8079_s18 + $0x30] sm:$0xff] %vm3282_vm10, %v3380_v39  ;;  %3993 = vst.msk [vmem:[%s8079_s18 + $0x38] sm:$0xff] %vm3282_vm10, %v3385_v15  ;;  %v3309_v17 = vadd.f32 %v3307_v11, %v3286_v8  ;;  %v2360_v58 = vadd.f32 %v2359_v60, %v2235_v35  ;;  %v2120_v43 = vstv %s8048_s9  ;;  %v2858_v30 = vstv %s8050_s10  ;;  %s3899_s9 = sld [smem:[#allocation10 + $0x62]] }
 0x2bb   : > { %v1747_v23 = vadd.f32 %v1746_v28, %v1622_v55  ;;  %v1996_v21 = vmul.f32 %v1995_v16, %v7391_v62  ;;  %v2734_v19 = vmul.f32 %v2733_v12, %v7878_v37  ;;  %v2245_v49 = vstv %s8055_s16  ;;  %s3916_s10 = sld [smem:[#allocation10 + $0x6a]] }
 0x2bc   : > { %3965 = vst.msk [vmem:[%s8079_s18 + $0x8] sm:$0xff] %vm3282_vm10, %v3309_v17  ;;  %v2485_v7 = vadd.f32 %v2484_v31, %v2360_v58  ;;  %v2983_v25 = vstv %s8065_s21  ;;  %v2121_v3 = vmul.f32 %v2120_v43, %v7440_v57  ;;  %v1491_v29 = vstv %s8067_s29  ;;  %s3933_s16 = sld [smem:[#allocation10 + $0x72]]  ;;  %s9200_s29 = sld [smem:[#allocation23_spill]] }
 0x2bd   : > { %v1872_v6 = vadd.f32 %v1871_v40, %v1747_v23  ;;  %v2859_v34 = vmul.f32 %v2858_v30, %v7933_v20  ;;  %v2370_v5 = vstv %s8073_s5  ;;  %v1372_v60 = vstv %s8077_s19  ;;  %s3950_s21 = sld [smem:[#allocation10 + $0x7a]]  ;;  %s9201_s19 = sld [smem:[#allocation26_spill]] }
 0x2be   : > { %v2610_v45 = vadd.f32 %v2609_v32, %v2485_v7  ;;  %v3108_v42 = vstv %s8090_s6  ;;  %v2246_v18 = vmul.f32 %v2245_v49, %v7483_v4  ;;  %v2984_v26 = vmul.f32 %v2983_v25, %v7940_v24  ;;  %s3966_s5 = sld [smem:[#allocation11 + $0x2]] }
 0x2bf   : > { %v1997_v63 = vadd.f32 %v1996_v21, %v1872_v6  ;;  %v2495_v36 = vstv %s8097_s11  ;;  %v1616_v52 = vstv %s8099_s4  ;;  %v1492_v22 = vmul.f32 %v1491_v29, %v7156_v61  ;;  %v3279_v6 = vpop.permute.xlu0 %3278  ;;  %s3402_s11 = sshll.u32 %s8079_s18, 4  ;;  %s8213_s11 = int_to_ptr.vmem [resolvable:$true] %s3402_s11 }
 0x2c0   : > { %v2735_v51 = vadd.f32 %v2734_v19, %v2610_v45  ;;  %v3233_v0 = vstv %s8102_s14  ;;  %v2371_v54 = vmul.f32 %v2370_v5, %v7605_v56  ;;  %v3109_v38 = vmul.f32 %v3108_v42, %v7973_v48 }
 0x2c1   : > { %v2122_v59 = vadd.f32 %v2121_v3, %v1997_v63  ;;  %v2620_v33 = vstv %s8109_s13  ;;  %v1741_v39 = vstv %s8111_s0  ;;  %v1373_v15 = vmul.f32 %v1372_v60, %v9199_v1  ;;  %s9202_s13 = sld [smem:[#allocation169_spill]] }
 0x2c2   : > { %v2860_v27 = vadd.f32 %v2859_v34, %v2735_v51  ;;  %v2496_v8 = vmul.f32 %v2495_v36, %v7678_v46  ;;  %v1617_v53 = vmul.f32 %v1616_v52, %v7197_v47  ;;  %v3234_v2 = vmul.f32 %v3233_v0, %v8021_v10  ;;  %s4000_s6 = sshll.u32 %s9200_s29, 10 }
 0x2c3   : > { %v2247_v61 = vadd.f32 %v2246_v18, %v2122_v59  ;;  %v2745_v11 = vstv %s8117_s22  ;;  %v1866_v14 = vstv %s8119_s20  ;;  %v2621_v28 = vmul.f32 %v2620_v33, %v7775_v44  ;;  %s8219_s22 = scalar_lea.sflag [#allocation3], %s346_s7  ;;  %s4196_s20 = scalar_lea.vmem %s8213_s11, 1024 }
 0x2c4   : > { %v2985_v13 = vadd.f32 %v2984_v26, %v2860_v27  ;;  %v1742_v17 = vmul.f32 %v1741_v39, %v7237_v9  ;;  %v1493_v31 = vadd.f32 %v1492_v22, %v1373_v15  ;;  %v3265_v35 = vstv %s8122_s3  ;;  %v3363_v15 = vpop.permute.xlu1 %3362  ;;  %p4197_p2 = scmp.ne.s32.totalorder %s8213_s11, %s4196_s20  ;;  %p9203_p3 = scmp.ne.s32.totalorder %s9201_s19, 0 }
 0x2c5   : > { %v2372_v41 = vadd.f32 %v2371_v54, %v2247_v61  ;;  %v2870_v47 = vstv %s8128_s24  ;;  %v1991_v12 = vstv %s8130_s23  ;;  %v2746_v40 = vmul.f32 %v2745_v11, %v7878_v37  ;;  %s4284_s3 = smov [#allocation13]  }
 0x2c6   : > { %v3110_v16 = vadd.f32 %v3109_v38, %v2985_v13  ;;  %v1867_v32 = vmul.f32 %v1866_v14, %v7292_v50  ;;  %v1618_v58 = vadd.f32 %v1617_v53, %v1493_v31  ;;  %v2995_v30 = vstv %s8137_s17  ;;  %p4198_p4 = pnand %p4197_p2, %p9203_p3  ;;  %s4200_s24 = sshll.u32 %s4284_s3, 4  ;;  %s4201_s24 = int_to_ptr.vmem [resolvable:$false] %s4200_s24 }
 0x2c7   : > { %v2497_v55 = vadd.f32 %v2496_v8, %v2372_v41  ;;  %v2116_v23 = vstv %s8140_s1  ;;  %v2871_v21 = vmul.f32 %v2870_v47, %v7933_v20  ;;  %v1992_v19 = vmul.f32 %v1991_v12, %v7391_v62  ;;  %v3335_v12 = vpop.permute.xlu0 %3334  ;;  %s8211_s0 = scalar_lea.hbm %s9202_s13, %s4000_s6  ;;  %s4202_s23 = scalar_lea.vmem %s4201_s24, 2048 }
 0x2c8   : > { %v3235_v43 = vadd.f32 %v3234_v2, %v3110_v16  ;;  %v1743_v7 = vadd.f32 %v1742_v17, %v1618_v58  ;;  %v3120_v25 = vstv %s8147_s27  ;;  %v2241_v50 = vstv %s8150_s8  ;;  %p4199_p9 = pneg %p4198_p4  ;;  %p4203_p7 = scmp.lt.s32.totalorder %s8213_s11, %s4201_s24 }
 0x2c9   : > { %v2622_v9 = vadd.f32 %v2621_v28, %v2497_v55  ;;  %v2996_v29 = vmul.f32 %v2995_v30, %v7940_v24  ;;  %v2117_v34 = vmul.f32 %v2116_v23, %v7440_v57  ;;  %v3245_v62 = vstv %s8157_s28  ;;  %p4204_p8 = scmp.lt.s32.totalorder %s4202_s23, %s4196_s20 }
 0x2ca   : > { %v3266_v49 = vadd.f32 %v3265_v35, %v3235_v43  ;;  %v1868_v45 = vadd.f32 %v1867_v32, %v1743_v7  ;;  %v2366_v60 = vstv %s8160_s2  ;;  %v3121_v63 = vmul.f32 %v3120_v25, %v7973_v48 }
 0x2cb   : > { %v2747_v3 = vadd.f32 %v2746_v40, %v2622_v9  ;;  %v2242_v18 = vmul.f32 %v2241_v50, %v7483_v4  ;;  %v2491_v51 = vstv %s8167_s12  ;;  %v3246_v57 = vmul.f32 %v3245_v62, %v8021_v10  ;;  %p4205_p5 = por %p4204_p8, %p4203_p7 }
 0x2cc   : > { %v3281_v5 = vadd.f32 %v3279_v6, %v3266_v49  ;;  %v1993_v26 = vadd.f32 %v1992_v19, %v1868_v45  ;;  %v2367_v52 = vmul.f32 %v2366_v60, %v7605_v56  ;;  %v2616_v0 = vstv %s8173_s26 }
 0x2cd   : > { %v2872_v42 = vadd.f32 %v2871_v21, %v2747_v3  ;;  %v2492_v54 = vmul.f32 %v2491_v51, %v7678_v46  ;;  %v3341_v27 = vstv %s8178_s25  ;;  %v2741_v33 = vstv %s8181_s30  ;;  %p4206_p0 = pnand %p4205_p5, %p4199_p9 }
 0x2ce   : > { %3283 = vst.msk [vmem:[%s8079_s18] sm:$0xff] %vm3282_vm10, %v3281_v5  ;;  %v2118_v22 = vadd.f32 %v2117_v34, %v1993_v26  ;;  %v2617_v39 = vmul.f32 %v2616_v0, %v7775_v44  ;;  %v2866_v61 = vstv %s3899_s9  ;;  %v2742_v56 = vmul.f32 %v2741_v33, %v7878_v37 }
 0x2cf   : > { %v2997_v36 = vadd.f32 %v2996_v29, %v2872_v42  ;;  %v2991_v2 = vstv %s3916_s10  ;;  %v2867_v46 = vmul.f32 %v2866_v61, %v7933_v20  ;;  %v3116_v14 = vstv %s3933_s16 }
 0x2d0   : > { %v2243_v38 = vadd.f32 %v2242_v18, %v2118_v22  ;;  %v2992_v44 = vmul.f32 %v2991_v2, %v7940_v24  ;;  %v3241_v28 = vstv %s3950_s21  ;;  %v3117_v37 = vmul.f32 %v3116_v14, %v7973_v48 }
 0x2d1   : > { %v3122_v59 = vadd.f32 %v3121_v63, %v2997_v36  ;;  %v3242_v31 = vmul.f32 %v3241_v28, %v8021_v10  ;;  %v3313_v16 = vstv %s3966_s5 }
 0x2d2   : > { %v2368_v1 = vadd.f32 %v2367_v52, %v2243_v38 }
 0x2d3   : > { %v3247_v4 = vadd.f32 %v3246_v57, %v3122_v59 }
 0x2d4   : > { %v2493_v53 = vadd.f32 %v2492_v54, %v2368_v1 }
 0x2d5   : > { %v3342_v8 = vadd.f32 %v3341_v27, %v3247_v4 }
 0x2d6   : > { %v2618_v11 = vadd.f32 %v2617_v39, %v2493_v53 }
 0x2d7   : > { %v3365_v13 = vadd.f32 %v3363_v15, %v3342_v8 }
 0x2d8   : > { %v2743_v41 = vadd.f32 %v2742_v56, %v2618_v11 }
 0x2d9   : > { %3985 = vst.msk [vmem:[%s8079_s18 + $0x18] sm:$0xff] %vm3282_vm10, %v3365_v13 }
 0x2da   : > { %v2868_v17 = vadd.f32 %v2867_v46, %v2743_v41 }
 0x2dc   : > { %v2993_v35 = vadd.f32 %v2992_v44, %v2868_v17 }
 0x2de   : > { %v3118_v20 = vadd.f32 %v3117_v37, %v2993_v35 }
 0x2e0   : > { %v3243_v47 = vadd.f32 %v3242_v31, %v3118_v20 }
 0x2e2   : > { %v3314_v55 = vadd.f32 %v3313_v16, %v3243_v47 }
 0x2e4   : > { %v3337_v24 = vadd.f32 %v3335_v12, %v3314_v55 }
 0x2e6   : > { %3975 = vst.msk [vmem:[%s8079_s18 + $0x10] sm:$0xff] %vm3282_vm10, %v3337_v24 }
 0x2e7   : > { %4209 = shalt.err (!%p4206_p0)
}
 0x2e8   : > { %s4210_s15 = scalar_lea.hbm %s8211_s0, 1024  ;;  %s4214_s17 = scalar_lea.hbm %s9202_s13, 2048 }
 0x2e9   : > { %p4211_p6 = scmp.ne.s32.totalorder %s8211_s0, %s4210_s15  ;;  %p4215_p11 = scmp.lt.u32.totalorder %s8211_s0, %s9202_s13 }
 0x2ea   : > { %p4216_p13 = scmp.lt.u32.totalorder %s4214_s17, %s4210_s15  ;;  %p4218_p2 = scmp.lt.u32.totalorder %s4210_s15, %s8211_s0 }
 0x2eb   : > { %p4212_p10 = pnand %p4211_p6, %p9203_p3 }
 0x2ec   : > { %p4217_p1 = por %p4216_p13, %p4215_p11 }
 0x2ed   : > { %p4213_p12 = pneg %p4212_p10 }
 0x2ee   : > { %p4219_p4 = por %p4218_p2, %p4217_p1 }
 0x2f0   : > { %p4220_p9 = pnand %p4219_p4, %p4213_p12 }
 0x2f2   : > { %4223 = shalt.err (!%p4220_p9)
}
 0x2f3   : > { %s4285_s8 = smov 128   ;;  %s4286_s28 = smov 8  }
 0x2f4   : > { %4025 = dma.vmem_to_hbm [thread:$0]  (%p9203_p3), %s8213_s11, 1024, %s8211_s0, %s8219_s22, %s4285_s8, %s4285_s8, %s4286_s28  }
 0x2f5 PF: > { %s9204_s2 = sld [smem:[#allocation22_spill]]  ;;  %s9205_s12 = sld [smem:[#allocation19_spill]] }
 0x2f6   : > { %s9206_s26 = sld [smem:[#allocation27_spill]] }
 0x2fb   : > { %p4062_p7 = scmp.ge.s32.totalorder %s9204_s2, 2  ;;  %s3417_s25 = sand.u32 1, %s9205_s12  }
 0x2fc   : > { %p9207_p8 = scmp.ne.s32.totalorder %s9206_s26, 0  ;;  %s3418_s30 = scalar_lea.sflag [#allocation3], %s3417_s25 }
 0x2fe   : > { %p4047_p5 = pnand %p4062_p7, %p9207_p8 }
 0x300   : > { %4257 = dma.done.wait (!%p4047_p5), %s3418_s30, 1024  }
 0x301   : > { %4259 = vsyncadd (!%p4047_p5), %s3418_s30, 4294966272  ;;  %s9208_s27 = sld [smem:[#allocation24_spill]]  ;;  %s9209_s24 = sld [smem:[#allocation20_spill]] }
 0x302   : > { %s9210_s25 = sld [smem:[#allocation21_spill]]  ;;  %s9211_s26 = sld [smem:[#allocation25_spill]] }
 0x307   : > { %p21_p0 = scmp.ge.s32.totalorder %s9208_s27, 4  }
 0x309   :  { %23 = sbr.rel (!%p21_p0) target bundleno = 16 (0x10), region = 130 }
 0x310   :  { %3423 = vsyncpa [#allocation3], 1 }
 0x311   :  { %3425 = vsyncpa [#allocation3 + $0x1], 1 }
 0x312   :  { %3426 = vsyncpa [#allocation4], 1 }
 0x313   :  { %3428 = vsyncpa [#allocation4 + $0x1], 1 }
 0x314   :  { %3429 = vsyncpa [#allocation6], 1 }
 0x315   :  { %3430 = vsyncpa [#allocation9], 1 }
 0x316   :  { %3431 = vsyncpa [#allocation12], 1 }

</bundles_post_ra>
